<compile_context>
chip_gen: v5e
topology: v5e:2x2
jax: 0.10.0
libtpu: 0.0.40
codegen_flags: <defaults>
</compile_context>

<pallas_src>
import functools

import numpy as np
import jax
import jax.numpy as jnp
from jax.experimental import pallas as pl
from jax.experimental.pallas import tpu as pltpu

ACTION_DIM = 4          # stand-in for common.OBSERVATION_SPACE_SHAPE_MAP.shape[-1]
NUM_CELLS = 256
OBS_DIM = 87
IMG_FEATS = 100
CONV_STACK = ((3, 5), (5, 10), (10, 4))     # (cin, cout) of conv1..conv3
# NormalParamExtractor default: scale = clamp_min(softplus(x + inv_softplus(1.0)), 1e-4)
SOFTPLUS_BIAS = 0.5413248546129181
SCALE_LB = 1e-4


def _pool_selection(batch, h, w):
    """0/1 decimation matrix for one (3x3 VALID conv -> MaxPool2d(2)) stage.

    The conv output lives on the flat [batch*h*w] grid of its *input* (stride w
    per row, stride h*w per batch).  After the 4-way shifted max, the pooled
    value for (b, ip, jp) sits at flat index b*h*w + 2*ip*w + 2*jp.  The matrix
    gathers those positions into PyTorch order (b, ip, jp) and crops everything
    else (invalid / wrapped positions).
    """
    oh, ow = h - 2, w - 2
    # TODO(synk): odd conv-output sizes (PyTorch floor-mode pooling) not handled.
    assert oh % 2 == 0 and ow % 2 == 0, (oh, ow)
    ph, pw = oh // 2, ow // 2
    lm = batch * h * w - 3 * w - 3          # length of the 4-way-max tensor
    sel = np.zeros((lm, batch * ph * pw), np.float32)
    for b in range(batch):
        for ip in range(ph):
            for jp in range(pw):
                sel[b * h * w + 2 * ip * w + 2 * jp, (b * ph + ip) * pw + jp] = 1.0
    return sel, ph, pw


# ------------------------------ fused kernel --------------------------------

def _actor_kernel(
    obs_ref, x0_ref,
    w1t_ref, b1c_ref, w2t_ref, b2c_ref, w3t_ref, b3c_ref,
    s1_ref, s2_ref, s3_ref,
    wimg_ref, bimg_ref,
    w1o_ref, w1i_ref, fb1_ref, w2_ref, fb2_ref, w3_ref, fb3_ref,
    out_ref,
    *, batch, h0, w0):
    f32 = jnp.float32

    def conv_relu_flat(x_slice, w_taps_ref, b_ref, h, w):
        """3x3 VALID conv + bias + ReLU in flat channel-major layout.

        x_slice(off, length) -> [cin, length] lane-slice of the flat [cin, B*h*w]
        activations.  Returns ([cout, lv], lv) with lv = B*h*w - (2*w + 2).
        """
        lv = batch * h * w - (2 * w + 2)
        acc = None
        for kh in range(3):
            for kw in range(3):
                xs = x_slice(kh * w + kw, lv)                 # [cin, lv]
                wt = w_taps_ref[kh * 3 + kw]                  # [cout, cin]
                t = jnp.dot(wt, xs, preferred_element_type=f32)
                acc = t if acc is None else acc + t
        return jnp.maximum(acc + b_ref[...], 0.0), lv         # [cout, lv]

    def maxpool_flat(y, sel_ref, w, lv):
        """2x2/stride-2 max pool + crop + re-flatten for the next layer."""
        lm = lv - (w + 1)
        m = jnp.maximum(y[:, 0:lm], y[:, 1:lm + 1])
        m = jnp.maximum(m, y[:, w:w + lm])
        m = jnp.maximum(m, y[:, w + 1:w + 1 + lm])            # [cout, lm]
        # One 0/1 selection matmul: crop valid region, decimate by 2, flatten.
        return jnp.dot(m, sel_ref[...], preferred_element_type=f32)

    # static spatial chain
    h1, w1 = (h0 - 2) // 2, (w0 - 2) // 2
    h2, w2 = (h1 - 2) // 2, (w1 - 2) // 2
    h3, w3 = (h2 - 2) // 2, (w2 - 2) // 2

    # ---- conv / pool stack (channel-major flat layout, all MXU matmuls) ----
    y1, lv1 = conv_relu_flat(lambda o, l: x0_ref[:, o:o + l], w1t_ref, b1c_ref, h0, w0)
    x1 = maxpool_flat(y1, s1_ref, w0, lv1)                    # [c1, B*h1*w1]
    y2, lv2 = conv_relu_flat(lambda o, l: x1[:, o:o + l], w2t_ref, b2c_ref, h1, w1)
    x2 = maxpool_flat(y2, s2_ref, w1, lv2)                    # [c2, B*h2*w2]
    y3, lv3 = conv_relu_flat(lambda o, l: x2[:, o:o + l], w3t_ref, b3c_ref, h2, w2)
    x3 = maxpool_flat(y3, s3_ref, w2, lv3)                    # [c3, B*h3*w3]

    # ---- torch.flatten(x, 1) in (c, h, w) order + fc_image + ReLU ----
    s = h3 * w3
    cout3 = x3.shape[0]
    rows = []
    for b in range(batch):
        rows.append(jnp.concatenate(
            [x3[c:c + 1, b * s:(b + 1) * s] for c in range(cout3)], axis=1))
    flat = jnp.concatenate(rows, axis=0)                      # [B, cout3*s]
    img = jnp.maximum(
        jnp.dot(flat, wimg_ref[...], preferred_element_type=f32) + bimg_ref[...],
        0.0)                                                  # [B, IMG_FEATS]

    # ---- head: fc1 (obs/img split => no concat), fc2, fc3, tanh ----
    h_1 = jnp.tanh(
        jnp.dot(obs_ref[...], w1o_ref[...], preferred_element_type=f32)
        + jnp.dot(img, w1i_ref[...], preferred_element_type=f32)
        + fb1_ref[...])
    h_2 = jnp.tanh(jnp.dot(h_1, w2_ref[...], preferred_element_type=f32) + fb2_ref[...])
    z = jnp.tanh(jnp.dot(h_2, w3_ref[...], preferred_element_type=f32) + fb3_ref[...])

    # ---- NormalParamExtractor: [loc | clamp(softplus(x + bias), 1e-4)] ----
    y = z + SOFTPLUS_BIAS
    softplus = jnp.maximum(y, 0.0) + jnp.log(1.0 + jnp.exp(-jnp.abs(y)))
    scale = jnp.maximum(softplus, SCALE_LB)
    col = jax.lax.broadcasted_iota(jnp.int32, z.shape, 1)
    out_ref[...] = jnp.where(col < ACTION_DIM, z, scale)


# --------------------------------- wrapper -----------------------------------

def actor_forward(params, observation, game_map):
    # TODO(synk): the original forward indexes a single tensor as inp[:, :87] and
    # inp[:, 88], which cannot simultaneously yield a [B, 87] feature vector and a
    # [B, 3, H, W] image; the split is therefore done at the wrapper boundary.
    bsz, obs_dim = observation.shape
    assert obs_dim == OBS_DIM
    _, cin0, h0, w0 = game_map.shape
    assert cin0 == CONV_STACK[0][0]

    s1, h1, w1 = _pool_selection(bsz, h0, w0)
    s2, h2, w2 = _pool_selection(bsz, h1, w1)
    s3, h3, w3 = _pool_selection(bsz, h2, w2)
    c3out = CONV_STACK[2][1]
    flat_dim = c3out * h3 * w3
    assert params["fc_image_w"].shape[0] == flat_dim

    # channel-major flattened image: [cin, B*H*W]
    x0 = jnp.transpose(game_map, (1, 0, 2, 3)).reshape(cin0, bsz * h0 * w0)

    def taps(w):  # [cout, cin, 3, 3] -> [9, cout, cin], tap index = kh*3 + kw
        return jnp.transpose(w, (2, 3, 0, 1)).reshape(9, w.shape[0], w.shape[1])

    w1_obs = params["fc1_w"][:OBS_DIM]          # [87, 256]
    w1_img = params["fc1_w"][OBS_DIM:]          # [100, 256]

    vmem = lambda: pl.BlockSpec(memory_space=pltpu.MemorySpace.VMEM)

    out = pl.pallas_call(
        functools.partial(_actor_kernel, batch=bsz, h0=h0, w0=w0),
        out_shape=jax.ShapeDtypeStruct((bsz, 2 * ACTION_DIM), jnp.float32),
        in_specs=[vmem() for _ in range(20)],
        out_specs=vmem(),
    )(observation, x0,
      taps(params["conv1_w"]), params["conv1_b"][:, None],
      taps(params["conv2_w"]), params["conv2_b"][:, None],
      taps(params["conv3_w"]), params["conv3_b"][:, None],
      jnp.asarray(s1), jnp.asarray(s2), jnp.asarray(s3),
      params["fc_image_w"], params["fc_image_b"],
      w1_obs, w1_img, params["fc1_b"],
      params["fc2_w"], params["fc2_b"],
      params["fc3_w"], params["fc3_b"])
    return out[:, :ACTION_DIM], out[:, ACTION_DIM:]


# ---------------------------- pure-JAX reference -----------------------------

def actor_reference(params, observation, game_map):
    hp = jax.lax.Precision.HIGHEST
    x = game_map
    for i in range(1, 4):
        w = params[f"conv{i}_w"]
        b = params[f"conv{i}_b"]
        x = jax.lax.conv_general_dilated(
            x, w, window_strides=(1, 1), padding="VALID",
            dimension_numbers=("NCHW", "OIHW", "NCHW"), precision=hp)
        x = jax.nn.relu(x + b[None, :, None, None])
        x = jax.lax.reduce_window(x, -jnp.inf, jax.lax.max,
                                  (1, 1, 2, 2), (1, 1, 2, 2), "VALID")
    x = x.reshape(x.shape[0], -1)
    img = jax.nn.relu(jnp.dot(x, params["fc_image_w"], precision=hp)
                      + params["fc_image_b"])
    xx = jnp.concatenate([observation, img], axis=1)
    z = jnp.tanh(jnp.dot(xx, params["fc1_w"], precision=hp) + params["fc1_b"])
    z = jnp.tanh(jnp.dot(z, params["fc2_w"], precision=hp) + params["fc2_b"])
    z = jnp.tanh(jnp.dot(z, params["fc3_w"], precision=hp) + params["fc3_b"])
    loc = z[:, :ACTION_DIM]
    scale = jnp.maximum(jax.nn.softplus(z[:, ACTION_DIM:] + SOFTPLUS_BIAS), SCALE_LB)
    return loc, scale


# --------------------------- deterministic init ------------------------------

def _linear_init(key, fan_in, fan_out):
    kw, kb = jax.random.split(key)
    bound = 1.0 / float(fan_in) ** 0.5
    w = jax.random.uniform(kw, (fan_in, fan_out), jnp.float32, -bound, bound)
    b = jax.random.uniform(kb, (1, fan_out), jnp.float32, -bound, bound)
    return w, b


def _conv_init(key, cin, cout, k=3):
    kw, kb = jax.random.split(key)
    bound = 1.0 / float(cin * k * k) ** 0.5
    w = jax.random.uniform(kw, (cout, cin, k, k), jnp.float32, -bound, bound)
    b = jax.random.uniform(kb, (cout,), jnp.float32, -bound, bound)
    return w, b


def init_params(key, flat_dim):
    keys = jax.random.split(key, 7)
    p = {}
    p["conv1_w"], p["conv1_b"] = _conv_init(keys[0], 3, 5)
    p["conv2_w"], p["conv2_b"] = _conv_init(keys[1], 5, 10)
    p["conv3_w"], p["conv3_b"] = _conv_init(keys[2], 10, 4)
    p["fc_image_w"], p["fc_image_b"] = _linear_init(keys[3], flat_dim, IMG_FEATS)
    p["fc1_w"], p["fc1_b"] = _linear_init(keys[4], OBS_DIM + IMG_FEATS, NUM_CELLS)
    p["fc2_w"], p["fc2_b"] = _linear_init(keys[5], NUM_CELLS, NUM_CELLS)
    p["fc3_w"], p["fc3_b"] = _linear_init(keys[6], NUM_CELLS, 2 * ACTION_DIM)
    return p


if __name__ == "__main__":
    B, H, W = 2, 30, 30            # 30 -> conv/pool stack -> 4 x 2 x 2 = 16 flat feats
    key = jax.random.PRNGKey(0)
    k_obs, k_map = jax.random.split(key)
    observation = jax.random.normal(k_obs, (B, OBS_DIM), dtype=jnp.float32)
    game_map = jax.random.normal(k_map, (B, 3, H, W), dtype=jnp.float32)

    params = init_params(jax.random.PRNGKey(1), flat_dim=4 * 2 * 2)

    fwd = jax.jit(functools.partial(actor_forward, params))
    loc, scale = fwd(observation, game_map)
    jax.block_until_ready((loc, scale))

    assert loc.shape == (B, ACTION_DIM) and scale.shape == (B, ACTION_DIM)
    assert bool(jnp.all(scale >= SCALE_LB))
    assert bool(jnp.all(jnp.isfinite(loc))) and bool(jnp.all(jnp.isfinite(scale)))

    # numeric check against a pure-JAX reference (loose tolerance: MXU default
    # precision inside the kernel vs HIGHEST-precision XLA reference)
    loc_ref, scale_ref = actor_reference(params, observation, game_map)
    assert bool(jnp.allclose(loc, loc_ref, atol=5e-2, rtol=5e-2)), (loc, loc_ref)
    assert bool(jnp.allclose(scale, scale_ref, atol=5e-2, rtol=5e-2)), (scale, scale_ref)

    print("KERNEL_OK")
</pallas_src>

<mosaic_0001>
module attributes {stable_mosaic.version = 11 : i64} {
  func.func @_actor_kernel(%arg0: memref<2x87xf32, #tpu.memory_space<vmem>>, %arg1: memref<3x1800xf32, #tpu.memory_space<vmem>>, %arg2: memref<9x5x3xf32, #tpu.memory_space<vmem>>, %arg3: memref<5x1xf32, #tpu.memory_space<vmem>>, %arg4: memref<9x10x5xf32, #tpu.memory_space<vmem>>, %arg5: memref<10x1xf32, #tpu.memory_space<vmem>>, %arg6: memref<9x4x10xf32, #tpu.memory_space<vmem>>, %arg7: memref<4x1xf32, #tpu.memory_space<vmem>>, %arg8: memref<1707x392xf32, #tpu.memory_space<vmem>>, %arg9: memref<347x72xf32, #tpu.memory_space<vmem>>, %arg10: memref<51x8xf32, #tpu.memory_space<vmem>>, %arg11: memref<16x100xf32, #tpu.memory_space<vmem>>, %arg12: memref<1x100xf32, #tpu.memory_space<vmem>>, %arg13: memref<87x256xf32, #tpu.memory_space<vmem>>, %arg14: memref<100x256xf32, #tpu.memory_space<vmem>>, %arg15: memref<1x256xf32, #tpu.memory_space<vmem>>, %arg16: memref<256x256xf32, #tpu.memory_space<vmem>>, %arg17: memref<1x256xf32, #tpu.memory_space<vmem>>, %arg18: memref<256x8xf32, #tpu.memory_space<vmem>>, %arg19: memref<1x8xf32, #tpu.memory_space<vmem>>, %arg20: memref<2x8xf32, #tpu.memory_space<vmem>>) attributes {dimension_semantics = [], scalar_prefetch = 0 : i64, scratch_operands = 0 : i64, tpu.core_type = #tpu.core_type<tc>} {
    %c0 = arith.constant 0 : index
    %c0_0 = arith.constant 0 : index
    %0 = vector.load %arg1[%c0, %c0_0] : memref<3x1800xf32, #tpu.memory_space<vmem>>, vector<3x1738xf32>
    %c0_1 = arith.constant 0 : index
    %c0_2 = arith.constant 0 : index
    %c0_3 = arith.constant 0 : index
    %1 = vector.load %arg2[%c0_1, %c0_2, %c0_3] : memref<9x5x3xf32, #tpu.memory_space<vmem>>, vector<1x5x3xf32>
    %2 = vector.shape_cast %1 : vector<1x5x3xf32> to vector<5x3xf32>
    %cst = arith.constant dense<0.000000e+00> : vector<5x1738xf32>
    %3 = tpu.matmul %2, %0, %cst {dimension_numbers = #tpu.dot_dimension_numbers<[1], [0], [0], [1], [0, 0, 1, 1], [], []>} : vector<5x3xf32>, vector<3x1738xf32>, vector<5x1738xf32> -> vector<5x1738xf32>
    %c0_4 = arith.constant 0 : index
    %c1 = arith.constant 1 : index
    %4 = vector.load %arg1[%c0_4, %c1] : memref<3x1800xf32, #tpu.memory_space<vmem>>, vector<3x1738xf32>
    %c1_5 = arith.constant 1 : index
    %c0_6 = arith.constant 0 : index
    %c0_7 = arith.constant 0 : index
    %5 = vector.load %arg2[%c1_5, %c0_6, %c0_7] : memref<9x5x3xf32, #tpu.memory_space<vmem>>, vector<1x5x3xf32>
    %6 = vector.shape_cast %5 : vector<1x5x3xf32> to vector<5x3xf32>
    %cst_8 = arith.constant dense<0.000000e+00> : vector<5x1738xf32>
    %7 = tpu.matmul %6, %4, %cst_8 {dimension_numbers = #tpu.dot_dimension_numbers<[1], [0], [0], [1], [0, 0, 1, 1], [], []>} : vector<5x3xf32>, vector<3x1738xf32>, vector<5x1738xf32> -> vector<5x1738xf32>
    %8 = arith.addf %3, %7 : vector<5x1738xf32>
    %c0_9 = arith.constant 0 : index
    %c2 = arith.constant 2 : index
    %9 = vector.load %arg1[%c0_9, %c2] : memref<3x1800xf32, #tpu.memory_space<vmem>>, vector<3x1738xf32>
    %c2_10 = arith.constant 2 : index
    %c0_11 = arith.constant 0 : index
    %c0_12 = arith.constant 0 : index
    %10 = vector.load %arg2[%c2_10, %c0_11, %c0_12] : memref<9x5x3xf32, #tpu.memory_space<vmem>>, vector<1x5x3xf32>
    %11 = vector.shape_cast %10 : vector<1x5x3xf32> to vector<5x3xf32>
    %cst_13 = arith.constant dense<0.000000e+00> : vector<5x1738xf32>
    %12 = tpu.matmul %11, %9, %cst_13 {dimension_numbers = #tpu.dot_dimension_numbers<[1], [0], [0], [1], [0, 0, 1, 1], [], []>} : vector<5x3xf32>, vector<3x1738xf32>, vector<5x1738xf32> -> vector<5x1738xf32>
    %13 = arith.addf %8, %12 : vector<5x1738xf32>
    %c0_14 = arith.constant 0 : index
    %c30 = arith.constant 30 : index
    %14 = vector.load %arg1[%c0_14, %c30] : memref<3x1800xf32, #tpu.memory_space<vmem>>, vector<3x1738xf32>
    %c3 = arith.constant 3 : index
    %c0_15 = arith.constant 0 : index
    %c0_16 = arith.constant 0 : index
    %15 = vector.load %arg2[%c3, %c0_15, %c0_16] : memref<9x5x3xf32, #tpu.memory_space<vmem>>, vector<1x5x3xf32>
    %16 = vector.shape_cast %15 : vector<1x5x3xf32> to vector<5x3xf32>
    %cst_17 = arith.constant dense<0.000000e+00> : vector<5x1738xf32>
    %17 = tpu.matmul %16, %14, %cst_17 {dimension_numbers = #tpu.dot_dimension_numbers<[1], [0], [0], [1], [0, 0, 1, 1], [], []>} : vector<5x3xf32>, vector<3x1738xf32>, vector<5x1738xf32> -> vector<5x1738xf32>
    %18 = arith.addf %13, %17 : vector<5x1738xf32>
    %c0_18 = arith.constant 0 : index
    %c31 = arith.constant 31 : index
    %19 = vector.load %arg1[%c0_18, %c31] : memref<3x1800xf32, #tpu.memory_space<vmem>>, vector<3x1738xf32>
    %c4 = arith.constant 4 : index
    %c0_19 = arith.constant 0 : index
    %c0_20 = arith.constant 0 : index
    %20 = vector.load %arg2[%c4, %c0_19, %c0_20] : memref<9x5x3xf32, #tpu.memory_space<vmem>>, vector<1x5x3xf32>
    %21 = vector.shape_cast %20 : vector<1x5x3xf32> to vector<5x3xf32>
    %cst_21 = arith.constant dense<0.000000e+00> : vector<5x1738xf32>
    %22 = tpu.matmul %21, %19, %cst_21 {dimension_numbers = #tpu.dot_dimension_numbers<[1], [0], [0], [1], [0, 0, 1, 1], [], []>} : vector<5x3xf32>, vector<3x1738xf32>, vector<5x1738xf32> -> vector<5x1738xf32>
    %23 = arith.addf %18, %22 : vector<5x1738xf32>
    %c0_22 = arith.constant 0 : index
    %c32 = arith.constant 32 : index
    %24 = vector.load %arg1[%c0_22, %c32] : memref<3x1800xf32, #tpu.memory_space<vmem>>, vector<3x1738xf32>
    %c5 = arith.constant 5 : index
    %c0_23 = arith.constant 0 : index
    %c0_24 = arith.constant 0 : index
    %25 = vector.load %arg2[%c5, %c0_23, %c0_24] : memref<9x5x3xf32, #tpu.memory_space<vmem>>, vector<1x5x3xf32>
    %26 = vector.shape_cast %25 : vector<1x5x3xf32> to vector<5x3xf32>
    %cst_25 = arith.constant dense<0.000000e+00> : vector<5x1738xf32>
    %27 = tpu.matmul %26, %24, %cst_25 {dimension_numbers = #tpu.dot_dimension_numbers<[1], [0], [0], [1], [0, 0, 1, 1], [], []>} : vector<5x3xf32>, vector<3x1738xf32>, vector<5x1738xf32> -> vector<5x1738xf32>
    %28 = arith.addf %23, %27 : vector<5x1738xf32>
    %c0_26 = arith.constant 0 : index
    %c60 = arith.constant 60 : index
    %29 = vector.load %arg1[%c0_26, %c60] : memref<3x1800xf32, #tpu.memory_space<vmem>>, vector<3x1738xf32>
    %c6 = arith.constant 6 : index
    %c0_27 = arith.constant 0 : index
    %c0_28 = arith.constant 0 : index
    %30 = vector.load %arg2[%c6, %c0_27, %c0_28] : memref<9x5x3xf32, #tpu.memory_space<vmem>>, vector<1x5x3xf32>
    %31 = vector.shape_cast %30 : vector<1x5x3xf32> to vector<5x3xf32>
    %cst_29 = arith.constant dense<0.000000e+00> : vector<5x1738xf32>
    %32 = tpu.matmul %31, %29, %cst_29 {dimension_numbers = #tpu.dot_dimension_numbers<[1], [0], [0], [1], [0, 0, 1, 1], [], []>} : vector<5x3xf32>, vector<3x1738xf32>, vector<5x1738xf32> -> vector<5x1738xf32>
    %33 = arith.addf %28, %32 : vector<5x1738xf32>
    %c0_30 = arith.constant 0 : index
    %c61 = arith.constant 61 : index
    %34 = vector.load %arg1[%c0_30, %c61] : memref<3x1800xf32, #tpu.memory_space<vmem>>, vector<3x1738xf32>
    %c7 = arith.constant 7 : index
    %c0_31 = arith.constant 0 : index
    %c0_32 = arith.constant 0 : index
    %35 = vector.load %arg2[%c7, %c0_31, %c0_32] : memref<9x5x3xf32, #tpu.memory_space<vmem>>, vector<1x5x3xf32>
    %36 = vector.shape_cast %35 : vector<1x5x3xf32> to vector<5x3xf32>
    %cst_33 = arith.constant dense<0.000000e+00> : vector<5x1738xf32>
    %37 = tpu.matmul %36, %34, %cst_33 {dimension_numbers = #tpu.dot_dimension_numbers<[1], [0], [0], [1], [0, 0, 1, 1], [], []>} : vector<5x3xf32>, vector<3x1738xf32>, vector<5x1738xf32> -> vector<5x1738xf32>
    %38 = arith.addf %33, %37 : vector<5x1738xf32>
    %c0_34 = arith.constant 0 : index
    %c62 = arith.constant 62 : index
    %39 = vector.load %arg1[%c0_34, %c62] : memref<3x1800xf32, #tpu.memory_space<vmem>>, vector<3x1738xf32>
    %c8 = arith.constant 8 : index
    %c0_35 = arith.constant 0 : index
    %c0_36 = arith.constant 0 : index
    %40 = vector.load %arg2[%c8, %c0_35, %c0_36] : memref<9x5x3xf32, #tpu.memory_space<vmem>>, vector<1x5x3xf32>
    %41 = vector.shape_cast %40 : vector<1x5x3xf32> to vector<5x3xf32>
    %cst_37 = arith.constant dense<0.000000e+00> : vector<5x1738xf32>
    %42 = tpu.matmul %41, %39, %cst_37 {dimension_numbers = #tpu.dot_dimension_numbers<[1], [0], [0], [1], [0, 0, 1, 1], [], []>} : vector<5x3xf32>, vector<3x1738xf32>, vector<5x1738xf32> -> vector<5x1738xf32>
    %43 = arith.addf %38, %42 : vector<5x1738xf32>
    %c0_38 = arith.constant 0 : index
    %c0_39 = arith.constant 0 : index
    %44 = vector.load %arg3[%c0_38, %c0_39] : memref<5x1xf32, #tpu.memory_space<vmem>>, vector<5x1xf32>
    %45 = vector.broadcast %44 : vector<5x1xf32> to vector<5x1738xf32>
    %46 = arith.addf %43, %45 : vector<5x1738xf32>
    %cst_40 = arith.constant 0.000000e+00 : f32
    %47 = vector.broadcast %cst_40 : f32 to vector<5x1738xf32>
    %48 = arith.maximumf %46, %47 : vector<5x1738xf32>
    %49 = vector.extract_strided_slice %48 {offsets = [0, 0], sizes = [5, 1707], strides = [1, 1]} : vector<5x1738xf32> to vector<5x1707xf32>
    %50 = vector.extract_strided_slice %48 {offsets = [0, 1], sizes = [5, 1707], strides = [1, 1]} : vector<5x1738xf32> to vector<5x1707xf32>
    %51 = arith.maximumf %49, %50 : vector<5x1707xf32>
    %52 = vector.extract_strided_slice %48 {offsets = [0, 30], sizes = [5, 1707], strides = [1, 1]} : vector<5x1738xf32> to vector<5x1707xf32>
    %53 = arith.maximumf %51, %52 : vector<5x1707xf32>
    %54 = vector.extract_strided_slice %48 {offsets = [0, 31], sizes = [5, 1707], strides = [1, 1]} : vector<5x1738xf32> to vector<5x1707xf32>
    %55 = arith.maximumf %53, %54 : vector<5x1707xf32>
    %c0_41 = arith.constant 0 : index
    %c0_42 = arith.constant 0 : index
    %56 = vector.load %arg8[%c0_41, %c0_42] : memref<1707x392xf32, #tpu.memory_space<vmem>>, vector<1707x392xf32>
    %cst_43 = arith.constant dense<0.000000e+00> : vector<5x392xf32>
    %57 = tpu.matmul %55, %56, %cst_43 {dimension_numbers = #tpu.dot_dimension_numbers<[1], [0], [0], [1], [0, 0, 1, 1], [], []>} : vector<5x1707xf32>, vector<1707x392xf32>, vector<5x392xf32> -> vector<5x392xf32>
    %58 = vector.extract_strided_slice %57 {offsets = [0, 0], sizes = [5, 362], strides = [1, 1]} : vector<5x392xf32> to vector<5x362xf32>
    %c0_44 = arith.constant 0 : index
    %c0_45 = arith.constant 0 : index
    %c0_46 = arith.constant 0 : index
    %59 = vector.load %arg4[%c0_44, %c0_45, %c0_46] : memref<9x10x5xf32, #tpu.memory_space<vmem>>, vector<1x10x5xf32>
    %60 = vector.shape_cast %59 : vector<1x10x5xf32> to vector<10x5xf32>
    %cst_47 = arith.constant dense<0.000000e+00> : vector<10x362xf32>
    %61 = tpu.matmul %60, %58, %cst_47 {dimension_numbers = #tpu.dot_dimension_numbers<[1], [0], [0], [1], [0, 0, 1, 1], [], []>} : vector<10x5xf32>, vector<5x362xf32>, vector<10x362xf32> -> vector<10x362xf32>
    %62 = vector.extract_strided_slice %57 {offsets = [0, 1], sizes = [5, 362], strides = [1, 1]} : vector<5x392xf32> to vector<5x362xf32>
    %c1_48 = arith.constant 1 : index
    %c0_49 = arith.constant 0 : index
    %c0_50 = arith.constant 0 : index
    %63 = vector.load %arg4[%c1_48, %c0_49, %c0_50] : memref<9x10x5xf32, #tpu.memory_space<vmem>>, vector<1x10x5xf32>
    %64 = vector.shape_cast %63 : vector<1x10x5xf32> to vector<10x5xf32>
    %cst_51 = arith.constant dense<0.000000e+00> : vector<10x362xf32>
    %65 = tpu.matmul %64, %62, %cst_51 {dimension_numbers = #tpu.dot_dimension_numbers<[1], [0], [0], [1], [0, 0, 1, 1], [], []>} : vector<10x5xf32>, vector<5x362xf32>, vector<10x362xf32> -> vector<10x362xf32>
    %66 = arith.addf %61, %65 : vector<10x362xf32>
    %67 = vector.extract_strided_slice %57 {offsets = [0, 2], sizes = [5, 362], strides = [1, 1]} : vector<5x392xf32> to vector<5x362xf32>
    %c2_52 = arith.constant 2 : index
    %c0_53 = arith.constant 0 : index
    %c0_54 = arith.constant 0 : index
    %68 = vector.load %arg4[%c2_52, %c0_53, %c0_54] : memref<9x10x5xf32, #tpu.memory_space<vmem>>, vector<1x10x5xf32>
    %69 = vector.shape_cast %68 : vector<1x10x5xf32> to vector<10x5xf32>
    %cst_55 = arith.constant dense<0.000000e+00> : vector<10x362xf32>
    %70 = tpu.matmul %69, %67, %cst_55 {dimension_numbers = #tpu.dot_dimension_numbers<[1], [0], [0], [1], [0, 0, 1, 1], [], []>} : vector<10x5xf32>, vector<5x362xf32>, vector<10x362xf32> -> vector<10x362xf32>
    %71 = arith.addf %66, %70 : vector<10x362xf32>
    %72 = vector.extract_strided_slice %57 {offsets = [0, 14], sizes = [5, 362], strides = [1, 1]} : vector<5x392xf32> to vector<5x362xf32>
    %c3_56 = arith.constant 3 : index
    %c0_57 = arith.constant 0 : index
    %c0_58 = arith.constant 0 : index
    %73 = vector.load %arg4[%c3_56, %c0_57, %c0_58] : memref<9x10x5xf32, #tpu.memory_space<vmem>>, vector<1x10x5xf32>
    %74 = vector.shape_cast %73 : vector<1x10x5xf32> to vector<10x5xf32>
    %cst_59 = arith.constant dense<0.000000e+00> : vector<10x362xf32>
    %75 = tpu.matmul %74, %72, %cst_59 {dimension_numbers = #tpu.dot_dimension_numbers<[1], [0], [0], [1], [0, 0, 1, 1], [], []>} : vector<10x5xf32>, vector<5x362xf32>, vector<10x362xf32> -> vector<10x362xf32>
    %76 = arith.addf %71, %75 : vector<10x362xf32>
    %77 = vector.extract_strided_slice %57 {offsets = [0, 15], sizes = [5, 362], strides = [1, 1]} : vector<5x392xf32> to vector<5x362xf32>
    %c4_60 = arith.constant 4 : index
    %c0_61 = arith.constant 0 : index
    %c0_62 = arith.constant 0 : index
    %78 = vector.load %arg4[%c4_60, %c0_61, %c0_62] : memref<9x10x5xf32, #tpu.memory_space<vmem>>, vector<1x10x5xf32>
    %79 = vector.shape_cast %78 : vector<1x10x5xf32> to vector<10x5xf32>
    %cst_63 = arith.constant dense<0.000000e+00> : vector<10x362xf32>
    %80 = tpu.matmul %79, %77, %cst_63 {dimension_numbers = #tpu.dot_dimension_numbers<[1], [0], [0], [1], [0, 0, 1, 1], [], []>} : vector<10x5xf32>, vector<5x362xf32>, vector<10x362xf32> -> vector<10x362xf32>
    %81 = arith.addf %76, %80 : vector<10x362xf32>
    %82 = vector.extract_strided_slice %57 {offsets = [0, 16], sizes = [5, 362], strides = [1, 1]} : vector<5x392xf32> to vector<5x362xf32>
    %c5_64 = arith.constant 5 : index
    %c0_65 = arith.constant 0 : index
    %c0_66 = arith.constant 0 : index
    %83 = vector.load %arg4[%c5_64, %c0_65, %c0_66] : memref<9x10x5xf32, #tpu.memory_space<vmem>>, vector<1x10x5xf32>
    %84 = vector.shape_cast %83 : vector<1x10x5xf32> to vector<10x5xf32>
    %cst_67 = arith.constant dense<0.000000e+00> : vector<10x362xf32>
    %85 = tpu.matmul %84, %82, %cst_67 {dimension_numbers = #tpu.dot_dimension_numbers<[1], [0], [0], [1], [0, 0, 1, 1], [], []>} : vector<10x5xf32>, vector<5x362xf32>, vector<10x362xf32> -> vector<10x362xf32>
    %86 = arith.addf %81, %85 : vector<10x362xf32>
    %87 = vector.extract_strided_slice %57 {offsets = [0, 28], sizes = [5, 362], strides = [1, 1]} : vector<5x392xf32> to vector<5x362xf32>
    %c6_68 = arith.constant 6 : index
    %c0_69 = arith.constant 0 : index
    %c0_70 = arith.constant 0 : index
    %88 = vector.load %arg4[%c6_68, %c0_69, %c0_70] : memref<9x10x5xf32, #tpu.memory_space<vmem>>, vector<1x10x5xf32>
    %89 = vector.shape_cast %88 : vector<1x10x5xf32> to vector<10x5xf32>
    %cst_71 = arith.constant dense<0.000000e+00> : vector<10x362xf32>
    %90 = tpu.matmul %89, %87, %cst_71 {dimension_numbers = #tpu.dot_dimension_numbers<[1], [0], [0], [1], [0, 0, 1, 1], [], []>} : vector<10x5xf32>, vector<5x362xf32>, vector<10x362xf32> -> vector<10x362xf32>
    %91 = arith.addf %86, %90 : vector<10x362xf32>
    %92 = vector.extract_strided_slice %57 {offsets = [0, 29], sizes = [5, 362], strides = [1, 1]} : vector<5x392xf32> to vector<5x362xf32>
    %c7_72 = arith.constant 7 : index
    %c0_73 = arith.constant 0 : index
    %c0_74 = arith.constant 0 : index
    %93 = vector.load %arg4[%c7_72, %c0_73, %c0_74] : memref<9x10x5xf32, #tpu.memory_space<vmem>>, vector<1x10x5xf32>
    %94 = vector.shape_cast %93 : vector<1x10x5xf32> to vector<10x5xf32>
    %cst_75 = arith.constant dense<0.000000e+00> : vector<10x362xf32>
    %95 = tpu.matmul %94, %92, %cst_75 {dimension_numbers = #tpu.dot_dimension_numbers<[1], [0], [0], [1], [0, 0, 1, 1], [], []>} : vector<10x5xf32>, vector<5x362xf32>, vector<10x362xf32> -> vector<10x362xf32>
    %96 = arith.addf %91, %95 : vector<10x362xf32>
    %97 = vector.extract_strided_slice %57 {offsets = [0, 30], sizes = [5, 362], strides = [1, 1]} : vector<5x392xf32> to vector<5x362xf32>
    %c8_76 = arith.constant 8 : index
    %c0_77 = arith.constant 0 : index
    %c0_78 = arith.constant 0 : index
    %98 = vector.load %arg4[%c8_76, %c0_77, %c0_78] : memref<9x10x5xf32, #tpu.memory_space<vmem>>, vector<1x10x5xf32>
    %99 = vector.shape_cast %98 : vector<1x10x5xf32> to vector<10x5xf32>
    %cst_79 = arith.constant dense<0.000000e+00> : vector<10x362xf32>
    %100 = tpu.matmul %99, %97, %cst_79 {dimension_numbers = #tpu.dot_dimension_numbers<[1], [0], [0], [1], [0, 0, 1, 1], [], []>} : vector<10x5xf32>, vector<5x362xf32>, vector<10x362xf32> -> vector<10x362xf32>
    %101 = arith.addf %96, %100 : vector<10x362xf32>
    %c0_80 = arith.constant 0 : index
    %c0_81 = arith.constant 0 : index
    %102 = vector.load %arg5[%c0_80, %c0_81] : memref<10x1xf32, #tpu.memory_space<vmem>>, vector<10x1xf32>
    %103 = vector.broadcast %102 : vector<10x1xf32> to vector<10x362xf32>
    %104 = arith.addf %101, %103 : vector<10x362xf32>
    %cst_82 = arith.constant 0.000000e+00 : f32
    %105 = vector.broadcast %cst_82 : f32 to vector<10x362xf32>
    %106 = arith.maximumf %104, %105 : vector<10x362xf32>
    %107 = vector.extract_strided_slice %106 {offsets = [0, 0], sizes = [10, 347], strides = [1, 1]} : vector<10x362xf32> to vector<10x347xf32>
    %108 = vector.extract_strided_slice %106 {offsets = [0, 1], sizes = [10, 347], strides = [1, 1]} : vector<10x362xf32> to vector<10x347xf32>
    %109 = arith.maximumf %107, %108 : vector<10x347xf32>
    %110 = vector.extract_strided_slice %106 {offsets = [0, 14], sizes = [10, 347], strides = [1, 1]} : vector<10x362xf32> to vector<10x347xf32>
    %111 = arith.maximumf %109, %110 : vector<10x347xf32>
    %112 = vector.extract_strided_slice %106 {offsets = [0, 15], sizes = [10, 347], strides = [1, 1]} : vector<10x362xf32> to vector<10x347xf32>
    %113 = arith.maximumf %111, %112 : vector<10x347xf32>
    %c0_83 = arith.constant 0 : index
    %c0_84 = arith.constant 0 : index
    %114 = vector.load %arg9[%c0_83, %c0_84] : memref<347x72xf32, #tpu.memory_space<vmem>>, vector<347x72xf32>
    %cst_85 = arith.constant dense<0.000000e+00> : vector<10x72xf32>
    %115 = tpu.matmul %113, %114, %cst_85 {dimension_numbers = #tpu.dot_dimension_numbers<[1], [0], [0], [1], [0, 0, 1, 1], [], []>} : vector<10x347xf32>, vector<347x72xf32>, vector<10x72xf32> -> vector<10x72xf32>
    %116 = vector.extract_strided_slice %115 {offsets = [0, 0], sizes = [10, 58], strides = [1, 1]} : vector<10x72xf32> to vector<10x58xf32>
    %c0_86 = arith.constant 0 : index
    %c0_87 = arith.constant 0 : index
    %c0_88 = arith.constant 0 : index
    %117 = vector.load %arg6[%c0_86, %c0_87, %c0_88] : memref<9x4x10xf32, #tpu.memory_space<vmem>>, vector<1x4x10xf32>
    %118 = vector.shape_cast %117 : vector<1x4x10xf32> to vector<4x10xf32>
    %cst_89 = arith.constant dense<0.000000e+00> : vector<4x58xf32>
    %119 = tpu.matmul %118, %116, %cst_89 {dimension_numbers = #tpu.dot_dimension_numbers<[1], [0], [0], [1], [0, 0, 1, 1], [], []>} : vector<4x10xf32>, vector<10x58xf32>, vector<4x58xf32> -> vector<4x58xf32>
    %120 = vector.extract_strided_slice %115 {offsets = [0, 1], sizes = [10, 58], strides = [1, 1]} : vector<10x72xf32> to vector<10x58xf32>
    %c1_90 = arith.constant 1 : index
    %c0_91 = arith.constant 0 : index
    %c0_92 = arith.constant 0 : index
    %121 = vector.load %arg6[%c1_90, %c0_91, %c0_92] : memref<9x4x10xf32, #tpu.memory_space<vmem>>, vector<1x4x10xf32>
    %122 = vector.shape_cast %121 : vector<1x4x10xf32> to vector<4x10xf32>
    %cst_93 = arith.constant dense<0.000000e+00> : vector<4x58xf32>
    %123 = tpu.matmul %122, %120, %cst_93 {dimension_numbers = #tpu.dot_dimension_numbers<[1], [0], [0], [1], [0, 0, 1, 1], [], []>} : vector<4x10xf32>, vector<10x58xf32>, vector<4x58xf32> -> vector<4x58xf32>
    %124 = arith.addf %119, %123 : vector<4x58xf32>
    %125 = vector.extract_strided_slice %115 {offsets = [0, 2], sizes = [10, 58], strides = [1, 1]} : vector<10x72xf32> to vector<10x58xf32>
    %c2_94 = arith.constant 2 : index
    %c0_95 = arith.constant 0 : index
    %c0_96 = arith.constant 0 : index
    %126 = vector.load %arg6[%c2_94, %c0_95, %c0_96] : memref<9x4x10xf32, #tpu.memory_space<vmem>>, vector<1x4x10xf32>
    %127 = vector.shape_cast %126 : vector<1x4x10xf32> to vector<4x10xf32>
    %cst_97 = arith.constant dense<0.000000e+00> : vector<4x58xf32>
    %128 = tpu.matmul %127, %125, %cst_97 {dimension_numbers = #tpu.dot_dimension_numbers<[1], [0], [0], [1], [0, 0, 1, 1], [], []>} : vector<4x10xf32>, vector<10x58xf32>, vector<4x58xf32> -> vector<4x58xf32>
    %129 = arith.addf %124, %128 : vector<4x58xf32>
    %130 = vector.extract_strided_slice %115 {offsets = [0, 6], sizes = [10, 58], strides = [1, 1]} : vector<10x72xf32> to vector<10x58xf32>
    %c3_98 = arith.constant 3 : index
    %c0_99 = arith.constant 0 : index
    %c0_100 = arith.constant 0 : index
    %131 = vector.load %arg6[%c3_98, %c0_99, %c0_100] : memref<9x4x10xf32, #tpu.memory_space<vmem>>, vector<1x4x10xf32>
    %132 = vector.shape_cast %131 : vector<1x4x10xf32> to vector<4x10xf32>
    %cst_101 = arith.constant dense<0.000000e+00> : vector<4x58xf32>
    %133 = tpu.matmul %132, %130, %cst_101 {dimension_numbers = #tpu.dot_dimension_numbers<[1], [0], [0], [1], [0, 0, 1, 1], [], []>} : vector<4x10xf32>, vector<10x58xf32>, vector<4x58xf32> -> vector<4x58xf32>
    %134 = arith.addf %129, %133 : vector<4x58xf32>
    %135 = vector.extract_strided_slice %115 {offsets = [0, 7], sizes = [10, 58], strides = [1, 1]} : vector<10x72xf32> to vector<10x58xf32>
    %c4_102 = arith.constant 4 : index
    %c0_103 = arith.constant 0 : index
    %c0_104 = arith.constant 0 : index
    %136 = vector.load %arg6[%c4_102, %c0_103, %c0_104] : memref<9x4x10xf32, #tpu.memory_space<vmem>>, vector<1x4x10xf32>
    %137 = vector.shape_cast %136 : vector<1x4x10xf32> to vector<4x10xf32>
    %cst_105 = arith.constant dense<0.000000e+00> : vector<4x58xf32>
    %138 = tpu.matmul %137, %135, %cst_105 {dimension_numbers = #tpu.dot_dimension_numbers<[1], [0], [0], [1], [0, 0, 1, 1], [], []>} : vector<4x10xf32>, vector<10x58xf32>, vector<4x58xf32> -> vector<4x58xf32>
    %139 = arith.addf %134, %138 : vector<4x58xf32>
    %140 = vector.extract_strided_slice %115 {offsets = [0, 8], sizes = [10, 58], strides = [1, 1]} : vector<10x72xf32> to vector<10x58xf32>
    %c5_106 = arith.constant 5 : index
    %c0_107 = arith.constant 0 : index
    %c0_108 = arith.constant 0 : index
    %141 = vector.load %arg6[%c5_106, %c0_107, %c0_108] : memref<9x4x10xf32, #tpu.memory_space<vmem>>, vector<1x4x10xf32>
    %142 = vector.shape_cast %141 : vector<1x4x10xf32> to vector<4x10xf32>
    %cst_109 = arith.constant dense<0.000000e+00> : vector<4x58xf32>
    %143 = tpu.matmul %142, %140, %cst_109 {dimension_numbers = #tpu.dot_dimension_numbers<[1], [0], [0], [1], [0, 0, 1, 1], [], []>} : vector<4x10xf32>, vector<10x58xf32>, vector<4x58xf32> -> vector<4x58xf32>
    %144 = arith.addf %139, %143 : vector<4x58xf32>
    %145 = vector.extract_strided_slice %115 {offsets = [0, 12], sizes = [10, 58], strides = [1, 1]} : vector<10x72xf32> to vector<10x58xf32>
    %c6_110 = arith.constant 6 : index
    %c0_111 = arith.constant 0 : index
    %c0_112 = arith.constant 0 : index
    %146 = vector.load %arg6[%c6_110, %c0_111, %c0_112] : memref<9x4x10xf32, #tpu.memory_space<vmem>>, vector<1x4x10xf32>
    %147 = vector.shape_cast %146 : vector<1x4x10xf32> to vector<4x10xf32>
    %cst_113 = arith.constant dense<0.000000e+00> : vector<4x58xf32>
    %148 = tpu.matmul %147, %145, %cst_113 {dimension_numbers = #tpu.dot_dimension_numbers<[1], [0], [0], [1], [0, 0, 1, 1], [], []>} : vector<4x10xf32>, vector<10x58xf32>, vector<4x58xf32> -> vector<4x58xf32>
    %149 = arith.addf %144, %148 : vector<4x58xf32>
    %150 = vector.extract_strided_slice %115 {offsets = [0, 13], sizes = [10, 58], strides = [1, 1]} : vector<10x72xf32> to vector<10x58xf32>
    %c7_114 = arith.constant 7 : index
    %c0_115 = arith.constant 0 : index
    %c0_116 = arith.constant 0 : index
    %151 = vector.load %arg6[%c7_114, %c0_115, %c0_116] : memref<9x4x10xf32, #tpu.memory_space<vmem>>, vector<1x4x10xf32>
    %152 = vector.shape_cast %151 : vector<1x4x10xf32> to vector<4x10xf32>
    %cst_117 = arith.constant dense<0.000000e+00> : vector<4x58xf32>
    %153 = tpu.matmul %152, %150, %cst_117 {dimension_numbers = #tpu.dot_dimension_numbers<[1], [0], [0], [1], [0, 0, 1, 1], [], []>} : vector<4x10xf32>, vector<10x58xf32>, vector<4x58xf32> -> vector<4x58xf32>
    %154 = arith.addf %149, %153 : vector<4x58xf32>
    %155 = vector.extract_strided_slice %115 {offsets = [0, 14], sizes = [10, 58], strides = [1, 1]} : vector<10x72xf32> to vector<10x58xf32>
    %c8_118 = arith.constant 8 : index
    %c0_119 = arith.constant 0 : index
    %c0_120 = arith.constant 0 : index
    %156 = vector.load %arg6[%c8_118, %c0_119, %c0_120] : memref<9x4x10xf32, #tpu.memory_space<vmem>>, vector<1x4x10xf32>
    %157 = vector.shape_cast %156 : vector<1x4x10xf32> to vector<4x10xf32>
    %cst_121 = arith.constant dense<0.000000e+00> : vector<4x58xf32>
    %158 = tpu.matmul %157, %155, %cst_121 {dimension_numbers = #tpu.dot_dimension_numbers<[1], [0], [0], [1], [0, 0, 1, 1], [], []>} : vector<4x10xf32>, vector<10x58xf32>, vector<4x58xf32> -> vector<4x58xf32>
    %159 = arith.addf %154, %158 : vector<4x58xf32>
    %c0_122 = arith.constant 0 : index
    %c0_123 = arith.constant 0 : index
    %160 = vector.load %arg7[%c0_122, %c0_123] : memref<4x1xf32, #tpu.memory_space<vmem>>, vector<4x1xf32>
    %161 = vector.broadcast %160 : vector<4x1xf32> to vector<4x58xf32>
    %162 = arith.addf %159, %161 : vector<4x58xf32>
    %cst_124 = arith.constant 0.000000e+00 : f32
    %163 = vector.broadcast %cst_124 : f32 to vector<4x58xf32>
    %164 = arith.maximumf %162, %163 : vector<4x58xf32>
    %165 = vector.extract_strided_slice %164 {offsets = [0, 0], sizes = [4, 51], strides = [1, 1]} : vector<4x58xf32> to vector<4x51xf32>
    %166 = vector.extract_strided_slice %164 {offsets = [0, 1], sizes = [4, 51], strides = [1, 1]} : vector<4x58xf32> to vector<4x51xf32>
    %167 = arith.maximumf %165, %166 : vector<4x51xf32>
    %168 = vector.extract_strided_slice %164 {offsets = [0, 6], sizes = [4, 51], strides = [1, 1]} : vector<4x58xf32> to vector<4x51xf32>
    %169 = arith.maximumf %167, %168 : vector<4x51xf32>
    %170 = vector.extract_strided_slice %164 {offsets = [0, 7], sizes = [4, 51], strides = [1, 1]} : vector<4x58xf32> to vector<4x51xf32>
    %171 = arith.maximumf %169, %170 : vector<4x51xf32>
    %c0_125 = arith.constant 0 : index
    %c0_126 = arith.constant 0 : index
    %172 = vector.load %arg10[%c0_125, %c0_126] : memref<51x8xf32, #tpu.memory_space<vmem>>, vector<51x8xf32>
    %cst_127 = arith.constant dense<0.000000e+00> : vector<4x8xf32>
    %173 = tpu.matmul %171, %172, %cst_127 {dimension_numbers = #tpu.dot_dimension_numbers<[1], [0], [0], [1], [0, 0, 1, 1], [], []>} : vector<4x51xf32>, vector<51x8xf32>, vector<4x8xf32> -> vector<4x8xf32>
    %174 = vector.extract_strided_slice %173 {offsets = [0, 0], sizes = [1, 4], strides = [1, 1]} : vector<4x8xf32> to vector<1x4xf32>
    %175 = vector.extract_strided_slice %173 {offsets = [1, 0], sizes = [1, 4], strides = [1, 1]} : vector<4x8xf32> to vector<1x4xf32>
    %176 = vector.extract_strided_slice %173 {offsets = [2, 0], sizes = [1, 4], strides = [1, 1]} : vector<4x8xf32> to vector<1x4xf32>
    %177 = vector.extract_strided_slice %173 {offsets = [3, 0], sizes = [1, 4], strides = [1, 1]} : vector<4x8xf32> to vector<1x4xf32>
    %178 = tpu.concatenate %174, %175, %176, %177 in 1 : vector<1x4xf32>, vector<1x4xf32>, vector<1x4xf32>, vector<1x4xf32> -> vector<1x16xf32>
    %179 = vector.extract_strided_slice %173 {offsets = [0, 4], sizes = [1, 4], strides = [1, 1]} : vector<4x8xf32> to vector<1x4xf32>
    %180 = vector.extract_strided_slice %173 {offsets = [1, 4], sizes = [1, 4], strides = [1, 1]} : vector<4x8xf32> to vector<1x4xf32>
    %181 = vector.extract_strided_slice %173 {offsets = [2, 4], sizes = [1, 4], strides = [1, 1]} : vector<4x8xf32> to vector<1x4xf32>
    %182 = vector.extract_strided_slice %173 {offsets = [3, 4], sizes = [1, 4], strides = [1, 1]} : vector<4x8xf32> to vector<1x4xf32>
    %183 = tpu.concatenate %179, %180, %181, %182 in 1 : vector<1x4xf32>, vector<1x4xf32>, vector<1x4xf32>, vector<1x4xf32> -> vector<1x16xf32>
    %184 = tpu.concatenate %178, %183 in 0 : vector<1x16xf32>, vector<1x16xf32> -> vector<2x16xf32>
    %c0_128 = arith.constant 0 : index
    %c0_129 = arith.constant 0 : index
    %185 = vector.load %arg11[%c0_128, %c0_129] : memref<16x100xf32, #tpu.memory_space<vmem>>, vector<16x100xf32>
    %cst_130 = arith.constant dense<0.000000e+00> : vector<2x100xf32>
    %186 = tpu.matmul %184, %185, %cst_130 {dimension_numbers = #tpu.dot_dimension_numbers<[1], [0], [0], [1], [0, 0, 1, 1], [], []>} : vector<2x16xf32>, vector<16x100xf32>, vector<2x100xf32> -> vector<2x100xf32>
    %c0_131 = arith.constant 0 : index
    %c0_132 = arith.constant 0 : index
    %187 = vector.load %arg12[%c0_131, %c0_132] : memref<1x100xf32, #tpu.memory_space<vmem>>, vector<1x100xf32>
    %188 = vector.broadcast %187 : vector<1x100xf32> to vector<2x100xf32>
    %189 = arith.addf %186, %188 : vector<2x100xf32>
    %cst_133 = arith.constant 0.000000e+00 : f32
    %190 = vector.broadcast %cst_133 : f32 to vector<2x100xf32>
    %191 = arith.maximumf %189, %190 : vector<2x100xf32>
    %c0_134 = arith.constant 0 : index
    %c0_135 = arith.constant 0 : index
    %192 = vector.load %arg0[%c0_134, %c0_135] : memref<2x87xf32, #tpu.memory_space<vmem>>, vector<2x87xf32>
    %c0_136 = arith.constant 0 : index
    %c0_137 = arith.constant 0 : index
    %193 = vector.load %arg13[%c0_136, %c0_137] : memref<87x256xf32, #tpu.memory_space<vmem>>, vector<87x256xf32>
    %cst_138 = arith.constant dense<0.000000e+00> : vector<2x256xf32>
    %194 = tpu.matmul %192, %193, %cst_138 {dimension_numbers = #tpu.dot_dimension_numbers<[1], [0], [0], [1], [0, 0, 1, 1], [], []>} : vector<2x87xf32>, vector<87x256xf32>, vector<2x256xf32> -> vector<2x256xf32>
    %c0_139 = arith.constant 0 : index
    %c0_140 = arith.constant 0 : index
    %195 = vector.load %arg14[%c0_139, %c0_140] : memref<100x256xf32, #tpu.memory_space<vmem>>, vector<100x256xf32>
    %cst_141 = arith.constant dense<0.000000e+00> : vector<2x256xf32>
    %196 = tpu.matmul %191, %195, %cst_141 {dimension_numbers = #tpu.dot_dimension_numbers<[1], [0], [0], [1], [0, 0, 1, 1], [], []>} : vector<2x100xf32>, vector<100x256xf32>, vector<2x256xf32> -> vector<2x256xf32>
    %197 = arith.addf %194, %196 : vector<2x256xf32>
    %c0_142 = arith.constant 0 : index
    %c0_143 = arith.constant 0 : index
    %198 = vector.load %arg15[%c0_142, %c0_143] : memref<1x256xf32, #tpu.memory_space<vmem>>, vector<1x256xf32>
    %199 = vector.broadcast %198 : vector<1x256xf32> to vector<2x256xf32>
    %200 = arith.addf %197, %199 : vector<2x256xf32>
    %201 = math.tanh %200 : vector<2x256xf32>
    %c0_144 = arith.constant 0 : index
    %c0_145 = arith.constant 0 : index
    %202 = vector.load %arg16[%c0_144, %c0_145] : memref<256x256xf32, #tpu.memory_space<vmem>>, vector<256x256xf32>
    %cst_146 = arith.constant dense<0.000000e+00> : vector<2x256xf32>
    %203 = tpu.matmul %201, %202, %cst_146 {dimension_numbers = #tpu.dot_dimension_numbers<[1], [0], [0], [1], [0, 0, 1, 1], [], []>} : vector<2x256xf32>, vector<256x256xf32>, vector<2x256xf32> -> vector<2x256xf32>
    %c0_147 = arith.constant 0 : index
    %c0_148 = arith.constant 0 : index
    %204 = vector.load %arg17[%c0_147, %c0_148] : memref<1x256xf32, #tpu.memory_space<vmem>>, vector<1x256xf32>
    %205 = vector.broadcast %204 : vector<1x256xf32> to vector<2x256xf32>
    %206 = arith.addf %203, %205 : vector<2x256xf32>
    %207 = math.tanh %206 : vector<2x256xf32>
    %c0_149 = arith.constant 0 : index
    %c0_150 = arith.constant 0 : index
    %208 = vector.load %arg18[%c0_149, %c0_150] : memref<256x8xf32, #tpu.memory_space<vmem>>, vector<256x8xf32>
    %cst_151 = arith.constant dense<0.000000e+00> : vector<2x8xf32>
    %209 = tpu.matmul %207, %208, %cst_151 {dimension_numbers = #tpu.dot_dimension_numbers<[1], [0], [0], [1], [0, 0, 1, 1], [], []>} : vector<2x256xf32>, vector<256x8xf32>, vector<2x8xf32> -> vector<2x8xf32>
    %c0_152 = arith.constant 0 : index
    %c0_153 = arith.constant 0 : index
    %210 = vector.load %arg19[%c0_152, %c0_153] : memref<1x8xf32, #tpu.memory_space<vmem>>, vector<1x8xf32>
    %211 = vector.broadcast %210 : vector<1x8xf32> to vector<2x8xf32>
    %212 = arith.addf %209, %211 : vector<2x8xf32>
    %213 = math.tanh %212 : vector<2x8xf32>
    %cst_154 = arith.constant 0.541324854 : f32
    %214 = vector.broadcast %cst_154 : f32 to vector<2x8xf32>
    %215 = arith.addf %213, %214 : vector<2x8xf32>
    %cst_155 = arith.constant 0.000000e+00 : f32
    %216 = vector.broadcast %cst_155 : f32 to vector<2x8xf32>
    %217 = arith.maximumf %215, %216 : vector<2x8xf32>
    %218 = math.absf %215 : vector<2x8xf32>
    %cst_156 = arith.constant 0.000000e+00 : f32
    %219 = vector.broadcast %cst_156 : f32 to vector<2x8xf32>
    %220 = arith.subf %219, %218 : vector<2x8xf32>
    %221 = math.exp %220 : vector<2x8xf32>
    %cst_157 = arith.constant 1.000000e+00 : f32
    %222 = vector.broadcast %cst_157 : f32 to vector<2x8xf32>
    %223 = arith.addf %222, %221 : vector<2x8xf32>
    %224 = math.log %223 : vector<2x8xf32>
    %225 = arith.addf %217, %224 : vector<2x8xf32>
    %cst_158 = arith.constant 9.99999974E-5 : f32
    %226 = vector.broadcast %cst_158 : f32 to vector<2x8xf32>
    %227 = arith.maximumf %225, %226 : vector<2x8xf32>
    %228 = tpu.iota {dimensions = array<i32: 1>} : vector<2x8xi32>
    %c4_i32 = arith.constant 4 : i32
    %229 = vector.broadcast %c4_i32 : i32 to vector<2x8xi32>
    %230 = arith.cmpi slt, %228, %229 : vector<2x8xi32>
    %231 = arith.select %230, %213, %227 : vector<2x8xi1>, vector<2x8xf32>
    %c0_159 = arith.constant 0 : index
    %c0_160 = arith.constant 0 : index
    %232 = vector.load %arg20[%c0_159, %c0_160] : memref<2x8xf32, #tpu.memory_space<vmem>>, vector<2x8xf32>
    tpu.vector_store %arg20[%c0_159, %c0_160], %231 {strides = array<i32>} : memref<2x8xf32, #tpu.memory_space<vmem>>, vector<2x8xf32>,
    return
  }
}

</mosaic_0001>

<bundles_post_ra>
// kernel: actor_forward.1
= control target key start
LH: loop header
LB: loop body
LE: loop exit
PB: predicated region body
PF: predicated region fallthrough
CT: control target
= control target key end

     0   :  { %s11551_s0 = inlined_call_operand.hbm [shape: f32[2,87], index: 0, kind: input, shape index: {}]   ;;  %s11552_s1 = inlined_call_operand.vmem [shape: f32[3,1800], index: 1, kind: input, shape index: {}]   ;;  %s11553_s2 = inlined_call_operand.hbm [shape: f32[9,5,3], index: 2, kind: input, shape index: {}]   ;;  %s11554_s3 = inlined_call_operand.hbm [shape: f32[5,1], index: 3, kind: input, shape index: {}]   ;;  %s11555_s4 = inlined_call_operand.hbm [shape: f32[9,10,5], index: 4, kind: input, shape index: {}]   ;;  %s11556_s5 = inlined_call_operand.hbm [shape: f32[10,1], index: 5, kind: input, shape index: {}]   ;;  %s11557_s6 = inlined_call_operand.hbm [shape: f32[9,4,10], index: 6, kind: input, shape index: {}]   ;;  %s11558_s7 = inlined_call_operand.hbm [shape: f32[4,1], index: 7, kind: input, shape index: {}]   ;;  %s11559_s8 = inlined_call_operand.hbm [shape: f32[1707,392], index: 8, kind: input, shape index: {}]   ;;  %s11560_s9 = inlined_call_operand.hbm [shape: f32[347,72], index: 9, kind: input, shape index: {}]   ;;  %s11561_s10 = inlined_call_operand.hbm [shape: f32[51,8], index: 10, kind: input, shape index: {}]   ;;  %s11562_s11 = inlined_call_operand.hbm [shape: f32[16,100], index: 11, kind: input, shape index: {}]   ;;  %s11563_s12 = inlined_call_operand.hbm [shape: f32[1,100], index: 12, kind: input, shape index: {}]   ;;  %s11564_s13 = inlined_call_operand.hbm [shape: f32[87,256], index: 13, kind: input, shape index: {}]   ;;  %s11565_s14 = inlined_call_operand.hbm [shape: f32[100,256], index: 14, kind: input, shape index: {}]   ;;  %s11566_s15 = inlined_call_operand.hbm [shape: f32[1,256], index: 15, kind: input, shape index: {}]   ;;  %s11567_s16 = inlined_call_operand.hbm [shape: f32[256,256], index: 16, kind: input, shape index: {}]   ;;  %s11568_s17 = inlined_call_operand.hbm [shape: f32[1,256], index: 17, kind: input, shape index: {}]   ;;  %s11569_s18 = inlined_call_operand.hbm [shape: f32[256,8], index: 18, kind: input, shape index: {}]   ;;  %s11570_s19 = inlined_call_operand.hbm [shape: f32[1,8], index: 19, kind: input, shape index: {}]   ;;  %s11571_s20 = inlined_call_operand.vmem [shape: f32[2,8], index: 20, kind: output, shape index: {}]  }
   0x1   :  { %11575 = sst [smem:[#allocation93_spill]] %s11551_s0 }
   0x2   :  { %11576 = sst [smem:[#allocation94_spill]] %s11552_s1 }
   0x3   :  { %11577 = sst [smem:[#allocation95_spill]] %s11553_s2 }
   0x4   :  { %11578 = sst [smem:[#allocation96_spill]] %s11554_s3 }
   0x5   :  { %11579 = sst [smem:[#allocation97_spill]] %s11555_s4 }
   0x6   :  { %11580 = sst [smem:[#allocation98_spill]] %s11571_s20 }
   0x7   :  { %25 = vsyncpa [#allocation3], 0 }
   0x8   :  { %26 = vsyncpa [#allocation5], 0 }
   0x9   :  { %27 = vsyncpa [#allocation8], 0 }
   0xa   :  { %28 = vsyncpa [#allocation11], 0 }
   0xb   :  { %29 = vsyncpa [#allocation14], 0 }
   0xc   :  { %30 = vsyncpa [#allocation17], 0 }
   0xd   :  { %31 = vsyncpa [#allocation20], 0 }
   0xe   :  { %32 = vsyncpa [#allocation23], 0 }
   0xf   :  { %33 = vsyncpa [#allocation26], 0  ;;  %s11581_s23 = sld [smem:[#allocation95_spill]] }
  0x15   :  { %s52_s24 = sshll.u32 %s11581_s23, 4  ;;  %s53_s24 = int_to_ptr.hbm [resolvable:$true] %s52_s24 }
  0x16   :  { %34 = vsyncpa [#allocation29], 0  ;;  %s9169_s2 = smov [#allocation4]   ;;  %s11582_s27 = sld [smem:[#allocation97_spill]] }
  0x17   :  { %s54_s25 = sshll.u32 %s9169_s2, 4  ;;  %s11573_s4 = smov 128   ;;  %s55_s25 = int_to_ptr.vmem [resolvable:$true] %s54_s25 }
  0x18   :  { %s9171_s29 = smov 8   ;;  %s9172_s30 = smov [#allocation7]  }
  0x19   :  { %60 = dma.hbm_to_vmem [thread:$0]  %s53_s24, 1152, %s55_s25, [#allocation5], %s11573_s4, %s11573_s4, %s9171_s29  }
  0x1a   :  { %s78_s0 = sshll.u32 %s9172_s30, 4  ;;  %s102_s22 = sshll.u32 %s11557_s6, 4  ;;  %s79_s0 = int_to_ptr.vmem [resolvable:$true] %s78_s0  ;;  %s103_s22 = int_to_ptr.hbm [resolvable:$true] %s102_s22 }
  0x1b   :  { %s9173_s23 = smov [#allocation10]   ;;  %s126_s24 = sshll.u32 %s11559_s8, 4  ;;  %s127_s24 = int_to_ptr.hbm [resolvable:$true] %s126_s24 }
  0x1c   :  { %s76_s28 = sshll.u32 %s11582_s27, 4  ;;  %s104_s2 = sshll.u32 %s9173_s23, 4  ;;  %s77_s28 = int_to_ptr.hbm [resolvable:$true] %s76_s28  ;;  %s105_s2 = int_to_ptr.vmem [resolvable:$true] %s104_s2 }
  0x1d   :  { %84 = dma.hbm_to_vmem [thread:$0]  %s77_s28, 2304, %s79_s0, [#allocation8], %s11573_s4, %s11573_s4, %s9171_s29  }
  0x1e   :  { %s9174_s25 = smov 64   ;;  %s9175_s27 = smov 4  }
  0x1f   :  { %110 = dma.hbm_to_vmem [thread:$0]  %s103_s22, 576, %s105_s2, [#allocation11], %s9174_s25, %s9174_s25, %s9175_s27  }
  0x20   :  { %s9176_s30 = smov [#allocation13]   ;;  %s9177_s21 = smov 512  }
  0x21   :  { %s128_s6 = sshll.u32 %s9176_s30, 4  ;;  %s9178_s1 = smov 32   ;;  %s129_s6 = int_to_ptr.vmem [resolvable:$true] %s128_s6 }
  0x22   :  { %134 = dma.hbm_to_vmem [thread:$0]  %s127_s24, 109568, %s129_s6, [#allocation14], %s9177_s21, %s9177_s21, %s9178_s1  }
  0x23   :  { %s152_s0 = sshll.u32 %s11561_s10, 4  ;;  %s9179_s23 = smov [#allocation16]   ;;  %s153_s0 = int_to_ptr.hbm [resolvable:$true] %s152_s0 }
  0x24   :  { %s154_s4 = sshll.u32 %s9179_s23, 4  ;;  %s179_s26 = sshll.u32 %s11563_s12, 4  ;;  %s155_s4 = int_to_ptr.vmem [resolvable:$true] %s154_s4  ;;  %s180_s26 = int_to_ptr.hbm [resolvable:$true] %s179_s26 }
  0x25   :  { %s11583_s22 = smov 128   ;;  %s9180_s2 = smov [#allocation19]  }
  0x26   :  { %160 = dma.hbm_to_vmem [thread:$0]  %s153_s0, 896, %s155_s4, [#allocation17], %s11583_s22, %s11583_s22, %s9171_s29  }
  0x27   :  { %s181_s25 = sshll.u32 %s9180_s2, 4  ;;  %s202_s10 = sshll.u32 %s11565_s14, 4  ;;  %s182_s25 = int_to_ptr.vmem [resolvable:$true] %s181_s25  ;;  %s203_s10 = int_to_ptr.hbm [resolvable:$true] %s202_s10 }
  0x28   :  { %184 = dma.hbm_to_vmem [thread:$0]  %s180_s26, 16, %s182_s25, [#allocation20]  }
  0x29   :  { %s9181_s30 = smov [#allocation22]   ;;  %s226_s12 = sshll.u32 %s11567_s16, 4  ;;  %s227_s12 = int_to_ptr.hbm [resolvable:$true] %s226_s12 }
  0x2a   :  { %s204_s6 = sshll.u32 %s9181_s30, 4  ;;  %s9182_s28 = smov 256   ;;  %s205_s6 = int_to_ptr.vmem [resolvable:$true] %s204_s6 }
  0x2b   :  { %s9183_s23 = smov 16   ;;  %s9184_s4 = smov [#allocation25]  }
  0x2c   :  { %210 = dma.hbm_to_vmem [thread:$0]  %s203_s10, 3328, %s205_s6, [#allocation23], %s9182_s28, %s9182_s28, %s9183_s23  }
  0x2d   :  { %s228_s0 = sshll.u32 %s9184_s4, 4  ;;  %s250_s14 = sshll.u32 %s11569_s18, 4  ;;  %s229_s0 = int_to_ptr.vmem [resolvable:$true] %s228_s0  ;;  %s251_s14 = int_to_ptr.hbm [resolvable:$true] %s250_s14 }
  0x2e   :  { %234 = dma.hbm_to_vmem [thread:$0]  %s227_s12, 8192, %s229_s0, [#allocation26], %s9182_s28, %s9182_s28, %s9183_s23  }
  0x2f   :  { %s11584_s2 = sld [smem:[#allocation93_spill]]  ;;  %s9185_s24 = smov [#allocation28]  }
  0x30   :  { %s252_s20 = sshll.u32 %s9185_s24, 4  ;;  %s9186_s10 = smov [#allocation2]   ;;  %s253_s20 = int_to_ptr.vmem [resolvable:$true] %s252_s20 }
  0x31   :  { %258 = dma.hbm_to_vmem [thread:$0]  %s251_s14, 4096, %s253_s20, [#allocation29], %s11583_s22, %s11583_s22, %s9171_s29  }
  0x32   :  { %s42_s18 = sshll.u32 %s9186_s10, 4  ;;  %s11585_s21 = sld [smem:[#allocation96_spill]]  ;;  %s43_s18 = int_to_ptr.vmem [resolvable:$true] %s42_s18 }
  0x33   :  { %s89_s0 = sshll.u32 %s11556_s5, 4  ;;  %s9187_s8 = smov [#allocation6]   ;;  %s90_s0 = int_to_ptr.hbm [resolvable:$true] %s89_s0 }
  0x34   :  { %s68_s3 = sshll.u32 %s9187_s8, 4  ;;  %s9188_s16 = smov [#allocation9]   ;;  %s69_s3 = int_to_ptr.vmem [resolvable:$true] %s68_s3 }
  0x35   :  { %s40_s25 = sshll.u32 %s11584_s2, 4  ;;  %s91_s14 = sshll.u32 %s9188_s16, 4  ;;  %s41_s25 = int_to_ptr.hbm [resolvable:$true] %s40_s25  ;;  %s92_s14 = int_to_ptr.vmem [resolvable:$true] %s91_s14 }
  0x36   :  { %45 = dma.hbm_to_vmem [thread:$0]  %s41_s25, 32, %s43_s18, [#allocation3]  }
  0x37   :  { %s116_s24 = sshll.u32 %s11558_s7, 4  ;;  %s139_s5 = sshll.u32 %s11560_s9, 4  ;;  %s117_s24 = int_to_ptr.hbm [resolvable:$true] %s116_s24  ;;  %s140_s5 = int_to_ptr.hbm [resolvable:$true] %s139_s5 }
  0x38   :  { %s66_s1 = sshll.u32 %s11585_s21, 4  ;;  %s9189_s10 = smov [#allocation12]   ;;  %s67_s1 = int_to_ptr.hbm [resolvable:$true] %s66_s1 }
  0x39   :  { %71 = dma.hbm_to_vmem [thread:$0]  %s67_s1, 128, %s69_s3, [#allocation5]  }
  0x3a   :  { %97 = dma.hbm_to_vmem [thread:$0]  %s90_s0, 256, %s92_s14, [#allocation8], %s11583_s22, %s11583_s22, %s9171_s29  }
  0x3b   :  { %s118_s18 = sshll.u32 %s9189_s10, 4  ;;  %s9190_s30 = smov [#allocation15]   ;;  %s119_s18 = int_to_ptr.vmem [resolvable:$true] %s118_s18 }
  0x3c   :  { %121 = dma.hbm_to_vmem [thread:$0]  %s117_s24, 64, %s119_s18, [#allocation11]  }
  0x3d   :  { %s141_s6 = sshll.u32 %s9190_s30, 4  ;;  %s165_s7 = sshll.u32 %s11562_s11, 4  ;;  %s142_s6 = int_to_ptr.vmem [resolvable:$true] %s141_s6  ;;  %s166_s7 = int_to_ptr.hbm [resolvable:$true] %s165_s7 }
  0x3e   :  { %147 = dma.hbm_to_vmem [thread:$0]  %s140_s5, 5632, %s142_s6, [#allocation14], %s11583_s22, %s11583_s22, %s9171_s29  }
  0x3f   :  { %s189_s9 = sshll.u32 %s11564_s13, 4  ;;  %s9191_s0 = smov [#allocation18]   ;;  %s190_s9 = int_to_ptr.hbm [resolvable:$true] %s189_s9 }
  0x40   :  { %s167_s8 = sshll.u32 %s9191_s0, 4  ;;  %s9192_s3 = smov [#allocation21]   ;;  %s168_s8 = int_to_ptr.vmem [resolvable:$true] %s167_s8 }
  0x41   :  { %173 = dma.hbm_to_vmem [thread:$0]  %s166_s7, 256, %s168_s8, [#allocation17], %s11583_s22, %s11583_s22, %s9171_s29  }
  0x42   :  { %s191_s11 = sshll.u32 %s9192_s3, 4  ;;  %s216_s26 = sshll.u32 %s11566_s15, 4  ;;  %s192_s11 = int_to_ptr.vmem [resolvable:$true] %s191_s11  ;;  %s217_s26 = int_to_ptr.hbm [resolvable:$true] %s216_s26 }
  0x43   :  { %197 = dma.hbm_to_vmem [thread:$0]  %s190_s9, 2816, %s192_s11, [#allocation20], %s9182_s28, %s9182_s28, %s9183_s23  }
  0x44   :  { %s240_s24 = sshll.u32 %s11568_s17, 4  ;;  %s9193_s25 = smov [#allocation24]   ;;  %s241_s24 = int_to_ptr.hbm [resolvable:$true] %s240_s24 }
  0x45   :  { %s218_s20 = sshll.u32 %s9193_s25, 4  ;;  %s9194_s22 = smov [#allocation27]   ;;  %s219_s20 = int_to_ptr.vmem [resolvable:$true] %s218_s20 }
  0x46   :  { %221 = dma.hbm_to_vmem [thread:$0]  %s217_s26, 32, %s219_s20, [#allocation23]  }
  0x47   :  { %s242_s5 = sshll.u32 %s9194_s22, 4  ;;  %s264_s15 = sshll.u32 %s11570_s19, 4  ;;  %s243_s5 = int_to_ptr.vmem [resolvable:$true] %s242_s5  ;;  %s265_s15 = int_to_ptr.hbm [resolvable:$true] %s264_s15 }
  0x48   :  { %245 = dma.hbm_to_vmem [thread:$0]  %s241_s24, 32, %s243_s5, [#allocation26]  }
  0x49   :  { %s9195_s30 = smov [#allocation30]  }
  0x4a   :  { %s266_s28 = sshll.u32 %s9195_s30, 4  ;;  %s267_s28 = int_to_ptr.vmem [resolvable:$true] %s266_s28 }
  0x4b   :  { %269 = dma.hbm_to_vmem [thread:$0]  %s265_s15, 16, %s267_s28, [#allocation29]  }
  0x4c   :  { %9149 = dma.done.wait [#allocation3], 32  }
  0x4d   :  { %9150 = vsyncadd [#allocation3], 4294967264 }
  0x4e   :  { %9151 = dma.done.wait [#allocation5], 1280  }
  0x4f   :  { %9152 = vsyncadd [#allocation5], 4294966016 }
  0x50   :  { %9153 = dma.done.wait [#allocation8], 2560  }
  0x51   :  { %9154 = vsyncadd [#allocation8], 4294964736 }
  0x52   :  { %9155 = dma.done.wait [#allocation11], 640  }
  0x53   :  { %9156 = vsyncadd [#allocation11], 4294966656 }
  0x54   :  { %9157 = dma.done.wait [#allocation14], 115200  }
  0x55   :  { %9158 = vsyncadd [#allocation14], 4294852096 }
  0x56   :  { %9159 = dma.done.wait [#allocation17], 1152  }
  0x57   :  { %9160 = vsyncadd [#allocation17], 4294966144 }
  0x58   :  { %9161 = dma.done.wait [#allocation20], 2832  }
  0x59   :  { %9162 = vsyncadd [#allocation20], 4294964464 }
  0x5a   :  { %9163 = dma.done.wait [#allocation23], 3360  }
  0x5b   :  { %9164 = vsyncadd [#allocation23], 4294963936 }
  0x5c   :  { %9165 = dma.done.wait [#allocation26], 8224  }
  0x5d   :  { %9166 = vsyncadd [#allocation26], 4294959072 }
  0x5e   :  { %9167 = dma.done.wait [#allocation29], 4112  }
  0x5f   :  { %9168 = vsyncadd [#allocation29], 4294963184  ;;  %s11586_s23 = sld [smem:[#allocation94_spill]]  ;;  %s9196_s14 = smov 127   ;;  %vm415_vm0 = vcmask 1039360   ;;  %vm433_vm1 = vcmask 1042432  }
  0x60   :  { %s9197_s19 = smov 126   ;;  %s9198_s2 = smov 98   ;;  %vm429_vm2 = vcmask 23552   ;;  %vm1145_vm3 = vcmask 1031168   ;;  %vm1552_vm4 = vcmask 801792   ;;  %vm1959_vm5 = vcmask 793600  }
  0x61   :  { %s9199_s4 = smov 97   ;;  %s9200_s18 = smov 96   ;;  %vm2366_vm6 = vcmask 785408   ;;  %vm2779_vm7 = vcmask 556032   ;;  %vm3193_vm8 = vcmask 547840   ;;  %vm3607_vm9 = vcmask 539648  }
  0x62   :  { %s9201_s3 = smov 68   ;;  %s9202_s7 = smov 67   ;;  %vm5058_vm10 = vcmask 351232   ;;  %vm6217_vm11 = vcmask 1044480   ;;  %vm6210_vm12 = vcmask 39936   ;;  %vm6481_vm13 = vcmask 932864  }
  0x63   :  { %s9203_s20 = smov 66   ;;  %s9208_s28 = smov 100   ;;  %vm6580_vm14 = vcmask 924672   ;;  %vm6781_vm15 = vcmask 818176  }
  0x64   :  { %s9209_s17 = smov 99   ;;  %s9211_s6 = smov 122  }
  0x65   :  { %v348_v0 = vld [vmem:[%s11586_s23 + $0x10] sm:$0x77]  ;;  %v347_v1 = vld [vmem:[%s11586_s23 + $0x8] sm:$0x77]  ;;  %v346_v2 = vld [vmem:[%s11586_s23] sm:$0x77] }
  0x66   :  { %367 = vst [vmem:[#allocation1 + $0x20] ss:$2 sm:$0xff] %v348_v0  ;;  %v349_v3 = vld [vmem:[%s11586_s23 + $0x18] sm:$0x77]  ;;  %v351_v4 = vld [vmem:[%s11586_s23 + $0x28] sm:$0x77] }
  0x67   :  { %365 = vst [vmem:[#allocation1 + $0x10] ss:$2 sm:$0xff] %v347_v1  ;;  %v350_v5 = vld [vmem:[%s11586_s23 + $0x20] sm:$0x77]  ;;  %v352_v8 = vld [vmem:[%s11586_s23 + $0x30] sm:$0x77] }
  0x68   :  { %363 = vst [vmem:[#allocation1] ss:$2 sm:$0xff] %v346_v2  ;;  %v1080_v19 = vld [vmem:[%s11586_s23 + $0x18] sm:$0x77]  ;;  %v1077_v30 = vld [vmem:[%s11586_s23] sm:$0x77] }
  0x69   :  { %369 = vst [vmem:[#allocation1 + $0x30] ss:$2 sm:$0xff] %v349_v3  ;;  %v1079_v31 = vld [vmem:[%s11586_s23 + $0x10] sm:$0x77]  ;;  %v1078_v34 = vld [vmem:[%s11586_s23 + $0x8] sm:$0x77] }
  0x6a   :  { %v1081_v39 = vld [vmem:[%s11586_s23 + $0x20] sm:$0x77]  ;;  %v1083_v40 = vld [vmem:[%s11586_s23 + $0x30] sm:$0x77]  ;;  %v1082_v43 = vld [vmem:[%s11586_s23 + $0x28] sm:$0x77] }
  0x6b   :  { %v1487_v48 = vld [vmem:[%s11586_s23 + $0x18] sm:$0x77]  ;;  %v1484_v51 = vld [vmem:[%s11586_s23] sm:$0x77]  ;;  %v1485_v54 = vld [vmem:[%s11586_s23 + $0x8] sm:$0x77] }
  0x6c   :  { %v1486_v55 = vld [vmem:[%s11586_s23 + $0x10] sm:$0x77]  ;;  %v1489_v60 = vld [vmem:[%s11586_s23 + $0x28] sm:$0x77]  ;;  %v1488_v62 = vld [vmem:[%s11586_s23 + $0x20] sm:$0x77] }
  0x6d   :  { %v375_v6 = vld.sshfl [vmem:[#allocation1 + $0x28] sm:$0xff pattern:$0x75316420]  ;;  %v374_v7 = vld.sshfl [vmem:[#allocation1 + $0x20] sm:$0xff pattern:$0x75316420] }
  0x6e   :  { %397 = vrot.lane.b32.xlu2 %v375_v6, %s9196_s14  ;;  %v373_v9 = vld.sshfl [vmem:[#allocation1 + $0x18] sm:$0xff pattern:$0x75316420]  ;;  %v372_v10 = vld.sshfl [vmem:[#allocation1 + $0x10] sm:$0xff pattern:$0x75316420] }
  0x6f   :  { %393 = vrot.lane.b32.xlu1 %v373_v9, %s9196_s14  ;;  %v370_v11 = vld.sshfl [vmem:[#allocation1] sm:$0xff pattern:$0x75316420]  ;;  %v371_v12 = vld.sshfl [vmem:[#allocation1 + $0x8] sm:$0xff pattern:$0x75316420] }
  0x70   :  { %387 = vrot.lane.b32.xlu0 %v370_v11, %s9196_s14  ;;  %379 = vst [vmem:[#allocation1 + $0x10] ss:$2 sm:$0xff] %v351_v4  ;;  %v376_v13 = vld.sshfl [vmem:[#allocation1 + $0x30] sm:$0xff pattern:$0x75316420]  ;;  %s9212_s21 = smov 121  }
  0x71   :  { %378 = vst [vmem:[#allocation1] ss:$2 sm:$0xff] %v350_v5  ;;  %v377_v14 = vld.sshfl [vmem:[#allocation1 + $0x38] sm:$0xff pattern:$0x75316420]  ;;  %s9213_s1 = smov 120  }
  0x72   :  { %380 = vst [vmem:[#allocation1 + $0x20] ss:$2 sm:$0xff] %v352_v8  ;;  %v1892_v9 = vld [vmem:[%s11586_s23 + $0x8] sm:$0x77]  ;;  %s11691_s12 = sld [smem:[#allocation98_spill]] }
  0x73   :  { %748 = vst [vmem:[#allocation1 + $0x30] ss:$2 sm:$0xff] %v349_v3 }
  0x76   :  { %401 = vrot.lane.b32.xlu2 %v377_v14, %s9196_s14 }
  0x77   :  { %395 = vrot.lane.b32.xlu1 %v374_v7, %s9196_s14  ;;  %v384_v15 = vld.sshfl [vmem:[#allocation1 + $0x18] sm:$0xff pattern:$0x75316420]  ;;  %v383_v16 = vld.sshfl [vmem:[#allocation1 + $0x10] sm:$0xff pattern:$0x75316420] }
  0x78   :  { %389 = vrot.lane.b32.xlu0 %v371_v12, %s9196_s14  ;;  %v381_v17 = vld.sshfl [vmem:[#allocation1] sm:$0xff pattern:$0x75316420]  ;;  %v382_v18 = vld.sshfl [vmem:[#allocation1 + $0x8] sm:$0xff pattern:$0x75316420] }
  0x79   :  { %v386_v20 = vld.sshfl [vmem:[#allocation1 + $0x28] sm:$0xff pattern:$0x75316420]  ;;  %742 = vst [vmem:[#allocation1] ss:$2 sm:$0xff] %v346_v2 }
  0x7a   :  { %v385_v21 = vld.sshfl [vmem:[#allocation1 + $0x20] sm:$0xff pattern:$0x75316420]  ;;  %744 = vst [vmem:[#allocation1 + $0x10] ss:$2 sm:$0xff] %v347_v1 }
  0x7b   :  { %746 = vst [vmem:[#allocation1 + $0x20] ss:$2 sm:$0xff] %v348_v0  ;;  %v9440_v22 = vld.sshfl [vmem:[#allocation1 + $0x30] sm:$0xff pattern:$0x75316420] }
  0x7c   :  { %v9442_v23 = vld.sshfl [vmem:[#allocation1 + $0x38] sm:$0xff pattern:$0x75316420]  ;;  %v1891_v7 = vld [vmem:[%s11586_s23] sm:$0x77] }
  0x7d   :  { %1099 = vst [vmem:[#allocation1 + $0x30] ss:$2 sm:$0xff] %v1080_v19 }
  0x7e   :  { %409 = vrot.lane.b32.xlu2 %v384_v15, %s9196_s14  ;;  %v1896_v15 = vld [vmem:[%s11586_s23 + $0x28] sm:$0x77] }
  0x7f   :  { %391 = vrot.lane.b32.xlu1 %v372_v10, %s9196_s14  ;;  %v1893_v10 = vld [vmem:[%s11586_s23 + $0x10] sm:$0x77] }
  0x80   :  { %403 = vrot.lane.b32.xlu0 %v381_v17, %s9196_s14  ;;  %v9447_v24 = vld.sshfl [vmem:[#allocation1] sm:$0xff pattern:$0x75316420]  ;;  %v9449_v25 = vld.sshfl [vmem:[#allocation1 + $0x8] sm:$0xff pattern:$0x75316420] }
  0x81   :  { %757 = vst [vmem:[#allocation1] ss:$2 sm:$0xff] %v350_v5  ;;  %v9451_v26 = vld.sshfl [vmem:[#allocation1 + $0x10] sm:$0xff pattern:$0x75316420] }
  0x82   :  { %v9453_v27 = vld.sshfl [vmem:[#allocation1 + $0x20] sm:$0xff pattern:$0x75316420]  ;;  %v9455_v28 = vld.sshfl [vmem:[#allocation1 + $0x28] sm:$0xff pattern:$0x75316420] }
  0x83   :  { %759 = vst [vmem:[#allocation1 + $0x20] ss:$2 sm:$0xff] %v352_v8  ;;  %v9457_v29 = vld.sshfl [vmem:[#allocation1 + $0x18] sm:$0xff pattern:$0x75316420] }
  0x84   :  { %758 = vst [vmem:[#allocation1 + $0x10] ss:$2 sm:$0xff] %v351_v4  ;;  %v1106_v44 = vld.sshfl [vmem:[#allocation1 + $0x30] sm:$0xff pattern:$0x75316420] }
  0x85   :  { %v1107_v45 = vld.sshfl [vmem:[#allocation1 + $0x38] sm:$0xff pattern:$0x75316420]  ;;  %v1490_v4 = vld [vmem:[%s11586_s23 + $0x30] sm:$0x77] }
  0x86   :  { %413 = vrot.lane.b32.xlu2 %v386_v20, %s9196_s14  ;;  %1506 = vst [vmem:[#allocation1 + $0x30] ss:$2 sm:$0xff] %v1487_v48  ;;  %v1894_v17 = vld [vmem:[%s11586_s23 + $0x18] sm:$0x77]  ;;  %v2299_v48 = vld [vmem:[%s11586_s23 + $0x8] sm:$0x77] }
  0x87   :  { %405 = vrot.lane.b32.xlu1 %v382_v18, %s9196_s14  ;;  %v1895_v18 = vld [vmem:[%s11586_s23 + $0x20] sm:$0x77] }
  0x88   :  { %411 = vrot.lane.b32.xlu0 %v385_v21, %s9196_s14  ;;  %v9468_v32 = vld.sshfl [vmem:[#allocation1] sm:$0xff pattern:$0x75316420]  ;;  %v9470_v33 = vld.sshfl [vmem:[#allocation1 + $0x8] sm:$0xff pattern:$0x75316420] }
  0x89   :  { %1093 = vst [vmem:[#allocation1] ss:$2 sm:$0xff] %v1077_v30 }
  0x8a   :  { %v9475_v35 = vld.sshfl [vmem:[#allocation1 + $0x20] sm:$0xff pattern:$0x75316420]  ;;  %v9477_v36 = vld.sshfl [vmem:[#allocation1 + $0x28] sm:$0xff pattern:$0x75316420] }
  0x8b   :  { %1097 = vst [vmem:[#allocation1 + $0x20] ss:$2 sm:$0xff] %v1079_v31  ;;  %v9479_v37 = vld.sshfl [vmem:[#allocation1 + $0x10] sm:$0xff pattern:$0x75316420] }
  0x8c   :  { %v9481_v38 = vld.sshfl [vmem:[#allocation1 + $0x18] sm:$0xff pattern:$0x75316420] }
  0x8d   :  { %1095 = vst [vmem:[#allocation1 + $0x10] ss:$2 sm:$0xff] %v1078_v34  ;;  %v1513_v14 = vld.sshfl [vmem:[#allocation1 + $0x30] sm:$0xff pattern:$0x75316420] }
  0x8f   :  { %407 = vrot.lane.b32.xlu1 %v383_v16, %s9196_s14  ;;  %v1514_v16 = vld.sshfl [vmem:[#allocation1 + $0x38] sm:$0xff pattern:$0x75316420] }
  0x90   :  { %399 = vrot.lane.b32.xlu0 %v376_v13, %s9196_s14  ;;  %v1100_v41 = vld.sshfl [vmem:[#allocation1] sm:$0xff pattern:$0x75316420]  ;;  %v1101_v42 = vld.sshfl [vmem:[#allocation1 + $0x8] sm:$0xff pattern:$0x75316420] }
  0x91   :  { %1117 = vrot.lane.b32.xlu2 %v1100_v41, %s9197_s19  ;;  %1108 = vst [vmem:[#allocation1] ss:$2 sm:$0xff] %v1081_v39  ;;  %v2298_v41 = vld [vmem:[%s11586_s23] sm:$0x77] }
  0x92   :  { %v1104_v46 = vld.sshfl [vmem:[#allocation1 + $0x20] sm:$0xff pattern:$0x75316420]  ;;  %v1105_v47 = vld.sshfl [vmem:[#allocation1 + $0x28] sm:$0xff pattern:$0x75316420] }
  0x93   :  { %1110 = vst [vmem:[#allocation1 + $0x20] ss:$2 sm:$0xff] %v1083_v40 }
  0x94   :  { %v1102_v49 = vld.sshfl [vmem:[#allocation1 + $0x10] sm:$0xff pattern:$0x75316420]  ;;  %v1103_v50 = vld.sshfl [vmem:[#allocation1 + $0x18] sm:$0xff pattern:$0x75316420] }
  0x95   :  { %1109 = vst [vmem:[#allocation1 + $0x10] ss:$2 sm:$0xff] %v1082_v43 }
  0x96   :  { %1913 = vst [vmem:[#allocation1 + $0x30] ss:$2 sm:$0xff] %v1894_v17 }
  0x97   :  { %1131 = vrot.lane.b32.xlu1 %v1107_v45, %s9197_s19 }
  0x98   :  { %1119 = vrot.lane.b32.xlu0 %v1101_v42, %s9197_s19  ;;  %v1111_v52 = vld.sshfl [vmem:[#allocation1] sm:$0xff pattern:$0x75316420]  ;;  %v1112_v53 = vld.sshfl [vmem:[#allocation1 + $0x8] sm:$0xff pattern:$0x75316420] }
  0x99   :  { %1125 = vrot.lane.b32.xlu2 %v1104_v46, %s9197_s19  ;;  %1500 = vst [vmem:[#allocation1] ss:$2 sm:$0xff] %v1484_v51  ;;  %v2300_v46 = vld [vmem:[%s11586_s23 + $0x10] sm:$0x77] }
  0x9a   :  { %v1115_v56 = vld.sshfl [vmem:[#allocation1 + $0x20] sm:$0xff pattern:$0x75316420]  ;;  %v1116_v57 = vld.sshfl [vmem:[#allocation1 + $0x28] sm:$0xff pattern:$0x75316420] }
  0x9b   :  { %1504 = vst [vmem:[#allocation1 + $0x20] ss:$2 sm:$0xff] %v1486_v55 }
  0x9c   :  { %v1114_v58 = vld.sshfl [vmem:[#allocation1 + $0x18] sm:$0xff pattern:$0x75316420]  ;;  %v1113_v59 = vld.sshfl [vmem:[#allocation1 + $0x10] sm:$0xff pattern:$0x75316420] }
  0x9d   :  { %1502 = vst [vmem:[#allocation1 + $0x10] ss:$2 sm:$0xff] %v1485_v54 }
  0x9f   :  { %1123 = vrot.lane.b32.xlu1 %v1103_v50, %s9197_s19 }
  0xa0   :  { %1127 = vrot.lane.b32.xlu0 %v1105_v47, %s9197_s19  ;;  %v1507_v61 = vld.sshfl [vmem:[#allocation1] sm:$0xff pattern:$0x75316420]  ;;  %v1508_v1 = vld.sshfl [vmem:[#allocation1 + $0x8] sm:$0xff pattern:$0x75316420] }
  0xa1   :  { %1133 = vrot.lane.b32.xlu2 %v1111_v52, %s9197_s19  ;;  %1515 = vst [vmem:[#allocation1] ss:$2 sm:$0xff] %v1488_v62  ;;  %v2304_v62 = vld [vmem:[%s11586_s23 + $0x30] sm:$0x77] }
  0xa2   :  { %v1511_v2 = vld.sshfl [vmem:[#allocation1 + $0x20] sm:$0xff pattern:$0x75316420]  ;;  %v1512_v3 = vld.sshfl [vmem:[#allocation1 + $0x28] sm:$0xff pattern:$0x75316420] }
  0xa3   :  { %1517 = vst [vmem:[#allocation1 + $0x20] ss:$2 sm:$0xff] %v1490_v4 }
  0xa4   :  { %v1509_v63 = vld.sshfl [vmem:[#allocation1 + $0x10] sm:$0xff pattern:$0x75316420]  ;;  %v1510_v0 = vld.sshfl [vmem:[#allocation1 + $0x18] sm:$0xff pattern:$0x75316420] }
  0xa5   :  { %1516 = vst [vmem:[#allocation1 + $0x10] ss:$2 sm:$0xff] %v1489_v60  ;;  %v1921_v60 = vld.sshfl [vmem:[#allocation1 + $0x38] sm:$0xff pattern:$0x75316420] }
  0xa7   :  { %1139 = vrot.lane.b32.xlu1 %v1114_v58, %s9197_s19  ;;  %v2301_v58 = vld [vmem:[%s11586_s23 + $0x18] sm:$0x77] }
  0xa8   :  { %1135 = vrot.lane.b32.xlu0 %v1112_v53, %s9197_s19  ;;  %v9526_v5 = vld.sshfl [vmem:[#allocation1] sm:$0xff pattern:$0x75316420]  ;;  %v1519_v6 = vld.sshfl [vmem:[#allocation1 + $0x8] sm:$0xff pattern:$0x75316420] }
  0xa9   :  { %1141 = vrot.lane.b32.xlu2 %v1115_v56, %s9197_s19  ;;  %1907 = vst [vmem:[#allocation1] ss:$2 sm:$0xff] %v1891_v7  ;;  %v9591_v53 = vld.sshfl [vmem:[#allocation1 + $0x30] sm:$0xff pattern:$0x75316420] }
  0xaa   :  { %v9534_v8 = vld.sshfl [vmem:[#allocation1 + $0x20] sm:$0xff pattern:$0x75316420]  ;;  %v1523_v13 = vld.sshfl [vmem:[#allocation1 + $0x28] sm:$0xff pattern:$0x75316420] }
  0xab   :  { %1911 = vst [vmem:[#allocation1 + $0x20] ss:$2 sm:$0xff] %v1893_v10 }
  0xac   :  { %v1520_v11 = vld.sshfl [vmem:[#allocation1 + $0x10] sm:$0xff pattern:$0x75316420]  ;;  %v1521_v12 = vld.sshfl [vmem:[#allocation1 + $0x18] sm:$0xff pattern:$0x75316420] }
  0xad   :  { %1909 = vst [vmem:[#allocation1 + $0x10] ss:$2 sm:$0xff] %v1892_v9 }
  0xae   :  { %2320 = vst [vmem:[#allocation1 + $0x30] ss:$2 sm:$0xff] %v2301_v58 }
  0xaf   :  { %1143 = vrot.lane.b32.xlu1 %v1116_v57, %s9197_s19  ;;  %v2302_v57 = vld [vmem:[%s11586_s23 + $0x20] sm:$0x77] }
  0xb0   :  { %1121 = vrot.lane.b32.xlu0 %v1102_v49, %s9197_s19  ;;  %v1915_v21 = vld.sshfl [vmem:[#allocation1 + $0x8] sm:$0xff pattern:$0x75316420]  ;;  %v1914_v30 = vld.sshfl [vmem:[#allocation1] sm:$0xff pattern:$0x75316420] }
  0xb1   :  { %1526 = vrot.lane.b32.xlu2 %v1508_v1, %s9198_s2  ;;  %1922 = vst [vmem:[#allocation1] ss:$2 sm:$0xff] %v1895_v18  ;;  %v9615_v1 = vld [vmem:[#allocation4 + $0x8] sm:$0x1f] }
  0xb2   :  { %v1918_v42 = vld.sshfl [vmem:[#allocation1 + $0x20] sm:$0xff pattern:$0x75316420]  ;;  %v1919_v43 = vld.sshfl [vmem:[#allocation1 + $0x28] sm:$0xff pattern:$0x75316420] }
  0xb4   :  { %v9556_v19 = vld.sshfl [vmem:[#allocation1 + $0x10] sm:$0xff pattern:$0x75316420]  ;;  %v1917_v20 = vld.sshfl [vmem:[#allocation1 + $0x18] sm:$0xff pattern:$0x75316420] }
  0xb5   :  { %1923 = vst [vmem:[#allocation1 + $0x10] ss:$2 sm:$0xff] %v1896_v15 }
  0xb7   :  { %1129 = vrot.lane.b32.xlu1 %v1106_v44, %s9197_s19  ;;  %v1897_v44 = vld [vmem:[%s11586_s23 + $0x30] sm:$0x77] }
  0xb8   :  { %1528 = vrot.lane.b32.xlu0 %v1509_v63, %s9198_s2  ;;  %v1925_v34 = vld.sshfl [vmem:[#allocation1] sm:$0xff pattern:$0x75316420]  ;;  %v1926_v40 = vld.sshfl [vmem:[#allocation1 + $0x8] sm:$0xff pattern:$0x75316420] }
  0xb9   :  { %1530 = vrot.lane.b32.xlu2 %v1510_v0, %s9198_s2  ;;  %2314 = vst [vmem:[#allocation1] ss:$2 sm:$0xff] %v2298_v41 }
  0xba   :  { %1924 = vst [vmem:[#allocation1 + $0x20] ss:$2 sm:$0xff] %v1897_v44 }
  0xbc   :  { %v9582_v47 = vld.sshfl [vmem:[#allocation1 + $0x10] sm:$0xff pattern:$0x75316420]  ;;  %v1928_v51 = vld.sshfl [vmem:[#allocation1 + $0x18] sm:$0xff pattern:$0x75316420] }
  0xbd   :  { %2316 = vst [vmem:[#allocation1 + $0x10] ss:$2 sm:$0xff] %v2299_v48 }
  0xbf   :  { %1536 = vrot.lane.b32.xlu1 %v1513_v14, %s9198_s2  ;;  %v2303_v14 = vld [vmem:[%s11586_s23 + $0x28] sm:$0x77] }
  0xc0   :  { %1534 = vrot.lane.b32.xlu0 %v1512_v3, %s9198_s2  ;;  %v9588_v52 = vld.sshfl [vmem:[#allocation1] sm:$0xff pattern:$0x75316420]  ;;  %v9593_v54 = vld.sshfl [vmem:[#allocation1 + $0x8] sm:$0xff pattern:$0x75316420] }
  0xc1   :  { %1137 = vrot.lane.b32.xlu2 %v1113_v59, %s9197_s19  ;;  %v1929_v49 = vld.sshfl [vmem:[#allocation1 + $0x20] sm:$0xff pattern:$0x75316420]  ;;  %v1930_v50 = vld.sshfl [vmem:[#allocation1 + $0x28] sm:$0xff pattern:$0x75316420] }
  0xc2   :  { %2318 = vst [vmem:[#allocation1 + $0x20] ss:$2 sm:$0xff] %v2300_v46  ;;  %v2707_v46 = vld [vmem:[%s11586_s23 + $0x10] sm:$0x77] }
  0xc3   :  { %2329 = vst [vmem:[#allocation1] ss:$2 sm:$0xff] %v2302_v57 }
  0xc4   :  { %v2323_v9 = vld.sshfl [vmem:[#allocation1 + $0x10] sm:$0xff pattern:$0x75316420] }
  0xc7   :  { %1542 = vrot.lane.b32.xlu1 %v1519_v6, %s9198_s2 }
  0xc8   :  { %1538 = vrot.lane.b32.xlu0 %v1514_v16, %s9198_s2  ;;  %v9560_v31 = vpop.permute.xlu2 %397 }
  0xc9   :  { %1544 = vrot.lane.b32.xlu2 %v1520_v11, %s9198_s2  ;;  %v9612_v63 = vld.sshfl [vmem:[#allocation1 + $0x28] sm:$0xff pattern:$0x75316420] }
  0xca   :  { %v9660_v17 = vld.sshfl [vmem:[#allocation1] sm:$0xff pattern:$0x75316420] }
  0xcf   :  { %1546 = vrot.lane.b32.xlu1 %v1521_v12, %s9198_s2 }
  0xd0   :  { %1524 = vrot.lane.b32.xlu0 %v1507_v61, %s9198_s2  ;;  %v9565_v39 = vpop.permute.xlu2 %401  ;;  %v9605_v61 = vld.sshfl [vmem:[#allocation1 + $0x20] sm:$0xff pattern:$0x75316420] }
  0xd1   :  { %1550 = vrot.lane.b32.xlu2 %v1523_v13, %s9198_s2  ;;  %2331 = vst [vmem:[#allocation1 + $0x20] ss:$2 sm:$0xff] %v2304_v62  ;;  %v9636_v13 = vld.sshfl [vmem:[#allocation1 + $0x18] sm:$0xff pattern:$0x75316420] }
  0xd2   :  { %2330 = vst [vmem:[#allocation1 + $0x10] ss:$2 sm:$0xff] %v2303_v14 }
  0xd7   :  { %1931 = vrot.lane.b32.xlu1 %v1914_v30, %s9199_s4 }
  0xd8   :  { %1532 = vrot.lane.b32.xlu0 %v1511_v2, %s9198_s2  ;;  %v9576_v45 = vpop.permute.xlu2 %409  ;;  %v9688_v41 = vld.sshfl [vmem:[#allocation1 + $0x20] sm:$0xff pattern:$0x75316420] }
  0xd9   :  { %1933 = vrot.lane.b32.xlu2 %v1915_v21, %s9199_s4 }
  0xdf   :  { %1939 = vrot.lane.b32.xlu1 %v1918_v42, %s9199_s4  ;;  %v9690_v42 = vld.sshfl [vmem:[#allocation1 + $0x10] sm:$0xff pattern:$0x75316420] }
  0xe0   :  { %1937 = vrot.lane.b32.xlu0 %v1917_v20, %s9199_s4  ;;  %v9597_v56 = vpop.permute.xlu2 %413 }
  0xe1   :  { %1540 = vrot.lane.b32.xlu2 %v9526_v5, %s9198_s2  ;;  %v394_v55 = vpop.permute.xlu1 %393 }
  0xe2   :  { %v388_v59 = vpop.permute.xlu0 %387 }
  0xe7   :  { %1945 = vrot.lane.b32.xlu1 %v1921_v60, %s9199_s4 }
  0xe8   :  { %1941 = vrot.lane.b32.xlu0 %v1919_v43, %s9199_s4  ;;  %v9694_v43 = vld.sshfl [vmem:[#allocation1 + $0x18] sm:$0xff pattern:$0x75316420] }
  0xe9   :  { %1947 = vrot.lane.b32.xlu2 %v1925_v34, %s9199_s4  ;;  %v396_v0 = vpop.permute.xlu1 %395 }
  0xea   :  { %v390_v2 = vpop.permute.xlu0 %389  ;;  %v419_v3 = vsel %vm415_vm0, %v394_v55, %v396_v0  ;;  %v420_v6 = vsel %vm415_vm0, %v396_v0, %v9560_v31 }
  0xeb   :  { %v9618_v4 = vpop.permute.xlu2 %1117  ;;  %v416_v5 = vsel %vm415_vm0, %v388_v59, %v390_v2  ;;  %8154 = vmatpush.msk.msra.mxu3 %vm433_vm1, %v419_v3 }
  0xec   :  { %8148 = vmatpush.msk.msra.mxu0 %vm433_vm1, %v416_v5  ;;  %8155 = vmatmul.msk.f32.vlgmr.msra.gmra.mxu3 %vm429_vm2, %v9615_v1  ;;  %v3120_v5 = vld [vmem:[%s11586_s23 + $0x8] sm:$0x77] }
  0xed   :  { %8149 = vmatmul.msk.f32.vlgmr.msra.gmra.mxu0 %vm429_vm2, %v9615_v1 }
  0xee   :  { %8156 = vmatpush.msk.msrb.mxu0 %vm433_vm1, %v420_v6  ;;  %v3119_v6 = vld [vmem:[%s11586_s23] sm:$0x77] }
  0xef   :  { %1949 = vrot.lane.b32.xlu1 %v1926_v40, %s9199_s4  ;;  %v2705_v40 = vld [vmem:[%s11586_s23] sm:$0x77] }
  0xf0   :  { %1548 = vrot.lane.b32.xlu0 %v9534_v8, %s9198_s2 }
  0xf1   :  { %1953 = vrot.lane.b32.xlu2 %v1928_v51, %s9199_s4  ;;  %v392_v7 = vpop.permute.xlu1 %391 }
  0xf2   :  { %v404_v10 = vpop.permute.xlu0 %403  ;;  %v417_v11 = vsel %vm415_vm0, %v390_v2, %v392_v7  ;;  %v418_v12 = vsel %vm415_vm0, %v392_v7, %v394_v55  ;;  %v2328_v55 = vld.sshfl [vmem:[#allocation1 + $0x38] sm:$0xff pattern:$0x75316420] }
  0xf3   :  { %v9641_v15 = vpop.permute.xlu2 %1125  ;;  %8150 = vmatpush.msk.msra.mxu1 %vm433_vm1, %v417_v11  ;;  %8152 = vmatpush.msk.msra.mxu2 %vm433_vm1, %v418_v12  ;;  %v423_v8 = vsel %vm415_vm0, %v9565_v39, %v404_v10 }
  0xf4   :  { %8162 = vmatpush.msk.msrb.mxu3 %vm433_vm1, %v423_v8  ;;  %8151 = vmatmul.msk.f32.vlgmr.msra.gmra.mxu1 %vm429_vm2, %v9615_v1 }
  0xf5   :  { %8157 = vmatmul.msk.f32.vlgmr.msrb.gmra.mxu0 %vm429_vm2, %v9615_v1  ;;  %8163 = vmatmul.msk.f32.vlgmr.msrb.gmra.mxu3 %vm429_vm2, %v9615_v1 }
  0xf6   :  { %8153 = vmatmul.msk.f32.vlgmr.msra.gmra.mxu2 %vm429_vm2, %v9615_v1 }
  0xf7   :  { %1935 = vrot.lane.b32.xlu1 %v9556_v19, %s9199_s4  ;;  %v2333_v19 = vld.sshfl [vmem:[#allocation1 + $0x8] sm:$0xff pattern:$0x75316420] }
  0xf8   :  { %1955 = vrot.lane.b32.xlu0 %v1929_v49, %s9199_s4  ;;  %2723 = vst [vmem:[#allocation1] ss:$2 sm:$0xff] %v2705_v40 }
  0xf9   :  { %1957 = vrot.lane.b32.xlu2 %v1930_v50, %s9199_s4  ;;  %v406_v16 = vpop.permute.xlu1 %405 }
  0xfa   :  { %v424_v18 = vsel %vm415_vm0, %v404_v10, %v406_v16  ;;  %v412_v20 = vpop.permute.xlu0 %411  ;;  %v9861_v10 = vld [vmem:[#allocation4 + $0x10] sm:$0x1f] }
  0xfb   :  { %v427_v21 = vsel %vm415_vm0, %v9576_v45, %v412_v20  ;;  %v428_v30 = vsel %vm415_vm0, %v412_v20, %v9597_v56  ;;  %v9667_v34 = vpop.permute.xlu2 %1133  ;;  %8164 = vmatpush.msk.msra.mxu0 %vm433_vm1, %v424_v18 }
  0xfc   :  { %8170 = vmatpush.msk.msra.mxu3 %vm433_vm1, %v427_v21 }
  0xfd   :  { %8172 = vmatpush.msk.msrb.mxu0 %vm433_vm1, %v428_v30  ;;  %8171 = vmatmul.msk.f32.vlgmr.msra.gmra.mxu3 %vm429_vm2, %v9615_v1 }
  0xfe   :  { %8165 = vmatmul.msk.f32.vlgmr.msra.gmra.mxu0 %vm429_vm2, %v9615_v1  ;;  %8178 = vmatpush.msk.msrb.mxu3 %vm433_vm1, %v9449_v25 }
  0xff   :  { %8180 = vmatpush.msk.msra.mxu0 %vm433_vm1, %v9451_v26  ;;  %2342 = vrot.lane.b32.xlu1 %v2323_v9, %s9200_s18  ;;  %v9696_v26 = vld.sshfl [vmem:[#allocation1 + $0x28] sm:$0xff pattern:$0x75316420] }
 0x100   :  { %8186 = vmatpush.msk.msra.mxu3 %vm433_vm1, %v9455_v28  ;;  %2340 = vrot.lane.b32.xlu0 %v9593_v54, %s9200_s18  ;;  %v2706_v28 = vld [vmem:[%s11586_s23 + $0x8] sm:$0x77]  ;;  %2727 = vst [vmem:[#allocation1 + $0x20] ss:$2 sm:$0xff] %v2707_v46  ;;  %v3122_v46 = vld [vmem:[%s11586_s23 + $0x18] sm:$0x77] }
 0x101   :  { %1943 = vrot.lane.b32.xlu2 %v9591_v53, %s9199_s4  ;;  %v408_v25 = vpop.permute.xlu1 %407  ;;  %2725 = vst [vmem:[#allocation1 + $0x10] ss:$2 sm:$0xff] %v2706_v28  ;;  %v9715_v54 = vld [vmem:[#allocation4] sm:$0x1f] }
 0x102   :  { %v400_v44 = vpop.permute.xlu0 %399  ;;  %v425_v48 = vsel %vm415_vm0, %v406_v16, %v408_v25  ;;  %v426_v49 = vsel %vm415_vm0, %v408_v25, %v9576_v45 }
 0x103   :  { %v9707_v50 = vpop.permute.xlu2 %1141  ;;  %v421_v51 = vsel %vm415_vm0, %v9560_v31, %v400_v44  ;;  %v422_v53 = vsel %vm415_vm0, %v400_v44, %v9565_v39  ;;  %v2327_v31 = vld.sshfl [vmem:[#allocation1 + $0x30] sm:$0xff pattern:$0x75316420] }
 0x104   :  { %8158 = vmatpush.msk.msrb.mxu1 %vm433_vm1, %v421_v51  ;;  %8160 = vmatpush.msk.msrb.mxu2 %vm433_vm1, %v422_v53 }
 0x105   :  { %8159 = vmatmul.msk.f32.vlgmr.msrb.gmra.mxu1 %vm429_vm2, %v9615_v1  ;;  %8161 = vmatmul.msk.f32.vlgmr.msrb.gmra.mxu2 %vm429_vm2, %v9615_v1 }
 0x106   :  { %8166 = vmatpush.msk.msra.mxu1 %vm433_vm1, %v425_v48  ;;  %8168 = vmatpush.msk.msra.mxu2 %vm433_vm1, %v426_v49 }
 0x107   :  { %8173 = vmatmul.msk.f32.vlgmr.msrb.gmra.mxu0 %vm429_vm2, %v9615_v1  ;;  %8179 = vmatmul.msk.f32.vlgmr.msrb.gmra.mxu3 %vm429_vm2, %v9715_v54  ;;  %v2734_v59 = vld.sshfl [vmem:[#allocation1 + $0x20] sm:$0xff pattern:$0x75316420]  ;;  %v9807_v60 = vld.sshfl [vmem:[#allocation1 + $0x28] sm:$0xff pattern:$0x75316420] }
 0x108   :  { %8174 = vmatpush.msk.msrb.mxu1 %vm433_vm1, %v9597_v56  ;;  %2348 = vrot.lane.b32.xlu1 %v9612_v63, %s9200_s18  ;;  %v2708_v56 = vld [vmem:[%s11586_s23 + $0x18] sm:$0x77]  ;;  %v2711_v63 = vld [vmem:[%s11586_s23 + $0x30] sm:$0x77] }
 0x109   :  { %2350 = vrot.lane.b32.xlu2 %v2327_v31, %s9200_s18  ;;  %2344 = vrot.lane.b32.xlu0 %v9636_v13, %s9200_s18  ;;  %v9734_v39 = vpop.permute.xlu1 %1131  ;;  %2729 = vst [vmem:[#allocation1 + $0x30] ss:$2 sm:$0xff] %v2708_v56  ;;  %v9814_v0 = vld.sshfl [vmem:[#allocation1 + $0x10] sm:$0xff pattern:$0x75316420] }
 0x10a   :  { %v9736_v45 = vpop.permute.xlu0 %1119  ;;  %8188 = vmatpush.msk.msrb.mxu0 %vm433_vm1, %v9440_v22  ;;  %8194 = vmatpush.msk.msrb.mxu3 %vm433_vm1, %v9470_v33  ;;  %v2709_v33 = vld [vmem:[%s11586_s23 + $0x20] sm:$0x77]  ;;  %2740 = vst [vmem:[#allocation1 + $0x20] ss:$2 sm:$0xff] %v2711_v63  ;;  %v3126_v63 = vld [vmem:[%s11586_s23 + $0x38] sm:$0x7] }
 0x10b   :  { %v9745_v57 = vpop.permute.xlu2 %1526  ;;  %8176 = vmatpush.msk.msrb.mxu2 %vm433_vm1, %v9447_v24  ;;  %v2730_v24 = vld.sshfl [vmem:[#allocation1] sm:$0xff pattern:$0x75316420] }
 0x10d   :  { %8167 = vmatmul.msk.f32.vlgmr.msra.gmra.mxu1 %vm429_vm2, %v9615_v1  ;;  %8169 = vmatmul.msk.f32.vlgmr.msra.gmra.mxu2 %vm429_vm2, %v9615_v1 }
 0x10e   :  { %8182 = vmatpush.msk.msra.mxu1 %vm433_vm1, %v9457_v29  ;;  %8184 = vmatpush.msk.msra.mxu2 %vm433_vm1, %v9453_v27  ;;  %v9771_v27 = vld.sshfl [vmem:[#allocation1 + $0x8] sm:$0xff pattern:$0x75316420] }
 0x10f   :  { %8181 = vmatmul.msk.f32.vlgmr.msra.gmra.mxu0 %vm429_vm2, %v9715_v54  ;;  %8187 = vmatmul.msk.f32.vlgmr.msra.gmra.mxu3 %vm429_vm2, %v9715_v54  ;;  %2738 = vst [vmem:[#allocation1] ss:$2 sm:$0xff] %v2709_v33 }
 0x110   :  { %2352 = vrot.lane.b32.xlu1 %v2328_v55, %s9200_s18  ;;  %8196 = vmatpush.msk.msra.mxu0 %vm433_vm1, %v9479_v37  ;;  %v9911_v25 = vld.sshfl [vmem:[#allocation1 + $0x30] sm:$0xff pattern:$0x75316420]  ;;  %v3124_v55 = vld [vmem:[%s11586_s23 + $0x28] sm:$0x77] }
 0x111   :  { %1951 = vrot.lane.b32.xlu0 %v9582_v47, %s9199_s4  ;;  %2356 = vrot.lane.b32.xlu2 %v2333_v19, %s9200_s18  ;;  %v1124_v22 = vpop.permute.xlu1 %1123  ;;  %v2733_v47 = vld.sshfl [vmem:[#allocation1 + $0x18] sm:$0xff pattern:$0x75316420]  ;;  %v9889_v16 = vld.sshfl [vmem:[#allocation1 + $0x20] sm:$0xff pattern:$0x75316420] }
 0x112   :  { %v9767_v29 = vpop.permute.xlu0 %1127  ;;  %8202 = vmatpush.msk.msra.mxu3 %vm433_vm1, %v9477_v36  ;;  %v1149_v37 = vsel %vm1145_vm3, %v1124_v22, %v9641_v15  ;;  %v1146_v36 = vsel %vm1145_vm3, %v9618_v4, %v9736_v45  ;;  %v9891_v18 = vld.sshfl [vmem:[#allocation1 + $0x28] sm:$0xff pattern:$0x75316420]  ;;  %v2712_v19 = vld [vmem:[%s11586_s23 + $0x38] sm:$0x7] }
 0x113   :  { %v9776_v58 = vpop.permute.xlu2 %1530  ;;  %v1150_v2 = vsel %vm1145_vm3, %v9641_v15, %v9767_v29 }
 0x115   :  { %8175 = vmatmul.msk.f32.vlgmr.msrb.gmra.mxu1 %vm429_vm2, %v9615_v1  ;;  %8177 = vmatmul.msk.f32.vlgmr.msrb.gmra.mxu2 %vm429_vm2, %v9715_v54  ;;  %v1153_v1 = vsel %vm1145_vm3, %v9734_v39, %v9667_v34 }
 0x116   :  { %8190 = vmatpush.msk.msrb.mxu1 %vm433_vm1, %v9442_v23  ;;  %8192 = vmatpush.msk.msrb.mxu2 %vm433_vm1, %v9468_v32  ;;  %v9847_v3 = vld.sshfl [vmem:[#allocation1] sm:$0xff pattern:$0x75316420] }
 0x117   :  { %8189 = vmatmul.msk.f32.vlgmr.msrb.gmra.mxu0 %vm429_vm2, %v9715_v54  ;;  %8195 = vmatmul.msk.f32.vlgmr.msrb.gmra.mxu3 %vm429_vm2, %v9715_v54 }
 0x118   :  { %8204 = vmatpush.msk.msrb.mxu0 %vm433_vm1, %v1146_v36  ;;  %8210 = vmatpush.msk.msrb.mxu3 %vm433_vm1, %v1149_v37 }
 0x119   :  { %2358 = vrot.lane.b32.xlu0 %v9690_v42, %s9200_s18  ;;  %2338 = vrot.lane.b32.xlu1 %v9588_v52, %s9200_s18  ;;  %v9801_v23 = vpop.permute.xlu1 %1139  ;;  %v2710_v52 = vld [vmem:[%s11586_s23 + $0x28] sm:$0x77]  ;;  %v2737_v42 = vld.sshfl [vmem:[#allocation1 + $0x38] sm:$0xff pattern:$0x75316420] }
 0x11a   :  { %2360 = vrot.lane.b32.xlu2 %v9694_v43, %s9200_s18  ;;  %v9805_v32 = vpop.permute.xlu0 %1135  ;;  %2739 = vst [vmem:[#allocation1 + $0x10] ss:$2 sm:$0xff] %v2710_v52  ;;  %v1157_v13 = vsel %vm1145_vm3, %v9801_v23, %v9707_v50 }
 0x11b   :  { %v9809_v62 = vpop.permute.xlu2 %1137  ;;  %v1154_v14 = vsel %vm1145_vm3, %v9667_v34, %v9805_v32  ;;  %v3121_v34 = vld [vmem:[%s11586_s23 + $0x10] sm:$0x77]  ;;  %2741 = vst [vmem:[#allocation1 + $0x30] ss:$2 sm:$0xff] %v2712_v19 }
 0x11c   :  { %3141 = vst [vmem:[#allocation1 + $0x20] ss:$2 sm:$0xff] %v3121_v34  ;;  %v1155_v48 = vsel %vm1145_vm3, %v9805_v32, %v9809_v62  ;;  %v1156_v49 = vsel %vm1145_vm3, %v9809_v62, %v9801_v23  ;;  %v3125_v32 = vld [vmem:[%s11586_s23 + $0x30] sm:$0x77] }
 0x11d   :  { %8183 = vmatmul.msk.f32.vlgmr.msra.gmra.mxu1 %vm429_vm2, %v9715_v54  ;;  %8185 = vmatmul.msk.f32.vlgmr.msra.gmra.mxu2 %vm429_vm2, %v9715_v54 }
 0x11e   :  { %8198 = vmatpush.msk.msra.mxu1 %vm433_vm1, %v9481_v38  ;;  %8200 = vmatpush.msk.msra.mxu2 %vm433_vm1, %v9475_v35  ;;  %v9845_v38 = vld.sshfl [vmem:[#allocation1 + $0x8] sm:$0xff pattern:$0x75316420] }
 0x11f   :  { %8197 = vmatmul.msk.f32.vlgmr.msra.gmra.mxu0 %vm429_vm2, %v9715_v54  ;;  %8203 = vmatmul.msk.f32.vlgmr.msra.gmra.mxu3 %vm429_vm2, %v9715_v54  ;;  %3137 = vst [vmem:[#allocation1] ss:$2 sm:$0xff] %v3119_v6 }
 0x120   :  { %8212 = vmatpush.msk.msra.mxu0 %vm433_vm1, %v1150_v2  ;;  %8218 = vmatpush.msk.msra.mxu3 %vm433_vm1, %v1153_v1 }
 0x121   :  { %2364 = vrot.lane.b32.xlu0 %v9696_v26, %s9200_s18  ;;  %2346 = vrot.lane.b32.xlu1 %v9605_v61, %s9200_s18  ;;  %v9843_v35 = vpop.permute.xlu1 %1143  ;;  %v9863_v11 = vld.sshfl [vmem:[#allocation1 + $0x18] sm:$0xff pattern:$0x75316420]  ;;  %v9865_v12 = vld.sshfl [vmem:[#allocation1 + $0x10] sm:$0xff pattern:$0x75316420] }
 0x122   :  { %2749 = vrot.lane.b32.xlu2 %v2730_v24, %s9201_s3  ;;  %v1122_v4 = vpop.permute.xlu0 %1121  ;;  %3139 = vst [vmem:[#allocation1 + $0x10] ss:$2 sm:$0xff] %v3120_v5  ;;  %v1158_v43 = vsel %vm1145_vm3, %v9707_v50, %v9843_v35  ;;  %v9948_v50 = vld.sshfl [vmem:[#allocation1 + $0x30] sm:$0xff pattern:$0x75316420] }
 0x123   :  { %v1147_v61 = vsel %vm1145_vm3, %v9736_v45, %v1122_v4  ;;  %v1148_v7 = vsel %vm1145_vm3, %v1122_v4, %v1124_v22  ;;  %v9859_v9 = vpop.permute.xlu2 %1544  ;;  %3143 = vst [vmem:[#allocation1 + $0x30] ss:$2 sm:$0xff] %v3122_v46  ;;  %v3123_v22 = vld [vmem:[%s11586_s23 + $0x20] sm:$0x77] }
 0x124   :  { %v9978_v24 = vld [vmem:[#allocation4 + $0x18] sm:$0x1f]  ;;  %v3149_v37 = vld.sshfl [vmem:[#allocation1 + $0x28] sm:$0xff pattern:$0x75316420] }
 0x125   :  { %8191 = vmatmul.msk.f32.vlgmr.msrb.gmra.mxu1 %vm429_vm2, %v9715_v54  ;;  %8193 = vmatmul.msk.f32.vlgmr.msrb.gmra.mxu2 %vm429_vm2, %v9715_v54  ;;  %v10013_v62 = vld.sshfl [vmem:[#allocation1 + $0x20] sm:$0xff pattern:$0x75316420] }
 0x126   :  { %8206 = vmatpush.msk.msrb.mxu1 %vm433_vm1, %v1147_v61  ;;  %8208 = vmatpush.msk.msrb.mxu2 %vm433_vm1, %v1148_v7  ;;  %v3145_v31 = vld.sshfl [vmem:[#allocation1 + $0x8] sm:$0xff pattern:$0x75316420]  ;;  %v9973_v56 = vld.sshfl [vmem:[#allocation1] sm:$0xff pattern:$0x75316420] }
 0x127   :  { %8205 = vmatmul.msk.f32.vlgmr.msrb.gmra.mxu0 %vm429_vm2, %v9861_v10  ;;  %8211 = vmatmul.msk.f32.vlgmr.msrb.gmra.mxu3 %vm429_vm2, %v9861_v10  ;;  %3152 = vst [vmem:[#allocation1] ss:$2 sm:$0xff] %v3123_v22  ;;  %v3533_v4 = vld [vmem:[%s11586_s23] sm:$0x77] }
 0x128   :  { %8220 = vmatpush.msk.msrb.mxu0 %vm433_vm1, %v1154_v14  ;;  %8226 = vmatpush.msk.msrb.mxu3 %vm433_vm1, %v1157_v13  ;;  %3154 = vst [vmem:[#allocation1 + $0x20] ss:$2 sm:$0xff] %v3125_v32 }
 0x129   :  { %2755 = vrot.lane.b32.xlu1 %v2733_v47, %s9201_s3  ;;  %2751 = vrot.lane.b32.xlu0 %v9771_v27, %s9201_s3  ;;  %v1130_v15 = vpop.permute.xlu1 %1129 }
 0x12a   :  { %2757 = vrot.lane.b32.xlu2 %v2734_v59, %s9201_s3  ;;  %v1529_v8 = vpop.permute.xlu0 %1528  ;;  %v1151_v20 = vsel %vm1145_vm3, %v9767_v29, %v1130_v15  ;;  %v1152_v21 = vsel %vm1145_vm3, %v1130_v15, %v9734_v39  ;;  %v9966_v39 = vld.sshfl [vmem:[#allocation1 + $0x18] sm:$0xff pattern:$0x75316420] }
 0x12b   :  { %v9897_v30 = vpop.permute.xlu2 %1550  ;;  %v1554_v40 = vsel %vm1552_vm4, %v9745_v57, %v1529_v8  ;;  %v1555_v51 = vsel %vm1552_vm4, %v1529_v8, %v9776_v58  ;;  %v10004_v23 = vld.sshfl [vmem:[#allocation1 + $0x38] sm:$0xff pattern:$0x75316420] }
 0x12d   :  { %8199 = vmatmul.msk.f32.vlgmr.msra.gmra.mxu1 %vm429_vm2, %v9715_v54  ;;  %8201 = vmatmul.msk.f32.vlgmr.msra.gmra.mxu2 %vm429_vm2, %v9715_v54  ;;  %v3146_v54 = vld.sshfl [vmem:[#allocation1 + $0x10] sm:$0xff pattern:$0x75316420] }
 0x12e   :  { %8214 = vmatpush.msk.msra.mxu1 %vm433_vm1, %v1151_v20  ;;  %8216 = vmatpush.msk.msra.mxu2 %vm433_vm1, %v1152_v21  ;;  %3153 = vst [vmem:[#allocation1 + $0x10] ss:$2 sm:$0xff] %v3124_v55  ;;  %v10037_v1 = vld.sshfl [vmem:[#allocation1] sm:$0xff pattern:$0x75316420] }
 0x12f   :  { %8213 = vmatmul.msk.f32.vlgmr.msra.gmra.mxu0 %vm429_vm2, %v9861_v10  ;;  %8219 = vmatmul.msk.f32.vlgmr.msra.gmra.mxu3 %vm429_vm2, %v9861_v10  ;;  %v10074_v13 = vld.sshfl [vmem:[#allocation1 + $0x20] sm:$0xff pattern:$0x75316420]  ;;  %v3161_v8 = vld.sshfl [vmem:[#allocation1 + $0x28] sm:$0xff pattern:$0x75316420] }
 0x130   :  { %8228 = vmatpush.msk.msra.mxu0 %vm433_vm1, %v1158_v43  ;;  %8234 = vmatpush.msk.msra.mxu3 %vm433_vm1, %v1554_v40  ;;  %v10101_v40 = vld [vmem:[#allocation4 + $0x20] sm:$0x1f] }
 0x131   :  { %2759 = vrot.lane.b32.xlu1 %v9807_v60, %s9201_s3  ;;  %2354 = vrot.lane.b32.xlu0 %v9660_v17, %s9200_s18  ;;  %v1537_v26 = vpop.permute.xlu1 %1536  ;;  %v3150_v60 = vld.sshfl [vmem:[#allocation1 + $0x30] sm:$0xff pattern:$0x75316420] }
 0x132   :  { %2763 = vrot.lane.b32.xlu2 %v2737_v42, %s9201_s3  ;;  %v9929_v44 = vpop.permute.xlu0 %1534  ;;  %3155 = vst [vmem:[#allocation1 + $0x30] ss:$2 sm:$0xff] %v3126_v63 }
 0x133   :  { %v9931_v28 = vpop.permute.xlu2 %1933  ;;  %v1558_v17 = vsel %vm1552_vm4, %v9929_v44, %v1537_v26 }
 0x135   :  { %8207 = vmatmul.msk.f32.vlgmr.msrb.gmra.mxu1 %vm429_vm2, %v9861_v10  ;;  %8209 = vmatmul.msk.f32.vlgmr.msrb.gmra.mxu2 %vm429_vm2, %v9861_v10  ;;  %v3158_v7 = vld.sshfl [vmem:[#allocation1 + $0x10] sm:$0xff pattern:$0x75316420] }
 0x136   :  { %8222 = vmatpush.msk.msrb.mxu1 %vm433_vm1, %v1155_v48  ;;  %8224 = vmatpush.msk.msrb.mxu2 %vm433_vm1, %v1156_v49 }
 0x137   :  { %8221 = vmatmul.msk.f32.vlgmr.msrb.gmra.mxu0 %vm429_vm2, %v9861_v10  ;;  %8227 = vmatmul.msk.f32.vlgmr.msrb.gmra.mxu3 %vm429_vm2, %v9861_v10 }
 0x138   :  { %8236 = vmatpush.msk.msrb.mxu0 %vm433_vm1, %v1555_v51  ;;  %8242 = vmatpush.msk.msrb.mxu3 %vm433_vm1, %v1558_v17 }
 0x139   :  { %2362 = vrot.lane.b32.xlu1 %v9688_v41, %s9200_s18  ;;  %2765 = vrot.lane.b32.xlu0 %v9847_v3, %s9201_s3  ;;  %v9964_v53 = vpop.permute.xlu1 %1542  ;;  %v3157_v3 = vld.sshfl [vmem:[#allocation1 + $0x8] sm:$0xff pattern:$0x75316420]  ;;  %v3162_v43 = vld.sshfl [vmem:[#allocation1 + $0x30] sm:$0xff pattern:$0x75316420] }
 0x13a   :  { %2767 = vrot.lane.b32.xlu2 %v9845_v38, %s9201_s3  ;;  %v1539_v45 = vpop.permute.xlu0 %1538  ;;  %v1562_v27 = vsel %vm1552_vm4, %v9964_v53, %v9859_v9  ;;  %3551 = vst [vmem:[#allocation1] ss:$2 sm:$0xff] %v3533_v4  ;;  %s9207_s18 = smov 112  }
 0x13b   :  { %v1541_v41 = vpop.permute.xlu2 %1540  ;;  %v1559_v29 = vsel %vm1552_vm4, %v1537_v26, %v1539_v45  ;;  %v3536_v26 = vld [vmem:[%s11586_s23 + $0x18] sm:$0x77] }
 0x13c   :  { %v1560_v5 = vsel %vm1552_vm4, %v1539_v45, %v1541_v41  ;;  %3557 = vst [vmem:[#allocation1 + $0x30] ss:$2 sm:$0xff] %v3536_v26 }
 0x13d   :  { %8215 = vmatmul.msk.f32.vlgmr.msra.gmra.mxu1 %vm429_vm2, %v9861_v10  ;;  %8217 = vmatmul.msk.f32.vlgmr.msra.gmra.mxu2 %vm429_vm2, %v9861_v10 }
 0x13e   :  { %8230 = vmatpush.msk.msra.mxu1 %vm433_vm1, %v9843_v35 }
 0x13f   :  { %8229 = vmatmul.msk.f32.vlgmr.msra.gmra.mxu0 %vm429_vm2, %v9861_v10  ;;  %8235 = vmatmul.msk.f32.vlgmr.msra.gmra.mxu3 %vm429_vm2, %v9978_v24 }
 0x140   :  { %8244 = vmatpush.msk.msra.mxu0 %vm433_vm1, %v1559_v29  ;;  %8250 = vmatpush.msk.msra.mxu3 %vm433_vm1, %v1562_v27 }
 0x141   :  { %2773 = vrot.lane.b32.xlu1 %v9889_v16, %s9201_s3  ;;  %2771 = vrot.lane.b32.xlu0 %v9863_v11, %s9201_s3  ;;  %v10000_v33 = vpop.permute.xlu1 %1546  ;;  %v3534_v11 = vld [vmem:[%s11586_s23 + $0x8] sm:$0x77]  ;;  %v3535_v16 = vld [vmem:[%s11586_s23 + $0x10] sm:$0x77] }
 0x142   :  { %2753 = vrot.lane.b32.xlu2 %v9814_v0, %s9201_s3  ;;  %v1525_v36 = vpop.permute.xlu0 %1524  ;;  %v1563_v0 = vsel %vm1552_vm4, %v9859_v9, %v10000_v33  ;;  %v3159_v9 = vld.sshfl [vmem:[#allocation1 + $0x18] sm:$0xff pattern:$0x75316420]  ;;  %3555 = vst [vmem:[#allocation1 + $0x20] ss:$2 sm:$0xff] %v3535_v16 }
 0x143   :  { %v1553_v47 = vsel %vm1552_vm4, %v1525_v36, %v9745_v57  ;;  %v10011_v59 = vpop.permute.xlu2 %1947  ;;  %3553 = vst [vmem:[#allocation1 + $0x10] ss:$2 sm:$0xff] %v3534_v11  ;;  %v3539_v36 = vld [vmem:[%s11586_s23 + $0x30] sm:$0x77] }
 0x144   :  { %8232 = vmatpush.msk.msra.mxu2 %vm433_vm1, %v1553_v47  ;;  %v3565_v4 = vld.sshfl [vmem:[#allocation1 + $0x38] sm:$0xff pattern:$0x75316420] }
 0x145   :  { %8223 = vmatmul.msk.f32.vlgmr.msrb.gmra.mxu1 %vm429_vm2, %v9861_v10  ;;  %8225 = vmatmul.msk.f32.vlgmr.msrb.gmra.mxu2 %vm429_vm2, %v9861_v10 }
 0x147   :  { %8237 = vmatmul.msk.f32.vlgmr.msrb.gmra.mxu0 %vm429_vm2, %v9978_v24  ;;  %8243 = vmatmul.msk.f32.vlgmr.msrb.gmra.mxu3 %vm429_vm2, %v9978_v24 }
 0x148   :  { %8252 = vmatpush.msk.msrb.mxu0 %vm433_vm1, %v1563_v0  ;;  %8258 = vmatpush.msk.msrb.mxu3 %vm433_vm1, %v9897_v30 }
 0x149   :  { %2775 = vrot.lane.b32.xlu0 %v9891_v18, %s9201_s3  ;;  %3165 = vrot.lane.b32.xlu1 %v3145_v31, %s9202_s7  ;;  %v1932_v57 = vpop.permute.xlu1 %1931  ;;  %v3562_v29 = vld.sshfl [vmem:[#allocation1 + $0x20] sm:$0xff pattern:$0x75316420] }
 0x14a   :  { %3167 = vrot.lane.b32.xlu2 %v3146_v54, %s9202_s7  ;;  %v1533_v52 = vpop.permute.xlu0 %1532  ;;  %v1960_v6 = vsel %vm1959_vm5, %v1932_v57, %v9931_v28  ;;  %v3558_v54 = vld.sshfl [vmem:[#allocation1] sm:$0xff pattern:$0x75316420]  ;;  %v3561_v47 = vld.sshfl [vmem:[#allocation1 + $0x18] sm:$0xff pattern:$0x75316420] }
 0x14b   :  { %v1556_v2 = vsel %vm1552_vm4, %v9776_v58, %v1533_v52  ;;  %v1557_v35 = vsel %vm1552_vm4, %v1533_v52, %v9929_v44  ;;  %v10043_v38 = vpop.permute.xlu2 %1953  ;;  %v1561_v58 = vsel %vm1552_vm4, %v1541_v41, %v9964_v53 }
 0x14c   :  { %8238 = vmatpush.msk.msrb.mxu1 %vm433_vm1, %v1556_v2  ;;  %8240 = vmatpush.msk.msrb.mxu2 %vm433_vm1, %v1557_v35 }
 0x14d   :  { %8231 = vmatmul.msk.f32.vlgmr.msra.gmra.mxu1 %vm429_vm2, %v9861_v10  ;;  %8233 = vmatmul.msk.f32.vlgmr.msra.gmra.mxu2 %vm429_vm2, %v9978_v24 }
 0x14e   :  { %8246 = vmatpush.msk.msra.mxu1 %vm433_vm1, %v1560_v5  ;;  %8248 = vmatpush.msk.msra.mxu2 %vm433_vm1, %v1561_v58 }
 0x14f   :  { %8245 = vmatmul.msk.f32.vlgmr.msra.gmra.mxu0 %vm429_vm2, %v9978_v24  ;;  %8251 = vmatmul.msk.f32.vlgmr.msra.gmra.mxu3 %vm429_vm2, %v9978_v24 }
 0x150   :  { %8260 = vmatpush.msk.msra.mxu0 %vm433_vm1, %v1960_v6  ;;  %v3564_v6 = vld.sshfl [vmem:[#allocation1 + $0x30] sm:$0xff pattern:$0x75316420] }
 0x151   :  { %2761 = vrot.lane.b32.xlu0 %v9911_v25, %s9201_s3  ;;  %3169 = vrot.lane.b32.xlu1 %v9966_v39, %s9202_s7  ;;  %v1940_v61 = vpop.permute.xlu1 %1939 }
 0x152   :  { %3173 = vrot.lane.b32.xlu2 %v3149_v37, %s9202_s7  ;;  %v1938_v10 = vpop.permute.xlu0 %1937  ;;  %v3563_v37 = vld.sshfl [vmem:[#allocation1 + $0x28] sm:$0xff pattern:$0x75316420] }
 0x153   :  { %v1963_v14 = vsel %vm1959_vm5, %v1938_v10, %v1940_v61  ;;  %v10077_v15 = vpop.permute.xlu2 %1957  ;;  %3568 = vst [vmem:[#allocation1 + $0x20] ss:$2 sm:$0xff] %v3539_v36 }
 0x154   :  { %8266 = vmatpush.msk.msra.mxu3 %vm433_vm1, %v1963_v14  ;;  %v3560_v14 = vld.sshfl [vmem:[#allocation1 + $0x10] sm:$0xff pattern:$0x75316420] }
 0x155   :  { %8239 = vmatmul.msk.f32.vlgmr.msrb.gmra.mxu1 %vm429_vm2, %v9978_v24  ;;  %8241 = vmatmul.msk.f32.vlgmr.msrb.gmra.mxu2 %vm429_vm2, %v9978_v24 }
 0x157   :  { %8253 = vmatmul.msk.f32.vlgmr.msrb.gmra.mxu0 %vm429_vm2, %v9978_v24  ;;  %8259 = vmatmul.msk.f32.vlgmr.msrb.gmra.mxu3 %vm429_vm2, %v9978_v24 }
 0x159   :  { %3175 = vrot.lane.b32.xlu0 %v3150_v60, %s9202_s7  ;;  %2769 = vrot.lane.b32.xlu1 %v9865_v12, %s9201_s3  ;;  %v1946_v18 = vpop.permute.xlu1 %1945 }
 0x15a   :  { %3177 = vrot.lane.b32.xlu2 %v10004_v23, %s9202_s7  ;;  %v1942_v20 = vpop.permute.xlu0 %1941  ;;  %v1967_v21 = vsel %vm1959_vm5, %v1946_v18, %v10011_v59 }
 0x15b   :  { %v1964_v34 = vsel %vm1959_vm5, %v1940_v61, %v1942_v20  ;;  %v1944_v19 = vpop.permute.xlu2 %1943  ;;  %8274 = vmatpush.msk.msrb.mxu3 %vm433_vm1, %v1967_v21  ;;  %v3540_v61 = vld [vmem:[%s11586_s23 + $0x38] sm:$0x7] }
 0x15c   :  { %8268 = vmatpush.msk.msrb.mxu0 %vm433_vm1, %v1964_v34  ;;  %v1965_v31 = vsel %vm1959_vm5, %v1942_v20, %v1944_v19  ;;  %v1966_v41 = vsel %vm1959_vm5, %v1944_v19, %v1946_v18  ;;  %3569 = vst [vmem:[#allocation1 + $0x30] ss:$2 sm:$0xff] %v3540_v61 }
 0x15d   :  { %8247 = vmatmul.msk.f32.vlgmr.msra.gmra.mxu1 %vm429_vm2, %v9978_v24  ;;  %8249 = vmatmul.msk.f32.vlgmr.msra.gmra.mxu2 %vm429_vm2, %v9978_v24 }
 0x15f   :  { %8261 = vmatmul.msk.f32.vlgmr.msra.gmra.mxu0 %vm429_vm2, %v10101_v40  ;;  %8267 = vmatmul.msk.f32.vlgmr.msra.gmra.mxu3 %vm429_vm2, %v10101_v40 }
 0x161   :  { %3183 = vrot.lane.b32.xlu1 %v3158_v7, %s9202_s7  ;;  %3181 = vrot.lane.b32.xlu0 %v3157_v3, %s9202_s7  ;;  %v10113_v12 = vpop.permute.xlu1 %1949 }
 0x162   :  { %3163 = vrot.lane.b32.xlu2 %v9973_v56, %s9202_s7  ;;  %v1549_v42 = vpop.permute.xlu0 %1548  ;;  %v1968_v25 = vsel %vm1959_vm5, %v10011_v59, %v10113_v12  ;;  %v3559_v56 = vld.sshfl [vmem:[#allocation1 + $0x8] sm:$0xff pattern:$0x75316420] }
 0x163   :  { %v1564_v44 = vsel %vm1552_vm4, %v10000_v33, %v1549_v42  ;;  %v1565_v46 = vsel %vm1552_vm4, %v1549_v42, %v9897_v30  ;;  %v10127_v48 = vpop.permute.xlu2 %2350  ;;  %8276 = vmatpush.msk.msra.mxu0 %vm433_vm1, %v1968_v25 }
 0x164   :  { %8254 = vmatpush.msk.msrb.mxu1 %vm433_vm1, %v1564_v44  ;;  %8256 = vmatpush.msk.msrb.mxu2 %vm433_vm1, %v1565_v46 }
 0x165   :  { %8255 = vmatmul.msk.f32.vlgmr.msrb.gmra.mxu1 %vm429_vm2, %v9978_v24  ;;  %8257 = vmatmul.msk.f32.vlgmr.msrb.gmra.mxu2 %vm429_vm2, %v9978_v24 }
 0x167   :  { %8269 = vmatmul.msk.f32.vlgmr.msrb.gmra.mxu0 %vm429_vm2, %v10101_v40  ;;  %8275 = vmatmul.msk.f32.vlgmr.msrb.gmra.mxu3 %vm429_vm2, %v10101_v40 }
 0x169   :  { %3189 = vrot.lane.b32.xlu1 %v3161_v8, %s9202_s7  ;;  %3185 = vrot.lane.b32.xlu0 %v3159_v9, %s9202_s7  ;;  %v1936_v30 = vpop.permute.xlu1 %1935 }
 0x16a   :  { %3191 = vrot.lane.b32.xlu2 %v3162_v43, %s9202_s7  ;;  %v10143_v49 = vpop.f32.mrf.mxu0  ;;  %v1956_v17 = vpop.permute.xlu0 %1955  ;;  %v1961_v51 = vsel %vm1959_vm5, %v9931_v28, %v1936_v30  ;;  %v1962_v53 = vsel %vm1959_vm5, %v1936_v30, %v1938_v10  ;;  %v3537_v28 = vld [vmem:[%s11586_s23 + $0x20] sm:$0x77] }
 0x16b   :  { %v1971_v39 = vsel %vm1959_vm5, %v10043_v38, %v1956_v17  ;;  %v1972_v45 = vsel %vm1959_vm5, %v1956_v17, %v10077_v15  ;;  %v10153_v55 = vpop.permute.xlu2 %2356  ;;  %8262 = vmatpush.msk.msra.mxu1 %vm433_vm1, %v1961_v51  ;;  %8264 = vmatpush.msk.msra.mxu2 %vm433_vm1, %v1962_v53  ;;  %3566 = vst [vmem:[#allocation1] ss:$2 sm:$0xff] %v3537_v28 }
 0x16c   :  { %8282 = vmatpush.msk.msra.mxu3 %vm433_vm1, %v1971_v39  ;;  %8284 = vmatpush.msk.msrb.mxu0 %vm433_vm1, %v1972_v45  ;;  %v3574_v39 = vld.sshfl [vmem:[#allocation1 + $0x20] sm:$0xff pattern:$0x75316420] }
 0x16d   :  { %8270 = vmatpush.msk.msrb.mxu1 %vm433_vm1, %v1965_v31  ;;  %8265 = vmatmul.msk.f32.vlgmr.msra.gmra.mxu2 %vm429_vm2, %v10101_v40  ;;  %v3575_v31 = vld.sshfl [vmem:[#allocation1 + $0x28] sm:$0xff pattern:$0x75316420] }
 0x16e   :  { %8263 = vmatmul.msk.f32.vlgmr.msra.gmra.mxu1 %vm429_vm2, %v10101_v40  ;;  %8272 = vmatpush.msk.msrb.mxu2 %vm433_vm1, %v1966_v41 }
 0x16f   :  { %8277 = vmatmul.msk.f32.vlgmr.msra.gmra.mxu0 %vm429_vm2, %v10101_v40  ;;  %8283 = vmatmul.msk.f32.vlgmr.msra.gmra.mxu3 %vm429_vm2, %v10101_v40  ;;  %v10173_v22 = vpop.f32.mrf.mxu3 }
 0x171   :  { %3171 = vrot.lane.b32.xlu1 %v10013_v62, %s9202_s7  ;;  %2777 = vrot.lane.b32.xlu0 %v9948_v50, %s9201_s3  ;;  %v2343_v24 = vpop.permute.xlu1 %2342  ;;  %v10192_v50 = vld [vmem:[#allocation4 + $0x28] sm:$0x1f]  ;;  %v10204_v60 = vpop.f32.mrf.mxu1 }
 0x172   :  { %3577 = vrot.lane.b32.xlu2 %v3558_v54, %s9203_s20  ;;  %v10180_v27 = vpop.f32.mrf.mxu0  ;;  %v10182_v33 = vpop.permute.xlu0 %2340  ;;  %v3571_v43 = vld.sshfl [vmem:[#allocation1 + $0x8] sm:$0xff pattern:$0x75316420] }
 0x173   :  { %v2368_v23 = vsel %vm2366_vm6, %v10182_v33, %v2343_v24 }
 0x174   :  { %v10189_v32 = vpop.permute.xlu2 %2360  ;;  %8290 = vmatpush.msk.msrb.mxu3 %vm433_vm1, %v2368_v23 }
 0x175   :  { %8273 = vmatmul.msk.f32.vlgmr.msrb.gmra.mxu2 %vm429_vm2, %v10101_v40 }
 0x176   :  { %8271 = vmatmul.msk.f32.vlgmr.msrb.gmra.mxu1 %vm429_vm2, %v10101_v40 }
 0x177   :  { %8285 = vmatmul.msk.f32.vlgmr.msrb.gmra.mxu0 %vm429_vm2, %v10101_v40  ;;  %8291 = vmatmul.msk.f32.vlgmr.msrb.gmra.mxu3 %vm429_vm2, %v10192_v50 }
 0x178   :  { %v10202_v59 = vpop.f32.mrf.mxu3 }
 0x179   :  { %3583 = vrot.lane.b32.xlu1 %v3561_v47, %s9203_s20  ;;  %3579 = vrot.lane.b32.xlu0 %v3559_v56, %s9203_s20  ;;  %v10224_v35 = vpop.f32.mrf.mxu2  ;;  %v3576_v47 = vld.sshfl [vmem:[#allocation1 + $0x30] sm:$0xff pattern:$0x75316420] }
 0x17a   :  { %3585 = vrot.lane.b32.xlu2 %v3562_v29, %s9203_s20  ;;  %v10211_v63 = vpop.permute.xlu1 %2348 }
 0x17b   :  { %v10209_v62 = vpop.f32.mrf.mxu0  ;;  %v2372_v0 = vsel %vm2366_vm6, %v10211_v63, %v10127_v48  ;;  %v10216_v57 = vpop.permute.xlu0 %2344 }
 0x17c   :  { %v2369_v52 = vsel %vm2366_vm6, %v2343_v24, %v10216_v57  ;;  %v10220_v2 = vpop.permute.xlu2 %2749  ;;  %8298 = vmatpush.msk.msra.mxu3 %vm433_vm1, %v2372_v0  ;;  %v10331_v24 = vld [vmem:[#allocation4 + $0x30] sm:$0x1f] }
 0x17d   :  { %8292 = vmatpush.msk.msra.mxu0 %vm433_vm1, %v2369_v52 }
 0x17f   :  { %8293 = vmatmul.msk.f32.vlgmr.msra.gmra.mxu0 %vm429_vm2, %v10192_v50  ;;  %8299 = vmatmul.msk.f32.vlgmr.msra.gmra.mxu3 %vm429_vm2, %v10192_v50 }
 0x180   :  { %v10230_v3 = vpop.f32.mrf.mxu3 }
 0x181   :  { %11587 = vst [vmem:[#allocation41_spill] sm:$0xff] %v10230_v3  ;;  %3179 = vrot.lane.b32.xlu1 %v10037_v1, %s9202_s7  ;;  %3587 = vrot.lane.b32.xlu0 %v3563_v37, %s9203_s20 }
 0x182   :  { %3187 = vrot.lane.b32.xlu2 %v10074_v13, %s9202_s7  ;;  %v10237_v5 = vpop.f32.mrf.mxu1  ;;  %v10239_v58 = vpop.permute.xlu1 %2352  ;;  %s9214_s7 = smov 115  }
 0x183   :  { %v2373_v7 = vsel %vm2366_vm6, %v10127_v48, %v10239_v58  ;;  %v1952_v1 = vpop.permute.xlu0 %1951 }
 0x184   :  { %v10247_v9 = vpop.f32.mrf.mxu0  ;;  %v1969_v10 = vsel %vm1959_vm5, %v10113_v12, %v1952_v1  ;;  %v1970_v11 = vsel %vm1959_vm5, %v1952_v1, %v10043_v38  ;;  %v10253_v13 = vpop.permute.xlu2 %2757  ;;  %8300 = vmatpush.msk.msrb.mxu0 %vm433_vm1, %v2373_v7  ;;  %v3570_v38 = vld.sshfl [vmem:[#allocation1] sm:$0xff pattern:$0x75316420] }
 0x185   :  { %11588 = vst [vmem:[#allocation42_spill] sm:$0xff] %v10247_v9  ;;  %8278 = vmatpush.msk.msra.mxu1 %vm433_vm1, %v1969_v10  ;;  %8280 = vmatpush.msk.msra.mxu2 %vm433_vm1, %v1970_v11 }
 0x186   :  { %8279 = vmatmul.msk.f32.vlgmr.msra.gmra.mxu1 %vm429_vm2, %v10101_v40  ;;  %8281 = vmatmul.msk.f32.vlgmr.msra.gmra.mxu2 %vm429_vm2, %v10101_v40 }
 0x187   :  { %8286 = vmatpush.msk.msrb.mxu1 %vm433_vm1, %v10077_v15  ;;  %8301 = vmatmul.msk.f32.vlgmr.msrb.gmra.mxu0 %vm429_vm2, %v10192_v50  ;;  %v3538_v15 = vld [vmem:[%s11586_s23 + $0x28] sm:$0x77]  ;;  %s9205_s23 = smov 114  }
 0x188   :  { %v10266_v8 = vpop.f32.mrf.mxu2  ;;  %3567 = vst [vmem:[#allocation1 + $0x10] ss:$2 sm:$0xff] %v3538_v15 }
 0x189   :  { %11589 = vst [vmem:[#allocation43_spill] sm:$0xff] %v10266_v8  ;;  %3591 = vrot.lane.b32.xlu1 %v3565_v4, %s9203_s20  ;;  %3581 = vrot.lane.b32.xlu0 %v3560_v14, %s9203_s20 }
 0x18a   :  { %v10270_v16 = vpop.f32.mrf.mxu3  ;;  %v10272_v18 = vpop.f32.mrf.mxu1  ;;  %3593 = vrot.lane.b32.xlu2 %v3570_v38, %s9203_s20 }
 0x18b   :  { %11590 = vst [vmem:[#allocation44_spill] sm:$0xff] %v10272_v18  ;;  %v2359_v20 = vpop.permute.xlu0 %2358  ;;  %v2339_v21 = vpop.permute.xlu1 %2338 }
 0x18c   :  { %v10278_v34 = vpop.f32.mrf.mxu0  ;;  %v2376_v19 = vsel %vm2366_vm6, %v10153_v55, %v2359_v20  ;;  %v2377_v12 = vsel %vm2366_vm6, %v2359_v20, %v10189_v32  ;;  %v2367_v42 = vsel %vm2366_vm6, %v2339_v21, %v10182_v33  ;;  %v10286_v25 = vpop.permute.xlu2 %2763 }
 0x18d   :  { %8288 = vmatpush.msk.msrb.mxu2 %vm433_vm1, %v2367_v42  ;;  %8306 = vmatpush.msk.msrb.mxu3 %vm433_vm1, %v2376_v19 }
 0x18e   :  { %8308 = vmatpush.msk.msra.mxu0 %vm433_vm1, %v2377_v12  ;;  %8287 = vmatmul.msk.f32.vlgmr.msrb.gmra.mxu1 %vm429_vm2, %v10101_v40 }
 0x18f   :  { %8289 = vmatmul.msk.f32.vlgmr.msrb.gmra.mxu2 %vm429_vm2, %v10192_v50  ;;  %8307 = vmatmul.msk.f32.vlgmr.msrb.gmra.mxu3 %vm429_vm2, %v10192_v50  ;;  %v3573_v48 = vld.sshfl [vmem:[#allocation1 + $0x18] sm:$0xff pattern:$0x75316420]  ;;  %v3572_v29 = vld.sshfl [vmem:[#allocation1 + $0x10] sm:$0xff pattern:$0x75316420] }
 0x190   :  { %8309 = vmatmul.msk.f32.vlgmr.msra.gmra.mxu0 %vm429_vm2, %v10192_v50  ;;  %v10299_v26 = vpop.f32.mrf.mxu2 }
 0x191   :  { %11591 = vst [vmem:[#allocation45_spill] sm:$0xff] %v10299_v26  ;;  %3589 = vrot.lane.b32.xlu1 %v3564_v6, %s9203_s20  ;;  %3595 = vrot.lane.b32.xlu0 %v3571_v43, %s9203_s20 }
 0x192   :  { %v10303_v44 = vpop.f32.mrf.mxu3  ;;  %3599 = vrot.lane.b32.xlu2 %v3573_v48, %s9203_s20  ;;  %v10317_v54 = vpop.f32.mrf.mxu1 }
 0x193   :  { %v2365_v46 = vpop.permute.xlu0 %2364  ;;  %v2347_v40 = vpop.permute.xlu1 %2346  ;;  %11593 = vst [vmem:[#allocation47_spill] sm:$0xff] %v10317_v54 }
 0x194   :  { %v10305_v30 = vpop.f32.mrf.mxu0  ;;  %v2370_v17 = vsel %vm2366_vm6, %v10216_v57, %v2347_v40  ;;  %v2371_v51 = vsel %vm2366_vm6, %v2347_v40, %v10211_v63  ;;  %v10311_v53 = vpop.permute.xlu2 %2767  ;;  %8314 = vmatpush.msk.msra.mxu3 %vm433_vm1, %v2365_v46 }
 0x195   :  { %11592 = vst [vmem:[#allocation46_spill] sm:$0xff] %v10305_v30  ;;  %8294 = vmatpush.msk.msra.mxu1 %vm433_vm1, %v2370_v17  ;;  %8296 = vmatpush.msk.msra.mxu2 %vm433_vm1, %v2371_v51 }
 0x196   :  { %8295 = vmatmul.msk.f32.vlgmr.msra.gmra.mxu1 %vm429_vm2, %v10192_v50 }
 0x197   :  { %8297 = vmatmul.msk.f32.vlgmr.msra.gmra.mxu2 %vm429_vm2, %v10192_v50  ;;  %8315 = vmatmul.msk.f32.vlgmr.msra.gmra.mxu3 %vm429_vm2, %v10192_v50 }
 0x198   :  { %v10327_v45 = vpop.f32.mrf.mxu2 }
 0x199   :  { %3603 = vrot.lane.b32.xlu1 %v3575_v31, %s9203_s20  ;;  %3601 = vrot.lane.b32.xlu0 %v3574_v39, %s9203_s20 }
 0x19a   :  { %v10329_v56 = vpop.f32.mrf.mxu3  ;;  %3597 = vrot.lane.b32.xlu2 %v3572_v29, %s9203_s20  ;;  %v10346_v63 = vpop.f32.mrf.mxu1 }
 0x19b   :  { %11594 = vst [vmem:[#allocation48_spill] sm:$0xff] %v10329_v56  ;;  %v2756_v28 = vpop.permute.xlu1 %2755  ;;  %v2752_v41 = vpop.permute.xlu0 %2751 }
 0x19c   :  { %v10333_v33 = vpop.f32.mrf.mxu0  ;;  %v2783_v37 = vsel %vm2779_vm7, %v2756_v28, %v10253_v13  ;;  %v2780_v36 = vsel %vm2779_vm7, %v10220_v2, %v2752_v41  ;;  %v2754_v23 = vpop.permute.xlu2 %2753 }
 0x19d   :  { %11595 = vst [vmem:[#allocation49_spill] sm:$0xff] %v10333_v33  ;;  %8316 = vmatpush.msk.msrb.mxu0 %vm433_vm1, %v2780_v36  ;;  %8322 = vmatpush.msk.msrb.mxu3 %vm433_vm1, %v2783_v37  ;;  %v2782_v19 = vsel %vm2779_vm7, %v2754_v23, %v2756_v28  ;;  %v10440_v36 = vld [vmem:[#allocation4 + $0x38] sm:$0x1f] }
 0x19e   :  { %8317 = vmatmul.msk.f32.vlgmr.msrb.gmra.mxu0 %vm429_vm2, %v10331_v24 }
 0x19f   :  { %8323 = vmatmul.msk.f32.vlgmr.msrb.gmra.mxu3 %vm429_vm2, %v10331_v24 }
 0x1a0   :  { %v10366_v1 = vpop.f32.mrf.mxu2 }
 0x1a1   :  { %3605 = vrot.lane.b32.xlu0 %v3576_v47, %s9203_s20 }
 0x1a2   :  { %v10349_v0 = vpop.f32.mrf.mxu3 }
 0x1a3   :  { %11596 = vst [vmem:[#allocation50_spill] sm:$0xff] %v10349_v0  ;;  %v10351_v57 = vpop.permute.xlu1 %2759  ;;  %v2355_v52 = vpop.permute.xlu0 %2354 }
 0x1a4   :  { %v10353_v2 = vpop.f32.mrf.mxu0  ;;  %v2784_v4 = vsel %vm2779_vm7, %v10253_v13, %v10351_v57  ;;  %v2374_v6 = vsel %vm2366_vm6, %v10239_v58, %v2355_v52  ;;  %v2375_v61 = vsel %vm2366_vm6, %v2355_v52, %v10153_v55  ;;  %v10362_v7 = vpop.permute.xlu2 %3167 }
 0x1a5   :  { %8302 = vmatpush.msk.msrb.mxu1 %vm433_vm1, %v2374_v6  ;;  %8304 = vmatpush.msk.msrb.mxu2 %vm433_vm1, %v2375_v61  ;;  %v10375_v55 = vpop.f32.mrf.mxu1 }
 0x1a6   :  { %8324 = vmatpush.msk.msra.mxu0 %vm433_vm1, %v2784_v4  ;;  %8303 = vmatmul.msk.f32.vlgmr.msrb.gmra.mxu1 %vm429_vm2, %v10192_v50 }
 0x1a7   :  { %8305 = vmatmul.msk.f32.vlgmr.msrb.gmra.mxu2 %vm429_vm2, %v10192_v50  ;;  %8325 = vmatmul.msk.f32.vlgmr.msra.gmra.mxu0 %vm429_vm2, %v10331_v24 }
 0x1a8   :  { %v10400_v12 = vpop.f32.mrf.mxu2 }
 0x1aa   :  { %v10377_v58 = vpop.f32.mrf.mxu3 }
 0x1ab   :  { %v2363_v10 = vpop.permute.xlu1 %2362  ;;  %v2766_v11 = vpop.permute.xlu0 %2765 }
 0x1ac   :  { %v10379_v13 = vpop.f32.mrf.mxu0  ;;  %v2378_v14 = vsel %vm2366_vm6, %v10189_v32, %v2363_v10  ;;  %v2379_v38 = vsel %vm2366_vm6, %v2363_v10, %v2365_v46  ;;  %v10384_v20 = vpop.permute.xlu2 %3173  ;;  %v2787_v21 = vsel %vm2779_vm7, %v10286_v25, %v2766_v11  ;;  %v2788_v15 = vsel %vm2779_vm7, %v2766_v11, %v10311_v53 }
 0x1ad   :  { %8310 = vmatpush.msk.msra.mxu1 %vm433_vm1, %v2378_v14  ;;  %8312 = vmatpush.msk.msra.mxu2 %vm433_vm1, %v2379_v38  ;;  %v2781_v32 = vsel %vm2779_vm7, %v2752_v41, %v2754_v23  ;;  %v10414_v48 = vpop.f32.mrf.mxu1  ;;  %vm7633_vm6 = vcmask 416768  }
 0x1ae   :  { %8330 = vmatpush.msk.msra.mxu3 %vm433_vm1, %v2787_v21  ;;  %8332 = vmatpush.msk.msrb.mxu0 %vm433_vm1, %v2788_v15  ;;  %11597 = vst [vmem:[#allocation51_spill] sm:$0xff] %v10414_v48 }
 0x1af   :  { %8311 = vmatmul.msk.f32.vlgmr.msra.gmra.mxu1 %vm429_vm2, %v10192_v50  ;;  %8313 = vmatmul.msk.f32.vlgmr.msra.gmra.mxu2 %vm429_vm2, %v10192_v50 }
 0x1b0   :  { %8318 = vmatpush.msk.msrb.mxu1 %vm433_vm1, %v2781_v32  ;;  %8320 = vmatpush.msk.msrb.mxu2 %vm433_vm1, %v2782_v19  ;;  %v10424_v51 = vpop.f32.mrf.mxu2 }
 0x1b1   :  { %8331 = vmatmul.msk.f32.vlgmr.msra.gmra.mxu3 %vm429_vm2, %v10331_v24  ;;  %8333 = vmatmul.msk.f32.vlgmr.msrb.gmra.mxu0 %vm429_vm2, %v10331_v24  ;;  %11598 = vst [vmem:[#allocation52_spill] sm:$0xff] %v10424_v51 }
 0x1b2   :  { %v10408_v42 = vpop.f32.mrf.mxu3 }
 0x1b3   :  { %v2774_v43 = vpop.permute.xlu1 %2773  ;;  %v2772_v46 = vpop.permute.xlu0 %2771 }
 0x1b4   :  { %v10410_v40 = vpop.f32.mrf.mxu0  ;;  %v2791_v50 = vsel %vm2779_vm7, %v2772_v46, %v2774_v43  ;;  %v10416_v17 = vpop.permute.xlu2 %3177 }
 0x1b5   :  { %8338 = vmatpush.msk.msrb.mxu3 %vm433_vm1, %v2791_v50  ;;  %v10442_v23 = vpop.f32.mrf.mxu1 }
 0x1b7   :  { %8319 = vmatmul.msk.f32.vlgmr.msrb.gmra.mxu1 %vm429_vm2, %v10331_v24  ;;  %8321 = vmatmul.msk.f32.vlgmr.msrb.gmra.mxu2 %vm429_vm2, %v10331_v24 }
 0x1b8   :  { %v10448_v6 = vpop.f32.mrf.mxu2 }
 0x1b9   :  { %8339 = vmatmul.msk.f32.vlgmr.msrb.gmra.mxu3 %vm429_vm2, %v10331_v24 }
 0x1ba   :  { %v10428_v28 = vpop.f32.mrf.mxu3 }
 0x1bb   :  { %v10426_v31 = vpop.permute.xlu0 %2775  ;;  %v3166_v39 = vpop.permute.xlu1 %3165  ;;  %11599 = vst [vmem:[#allocation53_spill] sm:$0xff] %v10428_v28 }
 0x1bc   :  { %v2792_v41 = vsel %vm2779_vm7, %v2774_v43, %v10426_v31  ;;  %v3195_v29 = vsel %vm3193_vm8, %v3166_v39, %v10362_v7  ;;  %v10436_v37 = vpop.f32.mrf.mxu0  ;;  %v3164_v47 = vpop.permute.xlu2 %3163 }
 0x1bd   :  { %8340 = vmatpush.msk.msra.mxu0 %vm433_vm1, %v2792_v41  ;;  %8346 = vmatpush.msk.msra.mxu3 %vm433_vm1, %v3195_v29  ;;  %11600 = vst [vmem:[#allocation54_spill] sm:$0xff] %v10436_v37  ;;  %v3194_v41 = vsel %vm3193_vm8, %v3164_v47, %v3166_v39 }
 0x1be   :  { %8341 = vmatmul.msk.f32.vlgmr.msra.gmra.mxu0 %vm429_vm2, %v10331_v24 }
 0x1c0   :  { %v10481_v50 = vpop.f32.mrf.mxu2 }
 0x1c1   :  { %8347 = vmatmul.msk.f32.vlgmr.msra.gmra.mxu3 %vm429_vm2, %v10440_v36  ;;  %11601 = vst [vmem:[#allocation55_spill] sm:$0xff] %v10481_v50 }
 0x1c2   :  { %v10459_v14 = vpop.f32.mrf.mxu3 }
 0x1c3   :  { %v2762_v52 = vpop.permute.xlu0 %2761  ;;  %v10446_v4 = vpop.permute.xlu1 %3169 }
 0x1c4   :  { %v2785_v61 = vsel %vm2779_vm7, %v10351_v57, %v2762_v52  ;;  %v2786_v10 = vsel %vm2779_vm7, %v2762_v52, %v10286_v25  ;;  %v3196_v11 = vsel %vm3193_vm8, %v10362_v7, %v10446_v4  ;;  %v10468_v25 = vpop.f32.mrf.mxu0  ;;  %v10470_v57 = vpop.f32.mrf.mxu1 }
 0x1c5   :  { %8326 = vmatpush.msk.msra.mxu1 %vm433_vm1, %v2785_v61  ;;  %8328 = vmatpush.msk.msra.mxu2 %vm433_vm1, %v2786_v10  ;;  %v3192_v7 = vpop.permute.xlu2 %3191 }
 0x1c6   :  { %8348 = vmatpush.msk.msrb.mxu0 %vm433_vm1, %v3196_v11  ;;  %8327 = vmatmul.msk.f32.vlgmr.msra.gmra.mxu1 %vm429_vm2, %v10331_v24 }
 0x1c7   :  { %8329 = vmatmul.msk.f32.vlgmr.msra.gmra.mxu2 %vm429_vm2, %v10331_v24  ;;  %8349 = vmatmul.msk.f32.vlgmr.msrb.gmra.mxu0 %vm429_vm2, %v10440_v36 }
 0x1c8   :  { %v10505_v10 = vpop.f32.mrf.mxu2 }
 0x1c9   :  { %11604 = vst [vmem:[#allocation58_spill] sm:$0xff] %v10505_v10 }
 0x1cb   :  { %v3176_v38 = vpop.permute.xlu0 %3175  ;;  %v2770_v21 = vpop.permute.xlu1 %2769 }
 0x1cc   :  { %v3199_v15 = vsel %vm3193_vm8, %v10384_v20, %v3176_v38  ;;  %v3200_v32 = vsel %vm3193_vm8, %v3176_v38, %v10416_v17  ;;  %v2789_v19 = vsel %vm2779_vm7, %v10311_v53, %v2770_v21  ;;  %v2790_v43 = vsel %vm2779_vm7, %v2770_v21, %v2772_v46  ;;  %v10490_v53 = vpop.f32.mrf.mxu3  ;;  %v10497_v46 = vpop.f32.mrf.mxu0 }
 0x1cd   :  { %8334 = vmatpush.msk.msrb.mxu1 %vm433_vm1, %v2789_v19  ;;  %8336 = vmatpush.msk.msrb.mxu2 %vm433_vm1, %v2790_v43  ;;  %11602 = vst [vmem:[#allocation56_spill] sm:$0xff] %v10497_v46  ;;  %v10499_v47 = vpop.f32.mrf.mxu1  ;;  %v3578_v52 = vpop.permute.xlu2 %3577  ;;  %v9204_v43 = vmov 0  }
 0x1ce   :  { %8354 = vmatpush.msk.msrb.mxu3 %vm433_vm1, %v3199_v15  ;;  %8356 = vmatpush.msk.msra.mxu0 %vm433_vm1, %v3200_v32  ;;  %11603 = vst [vmem:[#allocation57_spill] sm:$0xff] %v10499_v47 }
 0x1cf   :  { %8335 = vmatmul.msk.f32.vlgmr.msrb.gmra.mxu1 %vm429_vm2, %v10331_v24  ;;  %8337 = vmatmul.msk.f32.vlgmr.msrb.gmra.mxu2 %vm429_vm2, %v10331_v24 }
 0x1d0   :  { %8344 = vmatpush.msk.msra.mxu2 %vm433_vm1, %v3194_v41  ;;  %8355 = vmatmul.msk.f32.vlgmr.msrb.gmra.mxu3 %vm429_vm2, %v10440_v36  ;;  %v3947_v41 = vld [vmem:[#allocation6] sm:$0x1f] }
 0x1d1   :  { %8357 = vmatmul.msk.f32.vlgmr.msra.gmra.mxu0 %vm429_vm2, %v10440_v36  ;;  %8569 = vset.pattern.permute.xlu1 %v9204_v43 }
 0x1d2   :  { %8661 = vset.pattern.permute.xlu0 %v9204_v43  ;;  %3950 = vperm.xlu1 %8569, %v3947_v41   ;;  %v10544_v41 = vld [vmem:[#allocation4 + $0x40] sm:$0x1f] }
 0x1d3   :  { %v3184_v29 = vpop.permute.xlu1 %3183  ;;  %v3182_v39 = vpop.permute.xlu0 %3181  ;;  %8660 = vset.pattern.permute.xlu2 %v9204_v43 }
 0x1d4   :  { %v3203_v61 = vsel %vm3193_vm8, %v3182_v39, %v3184_v29  ;;  %v10509_v11 = vpop.f32.mrf.mxu3  ;;  %v10511_v15 = vpop.f32.mrf.mxu0 }
 0x1d5   :  { %8362 = vmatpush.msk.msra.mxu3 %vm433_vm1, %v3203_v61  ;;  %11605 = vst [vmem:[#allocation59_spill] sm:$0xff] %v10509_v11  ;;  %v10517_v61 = vpop.f32.mrf.mxu1  ;;  %v3586_v0 = vpop.permute.xlu2 %3585 }
 0x1d6   :  { %11606 = vst [vmem:[#allocation60_spill] sm:$0xff] %v10511_v15 }
 0x1d7   :  { %8345 = vmatmul.msk.f32.vlgmr.msra.gmra.mxu2 %vm429_vm2, %v10440_v36  ;;  %11607 = vst [vmem:[#allocation61_spill] sm:$0xff] %v10517_v61 }
 0x1d8   :  { %8363 = vmatmul.msk.f32.vlgmr.msra.gmra.mxu3 %vm429_vm2, %v10440_v36 }
 0x1db   :  { %v3190_v38 = vpop.permute.xlu1 %3189  ;;  %v3186_v21 = vpop.permute.xlu0 %3185 }
 0x1dc   :  { %v3207_v32 = vsel %vm3193_vm8, %v3190_v38, %v3192_v7  ;;  %v3204_v19 = vsel %vm3193_vm8, %v3184_v29, %v3186_v21  ;;  %v10523_v7 = vpop.f32.mrf.mxu2  ;;  %v10531_v11 = vpop.f32.mrf.mxu3 }
 0x1dd   :  { %8364 = vmatpush.msk.msrb.mxu0 %vm433_vm1, %v3204_v19  ;;  %8370 = vmatpush.msk.msrb.mxu3 %vm433_vm1, %v3207_v32  ;;  %11608 = vst [vmem:[#allocation62_spill] sm:$0xff] %v10531_v11  ;;  %v10535_v43 = vpop.f32.mrf.mxu0 }
 0x1de   :  { %8365 = vmatmul.msk.f32.vlgmr.msrb.gmra.mxu0 %vm429_vm2, %v10440_v36 }
 0x1e0   :  { %8371 = vmatmul.msk.f32.vlgmr.msrb.gmra.mxu3 %vm429_vm2, %v10440_v36 }
 0x1e3   :  { %v3172_v29 = vpop.permute.xlu1 %3171  ;;  %v2778_v54 = vpop.permute.xlu0 %2777 }
 0x1e4   :  { %v3197_v19 = vsel %vm3193_vm8, %v10446_v4, %v3172_v29  ;;  %v3198_v32 = vsel %vm3193_vm8, %v3172_v29, %v10384_v20  ;;  %v2793_v61 = vsel %vm2779_vm7, %v10426_v31, %v2778_v54  ;;  %v10542_v20 = vpop.f32.mrf.mxu1  ;;  %v3188_v4 = vpop.permute.xlu2 %3187  ;;  %vm7831_vm7 = vcmask 1046528  }
 0x1e5   :  { %8342 = vmatpush.msk.msra.mxu1 %vm433_vm1, %v2793_v61  ;;  %8352 = vmatpush.msk.msrb.mxu2 %vm433_vm1, %v3198_v32  ;;  %v10548_v32 = vpop.f32.mrf.mxu2  ;;  %v3205_v18 = vsel %vm3193_vm8, %v3186_v21, %v3188_v4  ;;  %v3206_v10 = vsel %vm3193_vm8, %v3188_v4, %v3190_v38 }
 0x1e6   :  { %8343 = vmatmul.msk.f32.vlgmr.msra.gmra.mxu1 %vm429_vm2, %v10331_v24  ;;  %8353 = vmatmul.msk.f32.vlgmr.msrb.gmra.mxu2 %vm429_vm2, %v10440_v36  ;;  %v10556_v24 = vpop.f32.mrf.mxu3 }
 0x1e7   :  { %8350 = vmatpush.msk.msrb.mxu1 %vm433_vm1, %v3197_v19  ;;  %v10560_v19 = vpop.f32.mrf.mxu0 }
 0x1eb   :  { %v3584_v54 = vpop.permute.xlu1 %3583  ;;  %v3580_v31 = vpop.permute.xlu0 %3579 }
 0x1ec   :  { %v3611_v61 = vsel %vm3607_vm9, %v3584_v54, %v3586_v0  ;;  %v3608_v29 = vsel %vm3607_vm9, %v3578_v52, %v3580_v31  ;;  %v3594_v52 = vpop.permute.xlu2 %3593  ;;  %v10562_v11 = vpop.f32.mrf.mxu1 }
 0x1ed   :  { %8372 = vmatpush.msk.msra.mxu0 %vm433_vm1, %v3608_v29  ;;  %8378 = vmatpush.msk.msra.mxu3 %vm433_vm1, %v3611_v61  ;;  %v10575_v33 = vpop.f32.mrf.mxu2 }
 0x1ee   :  { %8351 = vmatmul.msk.f32.vlgmr.msrb.gmra.mxu1 %vm429_vm2, %v10440_v36  ;;  %8373 = vmatmul.msk.f32.vlgmr.msra.gmra.mxu0 %vm429_vm2, %v10544_v41 }
 0x1ef   :  { %8379 = vmatmul.msk.f32.vlgmr.msra.gmra.mxu3 %vm429_vm2, %v10544_v41 }
 0x1f3   :  { %v3180_v47 = vpop.permute.xlu1 %3179  ;;  %v3588_v29 = vpop.permute.xlu0 %3587 }
 0x1f4   :  { %v3201_v61 = vsel %vm3193_vm8, %v10416_v17, %v3180_v47  ;;  %v3202_v15 = vsel %vm3193_vm8, %v3180_v47, %v3182_v39  ;;  %v3612_v56 = vsel %vm3607_vm9, %v3586_v0, %v3588_v29  ;;  %v3600_v0 = vpop.permute.xlu2 %3599  ;;  %v10583_v17 = vpop.f32.mrf.mxu3  ;;  %vm7673_vm8 = vcmask 31744  }
 0x1f5   :  { %8358 = vmatpush.msk.msra.mxu1 %vm433_vm1, %v3201_v61  ;;  %8360 = vmatpush.msk.msra.mxu2 %vm433_vm1, %v3202_v15  ;;  %v10590_v4 = vpop.f32.mrf.mxu1 }
 0x1f6   :  { %8380 = vmatpush.msk.msrb.mxu0 %vm433_vm1, %v3612_v56  ;;  %8359 = vmatmul.msk.f32.vlgmr.msra.gmra.mxu1 %vm429_vm2, %v10440_v36  ;;  %v10585_v56 = vpop.f32.mrf.mxu0  ;;  %11609 = vst [vmem:[#allocation63_spill] sm:$0xff] %v10590_v4 }
 0x1f7   :  { %8361 = vmatmul.msk.f32.vlgmr.msra.gmra.mxu2 %vm429_vm2, %v10440_v36  ;;  %8366 = vmatpush.msk.msrb.mxu1 %vm433_vm1, %v3205_v18  ;;  %v10601_v18 = vpop.f32.mrf.mxu2 }
 0x1f8   :  { %8368 = vmatpush.msk.msrb.mxu2 %vm433_vm1, %v3206_v10  ;;  %8381 = vmatmul.msk.f32.vlgmr.msrb.gmra.mxu0 %vm429_vm2, %v10544_v41  ;;  %11610 = vst [vmem:[#allocation64_spill] sm:$0xff] %v10601_v18 }
 0x1fb   :  { %v3592_v39 = vpop.permute.xlu1 %3591  ;;  %v3582_v47 = vpop.permute.xlu0 %3581 }
 0x1fc   :  { %v3609_v38 = vsel %vm3607_vm9, %v3580_v31, %v3582_v47  ;;  %v3610_v21 = vsel %vm3607_vm9, %v3582_v47, %v3584_v54  ;;  %v3615_v15 = vsel %vm3607_vm9, %v3592_v39, %v3594_v52  ;;  %v3598_v10 = vpop.permute.xlu2 %3597  ;;  %v10603_v31 = vpop.f32.mrf.mxu3 }
 0x1fd   :  { %8374 = vmatpush.msk.msra.mxu1 %vm433_vm1, %v3609_v38  ;;  %8376 = vmatpush.msk.msra.mxu2 %vm433_vm1, %v3610_v21  ;;  %11611 = vst [vmem:[#allocation65_spill] sm:$0xff] %v10603_v31  ;;  %v3618_v26 = vsel %vm3607_vm9, %v3598_v10, %v3600_v0 }
 0x1fe   :  { %8386 = vmatpush.msk.msrb.mxu3 %vm433_vm1, %v3615_v15  ;;  %8367 = vmatmul.msk.f32.vlgmr.msrb.gmra.mxu1 %vm429_vm2, %v10440_v36  ;;  %v10607_v21 = vpop.f32.mrf.mxu0 }
 0x1ff   :  { %8369 = vmatmul.msk.f32.vlgmr.msrb.gmra.mxu2 %vm429_vm2, %v10440_v36  ;;  %8387 = vmatmul.msk.f32.vlgmr.msrb.gmra.mxu3 %vm429_vm2, %v10544_v41  ;;  %11612 = vst [vmem:[#allocation66_spill] sm:$0xff] %v10607_v21 }
 0x203   :  { %v3590_v54 = vpop.permute.xlu1 %3589  ;;  %v3596_v38 = vpop.permute.xlu0 %3595 }
 0x204   :  { %v3613_v61 = vsel %vm3607_vm9, %v3588_v29, %v3590_v54  ;;  %v3614_v47 = vsel %vm3607_vm9, %v3590_v54, %v3592_v39  ;;  %v3616_v15 = vsel %vm3607_vm9, %v3594_v52, %v3596_v38  ;;  %v3617_v36 = vsel %vm3607_vm9, %v3596_v38, %v3598_v10  ;;  %v10617_v29 = vpop.f32.mrf.mxu1  ;;  %v10625_v52 = vpop.f32.mrf.mxu2 }
 0x205   :  { %8382 = vmatpush.msk.msrb.mxu1 %vm433_vm1, %v3613_v61  ;;  %8384 = vmatpush.msk.msrb.mxu2 %vm433_vm1, %v3614_v47  ;;  %v10629_v47 = vpop.f32.mrf.mxu3 }
 0x206   :  { %8388 = vmatpush.msk.msra.mxu0 %vm433_vm1, %v3616_v15  ;;  %8375 = vmatmul.msk.f32.vlgmr.msra.gmra.mxu1 %vm429_vm2, %v10544_v41  ;;  %v10633_v38 = vpop.f32.mrf.mxu0 }
 0x207   :  { %8377 = vmatmul.msk.f32.vlgmr.msra.gmra.mxu2 %vm429_vm2, %v10544_v41  ;;  %8389 = vmatmul.msk.f32.vlgmr.msra.gmra.mxu0 %vm429_vm2, %v10544_v41  ;;  %11613 = vst [vmem:[#allocation67_spill] sm:$0xff] %v10633_v38 }
 0x208   :  { %8390 = vmatpush.msk.msra.mxu1 %vm433_vm1, %v3617_v36  ;;  %8392 = vmatpush.msk.msra.mxu2 %vm433_vm1, %v3618_v26 }
 0x20b   :  { %v3604_v39 = vpop.permute.xlu1 %3603  ;;  %v3602_v10 = vpop.permute.xlu0 %3601 }
 0x20c   :  { %v3620_v54 = vsel %vm3607_vm9, %v3602_v10, %v3604_v39  ;;  %v3619_v61 = vsel %vm3607_vm9, %v3600_v0, %v3602_v10  ;;  %v10643_v26 = vpop.f32.mrf.mxu1  ;;  %v10645_v15 = vpop.f32.mrf.mxu2 }
 0x20d   :  { %8394 = vmatpush.msk.msra.mxu3 %vm433_vm1, %v3619_v61  ;;  %8396 = vmatpush.msk.msrb.mxu0 %vm433_vm1, %v3620_v54  ;;  %11614 = vst [vmem:[#allocation68_spill] sm:$0xff] %v10645_v15  ;;  %v10653_v10 = vpop.f32.mrf.mxu3 }
 0x20e   :  { %8383 = vmatmul.msk.f32.vlgmr.msrb.gmra.mxu1 %vm429_vm2, %v10544_v41  ;;  %8395 = vmatmul.msk.f32.vlgmr.msra.gmra.mxu3 %vm429_vm2, %v10544_v41  ;;  %11615 = vst [vmem:[#allocation69_spill] sm:$0xff] %v10653_v10  ;;  %v10657_v61 = vpop.f32.mrf.mxu0 }
 0x20f   :  { %8385 = vmatmul.msk.f32.vlgmr.msrb.gmra.mxu2 %vm429_vm2, %v10544_v41  ;;  %8397 = vmatmul.msk.f32.vlgmr.msrb.gmra.mxu0 %vm429_vm2, %v10544_v41  ;;  %11617 = vst [vmem:[#allocation71_spill] sm:$0xff] %v10657_v61 }
 0x213   :  { %v3606_v0 = vpop.permute.xlu0 %3605 }
 0x214   :  { %v3621_v36 = vsel %vm3607_vm9, %v3604_v39, %v3606_v0  ;;  %v10655_v54 = vpop.f32.mrf.mxu1  ;;  %v10659_v21 = vpop.f32.mrf.mxu2  ;;  %vm7675_vm9 = vcmask 64512  }
 0x215   :  { %8398 = vmatpush.msk.msrb.mxu1 %vm433_vm1, %v3621_v36  ;;  %11616 = vst [vmem:[#allocation70_spill] sm:$0xff] %v10655_v54  ;;  %v10663_v39 = vpop.f32.mrf.mxu3 }
 0x216   :  { %8391 = vmatmul.msk.f32.vlgmr.msra.gmra.mxu1 %vm429_vm2, %v10544_v41  ;;  %11618 = vst [vmem:[#allocation72_spill] sm:$0xff] %v10659_v21  ;;  %v10667_v36 = vpop.f32.mrf.mxu0 }
 0x217   :  { %8393 = vmatmul.msk.f32.vlgmr.msra.gmra.mxu2 %vm429_vm2, %v10544_v41  ;;  %11619 = vst [vmem:[#allocation73_spill] sm:$0xff] %v10663_v39 }
 0x218   :  { %11621 = vst [vmem:[#allocation75_spill] sm:$0xff] %v10667_v36 }
 0x21c   :  { %v10665_v0 = vpop.f32.mrf.mxu1  ;;  %v10669_v18 = vpop.f32.mrf.mxu2 }
 0x21d   :  { %11620 = vst [vmem:[#allocation74_spill] sm:$0xff] %v10665_v0  ;;  %v10671_v31 = vpop.f32.mrf.mxu3 }
 0x21e   :  { %8399 = vmatmul.msk.f32.vlgmr.msrb.gmra.mxu1 %vm429_vm2, %v10544_v41  ;;  %11622 = vst [vmem:[#allocation76_spill] sm:$0xff] %v10671_v31  ;;  %v10673_v37 = vpop.f32.mrf.mxu0  ;;  %vm6679_vm2 = vcmask 916480  }
 0x224   :  { %v2488_v54 = vpop.f32.mrf.mxu1  ;;  %v2508_v15 = vpop.f32.mrf.mxu2 }
 0x225   :  { %v2902_v61 = vpop.f32.mrf.mxu3 }
 0x226   :  { %v2922_v21 = vpop.f32.mrf.mxu0 }
 0x22c   :  { %v10675_v4 = vpop.f32.mrf.mxu1  ;;  %v10677_v51 = vpop.f32.mrf.mxu2 }
 0x22e   :  { %v10683_v0 = vpop.f32.mrf.mxu0 }
 0x22f   :  { %11624 = vst [vmem:[#allocation78_spill] sm:$0xff] %v10683_v0 }
 0x234   :  { %v10679_v41 = vpop.f32.mrf.mxu3  ;;  %v10681_v39 = vpop.f32.mrf.mxu1 }
 0x235   :  { %11623 = vst [vmem:[#allocation77_spill] sm:$0xff] %v10681_v39  ;;  %v10685_v36 = vpop.f32.mrf.mxu2 }
 0x236   :  { %11625 = vst [vmem:[#allocation79_spill] sm:$0xff] %v10685_v36 }
 0x23b   :  { %v10689_v31 = vpop.f32.mrf.mxu0 }
 0x23c   :  { %v10687_v9 = vpop.f32.mrf.mxu3  ;;  %11627 = vst [vmem:[#allocation81_spill] sm:$0xff] %v10689_v31  ;;  %v10691_v46 = vpop.f32.mrf.mxu1 }
 0x23d   :  { %11626 = vst [vmem:[#allocation80_spill] sm:$0xff] %v10687_v9  ;;  %v10693_v28 = vpop.f32.mrf.mxu2 }
 0x23e   :  { %11628 = vst [vmem:[#allocation82_spill] sm:$0xff] %v10693_v28 }
 0x244   :  { %v10695_v50 = vpop.f32.mrf.mxu3  ;;  %v10697_v48 = vpop.f32.mrf.mxu1 }
 0x245   :  { %11629 = vst [vmem:[#allocation83_spill] sm:$0xff] %v10697_v48  ;;  %v10699_v3 = vpop.f32.mrf.mxu0  ;;  %v875_v48 = vadd.f32 %v10346_v63, %v10173_v22 }
 0x246   :  { %11630 = vst [vmem:[#allocation84_spill] sm:$0xff] %v10699_v3 }
 0x247   :  { %v1473_v3 = vadd.f32 %v10377_v58, %v875_v48 }
 0x24a   :  { %v10701_v10 = vpop.f32.mrf.mxu2 }
 0x24b   :  { %11631 = vst [vmem:[#allocation85_spill] sm:$0xff] %v10701_v10  ;;  %v895_v10 = vadd.f32 %v10366_v1, %v10180_v27 }
 0x24c   :  { %v10705_v30 = vpop.f32.mrf.mxu1 }
 0x24d   :  { %11633 = vst [vmem:[#allocation87_spill] sm:$0xff] %v10705_v30  ;;  %v1880_v30 = vadd.f32 %v10542_v20, %v1473_v3  ;;  %v815_v3 = vadd.f32 %v10327_v45, %v10143_v49 }
 0x24e   :  { %v10707_v36 = vpop.f32.mrf.mxu0 }
 0x24f   :  { %11634 = vst [vmem:[#allocation88_spill] sm:$0xff] %v10707_v36  ;;  %v1474_v36 = vadd.f32 %v10379_v13, %v895_v10 }
 0x252   :  { %v10709_v9 = vpop.f32.mrf.mxu2 }
 0x253   :  { %v10703_v39 = vpop.f32.mrf.mxu3  ;;  %11635 = vst [vmem:[#allocation89_spill] sm:$0xff] %v10709_v9 }
 0x254   :  { %11632 = vst [vmem:[#allocation86_spill] sm:$0xff] %v10703_v39 }
 0x25a   :  { %v3256_v39 = vpop.f32.mrf.mxu2 }
 0x25b   :  { %v10711_v31 = vpop.f32.mrf.mxu3  ;;  %v10713_v8 = vpop.f32.mrf.mxu0 }
 0x25c   :  { %11636 = vst [vmem:[#allocation90_spill] sm:$0xff] %v10711_v31  ;;  %v2287_v31 = vadd.f32 %v10556_v24, %v1880_v30  ;;  %v1470_v30 = vadd.f32 %v10353_v2, %v815_v3  ;;  %v955_v2 = vadd.f32 %v10375_v55, %v10202_v59  ;;  %v855_v55 = vadd.f32 %v10278_v34, %v10224_v35  ;;  %v11641_v3 = vld [vmem:[#allocation43_spill] sm:$0xff] }
 0x25d   :  { %11637 = vst [vmem:[#allocation91_spill] sm:$0xff] %v10713_v8 }
 0x25e   :  { %v2694_v38 = vadd.f32 %v2488_v54, %v2287_v31  ;;  %v10734_v31 = vpop.permute.xlu1 %3950 }
 0x260   :  { %v3108_v63 = vadd.f32 %v2902_v61, %v2694_v38 }
 0x263   :  { %v10715_v28 = vpop.f32.mrf.mxu1  ;;  %v10724_v9 = vpop.f32.mrf.mxu3 }
 0x264   :  { %11638 = vst [vmem:[#allocation92_spill] sm:$0xff] %v10715_v28  ;;  %v1881_v28 = vadd.f32 %v10548_v32, %v1474_v36  ;;  %v835_v32 = vadd.f32 %v10270_v16, %v10204_v60  ;;  %v975_v60 = vadd.f32 %v10400_v12, %v10209_v62 }
 0x266   :  { %v2288_v22 = vadd.f32 %v10560_v19, %v1881_v28  ;;  %v1877_v19 = vadd.f32 %v10523_v7, %v1470_v30  ;;  %v1471_v49 = vadd.f32 %v10442_v23, %v835_v32  ;;  %v1478_v61 = vadd.f32 %v10410_v40, %v975_v60  ;;  %v11644_v30 = vld [vmem:[#allocation82_spill] sm:$0xff]  ;;  %v11648_v60 = vld [vmem:[#allocation83_spill] sm:$0xff] }
 0x268   :  { %v2695_v58 = vadd.f32 %v2508_v15, %v2288_v22  ;;  %v2284_v45 = vadd.f32 %v10535_v43, %v1877_v19  ;;  %v1878_v16 = vadd.f32 %v10459_v14, %v1471_v49  ;;  %v1477_v43 = vadd.f32 %v10408_v42, %v955_v2  ;;  %v11645_v19 = vld [vmem:[#allocation41_spill] sm:$0xff] }
 0x269   :  { %v3336_v48 = vpop.f32.mrf.mxu2  ;;  %v1885_v42 = vadd.f32 %v10575_v33, %v1478_v61 }
 0x26a   :  { %v3109_v1 = vadd.f32 %v2922_v21, %v2695_v58  ;;  %v2691_v7 = vadd.f32 %v10669_v18, %v2284_v45  ;;  %v2285_v36 = vadd.f32 %v10617_v29, %v1878_v16  ;;  %v1884_v12 = vadd.f32 %v10562_v11, %v1477_v43  ;;  %v11647_v45 = vld [vmem:[#allocation55_spill] sm:$0xff] }
 0x26b   :  { %v3316_v8 = vpop.f32.mrf.mxu1  ;;  %v3670_v0 = vpop.f32.mrf.mxu0  ;;  %v1472_v18 = vadd.f32 %v10448_v6, %v855_v55  ;;  %v2292_v35 = vadd.f32 %v10585_v56, %v1885_v42  ;;  %v11651_v55 = vld [vmem:[#allocation56_spill] sm:$0xff]  ;;  %v11652_v42 = vld [vmem:[#allocation86_spill] sm:$0xff] }
 0x26c   :  { %v3522_v27 = vadd.f32 %v3316_v8, %v3108_v63  ;;  %v3523_v24 = vadd.f32 %v3336_v48, %v3109_v1  ;;  %v3105_v59 = vadd.f32 %v10673_v37, %v2691_v7  ;;  %v2692_v40 = vadd.f32 %v10629_v47, %v2285_v36  ;;  %v11640_v48 = vld [vmem:[#allocation78_spill] sm:$0xff]  ;;  %v11649_v7 = vld [vmem:[#allocation84_spill] sm:$0xff]  ;;  %v11650_v36 = vld [vmem:[#allocation53_spill] sm:$0xff] }
 0x26d   :  { %v915_v37 = vadd.f32 %v10303_v44, %v10237_v5  ;;  %v2291_v29 = vadd.f32 %v10583_v17, %v1884_v12  ;;  %v1879_v47 = vadd.f32 %v10468_v25, %v1472_v18  ;;  %v2699_v63 = vadd.f32 %v10677_v51, %v2292_v35  ;;  %v11642_v1 = vld [vmem:[#allocation46_spill] sm:$0xff] }
 0x26e   :  { %v3519_v14 = vadd.f32 %v3256_v39, %v3105_v59  ;;  %v3106_v34 = vadd.f32 %v10691_v46, %v2692_v40  ;;  %v11653_v18 = vld [vmem:[#allocation42_spill] sm:$0xff] }
 0x26f   :  { %v1475_v11 = vadd.f32 %v10470_v57, %v915_v37  ;;  %v2698_v39 = vadd.f32 %v10675_v4, %v2291_v29  ;;  %v2286_v17 = vadd.f32 %v10625_v52, %v1879_v47  ;;  %v11639_v4 = vld [vmem:[#allocation67_spill] sm:$0xff]  ;;  %v11654_v29 = vld [vmem:[#allocation52_spill] sm:$0xff] }
 0x270   :  { %v3933_v33 = vadd.f32 %v3670_v0, %v3519_v14  ;;  %v3520_v5 = vadd.f32 %v10695_v50, %v3106_v34  ;;  %v3113_v50 = vadd.f32 %v11640_v48, %v2699_v63  ;;  %v1055_v35 = vadd.f32 %v11654_v29, %v11653_v18  ;;  %v11655_v34 = vld [vmem:[#allocation63_spill] sm:$0xff]  ;;  %v11656_v47 = vld [vmem:[#allocation68_spill] sm:$0xff] }
 0x271   :  { %v1882_v6 = vadd.f32 %v10490_v53, %v1475_v11  ;;  %v3112_v56 = vadd.f32 %v10679_v41, %v2698_v39  ;;  %v2693_v51 = vadd.f32 %v11639_v4, %v2286_v17  ;;  %v935_v53 = vadd.f32 %v11642_v1, %v11641_v3  ;;  %v11657_v17 = vld [vmem:[#allocation54_spill] sm:$0xff]  ;;  %v11661_v3 = vld [vmem:[#allocation77_spill] sm:$0xff] }
 0x272   :  { %v3730_v13 = vpop.f32.mrf.mxu3  ;;  %v10788_v57 = vadd.f32 %v10734_v31, %v3933_v33 }
 0x273   :  { %v3936_v20 = vadd.f32 %v3730_v13, %v3522_v27  ;;  %v3396_v10 = vpop.f32.mrf.mxu1  ;;  %v2289_v25 = vadd.f32 %v10643_v26, %v1882_v6  ;;  %v11643_v13 = vld [vmem:[#allocation69_spill] sm:$0xff]  ;;  %v11646_v26 = vld [vmem:[#allocation51_spill] sm:$0xff]  ;;  %v1476_v2 = vadd.f32 %v11647_v45, %v935_v53 }
 0x274   :  { %v3526_v27 = vadd.f32 %v3396_v10, %v3112_v56  ;;  %v3967_v10 = vmax.f32 %v10788_v57, 0.0  ;;  %v1482_v56 = vadd.f32 %v11657_v17, %v1055_v35  ;;  %v11662_v53 = vld [vmem:[#allocation85_spill] sm:$0xff]  ;;  %v11671_v35 = vld [vmem:[#allocation44_spill] sm:$0xff] }
 0x275   :  { %v3750_v28 = vpop.f32.mrf.mxu0  ;;  %v10738_v8 = vadd.f32 %v10734_v31, %v3936_v20  ;;  %v2696_v20 = vadd.f32 %v11643_v13, %v2289_v25  ;;  %v1883_v12 = vadd.f32 %v11651_v55, %v1476_v2 }
 0x276   :  { %v3937_v38 = vadd.f32 %v3750_v28, %v3523_v24  ;;  %v3107_v24 = vadd.f32 %v11644_v30, %v2693_v51 }
 0x277   :  { %v3970_v15 = vmax.f32 %v10738_v8, 0.0  ;;  %v3110_v16 = vadd.f32 %v11648_v60, %v2696_v20  ;;  %v2290_v39 = vadd.f32 %v11656_v47, %v1883_v12 }
 0x278   :  { %v10743_v21 = vadd.f32 %v10734_v31, %v3937_v38  ;;  %v1035_v38 = vadd.f32 %v11646_v26, %v11645_v19  ;;  %v3521_v43 = vadd.f32 %v11649_v7, %v3107_v24  ;;  %v11663_v24 = vld [vmem:[#allocation66_spill] sm:$0xff] }
 0x279   :  { %v3524_v40 = vadd.f32 %v11652_v42, %v3110_v16  ;;  %v11666_v16 = vld [vmem:[#allocation88_spill] sm:$0xff] }
 0x27a   :  { %v3971_v54 = vmax.f32 %v10743_v21, 0.0  ;;  %v3416_v23 = vpop.f32.mrf.mxu2  ;;  %v1481_v59 = vadd.f32 %v11650_v36, %v1035_v38  ;;  %v11665_v38 = vld [vmem:[#allocation79_spill] sm:$0xff]  ;;  %v11668_v36 = vld [vmem:[#allocation49_spill] sm:$0xff] }
 0x27b   :  { %v10756_v22 = vpop.f32.mrf.mxu1  ;;  %v3527_v32 = vadd.f32 %v3416_v23, %v3113_v50  ;;  %v11660_v50 = vld [vmem:[#allocation64_spill] sm:$0xff] }
 0x27c   :  { %v8595_v62 = vpack.i.bf16 %v3971_v54, %v3970_v15  ;;  %v1888_v33 = vadd.f32 %v11655_v34, %v1481_v59 }
 0x27e   :  { %8596 = vrot.lane.b32.xlu1 %v8595_v62, %s9199_s4  ;;  %8581 = vrot.lane.b32.xlu0 %v8595_v62, %s9198_s2 }
 0x27f   :  { %8571 = vrot.lane.b32.xlu2 %v8595_v62, %s9196_s14 }
 0x282   :  { %v10782_v44 = vpop.f32.mrf.mxu2  ;;  %v3810_v0 = vpop.f32.mrf.mxu3 }
 0x283   :  { %v3690_v46 = vpop.f32.mrf.mxu1  ;;  %v3940_v28 = vadd.f32 %v3810_v0, %v3526_v27  ;;  %v1889_v27 = vadd.f32 %v11660_v50, %v1482_v56  ;;  %v11675_v56 = vld [vmem:[#allocation72_spill] sm:$0xff] }
 0x284   :  { %v3934_v58 = vadd.f32 %v3690_v46, %v3520_v5  ;;  %v3830_v41 = vpop.f32.mrf.mxu0  ;;  %v11658_v46 = vld [vmem:[#allocation65_spill] sm:$0xff] }
 0x285   :  { %v3941_v61 = vadd.f32 %v3830_v41, %v3527_v32  ;;  %v10815_v14 = vadd.f32 %v10734_v31, %v3940_v28  ;;  %v2295_v0 = vadd.f32 %v11658_v46, %v1888_v33  ;;  %v2296_v32 = vadd.f32 %v11663_v24, %v1889_v27  ;;  %v11664_v28 = vld [vmem:[#allocation80_spill] sm:$0xff] }
 0x286   :  { %v10796_v52 = vadd.f32 %v10734_v31, %v3934_v58  ;;  %v11659_v58 = vld [vmem:[#allocation71_spill] sm:$0xff]  ;;  %v11673_v33 = vld [vmem:[#allocation60_spill] sm:$0xff] }
 0x287   :  { %v10824_v63 = vadd.f32 %v10734_v31, %v3941_v61  ;;  %v2697_v25 = vadd.f32 %v11659_v58, %v2290_v39  ;;  %v3974_v4 = vmax.f32 %v10815_v14, 0.0  ;;  %v2702_v1 = vadd.f32 %v11661_v3, %v2295_v0  ;;  %v11667_v61 = vld [vmem:[#allocation45_spill] sm:$0xff]  ;;  %v4450_v0 = vld [vmem:[#allocation13 + $0x7c0] sm:$0xff] }
 0x288   :  { %v3968_v49 = vmax.f32 %v10796_v52, 0.0  ;;  %v2703_v45 = vadd.f32 %v11665_v38, %v2296_v32  ;;  %v1015_v59 = vadd.f32 %v11668_v36, %v11667_v61  ;;  %v11676_v58 = vld [vmem:[#allocation59_spill] sm:$0xff]  ;;  %v11683_v36 = vld [vmem:[#allocation61_spill] sm:$0xff] }
 0x289   :  { %v3111_v41 = vadd.f32 %v11662_v53, %v2697_v25  ;;  %v3975_v13 = vmax.f32 %v10824_v63, 0.0  ;;  %v3116_v19 = vadd.f32 %v11664_v28, %v2702_v1  ;;  %v11677_v1 = vld [vmem:[#allocation70_spill] sm:$0xff]  ;;  %v11679_v32 = vld [vmem:[#allocation47_spill] sm:$0xff] }
 0x28a   :  { %v3710_v62 = vpop.f32.mrf.mxu2  ;;  %v8585_v23 = vpack.i.bf16 %v3968_v49, %v3967_v10  ;;  %v4442_v61 = vld [vmem:[#allocation13 + $0x780] sm:$0xff] }
 0x28b   :  { %v3935_v37 = vadd.f32 %v3710_v62, %v3521_v43  ;;  %v3770_v11 = vpop.f32.mrf.mxu1  ;;  %v3525_v7 = vadd.f32 %v11666_v16, %v3111_v41  ;;  %v3530_v43 = vadd.f32 %v10756_v22, %v3116_v19  ;;  %v11669_v62 = vld [vmem:[#allocation81_spill] sm:$0xff]  ;;  %v11678_v41 = vld [vmem:[#allocation75_spill] sm:$0xff] }
 0x28c   :  { %8586 = vrot.lane.b32.xlu0 %v8585_v23, %s9198_s2  ;;  %8576 = vrot.lane.b32.xlu2 %v8585_v23, %s9196_s14  ;;  %v3938_v6 = vadd.f32 %v3770_v11, %v3524_v40  ;;  %v3117_v55 = vadd.f32 %v11669_v62, %v2703_v45  ;;  %v3910_v12 = vpop.f32.mrf.mxu0  ;;  %v11681_v19 = vld [vmem:[#allocation73_spill] sm:$0xff]  ;;  %v11684_v62 = vld [vmem:[#allocation87_spill] sm:$0xff] }
 0x28d   :  { %v10827_v5 = vadd.f32 %v10734_v31, %v3935_v37  ;;  %v11670_v37 = vld [vmem:[#allocation58_spill] sm:$0xff]  ;;  %v11682_v45 = vld [vmem:[#allocation89_spill] sm:$0xff] }
 0x28e   :  { %v10835_v48 = vadd.f32 %v10734_v31, %v3938_v6  ;;  %v1480_v18 = vadd.f32 %v11670_v37, %v1015_v59  ;;  %v3531_v29 = vadd.f32 %v10782_v44, %v3117_v55  ;;  %v11674_v6 = vld [vmem:[#allocation57_spill] sm:$0xff]  ;;  %v4454_v44 = vld [vmem:[#allocation13 + $0x7e0] sm:$0xff] }
 0x28f   :  { %v3969_v51 = vmax.f32 %v10827_v5, 0.0  ;;  %5134 = vmatpush.msra.mxu1 %v4454_v44  ;;  %v4250_v44 = vld [vmem:[#allocation13 + $0x180] sm:$0xff] }
 0x290   :  { %v3972_v20 = vmax.f32 %v10835_v48, 0.0  ;;  %v1887_v11 = vadd.f32 %v11673_v33, %v1480_v18  ;;  %v3945_v22 = vadd.f32 %v3910_v12, %v3531_v29  ;;  %v11685_v12 = vld [vmem:[#allocation91_spill] sm:$0xff]  ;;  %v11686_v29 = vld [vmem:[#allocation62_spill] sm:$0xff] }
 0x291   :  { %v8600_v30 = vpack.i.bf16 %v3974_v4, %v3969_v51  ;;  %v3890_v60 = vpop.f32.mrf.mxu3  ;;  %5135 = vmatpush.msra.mxu1 %v4450_v0  ;;  %v4258_v18 = vld [vmem:[#allocation13 + $0x1c0] sm:$0xff] }
 0x292   :  { %v8615_v26 = vpack.i.bf16 %v3972_v20, %v3975_v13  ;;  %v3790_v2 = vpop.f32.mrf.mxu2  ;;  %v3944_v40 = vadd.f32 %v3890_v60, %v3530_v43  ;;  %v2294_v46 = vadd.f32 %v11675_v56, %v1887_v11  ;;  %v3965_v50 = vadd.f32 %v10734_v31, %v3945_v22  ;;  %v4446_v43 = vld [vmem:[#allocation13 + $0x7a0] sm:$0xff] }
 0x293   :  { %8601 = vrot.lane.b32.xlu1 %v8600_v30, %s9196_s14  ;;  %v3939_v42 = vadd.f32 %v3790_v2, %v3525_v7  ;;  %5136 = vmatpush.msra.mxu1 %v4446_v43  ;;  %v3850_v37 = vpop.f32.mrf.mxu1  ;;  %v4254_v11 = vld [vmem:[#allocation13 + $0x1a0] sm:$0xff] }
 0x294   :  { %8591 = vrot.lane.b32.xlu0 %v8585_v23, %s9199_s4  ;;  %8616 = vrot.lane.b32.xlu2 %v8615_v26, %s9196_s14  ;;  %v11672_v23 = vld [vmem:[#allocation48_spill] sm:$0xff]  ;;  %v10870_v39 = vadd.f32 %v10734_v31, %v3944_v40  ;;  %v2701_v24 = vadd.f32 %v11678_v41, %v2294_v46  ;;  %v10887_v60 = vmax.f32 %v3965_v50, 0.0  ;;  %v4262_v40 = vld [vmem:[#allocation13 + $0x1e0] sm:$0xff] }
 0x295   :  { %v995_v34 = vadd.f32 %v11672_v23, %v11671_v35  ;;  %v10867_v47 = vadd.f32 %v10734_v31, %v3939_v42  ;;  %5074 = vmatpush.msrb.mxu2 %v4262_v40  ;;  %v11687_v23 = vld [vmem:[#allocation90_spill] sm:$0xff]  ;;  %5137 = vmatpush.msra.mxu1 %v4442_v61  ;;  %v4434_v22 = vld [vmem:[#allocation13 + $0x740] sm:$0xff] }
 0x296   :  { %v3978_v3 = vmax.f32 %v10870_v39, 0.0  ;;  %v3115_v2 = vadd.f32 %v11682_v45, %v2701_v24  ;;  %v4390_v0 = vld [vmem:[#allocation13 + $0x5e0] sm:$0xff]  ;;  %v11690_v24 = vld [vmem:[#allocation92_spill] sm:$0xff] }
 0x297   :  { %v1479_v17 = vadd.f32 %v11674_v6, %v995_v34  ;;  %v3973_v27 = vmax.f32 %v10867_v47, 0.0  ;;  %5075 = vmatpush.msrb.mxu2 %v4258_v18  ;;  %v4326_v6 = vld [vmem:[#allocation13 + $0x3e0] sm:$0xff]  ;;  %5114 = vmatpush.msra.mxu0 %v4390_v0 }
 0x298   :  { %v3529_v42 = vadd.f32 %v11685_v12, %v3115_v2  ;;  %5094 = vmatpush.msrb.mxu3 %v4326_v6  ;;  %v4426_v41 = vld [vmem:[#allocation13 + $0x700] sm:$0xff] }
 0x299   :  { %v1886_v25 = vadd.f32 %v11676_v58, %v1479_v17  ;;  %v8630_v7 = vpack.i.bf16 %v3978_v3, %v3973_v27  ;;  %v11688_v17 = vld [vmem:[#allocation74_spill] sm:$0xff]  ;;  %v4430_v58 = vld [vmem:[#allocation13 + $0x720] sm:$0xff]  ;;  %5076 = vmatpush.msrb.mxu2 %v4254_v11 }
 0x29a   :  { %v3870_v16 = vpop.f32.mrf.mxu2  ;;  %v4418_v45 = vld [vmem:[#allocation13 + $0x6c0] sm:$0xff] }
 0x29b   :  { %8606 = vrot.lane.b32.xlu1 %v8600_v30, %s9198_s2  ;;  %v2293_v53 = vadd.f32 %v11677_v1, %v1886_v25  ;;  %v3943_v33 = vadd.f32 %v3870_v16, %v3529_v42  ;;  %v11689_v25 = vld [vmem:[#allocation76_spill] sm:$0xff]  ;;  %5077 = vmatpush.msrb.mxu2 %v4250_v44  ;;  %v4414_v43 = vld [vmem:[#allocation13 + $0x6a0] sm:$0xff] }
 0x29c   :  { %8611 = vrot.lane.b32.xlu0 %v8600_v30, %s9199_s4  ;;  %8621 = vrot.lane.b32.xlu2 %v8615_v26, %s9198_s2  ;;  %v11680_v30 = vld [vmem:[#allocation50_spill] sm:$0xff]  ;;  %v4386_v12 = vld [vmem:[#allocation13 + $0x5c0] sm:$0xff] }
 0x29d   :  { %v1075_v28 = vadd.f32 %v11680_v30, %v11679_v32  ;;  %v2700_v38 = vadd.f32 %v11681_v19, %v2293_v53  ;;  %v10905_v1 = vadd.f32 %v10734_v31, %v3943_v33  ;;  %v4246_v53 = vld [vmem:[#allocation13 + $0x160] sm:$0xff]  ;;  %5115 = vmatpush.msra.mxu0 %v4386_v12 }
 0x29e   :  { %5078 = vmatpush.msrb.mxu2 %v4246_v53  ;;  %v4406_v42 = vld [vmem:[#allocation13 + $0x660] sm:$0xff] }
 0x29f   :  { %v1483_v59 = vadd.f32 %v11683_v36, %v1075_v28  ;;  %v3114_v55 = vadd.f32 %v11684_v62, %v2700_v38  ;;  %v4422_v28 = vld [vmem:[#allocation13 + $0x6e0] sm:$0xff]  ;;  %v3977_v19 = vmax.f32 %v10905_v1, 0.0  ;;  %v3930_v38 = vpop.f32.mrf.mxu1 }
 0x2a0   :  { %v4410_v36 = vld [vmem:[#allocation13 + $0x680] sm:$0xff] }
 0x2a1   :  { %v1890_v35 = vadd.f32 %v11686_v29, %v1483_v59  ;;  %v3528_v34 = vadd.f32 %v11687_v23, %v3114_v55  ;;  %v4242_v62 = vld [vmem:[#allocation13 + $0x140] sm:$0xff] }
 0x2a2   :  { %v4322_v55 = vld [vmem:[#allocation13 + $0x3c0] sm:$0xff]  ;;  %5079 = vmatpush.msrb.mxu2 %v4242_v62 }
 0x2a3   :  { %8626 = vrot.lane.b32.xlu1 %v8615_v26, %s9199_s4  ;;  %v4438_v26 = vld [vmem:[#allocation13 + $0x760] sm:$0xff]  ;;  %v2297_v56 = vadd.f32 %v11688_v17, %v1890_v35  ;;  %v3942_v46 = vadd.f32 %v3850_v37, %v3528_v34  ;;  %5095 = vmatpush.msrb.mxu3 %v4322_v55 }
 0x2a4   :  { %4019 = vrot.lane.b32.xlu0 %v10887_v60, %s9196_s14  ;;  %8631 = vrot.lane.b32.xlu2 %v8630_v7, %s9196_s14  ;;  %v4238_v40 = vld [vmem:[#allocation13 + $0x120] sm:$0xff] }
 0x2a5   :  { %5138 = vmatpush.msra.mxu1 %v4438_v26  ;;  %v2704_v50 = vadd.f32 %v11689_v25, %v2297_v56  ;;  %v10910_v30 = vadd.f32 %v10734_v31, %v3942_v46  ;;  %v4318_v37 = vld [vmem:[#allocation13 + $0x3a0] sm:$0xff]  ;;  %5080 = vmatpush.msrb.mxu2 %v4238_v40 }
 0x2a6   :  { %v4382_v26 = vld [vmem:[#allocation13 + $0x5a0] sm:$0xff]  ;;  %5096 = vmatpush.msrb.mxu3 %v4318_v37 }
 0x2a7   :  { %5139 = vmatpush.msra.mxu1 %v4434_v22  ;;  %v3118_v32 = vadd.f32 %v11690_v24, %v2704_v50  ;;  %v3976_v16 = vmax.f32 %v10910_v30, 0.0  ;;  %v4234_v18 = vld [vmem:[#allocation13 + $0x100] sm:$0xff]  ;;  %5116 = vmatpush.msra.mxu0 %v4382_v26 }
 0x2a8   :  { %v4314_v29 = vld [vmem:[#allocation13 + $0x380] sm:$0xff]  ;;  %5081 = vmatpush.msrb.mxu2 %v4234_v18 }
 0x2a9   :  { %5140 = vmatpush.msra.mxu1 %v4430_v58  ;;  %v3532_v2 = vadd.f32 %v10724_v9, %v3118_v32  ;;  %v4378_v35 = vld [vmem:[#allocation13 + $0x580] sm:$0xff]  ;;  %5097 = vmatpush.msrb.mxu3 %v4314_v29 }
 0x2aa   :  { %v4398_v23 = vld [vmem:[#allocation13 + $0x620] sm:$0xff]  ;;  %5117 = vmatpush.msra.mxu0 %v4378_v35 }
 0x2ab   :  { %8636 = vrot.lane.b32.xlu1 %v8630_v7, %s9198_s2  ;;  %5141 = vmatpush.msra.mxu1 %v4426_v41  ;;  %v3946_v61 = vadd.f32 %v3930_v38, %v3532_v2  ;;  %v4230_v34 = vld [vmem:[#allocation13 + $0xe0] sm:$0xff] }
 0x2ac   :  { %8641 = vrot.lane.b32.xlu0 %v8630_v7, %s9199_s4  ;;  %4088 = vrot.lane.b32.xlu2 %v10887_v60, %s9198_s2  ;;  %v8650_v7 = vpack.i.bf16 %v3977_v19, %v3976_v16  ;;  %v4310_v33 = vld [vmem:[#allocation13 + $0x360] sm:$0xff] }
 0x2ad   :  { %5142 = vmatpush.msra.mxu1 %v4422_v28  ;;  %v3966_v9 = vadd.f32 %v10734_v31, %v3946_v61  ;;  %v4402_v31 = vld [vmem:[#allocation13 + $0x640] sm:$0xff]  ;;  %5082 = vmatpush.msrb.mxu2 %v4230_v34 }
 0x2ae   :  { %v4374_v11 = vld [vmem:[#allocation13 + $0x560] sm:$0xff]  ;;  %5098 = vmatpush.msrb.mxu3 %v4310_v33 }
 0x2af   :  { %5143 = vmatpush.msra.mxu1 %v4418_v45  ;;  %v10927_v59 = vmax.f32 %v3966_v9, 0.0  ;;  %v4394_v22 = vld [vmem:[#allocation13 + $0x600] sm:$0xff]  ;;  %5118 = vmatpush.msra.mxu0 %v4374_v11 }
 0x2b0   :  { %v4710_v6 = vld [vmem:[#allocation13 + $0xfe0] sm:$0xff] }
 0x2b1   :  { %5144 = vmatpush.msra.mxu1 %v4414_v43  ;;  %v4226_v17 = vld [vmem:[#allocation13 + $0xc0] sm:$0xff] }
 0x2b2   :  { %v4306_v56 = vld [vmem:[#allocation13 + $0x340] sm:$0xff]  ;;  %5083 = vmatpush.msrb.mxu2 %v4226_v17 }
 0x2b3   :  { %4157 = vrot.lane.b32.xlu1 %v10887_v60, %s9199_s4  ;;  %5145 = vmatpush.msra.mxu1 %v4410_v36  ;;  %v4370_v46 = vld [vmem:[#allocation13 + $0x540] sm:$0xff] }
 0x2b4   :  { %8651 = vrot.lane.b32.xlu0 %v8650_v7, %s9198_s2  ;;  %8646 = vrot.lane.b32.xlu2 %v8650_v7, %s9196_s14  ;;  %v4706_v44 = vld [vmem:[#allocation13 + $0xfc0] sm:$0xff] }
 0x2b5   :  { %5146 = vmatpush.msra.mxu1 %v4406_v42  ;;  %v4222_v0 = vld [vmem:[#allocation13 + $0xa0] sm:$0xff]  ;;  %5099 = vmatpush.msrb.mxu3 %v4306_v56 }
 0x2b6   :  { %v4302_v58 = vld [vmem:[#allocation13 + $0x320] sm:$0xff]  ;;  %5119 = vmatpush.msra.mxu0 %v4370_v46  ;;  %5084 = vmatpush.msrb.mxu2 %v4222_v0 }
 0x2b7   :  { %5147 = vmatpush.msra.mxu1 %v4402_v31  ;;  %v4366_v25 = vld [vmem:[#allocation13 + $0x520] sm:$0xff]  ;;  %5100 = vmatpush.msrb.mxu3 %v4302_v58 }
 0x2b8   :  { %v4702_v50 = vld [vmem:[#allocation13 + $0xfa0] sm:$0xff]  ;;  %5120 = vmatpush.msra.mxu0 %v4366_v25 }
 0x2b9   :  { %5148 = vmatpush.msra.mxu1 %v4398_v23  ;;  %v4218_v53 = vld [vmem:[#allocation13 + $0x80] sm:$0xff] }
 0x2ba   :  { %v4298_v41 = vld [vmem:[#allocation13 + $0x300] sm:$0xff]  ;;  %5085 = vmatpush.msrb.mxu2 %v4218_v53 }
 0x2bb   :  { %8656 = vrot.lane.b32.xlu1 %v8650_v7, %s9199_s4  ;;  %5149 = vmatpush.msra.mxu1 %v4394_v22  ;;  %v4362_v24 = vld [vmem:[#allocation13 + $0x500] sm:$0xff] }
 0x2bc   :  { %4090 = vrot.lane.b32.xlu0 %v10927_v59, %s9198_s2  ;;  %4021 = vrot.lane.b32.xlu2 %v10927_v59, %s9196_s14  ;;  %v4698_v32 = vld [vmem:[#allocation13 + $0xf80] sm:$0xff] }
 0x2bd   :  { %5214 = vmatpush.msrb.mxu1 %v4710_v6  ;;  %v4214_v28 = vld [vmem:[#allocation13 + $0x60] sm:$0xff]  ;;  %5101 = vmatpush.msrb.mxu3 %v4298_v41 }
 0x2be   :  { %v4294_v38 = vld [vmem:[#allocation13 + $0x2e0] sm:$0xff]  ;;  %5121 = vmatpush.msra.mxu0 %v4362_v24  ;;  %5086 = vmatpush.msrb.mxu2 %v4214_v28 }
 0x2bf   :  { %5215 = vmatpush.msrb.mxu1 %v4706_v44  ;;  %v4358_v45 = vld [vmem:[#allocation13 + $0x4e0] sm:$0xff]  ;;  %5102 = vmatpush.msrb.mxu3 %v4294_v38 }
 0x2c0   :  { %v4694_v2 = vld [vmem:[#allocation13 + $0xf60] sm:$0xff]  ;;  %5122 = vmatpush.msra.mxu0 %v4358_v45 }
 0x2c1   :  { %5216 = vmatpush.msrb.mxu1 %v4702_v50  ;;  %v4210_v43 = vld [vmem:[#allocation13 + $0x40] sm:$0xff] }
 0x2c2   :  { %v4290_v61 = vld [vmem:[#allocation13 + $0x2c0] sm:$0xff]  ;;  %5087 = vmatpush.msrb.mxu2 %v4210_v43 }
 0x2c3   :  { %4159 = vrot.lane.b32.xlu1 %v10927_v59, %s9199_s4  ;;  %5217 = vmatpush.msrb.mxu1 %v4698_v32  ;;  %v4354_v7 = vld [vmem:[#allocation13 + $0x4c0] sm:$0xff]  ;;  %s9206_s4 = smov 113  }
 0x2c4   :  { %v4690_v36 = vld [vmem:[#allocation13 + $0xf40] sm:$0xff]  ;;  %5103 = vmatpush.msrb.mxu3 %v4290_v61  ;;  %5123 = vmatpush.msra.mxu0 %v4354_v7 }
 0x2c5   :  { %v4206_v9 = vld [vmem:[#allocation13 + $0x20] sm:$0xff]  ;;  %5218 = vmatpush.msrb.mxu1 %v4694_v2 }
 0x2c6   :  { %v4286_v62 = vld [vmem:[#allocation13 + $0x2a0] sm:$0xff]  ;;  %5088 = vmatpush.msrb.mxu2 %v4206_v9 }
 0x2c7   :  { %v4350_v55 = vld [vmem:[#allocation13 + $0x4a0] sm:$0xff]  ;;  %5219 = vmatpush.msrb.mxu1 %v4690_v36  ;;  %5104 = vmatpush.msrb.mxu3 %v4286_v62 }
 0x2c8   :  { %v4686_v12 = vld [vmem:[#allocation13 + $0xf20] sm:$0xff]  ;;  %5124 = vmatpush.msra.mxu0 %v4350_v55 }
 0x2c9   :  { %v4202_v42 = vld [vmem:[#allocation13] sm:$0xff]  ;;  %5220 = vmatpush.msrb.mxu1 %v4686_v12 }
 0x2ca   :  { %v4282_v40 = vld [vmem:[#allocation13 + $0x280] sm:$0xff]  ;;  %5089 = vmatpush.msrb.mxu2 %v4202_v42 }
 0x2cb   :  { %v4346_v37 = vld [vmem:[#allocation13 + $0x480] sm:$0xff]  ;;  %5105 = vmatpush.msrb.mxu3 %v4282_v40 }
 0x2cc   :  { %v4518_v26 = vld [vmem:[#allocation13 + $0x9e0] sm:$0xff]  ;;  %5125 = vmatpush.msra.mxu0 %v4346_v37 }
 0x2cd   :  { %v4682_v31 = vld [vmem:[#allocation13 + $0xf00] sm:$0xff]  ;;  %5154 = vmatpush.msra.mxu2 %v4518_v26 }
 0x2ce   :  { %v4278_v18 = vld [vmem:[#allocation13 + $0x260] sm:$0xff]  ;;  %5221 = vmatpush.msrb.mxu1 %v4682_v31 }
 0x2cf   :  { %v4342_v29 = vld [vmem:[#allocation13 + $0x460] sm:$0xff]  ;;  %5106 = vmatpush.msrb.mxu3 %v4278_v18 }
 0x2d0   :  { %v4514_v35 = vld [vmem:[#allocation13 + $0x9c0] sm:$0xff]  ;;  %5126 = vmatpush.msra.mxu0 %v4342_v29 }
 0x2d1   :  { %v4678_v23 = vld [vmem:[#allocation13 + $0xee0] sm:$0xff]  ;;  %5155 = vmatpush.msra.mxu2 %v4514_v35 }
 0x2d2   :  { %v4274_v34 = vld [vmem:[#allocation13 + $0x240] sm:$0xff]  ;;  %5222 = vmatpush.msrb.mxu1 %v4678_v23 }
 0x2d3   :  { %v4338_v33 = vld [vmem:[#allocation13 + $0x440] sm:$0xff]  ;;  %5107 = vmatpush.msrb.mxu3 %v4274_v34 }
 0x2d4   :  { %v4510_v11 = vld [vmem:[#allocation13 + $0x9a0] sm:$0xff]  ;;  %5127 = vmatpush.msra.mxu0 %v4338_v33 }
 0x2d5   :  { %v4674_v22 = vld [vmem:[#allocation13 + $0xec0] sm:$0xff]  ;;  %5156 = vmatpush.msra.mxu2 %v4510_v11 }
 0x2d6   :  { %v4270_v6 = vld [vmem:[#allocation13 + $0x220] sm:$0xff]  ;;  %5223 = vmatpush.msrb.mxu1 %v4674_v22 }
 0x2d7   :  { %v4334_v17 = vld [vmem:[#allocation13 + $0x420] sm:$0xff]  ;;  %5108 = vmatpush.msrb.mxu3 %v4270_v6 }
 0x2d8   :  { %v4506_v56 = vld [vmem:[#allocation13 + $0x980] sm:$0xff]  ;;  %5128 = vmatpush.msra.mxu0 %v4334_v17 }
 0x2d9   :  { %v4670_v46 = vld [vmem:[#allocation13 + $0xea0] sm:$0xff]  ;;  %5157 = vmatpush.msra.mxu2 %v4506_v56  ;;  %v10936_v33 = vpop.permute.xlu2 %8571 }
 0x2da   :  { %v4266_v44 = vld [vmem:[#allocation13 + $0x200] sm:$0xff]  ;;  %5224 = vmatpush.msrb.mxu1 %v4670_v46  ;;  %v8574_v46 = vunpack.i.h.bf16 %v10936_v33 }
 0x2db   :  { %v4330_v0 = vld [vmem:[#allocation13 + $0x400] sm:$0xff]  ;;  %5109 = vmatpush.msrb.mxu3 %v4266_v44  ;;  %v8573_v44 = vunpack.i.l.bf16 %v10936_v33 }
 0x2dc   :  { %v4502_v58 = vld [vmem:[#allocation13 + $0x960] sm:$0xff]  ;;  %5129 = vmatpush.msra.mxu0 %v4330_v0 }
 0x2dd   :  { %v4582_v25 = vld [vmem:[#allocation13 + $0xbe0] sm:$0xff]  ;;  %5158 = vmatpush.msra.mxu2 %v4502_v58 }
 0x2de   :  { %v4646_v50 = vld [vmem:[#allocation13 + $0xde0] sm:$0xff]  ;;  %5174 = vmatpush.msra.mxu3 %v4582_v25 }
 0x2df   :  { %v4666_v53 = vld [vmem:[#allocation13 + $0xe80] sm:$0xff]  ;;  %5194 = vmatpush.msrb.mxu0 %v4646_v50 }
 0x2e0   :  { %v4498_v41 = vld [vmem:[#allocation13 + $0x940] sm:$0xff]  ;;  %5225 = vmatpush.msrb.mxu1 %v4666_v53 }
 0x2e1   :  { %v4578_v24 = vld [vmem:[#allocation13 + $0xbc0] sm:$0xff]  ;;  %5159 = vmatpush.msra.mxu2 %v4498_v41 }
 0x2e2   :  { %v4642_v32 = vld [vmem:[#allocation13 + $0xdc0] sm:$0xff]  ;;  %5175 = vmatpush.msra.mxu3 %v4578_v24  ;;  %v4026_v24 = vsel %vm415_vm0, %v8573_v44, %v8574_v46 }
 0x2e3   :  { %v4662_v28 = vld [vmem:[#allocation13 + $0xe60] sm:$0xff]  ;;  %5195 = vmatpush.msrb.mxu0 %v4642_v32 }
 0x2e4   :  { %v4494_v38 = vld [vmem:[#allocation13 + $0x920] sm:$0xff]  ;;  %5226 = vmatpush.msrb.mxu1 %v4662_v28 }
 0x2e5   :  { %v4574_v45 = vld [vmem:[#allocation13 + $0xba0] sm:$0xff]  ;;  %5160 = vmatpush.msra.mxu2 %v4494_v38 }
 0x2e6   :  { %v4638_v2 = vld [vmem:[#allocation13 + $0xda0] sm:$0xff]  ;;  %5176 = vmatpush.msra.mxu3 %v4574_v45 }
 0x2e7   :  { %v4658_v43 = vld [vmem:[#allocation13 + $0xe40] sm:$0xff]  ;;  %5196 = vmatpush.msrb.mxu0 %v4638_v2 }
 0x2e8   :  { %v4490_v61 = vld [vmem:[#allocation13 + $0x900] sm:$0xff]  ;;  %5227 = vmatpush.msrb.mxu1 %v4658_v43 }
 0x2e9   :  { %v4570_v7 = vld [vmem:[#allocation13 + $0xb80] sm:$0xff]  ;;  %5161 = vmatpush.msra.mxu2 %v4490_v61 }
 0x2ea   :  { %v4634_v36 = vld [vmem:[#allocation13 + $0xd80] sm:$0xff]  ;;  %5177 = vmatpush.msra.mxu3 %v4570_v7 }
 0x2eb   :  { %v4654_v9 = vld [vmem:[#allocation13 + $0xe20] sm:$0xff]  ;;  %5197 = vmatpush.msrb.mxu0 %v4634_v36 }
 0x2ec   :  { %v4486_v62 = vld [vmem:[#allocation13 + $0x8e0] sm:$0xff]  ;;  %5228 = vmatpush.msrb.mxu1 %v4654_v9  ;;  %v4053_v9 = vmax.f32 %v3970_v15, %v4026_v24 }
 0x2ed   :  { %v4566_v55 = vld [vmem:[#allocation13 + $0xb60] sm:$0xff]  ;;  %5162 = vmatpush.msra.mxu2 %v4486_v62  ;;  %v10955_v62 = vpop.permute.xlu2 %8576 }
 0x2ee   :  { %v4630_v12 = vld [vmem:[#allocation13 + $0xd60] sm:$0xff]  ;;  %5178 = vmatpush.msra.mxu3 %v4566_v55 }
 0x2ef   :  { %v4650_v42 = vld [vmem:[#allocation13 + $0xe00] sm:$0xff]  ;;  %5198 = vmatpush.msrb.mxu0 %v4630_v12 }
 0x2f0   :  { %v4482_v40 = vld [vmem:[#allocation13 + $0x8c0] sm:$0xff]  ;;  %5229 = vmatpush.msrb.mxu1 %v4650_v42  ;;  %v10945_v28 = vpop.permute.xlu1 %8596  ;;  %v10947_v38 = vpop.permute.xlu0 %8581 }
 0x2f1   :  { %v4562_v37 = vld [vmem:[#allocation13 + $0xb40] sm:$0xff]  ;;  %5163 = vmatpush.msra.mxu2 %v4482_v40  ;;  %v8599_v2 = vunpack.i.h.bf16 %v10945_v28  ;;  %v8598_v43 = vunpack.i.l.bf16 %v10945_v28  ;;  %v8584_v61 = vunpack.i.h.bf16 %v10947_v38  ;;  %v8583_v7 = vunpack.i.l.bf16 %v10947_v38 }
 0x2f2   :  { %v4626_v26 = vld [vmem:[#allocation13 + $0xd40] sm:$0xff]  ;;  %5179 = vmatpush.msra.mxu3 %v4562_v37 }
 0x2f3   :  { %v4478_v31 = vld [vmem:[#allocation13 + $0x8a0] sm:$0xff]  ;;  %5199 = vmatpush.msrb.mxu0 %v4626_v26  ;;  %v4095_v12 = vsel %vm1552_vm4, %v8583_v7, %v8584_v61  ;;  %v4164_v8 = vsel %vm1959_vm5, %v8598_v43, %v8599_v2 }
 0x2f4   :  { %v4558_v18 = vld [vmem:[#allocation13 + $0xb20] sm:$0xff]  ;;  %5164 = vmatpush.msra.mxu2 %v4478_v31  ;;  %v4122_v40 = vmax.f32 %v4053_v9, %v4095_v12 }
 0x2f5   :  { %v4622_v29 = vld [vmem:[#allocation13 + $0xd20] sm:$0xff]  ;;  %5180 = vmatpush.msra.mxu3 %v4558_v18 }
 0x2f6   :  { %v4474_v35 = vld [vmem:[#allocation13 + $0x880] sm:$0xff]  ;;  %5200 = vmatpush.msrb.mxu0 %v4622_v29  ;;  %v10967_v26 = vmax.f32 %v4122_v40, %v4164_v8 }
 0x2f7   :  { %v4554_v23 = vld [vmem:[#allocation13 + $0xb00] sm:$0xff]  ;;  %5165 = vmatpush.msra.mxu2 %v4474_v35 }
 0x2f8   :  { %v4618_v34 = vld [vmem:[#allocation13 + $0xd00] sm:$0xff]  ;;  %5181 = vmatpush.msra.mxu3 %v4554_v23  ;;  %5150 = vmatmul.f32.vlgmr.msra.gmra.mxu1 %v10967_v26 }
 0x2f9   :  { %v4470_v11 = vld [vmem:[#allocation13 + $0x860] sm:$0xff]  ;;  %5201 = vmatpush.msrb.mxu0 %v4618_v34  ;;  %v10970_v34 = vpop.permute.xlu2 %8616 }
 0x2fa   :  { %v4550_v22 = vld [vmem:[#allocation13 + $0xae0] sm:$0xff]  ;;  %5166 = vmatpush.msra.mxu2 %v4470_v11 }
 0x2fb   :  { %v4614_v6 = vld [vmem:[#allocation13 + $0xce0] sm:$0xff]  ;;  %5182 = vmatpush.msra.mxu3 %v4550_v22 }
 0x2fc   :  { %v4466_v17 = vld [vmem:[#allocation13 + $0x840] sm:$0xff]  ;;  %5202 = vmatpush.msrb.mxu0 %v4614_v6 }
 0x2fd   :  { %v4546_v56 = vld [vmem:[#allocation13 + $0xac0] sm:$0xff]  ;;  %5167 = vmatpush.msra.mxu2 %v4466_v17  ;;  %v8579_v17 = vunpack.i.h.bf16 %v10955_v62 }
 0x2fe   :  { %v4610_v0 = vld [vmem:[#allocation13 + $0xcc0] sm:$0xff]  ;;  %5183 = vmatpush.msra.mxu3 %v4546_v56  ;;  %v8587_v22 = vpop.permute.xlu0 %8586  ;;  %v8578_v56 = vunpack.i.l.bf16 %v10955_v62 }
 0x2ff   :  { %v4462_v58 = vld [vmem:[#allocation13 + $0x820] sm:$0xff]  ;;  %5203 = vmatpush.msrb.mxu0 %v4610_v0 }
 0x300   :  { %v4542_v25 = vld [vmem:[#allocation13 + $0xaa0] sm:$0xff]  ;;  %5168 = vmatpush.msra.mxu2 %v4462_v58  ;;  %v8589_v58 = vunpack.i.h.bf16 %v8587_v22 }
 0x301   :  { %v4606_v50 = vld [vmem:[#allocation13 + $0xca0] sm:$0xff]  ;;  %5184 = vmatpush.msra.mxu3 %v4542_v25  ;;  %v8588_v25 = vunpack.i.l.bf16 %v8587_v22 }
 0x302   :  { %v4458_v53 = vld [vmem:[#allocation13 + $0x800] sm:$0xff]  ;;  %5204 = vmatpush.msrb.mxu0 %v4606_v50 }
 0x303   :  { %v4538_v41 = vld [vmem:[#allocation13 + $0xa80] sm:$0xff]  ;;  %5169 = vmatpush.msra.mxu2 %v4458_v53  ;;  %v4023_v53 = vsel %vm415_vm0, %v8578_v56, %v8579_v17 }
 0x304   :  { %v4602_v32 = vld [vmem:[#allocation13 + $0xc80] sm:$0xff]  ;;  %5185 = vmatpush.msra.mxu3 %v4538_v41  ;;  %v4050_v62 = vmax.f32 %v3967_v10, %v4023_v53 }
 0x305   :  { %v4534_v45 = vld [vmem:[#allocation13 + $0xa60] sm:$0xff]  ;;  %5205 = vmatpush.msrb.mxu0 %v4602_v32  ;;  %v10975_v24 = vpop.permute.xlu1 %8601  ;;  %v10977_v32 = vpop.permute.xlu2 %8621 }
 0x306   :  { %v4598_v36 = vld [vmem:[#allocation13 + $0xc60] sm:$0xff]  ;;  %5186 = vmatpush.msra.mxu3 %v4534_v45  ;;  %v4092_v45 = vsel %vm1552_vm4, %v8588_v25, %v8589_v58  ;;  %v8604_v22 = vunpack.i.h.bf16 %v10975_v24 }
 0x307   :  { %v4530_v55 = vld [vmem:[#allocation13 + $0xa40] sm:$0xff]  ;;  %5206 = vmatpush.msrb.mxu0 %v4598_v36  ;;  %v8592_v36 = vpop.permute.xlu0 %8591 }
 0x308   :  { %v4594_v42 = vld [vmem:[#allocation13 + $0xc40] sm:$0xff]  ;;  %5187 = vmatpush.msra.mxu3 %v4530_v55  ;;  %v8594_v55 = vunpack.i.h.bf16 %v8592_v36  ;;  %v8593_v12 = vunpack.i.l.bf16 %v8592_v36 }
 0x309   :  { %v4526_v37 = vld [vmem:[#allocation13 + $0xa20] sm:$0xff]  ;;  %5207 = vmatpush.msrb.mxu0 %v4594_v42  ;;  %v8603_v42 = vunpack.i.l.bf16 %v10975_v24 }
 0x30a   :  { %v4590_v15 = vld [vmem:[#allocation13 + $0xc20] sm:$0xff]  ;;  %5188 = vmatpush.msra.mxu3 %v4526_v37  ;;  %v4119_v37 = vmax.f32 %v4050_v62, %v4092_v45  ;;  %v4161_v8 = vsel %vm1959_vm5, %v8593_v12, %v8594_v55 }
 0x30b   :  { %v4966_v31 = vld [vmem:[#allocation13 + $0x17e0] sm:$0xff]  ;;  %5208 = vmatpush.msrb.mxu0 %v4590_v15  ;;  %v4025_v57 = vsel %vm415_vm0, %v8603_v42, %v8573_v44 }
 0x30c   :  { %v4522_v18 = vld [vmem:[#allocation13 + $0xa00] sm:$0xff]  ;;  %5294 = vmatpush.msra.mxu1 %v4966_v31  ;;  %v10984_v31 = vmax.f32 %v4119_v37, %v4161_v8  ;;  %v4052_v25 = vmax.f32 %v3969_v51, %v4025_v57 }
 0x30d   :  { %v4586_v29 = vld [vmem:[#allocation13 + $0xc00] sm:$0xff]  ;;  %5189 = vmatpush.msra.mxu3 %v4522_v18  ;;  %v11005_v45 = vpop.permute.xlu2 %8631 }
 0x30e   :  { %v4962_v35 = vld [vmem:[#allocation13 + $0x17c0] sm:$0xff]  ;;  %5209 = vmatpush.msrb.mxu0 %v4586_v29  ;;  %v4024_v29 = vsel %vm415_vm0, %v8579_v17, %v8603_v42  ;;  %5090 = vmatmul.f32.vlgmr.msrb.gmra.mxu2 %v10984_v31 }
 0x30f   :  { %v4958_v23 = vld [vmem:[#allocation13 + $0x17a0] sm:$0xff]  ;;  %5295 = vmatpush.msra.mxu1 %v4962_v35  ;;  %v10991_v35 = vpop.permute.xlu1 %8606  ;;  %v10996_v56 = vpop.permute.xlu0 %8611  ;;  %v4051_v44 = vmax.f32 %v3968_v49, %v4024_v29 }
 0x310   :  { %v4954_v11 = vld [vmem:[#allocation13 + $0x1780] sm:$0xff]  ;;  %v8609_v36 = vunpack.i.h.bf16 %v10991_v35 }
 0x311   :  { %5296 = vmatpush.msra.mxu1 %v4958_v23  ;;  %v4950_v6 = vld [vmem:[#allocation13 + $0x1760] sm:$0xff] }
 0x312   :  { %v4946_v0 = vld [vmem:[#allocation13 + $0x1740] sm:$0xff] }
 0x313   :  { %5297 = vmatpush.msra.mxu1 %v4954_v11  ;;  %v4942_v50 = vld [vmem:[#allocation13 + $0x1720] sm:$0xff]  ;;  %v8619_v11 = vunpack.i.h.bf16 %v10970_v34 }
 0x314   :  { %v4938_v41 = vld [vmem:[#allocation13 + $0x1700] sm:$0xff] }
 0x315   :  { %5298 = vmatpush.msra.mxu1 %v4950_v6  ;;  %v4934_v9 = vld [vmem:[#allocation13 + $0x16e0] sm:$0xff]  ;;  %v8608_v6 = vunpack.i.l.bf16 %v10991_v35  ;;  %v4027_v42 = vsel %vm415_vm0, %v8574_v46, %v8619_v11 }
 0x316   :  { %v4930_v40 = vld [vmem:[#allocation13 + $0x16c0] sm:$0xff]  ;;  %v4054_v29 = vmax.f32 %v3971_v54, %v4027_v42 }
 0x317   :  { %5299 = vmatpush.msra.mxu1 %v4946_v0  ;;  %v4926_v15 = vld [vmem:[#allocation13 + $0x16a0] sm:$0xff]  ;;  %v8618_v0 = vunpack.i.l.bf16 %v10970_v34  ;;  %v4094_v52 = vsel %vm1552_vm4, %v8608_v6, %v8583_v7  ;;  %v11047_v38 = vpop.permute.xlu1 %8626  ;;  %v4323_v34 = vld [vmem:[#allocation13 + $0x3c8] sm:$0xff] }
 0x318   :  { %v4774_v18 = vld [vmem:[#allocation13 + $0x11e0] sm:$0xff]  ;;  %v4121_v51 = vmax.f32 %v4052_v25, %v4094_v52  ;;  %v8628_v21 = vunpack.i.l.bf16 %v11047_v38 }
 0x319   :  { %5300 = vmatpush.msra.mxu1 %v4942_v50  ;;  %v4922_v10 = vld [vmem:[#allocation13 + $0x1680] sm:$0xff]  ;;  %5234 = vmatpush.msrb.mxu2 %v4774_v18  ;;  %v8613_v50 = vunpack.i.l.bf16 %v10996_v56  ;;  %v4030_v7 = vsel %vm415_vm0, %v8604_v22, %v8618_v0 }
 0x31a   :  { %v4770_v23 = vld [vmem:[#allocation13 + $0x11c0] sm:$0xff]  ;;  %v4057_v57 = vmax.f32 %v3974_v4, %v4030_v7 }
 0x31b   :  { %5301 = vmatpush.msra.mxu1 %v4938_v41  ;;  %v4918_v17 = vld [vmem:[#allocation13 + $0x1660] sm:$0xff]  ;;  %v8624_v41 = vunpack.i.h.bf16 %v10977_v32  ;;  %5235 = vmatpush.msrb.mxu2 %v4770_v23  ;;  %v4162_v62 = vsel %vm1959_vm5, %v8594_v55, %v8613_v50  ;;  %v4163_v55 = vsel %vm1959_vm5, %v8613_v50, %v8598_v43  ;;  %v8614_v23 = vunpack.i.h.bf16 %v10996_v56 }
 0x31c   :  { %v4766_v53 = vld [vmem:[#allocation13 + $0x11a0] sm:$0xff]  ;;  %v11029_v37 = vmax.f32 %v4121_v51, %v4163_v55  ;;  %v8633_v50 = vunpack.i.l.bf16 %v11005_v45 }
 0x31d   :  { %5302 = vmatpush.msra.mxu1 %v4934_v9  ;;  %v4093_v9 = vsel %vm1552_vm4, %v8589_v58, %v8608_v6  ;;  %v4914_v49 = vld [vmem:[#allocation13 + $0x1640] sm:$0xff]  ;;  %v8623_v58 = vunpack.i.l.bf16 %v10977_v32  ;;  %5236 = vmatpush.msrb.mxu2 %v4766_v53  ;;  %v4096_v46 = vsel %vm1552_vm4, %v8584_v61, %v8624_v41  ;;  %v8629_v6 = vunpack.i.h.bf16 %v11047_v38 }
 0x31e   :  { %v4120_v5 = vmax.f32 %v4051_v44, %v4093_v9  ;;  %v4762_v12 = vld [vmem:[#allocation13 + $0x1180] sm:$0xff]  ;;  %5130 = vmatmul.f32.vlgmr.msra.gmra.mxu0 %v11029_v37  ;;  %v4123_v14 = vmax.f32 %v4054_v29, %v4096_v46  ;;  %v4168_v9 = vsel %vm1959_vm5, %v8614_v23, %v8628_v21  ;;  %v4028_v7 = vsel %vm415_vm0, %v8619_v11, %v8633_v50 }
 0x31f   :  { %5303 = vmatpush.msra.mxu1 %v4930_v40  ;;  %v4758_v33 = vld [vmem:[#allocation13 + $0x1160] sm:$0xff]  ;;  %v4099_v43 = vsel %vm1552_vm4, %v8609_v36, %v8623_v58  ;;  %5237 = vmatpush.msrb.mxu2 %v4762_v12  ;;  %v4165_v53 = vsel %vm1959_vm5, %v8599_v2, %v8629_v6  ;;  %v4029_v55 = vsel %vm415_vm0, %v8633_v50, %v8604_v22  ;;  %v11079_v46 = vpop.permute.xlu1 %8636 }
 0x320   :  { %v11027_v40 = vmax.f32 %v4120_v5, %v4162_v62  ;;  %v4838_v8 = vld [vmem:[#allocation13 + $0x13e0] sm:$0xff]  ;;  %v4126_v4 = vmax.f32 %v4057_v57, %v4099_v43  ;;  %v11069_v62 = vpop.permute.xlu2 %4088  ;;  %v4055_v22 = vmax.f32 %v3972_v20, %v4028_v7  ;;  %v4056_v57 = vmax.f32 %v3973_v27, %v4029_v55 }
 0x321   :  { %5304 = vmatpush.msra.mxu1 %v4926_v15  ;;  %v4902_v15 = vld [vmem:[#allocation13 + $0x15e0] sm:$0xff]  ;;  %5238 = vmatpush.msrb.mxu2 %v4758_v33 }
 0x322   :  { %v4910_v18 = vld [vmem:[#allocation13 + $0x1620] sm:$0xff]  ;;  %5110 = vmatmul.f32.vlgmr.msrb.gmra.mxu3 %v11027_v40  ;;  %5274 = vmatpush.msra.mxu0 %v4902_v15  ;;  %v11067_v5 = vmax.f32 %v4126_v4, %v4168_v9  ;;  %v8639_v4 = vunpack.i.h.bf16 %v11079_v46 }
 0x323   :  { %5305 = vmatpush.msra.mxu1 %v4922_v10  ;;  %v4754_v61 = vld [vmem:[#allocation13 + $0x1140] sm:$0xff]  ;;  %5254 = vmatpush.msrb.mxu3 %v4838_v8 }
 0x324   :  { %v4834_v10 = vld [vmem:[#allocation13 + $0x13c0] sm:$0xff]  ;;  %5239 = vmatpush.msrb.mxu2 %v4754_v61  ;;  %5230 = vmatmul.f32.vlgmr.msrb.gmra.mxu1 %v11067_v5 }
 0x325   :  { %5306 = vmatpush.msra.mxu1 %v4918_v17  ;;  %v4898_v54 = vld [vmem:[#allocation13 + $0x15c0] sm:$0xff]  ;;  %v11052_v17 = vpop.permute.xlu0 %4019  ;;  %5255 = vmatpush.msrb.mxu3 %v4834_v10 }
 0x326   :  { %v4750_v44 = vld [vmem:[#allocation13 + $0x1120] sm:$0xff]  ;;  %5275 = vmatpush.msra.mxu0 %v4898_v54 }
 0x327   :  { %5307 = vmatpush.msra.mxu1 %v4914_v49  ;;  %v4830_v25 = vld [vmem:[#allocation13 + $0x13a0] sm:$0xff]  ;;  %v11065_v49 = vmax.f32 %v4123_v14, %v4165_v53  ;;  %5240 = vmatpush.msrb.mxu2 %v4750_v44  ;;  %v8634_v14 = vunpack.i.h.bf16 %v11005_v45 }
 0x328   :  { %v4894_v52 = vld [vmem:[#allocation13 + $0x15a0] sm:$0xff]  ;;  %5256 = vmatpush.msrb.mxu3 %v4830_v25 }
 0x329   :  { %5308 = vmatpush.msra.mxu1 %v4910_v18  ;;  %v4746_v51 = vld [vmem:[#allocation13 + $0x1100] sm:$0xff]  ;;  %5276 = vmatpush.msra.mxu0 %v4894_v52  ;;  %v8638_v18 = vunpack.i.l.bf16 %v11079_v46  ;;  %v4034_v35 = vsel %vm415_vm0, %v8634_v14, %v11052_v17 }
 0x32a   :  { %v4826_v28 = vld [vmem:[#allocation13 + $0x1380] sm:$0xff]  ;;  %5170 = vmatmul.f32.vlgmr.msra.gmra.mxu2 %v11065_v49  ;;  %v4061_v55 = vmax.f32 %v3978_v3, %v4034_v35 }
 0x32b   :  { %v4890_v2 = vld [vmem:[#allocation13 + $0x1580] sm:$0xff]  ;;  %5241 = vmatpush.msrb.mxu2 %v4746_v51  ;;  %5257 = vmatpush.msrb.mxu3 %v4826_v28  ;;  %v4097_v44 = vsel %vm1552_vm4, %v8624_v41, %v8638_v18  ;;  %v4098_v48 = vsel %vm1552_vm4, %v8638_v18, %v8609_v36 }
 0x32c   :  { %v4742_v12 = vld [vmem:[#allocation13 + $0x10e0] sm:$0xff]  ;;  %5277 = vmatpush.msra.mxu0 %v4890_v2  ;;  %v4124_v27 = vmax.f32 %v4055_v22, %v4097_v44  ;;  %v4125_v25 = vmax.f32 %v4056_v57, %v4098_v48 }
 0x32d   :  { %v4906_v42 = vld [vmem:[#allocation13 + $0x1600] sm:$0xff]  ;;  %5242 = vmatpush.msrb.mxu2 %v4742_v12  ;;  %v11082_v24 = vpop.permute.xlu0 %8641 }
 0x32e   :  { %v4822_v33 = vld [vmem:[#allocation13 + $0x1360] sm:$0xff]  ;;  %5309 = vmatpush.msra.mxu1 %v4906_v42  ;;  %v8643_v61 = vunpack.i.l.bf16 %v11082_v24  ;;  %v8644_v2 = vunpack.i.h.bf16 %v11082_v24 }
 0x32f   :  { %v4886_v8 = vld [vmem:[#allocation13 + $0x1560] sm:$0xff]  ;;  %5258 = vmatpush.msrb.mxu3 %v4822_v33  ;;  %v11119_v33 = vpop.permute.xlu1 %4157 }
 0x330   :  { %v5054_v43 = vld [vmem:[#allocation13 + $0x1aa0] sm:$0x7]  ;;  %5278 = vmatpush.msra.mxu0 %v4886_v8  ;;  %v4166_v50 = vsel %vm1959_vm5, %v8629_v6, %v8643_v61  ;;  %v4167_v41 = vsel %vm1959_vm5, %v8643_v61, %v8614_v23  ;;  %v8647_v6 = vpop.permute.xlu2 %8646  ;;  %v4103_v23 = vsel %vm1552_vm4, %v8639_v4, %v11069_v62  ;;  %v4172_v8 = vsel %vm1959_vm5, %v8644_v2, %v11119_v33 }
 0x331   :  { %v4738_v15 = vld [vmem:[#allocation13 + $0x10c0] sm:$0xff]  ;;  %8400 = vmatpush.msk.msrb.mxu1 %vm433_vm1, %v5054_v43  ;;  %v11109_v12 = vmax.f32 %v4124_v27, %v4166_v50  ;;  %v11111_v42 = vmax.f32 %v4125_v25, %v4167_v41  ;;  %v8649_v22 = vunpack.i.h.bf16 %v8647_v6  ;;  %v4327_v25 = vld [vmem:[#allocation13 + $0x3e8] sm:$0xff] }
 0x332   :  { %v4818_v11 = vld [vmem:[#allocation13 + $0x1340] sm:$0xff]  ;;  %5243 = vmatpush.msrb.mxu2 %v4738_v15 }
 0x333   :  { %v4882_v29 = vld [vmem:[#allocation13 + $0x1540] sm:$0xff]  ;;  %5259 = vmatpush.msrb.mxu3 %v4818_v11  ;;  %v8648_v11 = vunpack.i.l.bf16 %v8647_v6  ;;  %5210 = vmatmul.f32.vlgmr.msrb.gmra.mxu0 %v11111_v42 }
 0x334   :  { %v5050_v10 = vld [vmem:[#allocation13 + $0x1a80] sm:$0xff]  ;;  %5279 = vmatpush.msra.mxu0 %v4882_v29  ;;  %v4130_v29 = vmax.f32 %v4061_v55, %v4103_v23  ;;  %5190 = vmatmul.f32.vlgmr.msra.gmra.mxu3 %v11109_v12  ;;  %v4319_v23 = vld [vmem:[#allocation13 + $0x3a8] sm:$0xff] }
 0x335   :  { %v4734_v54 = vld [vmem:[#allocation13 + $0x10a0] sm:$0xff]  ;;  %5345 = vmatpush.msrb.mxu1 %v5050_v10  ;;  %v8652_v18 = vpop.permute.xlu0 %8651 }
 0x336   :  { %v4814_v20 = vld [vmem:[#allocation13 + $0x1320] sm:$0xff]  ;;  %5244 = vmatpush.msrb.mxu2 %v4734_v54  ;;  %v11127_v10 = vmax.f32 %v4130_v29, %v4172_v8  ;;  %v8653_v54 = vunpack.i.l.bf16 %v8652_v18  ;;  %v8654_v27 = vunpack.i.h.bf16 %v8652_v18 }
 0x337   :  { %v4878_v47 = vld [vmem:[#allocation13 + $0x1520] sm:$0xff]  ;;  %5260 = vmatpush.msrb.mxu3 %v4814_v20 }
 0x338   :  { %v5046_v53 = vld [vmem:[#allocation13 + $0x1a60] sm:$0xff]  ;;  %5280 = vmatpush.msra.mxu0 %v4878_v47  ;;  %v4031_v47 = vsel %vm415_vm0, %v8618_v0, %v8648_v11  ;;  %v4100_v41 = vsel %vm1552_vm4, %v8623_v58, %v8653_v54  ;;  %5310 = vmatmul.f32.vlgmr.msra.gmra.mxu1 %v11127_v10  ;;  %v4102_v63 = vsel %vm1552_vm4, %v8654_v27, %v8639_v4 }
 0x339   :  { %v4730_v9 = vld [vmem:[#allocation13 + $0x1080] sm:$0xff]  ;;  %5346 = vmatpush.msrb.mxu1 %v5046_v53  ;;  %v4032_v53 = vsel %vm415_vm0, %v8648_v11, %v8649_v22  ;;  %v11159_v11 = vpop.permute.xlu2 %4021 }
 0x33a   :  { %v4810_v36 = vld [vmem:[#allocation13 + $0x1300] sm:$0xff]  ;;  %5245 = vmatpush.msrb.mxu2 %v4730_v9  ;;  %v4059_v58 = vmax.f32 %v3976_v16, %v4032_v53  ;;  %v4299_v53 = vld [vmem:[#allocation13 + $0x308] sm:$0xff] }
 0x33b   :  { %v4874_v52 = vld [vmem:[#allocation13 + $0x1500] sm:$0xff]  ;;  %5261 = vmatpush.msrb.mxu3 %v4810_v36  ;;  %v8657_v36 = vpop.permute.xlu1 %8656 }
 0x33c   :  { %v5042_v51 = vld [vmem:[#allocation13 + $0x1a40] sm:$0xff]  ;;  %5281 = vmatpush.msra.mxu0 %v4874_v52  ;;  %v4033_v52 = vsel %vm415_vm0, %v8649_v22, %v8634_v14  ;;  %v8659_v6 = vunpack.i.h.bf16 %v8657_v36  ;;  %v8658_v32 = vunpack.i.l.bf16 %v8657_v36  ;;  %v4307_v22 = vld [vmem:[#allocation13 + $0x348] sm:$0xff] }
 0x33d   :  { %v4726_v28 = vld [vmem:[#allocation13 + $0x1060] sm:$0xff]  ;;  %5347 = vmatpush.msrb.mxu1 %v5042_v51  ;;  %v4058_v51 = vmax.f32 %v3975_v13, %v4031_v47  ;;  %v4060_v16 = vmax.f32 %v3977_v19, %v4033_v52  ;;  %v4311_v19 = vld [vmem:[#allocation13 + $0x368] sm:$0xff] }
 0x33e   :  { %v4806_v56 = vld [vmem:[#allocation13 + $0x12e0] sm:$0xff]  ;;  %5246 = vmatpush.msrb.mxu2 %v4726_v28  ;;  %v4169_v14 = vsel %vm1959_vm5, %v8628_v21, %v8658_v32  ;;  %v4170_v8 = vsel %vm1959_vm5, %v8658_v32, %v8659_v6  ;;  %v4171_v4 = vsel %vm1959_vm5, %v8659_v6, %v8644_v2  ;;  %v11165_v2 = vpop.permute.xlu0 %4090  ;;  %v4303_v47 = vld [vmem:[#allocation13 + $0x328] sm:$0xff] }
 0x33f   :  { %v4870_v7 = vld [vmem:[#allocation13 + $0x14e0] sm:$0xff]  ;;  %5262 = vmatpush.msrb.mxu3 %v4806_v56  ;;  %v4127_v13 = vmax.f32 %v4058_v51, %v4100_v41  ;;  %v4129_v1 = vmax.f32 %v4060_v16, %v4102_v63  ;;  %v4383_v41 = vld [vmem:[#allocation13 + $0x5a8] sm:$0xff] }
 0x340   :  { %v5038_v43 = vld [vmem:[#allocation13 + $0x1a20] sm:$0xff]  ;;  %5282 = vmatpush.msra.mxu0 %v4870_v7  ;;  %v4101_v7 = vsel %vm1552_vm4, %v8653_v54, %v8654_v27  ;;  %v4263_v54 = vld [vmem:[#allocation13 + $0x1e8] sm:$0xff] }
 0x341   :  { %v4722_v15 = vld [vmem:[#allocation13 + $0x1040] sm:$0xff]  ;;  %5348 = vmatpush.msrb.mxu1 %v5038_v43  ;;  %v4315_v43 = vld [vmem:[#allocation13 + $0x388] sm:$0xff]  ;;  %v11157_v18 = vmax.f32 %v4127_v13, %v4169_v14 }
 0x342   :  { %v4802_v39 = vld [vmem:[#allocation13 + $0x12c0] sm:$0xff]  ;;  %5247 = vmatpush.msrb.mxu2 %v4722_v15  ;;  %v4128_v15 = vmax.f32 %v4059_v58, %v4101_v7  ;;  %v4251_v36 = vld [vmem:[#allocation13 + $0x188] sm:$0xff] }
 0x343   :  { %v4866_v3 = vld [vmem:[#allocation13 + $0x14c0] sm:$0xff]  ;;  %5263 = vmatpush.msrb.mxu3 %v4802_v39  ;;  %v4379_v52 = vld [vmem:[#allocation13 + $0x588] sm:$0xff] }
 0x344   :  { %v5034_v57 = vld [vmem:[#allocation13 + $0x1a00] sm:$0xff]  ;;  %5283 = vmatpush.msra.mxu0 %v4866_v3  ;;  %v11161_v29 = vmax.f32 %v4128_v15, %v4170_v8  ;;  %v11163_v3 = vmax.f32 %v4129_v1, %v4171_v4  ;;  %v4291_v51 = vld [vmem:[#allocation13 + $0x2c8] sm:$0xff] }
 0x345   :  { %v4718_v61 = vld [vmem:[#allocation13 + $0x1020] sm:$0xff]  ;;  %5349 = vmatpush.msrb.mxu1 %v5034_v57  ;;  %v4063_v57 = vmax.f32 %v10927_v59, %v11159_v11  ;;  %v4259_v59 = vld [vmem:[#allocation13 + $0x1c8] sm:$0xff] }
 0x346   :  { %v4798_v44 = vld [vmem:[#allocation13 + $0x12a0] sm:$0xff]  ;;  %5248 = vmatpush.msrb.mxu2 %v4718_v61  ;;  %v4247_v6 = vld [vmem:[#allocation13 + $0x168] sm:$0xff] }
 0x347   :  { %v4862_v48 = vld [vmem:[#allocation13 + $0x14a0] sm:$0xff]  ;;  %5264 = vmatpush.msrb.mxu3 %v4798_v44  ;;  %5374 = vmatpush.msra.mxu1 %v4327_v25  ;;  %v4391_v44 = vld [vmem:[#allocation13 + $0x5e8] sm:$0xff] }
 0x348   :  { %v4714_v20 = vld [vmem:[#allocation13 + $0x1000] sm:$0xff]  ;;  %5284 = vmatpush.msra.mxu0 %v4862_v48  ;;  %v11170_v48 = vpop.permute.xlu1 %4159  ;;  %v4387_v25 = vld [vmem:[#allocation13 + $0x5c8] sm:$0xff] }
 0x349   :  { %v4794_v50 = vld [vmem:[#allocation13 + $0x1280] sm:$0xff]  ;;  %5249 = vmatpush.msrb.mxu2 %v4714_v20  ;;  %5375 = vmatpush.msra.mxu1 %v4323_v34  ;;  %v4132_v20 = vmax.f32 %v4063_v57, %v11165_v2  ;;  %v4295_v34 = vld [vmem:[#allocation13 + $0x2e8] sm:$0xff] }
 0x34a   :  { %v4858_v9 = vld [vmem:[#allocation13 + $0x1480] sm:$0xff]  ;;  %5265 = vmatpush.msrb.mxu3 %v4794_v50  ;;  %5250 = vmatmul.f32.vlgmr.msrb.gmra.mxu2 %v11157_v18  ;;  %v4375_v32 = vld [vmem:[#allocation13 + $0x568] sm:$0xff] }
 0x34b   :  { %v5030_v35 = vld [vmem:[#allocation13 + $0x19e0] sm:$0xff]  ;;  %5285 = vmatpush.msra.mxu0 %v4858_v9  ;;  %5376 = vmatpush.msra.mxu1 %v4319_v23  ;;  %v11176_v50 = vmax.f32 %v4132_v20, %v11170_v48  ;;  %v4243_v7 = vld [vmem:[#allocation13 + $0x148] sm:$0xff] }
 0x34c   :  { %v4790_v0 = vld [vmem:[#allocation13 + $0x1260] sm:$0xff]  ;;  %5314 = vmatpush.msra.mxu2 %v5030_v35  ;;  %v4255_v35 = vld [vmem:[#allocation13 + $0x1a8] sm:$0xff] }
 0x34d   :  { %v4854_v28 = vld [vmem:[#allocation13 + $0x1460] sm:$0xff]  ;;  %5266 = vmatpush.msrb.mxu3 %v4790_v0  ;;  %5377 = vmatpush.msra.mxu1 %v4315_v43  ;;  %v4371_v23 = vld [vmem:[#allocation13 + $0x548] sm:$0xff] }
 0x34e   :  { %v5026_v56 = vld [vmem:[#allocation13 + $0x19c0] sm:$0xff]  ;;  %5286 = vmatpush.msra.mxu0 %v4854_v28  ;;  %8401 = vmatmul.msk.f32.vlgmr.msrb.gmra.mxu1 %vm5058_vm10, %v11176_v50  ;;  %v4239_v13 = vld [vmem:[#allocation13 + $0x128] sm:$0xff] }
 0x34f   :  { %v4786_v45 = vld [vmem:[#allocation13 + $0x1240] sm:$0xff]  ;;  %5315 = vmatpush.msra.mxu2 %v5026_v56  ;;  %5378 = vmatpush.msra.mxu1 %v4311_v19  ;;  %v4287_v56 = vld [vmem:[#allocation13 + $0x2a8] sm:$0xff] }
 0x350   :  { %v4850_v55 = vld [vmem:[#allocation13 + $0x1440] sm:$0xff]  ;;  %5267 = vmatpush.msrb.mxu3 %v4786_v45  ;;  %v4283_v45 = vld [vmem:[#allocation13 + $0x288] sm:$0xff] }
 0x351   :  { %v5022_v30 = vld [vmem:[#allocation13 + $0x19a0] sm:$0xff]  ;;  %5287 = vmatpush.msra.mxu0 %v4850_v55  ;;  %5379 = vmatpush.msra.mxu1 %v4307_v22  ;;  %v4367_v14 = vld [vmem:[#allocation13 + $0x528] sm:$0xff]  ;;  %v4104_v22 = vsel %vm1552_vm4, %v11069_v62, %v11165_v2 }
 0x352   :  { %v4782_v46 = vld [vmem:[#allocation13 + $0x1220] sm:$0xff]  ;;  %5316 = vmatpush.msra.mxu2 %v5022_v30  ;;  %v4279_v55 = vld [vmem:[#allocation13 + $0x268] sm:$0xff] }
 0x353   :  { %v4846_v38 = vld [vmem:[#allocation13 + $0x1420] sm:$0xff]  ;;  %5268 = vmatpush.msrb.mxu3 %v4782_v46  ;;  %5380 = vmatpush.msra.mxu1 %v4303_v47  ;;  %v4235_v16 = vld [vmem:[#allocation13 + $0x108] sm:$0xff] }
 0x354   :  { %v5018_v21 = vld [vmem:[#allocation13 + $0x1980] sm:$0xff]  ;;  %5288 = vmatpush.msra.mxu0 %v4846_v38  ;;  %v4363_v8 = vld [vmem:[#allocation13 + $0x508] sm:$0xff] }
 0x355   :  { %v4778_v39 = vld [vmem:[#allocation13 + $0x1200] sm:$0xff]  ;;  %5317 = vmatpush.msra.mxu2 %v5018_v21  ;;  %5381 = vmatpush.msra.mxu1 %v4299_v53  ;;  %v4275_v43 = vld [vmem:[#allocation13 + $0x248] sm:$0xff]  ;;  %v4035_v21 = vsel %vm415_vm0, %v11052_v17, %v11159_v11  ;;  %v4173_v11 = vsel %vm1959_vm5, %v11119_v33, %v11170_v48  ;;  %vm7322_vm5 = vcmask 80896  }
 0x356   :  { %v4842_v24 = vld [vmem:[#allocation13 + $0x1400] sm:$0xff]  ;;  %5269 = vmatpush.msrb.mxu3 %v4778_v39  ;;  %v4231_v15 = vld [vmem:[#allocation13 + $0xe8] sm:$0xff] }
 0x357   :  { %v5014_v61 = vld [vmem:[#allocation13 + $0x1960] sm:$0xff]  ;;  %5289 = vmatpush.msra.mxu0 %v4842_v24  ;;  %5270 = vmatmul.f32.vlgmr.msrb.gmra.mxu3 %v11161_v29  ;;  %v4359_v4 = vld [vmem:[#allocation13 + $0x4e8] sm:$0xff] }
 0x358   :  { %v5010_v27 = vld [vmem:[#allocation13 + $0x1940] sm:$0xff]  ;;  %5290 = vmatmul.f32.vlgmr.msra.gmra.mxu0 %v11163_v3  ;;  %5318 = vmatpush.msra.mxu2 %v5014_v61  ;;  %v4271_v38 = vld [vmem:[#allocation13 + $0x228] sm:$0xff] }
 0x359   :  { %5354 = vmatpush.msrb.mxu0 %v4263_v54  ;;  %5394 = vmatpush.msra.mxu3 %v4391_v44  ;;  %v5006_v9 = vld [vmem:[#allocation13 + $0x1920] sm:$0xff]  ;;  %v4227_v19 = vld [vmem:[#allocation13 + $0xc8] sm:$0xff]  ;;  %v4062_v54 = vmax.f32 %v10887_v60, %v4035_v21 }
 0x35a   :  { %5319 = vmatpush.msra.mxu2 %v5010_v27  ;;  %v5002_v0 = vld [vmem:[#allocation13 + $0x1900] sm:$0xff]  ;;  %5382 = vmatpush.msra.mxu1 %v4295_v34  ;;  %v4355_v39 = vld [vmem:[#allocation13 + $0x4c8] sm:$0xff] }
 0x35b   :  { %5355 = vmatpush.msrb.mxu0 %v4259_v59  ;;  %5395 = vmatpush.msra.mxu3 %v4387_v25  ;;  %v4998_v28 = vld [vmem:[#allocation13 + $0x18e0] sm:$0xff]  ;;  %v4267_v24 = vld [vmem:[#allocation13 + $0x208] sm:$0xff]  ;;  %v4131_v47 = vmax.f32 %v4062_v54, %v4104_v22 }
 0x35c   :  { %5320 = vmatpush.msra.mxu2 %v5006_v9  ;;  %5383 = vmatpush.msra.mxu1 %v4291_v51  ;;  %v4994_v58 = vld [vmem:[#allocation13 + $0x18c0] sm:$0xff]  ;;  %v4223_v61 = vld [vmem:[#allocation13 + $0xa8] sm:$0xff] }
 0x35d   :  { %5356 = vmatpush.msrb.mxu0 %v4255_v35  ;;  %5396 = vmatpush.msra.mxu3 %v4383_v41  ;;  %v4990_v63 = vld [vmem:[#allocation13 + $0x18a0] sm:$0xff]  ;;  %v4351_v17 = vld [vmem:[#allocation13 + $0x4a8] sm:$0xff]  ;;  %v11191_v27 = vmax.f32 %v4131_v47, %v4173_v11 }
 0x35e   :  { %5321 = vmatpush.msra.mxu2 %v5002_v0  ;;  %5384 = vmatpush.msra.mxu1 %v4287_v56  ;;  %v4986_v30 = vld [vmem:[#allocation13 + $0x1880] sm:$0xff]  ;;  %v4583_v44 = vld [vmem:[#allocation13 + $0xbe8] sm:$0xff] }
 0x35f   :  { %5357 = vmatpush.msrb.mxu0 %v4251_v36  ;;  %5397 = vmatpush.msra.mxu3 %v4379_v52  ;;  %v4982_v46 = vld [vmem:[#allocation13 + $0x1860] sm:$0xff]  ;;  %v4219_v62 = vld [vmem:[#allocation13 + $0x88] sm:$0xff] }
 0x360   :  { %5322 = vmatpush.msra.mxu2 %v4998_v28  ;;  %5385 = vmatpush.msra.mxu1 %v4283_v45  ;;  %v4978_v1 = vld [vmem:[#allocation13 + $0x1840] sm:$0xff]  ;;  %v4347_v2 = vld [vmem:[#allocation13 + $0x488] sm:$0xff] }
 0x361   :  { %5358 = vmatpush.msrb.mxu0 %v4247_v6  ;;  %5398 = vmatpush.msra.mxu3 %v4375_v32  ;;  %v4974_v57 = vld [vmem:[#allocation13 + $0x1820] sm:$0xff]  ;;  %v4579_v60 = vld [vmem:[#allocation13 + $0xbc8] sm:$0xff] }
 0x362   :  { %5323 = vmatpush.msra.mxu2 %v4994_v58  ;;  %5386 = vmatpush.msra.mxu1 %v4279_v55  ;;  %v4970_v20 = vld [vmem:[#allocation13 + $0x1800] sm:$0xff]  ;;  %v4455_v59 = vld [vmem:[#allocation13 + $0x7e8] sm:$0xff] }
 0x363   :  { %5359 = vmatpush.msrb.mxu0 %v4243_v7  ;;  %5399 = vmatpush.msra.mxu3 %v4371_v23  ;;  %v4215_v25 = vld [vmem:[#allocation13 + $0x68] sm:$0xff] }
 0x364   :  { %5324 = vmatpush.msra.mxu2 %v4990_v63  ;;  %5387 = vmatpush.msra.mxu1 %v4275_v43  ;;  %v4343_v33 = vld [vmem:[#allocation13 + $0x468] sm:$0xff] }
 0x365   :  { %5360 = vmatpush.msrb.mxu0 %v4239_v13  ;;  %5400 = vmatpush.msra.mxu3 %v4367_v14  ;;  %v4575_v48 = vld [vmem:[#allocation13 + $0xba8] sm:$0xff] }
 0x366   :  { %5325 = vmatpush.msra.mxu2 %v4986_v30  ;;  %5388 = vmatpush.msra.mxu1 %v4271_v38  ;;  %v4451_v53 = vld [vmem:[#allocation13 + $0x7c8] sm:$0xff] }
 0x367   :  { %5361 = vmatpush.msrb.mxu0 %v4235_v16  ;;  %5401 = vmatpush.msra.mxu3 %v4363_v8  ;;  %v4211_v9 = vld [vmem:[#allocation13 + $0x48] sm:$0xff] }
 0x368   :  { %5326 = vmatpush.msra.mxu2 %v4982_v46  ;;  %5389 = vmatpush.msra.mxu1 %v4267_v24  ;;  %v4339_v35 = vld [vmem:[#allocation13 + $0x448] sm:$0xff] }
 0x369   :  { %5362 = vmatpush.msrb.mxu0 %v4231_v15  ;;  %5402 = vmatpush.msra.mxu3 %v4359_v4  ;;  %v4571_v41 = vld [vmem:[#allocation13 + $0xb88] sm:$0xff] }
 0x36a   :  { %5327 = vmatpush.msra.mxu2 %v4978_v1  ;;  %5390 = vmatmul.f32.vlgmr.msra.gmra.mxu1 %v11027_v40  ;;  %v4447_v34 = vld [vmem:[#allocation13 + $0x7a8] sm:$0xff] }
 0x36b   :  { %5363 = vmatpush.msrb.mxu0 %v4227_v19  ;;  %5403 = vmatpush.msra.mxu3 %v4355_v39  ;;  %v4207_v0 = vld [vmem:[#allocation13 + $0x28] sm:$0xff] }
 0x36c   :  { %5328 = vmatpush.msra.mxu2 %v4974_v57  ;;  %5454 = vmatpush.msrb.mxu1 %v4583_v44  ;;  %v4335_v36 = vld [vmem:[#allocation13 + $0x428] sm:$0xff] }
 0x36d   :  { %5364 = vmatpush.msrb.mxu0 %v4223_v61  ;;  %5404 = vmatpush.msra.mxu3 %v4351_v17  ;;  %v4567_v52 = vld [vmem:[#allocation13 + $0xb68] sm:$0xff] }
 0x36e   :  { %5329 = vmatpush.msra.mxu2 %v4970_v20  ;;  %5455 = vmatpush.msrb.mxu1 %v4579_v60  ;;  %v4443_v51 = vld [vmem:[#allocation13 + $0x788] sm:$0xff] }
 0x36f   :  { %5365 = vmatpush.msrb.mxu0 %v4219_v62  ;;  %5405 = vmatpush.msra.mxu3 %v4347_v2  ;;  %v4203_v28 = vld [vmem:[#allocation13 + $0x8] sm:$0xff] }
 0x370   :  { %5330 = vmatmul.f32.vlgmr.msra.gmra.mxu2 %v11191_v27  ;;  %5456 = vmatpush.msrb.mxu1 %v4575_v48  ;;  %v4331_v6 = vld [vmem:[#allocation13 + $0x408] sm:$0xff] }
 0x371   :  { %5414 = vmatpush.msrb.mxu2 %v4455_v59  ;;  %5366 = vmatpush.msrb.mxu0 %v4215_v25  ;;  %v4563_v32 = vld [vmem:[#allocation13 + $0xb48] sm:$0xff] }
 0x372   :  { %5406 = vmatpush.msra.mxu3 %v4343_v33  ;;  %5457 = vmatpush.msrb.mxu1 %v4571_v41  ;;  %v4439_v56 = vld [vmem:[#allocation13 + $0x768] sm:$0xff] }
 0x373   :  { %5415 = vmatpush.msrb.mxu2 %v4451_v53  ;;  %5367 = vmatpush.msrb.mxu0 %v4211_v9  ;;  %v4519_v58 = vld [vmem:[#allocation13 + $0x9e8] sm:$0xff] }
 0x374   :  { %5407 = vmatpush.msra.mxu3 %v4339_v35  ;;  %5458 = vmatpush.msrb.mxu1 %v4567_v52  ;;  %v4647_v7 = vld [vmem:[#allocation13 + $0xde8] sm:$0xff] }
 0x375   :  { %5416 = vmatpush.msrb.mxu2 %v4447_v34  ;;  %5368 = vmatpush.msrb.mxu0 %v4207_v0  ;;  %v4559_v23 = vld [vmem:[#allocation13 + $0xb28] sm:$0xff] }
 0x376   :  { %5408 = vmatpush.msra.mxu3 %v4335_v36  ;;  %5459 = vmatpush.msrb.mxu1 %v4563_v32  ;;  %v4435_v45 = vld [vmem:[#allocation13 + $0x748] sm:$0xff] }
 0x377   :  { %5417 = vmatpush.msrb.mxu2 %v4443_v51  ;;  %5369 = vmatpush.msrb.mxu0 %v4203_v28  ;;  %v4515_v63 = vld [vmem:[#allocation13 + $0x9c8] sm:$0xff] }
 0x378   :  { %5409 = vmatpush.msra.mxu3 %v4331_v6  ;;  %5370 = vmatmul.f32.vlgmr.msrb.gmra.mxu0 %v10984_v31  ;;  %v4643_v13 = vld [vmem:[#allocation13 + $0xdc8] sm:$0xff] }
 0x379   :  { %5410 = vmatmul.f32.vlgmr.msra.gmra.mxu3 %v11029_v37  ;;  %5418 = vmatpush.msrb.mxu2 %v4439_v56  ;;  %v4555_v14 = vld [vmem:[#allocation13 + $0xb08] sm:$0xff] }
 0x37a   :  { %5434 = vmatpush.msra.mxu0 %v4519_v58  ;;  %5474 = vmatpush.msrb.mxu3 %v4647_v7  ;;  %v4431_v55 = vld [vmem:[#allocation13 + $0x728] sm:$0xff] }
 0x37b   :  { %5460 = vmatpush.msrb.mxu1 %v4559_v23  ;;  %v4511_v30 = vld [vmem:[#allocation13 + $0x9a8] sm:$0xff]  ;;  %5419 = vmatpush.msrb.mxu2 %v4435_v45 }
 0x37c   :  { %5435 = vmatpush.msra.mxu0 %v4515_v63  ;;  %v4639_v16 = vld [vmem:[#allocation13 + $0xda8] sm:$0xff]  ;;  %5475 = vmatpush.msrb.mxu3 %v4643_v13 }
 0x37d   :  { %v4551_v8 = vld [vmem:[#allocation13 + $0xae8] sm:$0xff]  ;;  %5461 = vmatpush.msrb.mxu1 %v4555_v14  ;;  %5420 = vmatpush.msrb.mxu2 %v4431_v55 }
 0x37e   :  { %v4427_v43 = vld [vmem:[#allocation13 + $0x708] sm:$0xff]  ;;  %5436 = vmatpush.msra.mxu0 %v4511_v30  ;;  %5476 = vmatpush.msrb.mxu3 %v4639_v16 }
 0x37f   :  { %v4507_v46 = vld [vmem:[#allocation13 + $0x988] sm:$0xff]  ;;  %5462 = vmatpush.msrb.mxu1 %v4551_v8  ;;  %5421 = vmatpush.msrb.mxu2 %v4427_v43 }
 0x380   :  { %v4635_v15 = vld [vmem:[#allocation13 + $0xd88] sm:$0xff]  ;;  %5437 = vmatpush.msra.mxu0 %v4507_v46 }
 0x381   :  { %v4547_v4 = vld [vmem:[#allocation13 + $0xac8] sm:$0xff]  ;;  %5477 = vmatpush.msrb.mxu3 %v4635_v15 }
 0x382   :  { %v4423_v38 = vld [vmem:[#allocation13 + $0x6e8] sm:$0xff]  ;;  %5463 = vmatpush.msrb.mxu1 %v4547_v4 }
 0x383   :  { %v4503_v21 = vld [vmem:[#allocation13 + $0x968] sm:$0xff]  ;;  %5422 = vmatpush.msrb.mxu2 %v4423_v38 }
 0x384   :  { %v4631_v1 = vld [vmem:[#allocation13 + $0xd68] sm:$0xff]  ;;  %5438 = vmatpush.msra.mxu0 %v4503_v21 }
 0x385   :  { %v4543_v19 = vld [vmem:[#allocation13 + $0xaa8] sm:$0xff]  ;;  %5478 = vmatpush.msrb.mxu3 %v4631_v1 }
 0x386   :  { %v4419_v39 = vld [vmem:[#allocation13 + $0x6c8] sm:$0xff]  ;;  %5464 = vmatpush.msrb.mxu1 %v4543_v19 }
 0x387   :  { %v4499_v24 = vld [vmem:[#allocation13 + $0x948] sm:$0xff]  ;;  %5423 = vmatpush.msrb.mxu2 %v4419_v39 }
 0x388   :  { %v4627_v22 = vld [vmem:[#allocation13 + $0xd48] sm:$0xff]  ;;  %5439 = vmatpush.msra.mxu0 %v4499_v24 }
 0x389   :  { %v4539_v57 = vld [vmem:[#allocation13 + $0xa88] sm:$0xff]  ;;  %5479 = vmatpush.msrb.mxu3 %v4627_v22 }
 0x38a   :  { %v4415_v61 = vld [vmem:[#allocation13 + $0x6a8] sm:$0xff]  ;;  %5465 = vmatpush.msrb.mxu1 %v4539_v57 }
 0x38b   :  { %v4495_v54 = vld [vmem:[#allocation13 + $0x928] sm:$0xff]  ;;  %5424 = vmatpush.msrb.mxu2 %v4415_v61 }
 0x38c   :  { %v4623_v17 = vld [vmem:[#allocation13 + $0xd28] sm:$0xff]  ;;  %5440 = vmatpush.msra.mxu0 %v4495_v54 }
 0x38d   :  { %v4535_v11 = vld [vmem:[#allocation13 + $0xa68] sm:$0xff]  ;;  %5480 = vmatpush.msrb.mxu3 %v4623_v17 }
 0x38e   :  { %v4411_v44 = vld [vmem:[#allocation13 + $0x688] sm:$0xff]  ;;  %5466 = vmatpush.msrb.mxu1 %v4535_v11 }
 0x38f   :  { %v4491_v20 = vld [vmem:[#allocation13 + $0x908] sm:$0xff]  ;;  %5425 = vmatpush.msrb.mxu2 %v4411_v44 }
 0x390   :  { %v4619_v47 = vld [vmem:[#allocation13 + $0xd08] sm:$0xff]  ;;  %5441 = vmatpush.msra.mxu0 %v4491_v20 }
 0x391   :  { %v4531_v62 = vld [vmem:[#allocation13 + $0xa48] sm:$0xff]  ;;  %5481 = vmatpush.msrb.mxu3 %v4619_v47 }
 0x392   :  { %v4407_v2 = vld [vmem:[#allocation13 + $0x668] sm:$0xff]  ;;  %5467 = vmatpush.msrb.mxu1 %v4531_v62 }
 0x393   :  { %v4487_v60 = vld [vmem:[#allocation13 + $0x8e8] sm:$0xff]  ;;  %5426 = vmatpush.msrb.mxu2 %v4407_v2 }
 0x394   :  { %v4615_v59 = vld [vmem:[#allocation13 + $0xce8] sm:$0xff]  ;;  %5442 = vmatpush.msra.mxu0 %v4487_v60 }
 0x395   :  { %v4527_v25 = vld [vmem:[#allocation13 + $0xa28] sm:$0xff]  ;;  %5482 = vmatpush.msrb.mxu3 %v4615_v59 }
 0x396   :  { %v4403_v33 = vld [vmem:[#allocation13 + $0x648] sm:$0xff]  ;;  %5468 = vmatpush.msrb.mxu1 %v4527_v25 }
 0x397   :  { %v4483_v48 = vld [vmem:[#allocation13 + $0x8c8] sm:$0xff]  ;;  %5427 = vmatpush.msrb.mxu2 %v4403_v33 }
 0x398   :  { %v4611_v53 = vld [vmem:[#allocation13 + $0xcc8] sm:$0xff]  ;;  %5443 = vmatpush.msra.mxu0 %v4483_v48 }
 0x399   :  { %v4523_v9 = vld [vmem:[#allocation13 + $0xa08] sm:$0xff]  ;;  %5483 = vmatpush.msrb.mxu3 %v4611_v53 }
 0x39a   :  { %v4399_v35 = vld [vmem:[#allocation13 + $0x628] sm:$0xff]  ;;  %5469 = vmatpush.msrb.mxu1 %v4523_v9 }
 0x39b   :  { %v4479_v41 = vld [vmem:[#allocation13 + $0x8a8] sm:$0xff]  ;;  %5428 = vmatpush.msrb.mxu2 %v4399_v35  ;;  %5470 = vmatmul.f32.vlgmr.msrb.gmra.mxu1 %v11109_v12 }
 0x39c   :  { %v4607_v34 = vld [vmem:[#allocation13 + $0xca8] sm:$0xff]  ;;  %5444 = vmatpush.msra.mxu0 %v4479_v41 }
 0x39d   :  { %v4839_v0 = vld [vmem:[#allocation13 + $0x13e8] sm:$0xff]  ;;  %5484 = vmatpush.msrb.mxu3 %v4607_v34 }
 0x39e   :  { %v4395_v36 = vld [vmem:[#allocation13 + $0x608] sm:$0xff]  ;;  %5534 = vmatpush.msra.mxu1 %v4839_v0 }
 0x39f   :  { %v4475_v52 = vld [vmem:[#allocation13 + $0x888] sm:$0xff]  ;;  %5429 = vmatpush.msrb.mxu2 %v4395_v36 }
 0x3a0   :  { %v4603_v51 = vld [vmem:[#allocation13 + $0xc88] sm:$0xff]  ;;  %5445 = vmatpush.msra.mxu0 %v4475_v52  ;;  %5430 = vmatmul.f32.vlgmr.msrb.gmra.mxu2 %v10967_v26 }
 0x3a1   :  { %v4835_v28 = vld [vmem:[#allocation13 + $0x13c8] sm:$0xff]  ;;  %5485 = vmatpush.msrb.mxu3 %v4603_v51 }
 0x3a2   :  { %v4711_v6 = vld [vmem:[#allocation13 + $0xfe8] sm:$0xff]  ;;  %5535 = vmatpush.msra.mxu1 %v4835_v28 }
 0x3a3   :  { %v4471_v32 = vld [vmem:[#allocation13 + $0x868] sm:$0xff]  ;;  %5494 = vmatpush.msra.mxu2 %v4711_v6 }
 0x3a4   :  { %v4599_v56 = vld [vmem:[#allocation13 + $0xc68] sm:$0xff]  ;;  %5446 = vmatpush.msra.mxu0 %v4471_v32 }
 0x3a5   :  { %v4831_v58 = vld [vmem:[#allocation13 + $0x13a8] sm:$0xff]  ;;  %5486 = vmatpush.msrb.mxu3 %v4599_v56 }
 0x3a6   :  { %v4707_v7 = vld [vmem:[#allocation13 + $0xfc8] sm:$0xff]  ;;  %5536 = vmatpush.msra.mxu1 %v4831_v58 }
 0x3a7   :  { %v4467_v23 = vld [vmem:[#allocation13 + $0x848] sm:$0xff]  ;;  %5495 = vmatpush.msra.mxu2 %v4707_v7 }
 0x3a8   :  { %v4595_v45 = vld [vmem:[#allocation13 + $0xc48] sm:$0xff]  ;;  %5447 = vmatpush.msra.mxu0 %v4467_v23 }
 0x3a9   :  { %v4827_v63 = vld [vmem:[#allocation13 + $0x1388] sm:$0xff]  ;;  %5487 = vmatpush.msrb.mxu3 %v4595_v45 }
 0x3aa   :  { %v4703_v13 = vld [vmem:[#allocation13 + $0xfa8] sm:$0xff]  ;;  %5537 = vmatpush.msra.mxu1 %v4827_v63 }
 0x3ab   :  { %v4463_v14 = vld [vmem:[#allocation13 + $0x828] sm:$0xff]  ;;  %5496 = vmatpush.msra.mxu2 %v4703_v13 }
 0x3ac   :  { %v4591_v55 = vld [vmem:[#allocation13 + $0xc28] sm:$0xff]  ;;  %5448 = vmatpush.msra.mxu0 %v4463_v14 }
 0x3ad   :  { %v4823_v30 = vld [vmem:[#allocation13 + $0x1368] sm:$0xff]  ;;  %5488 = vmatpush.msrb.mxu3 %v4591_v55 }
 0x3ae   :  { %v4699_v16 = vld [vmem:[#allocation13 + $0xf88] sm:$0xff]  ;;  %5538 = vmatpush.msra.mxu1 %v4823_v30 }
 0x3af   :  { %v4459_v8 = vld [vmem:[#allocation13 + $0x808] sm:$0xff]  ;;  %5497 = vmatpush.msra.mxu2 %v4699_v16 }
 0x3b0   :  { %v4587_v43 = vld [vmem:[#allocation13 + $0xc08] sm:$0xff]  ;;  %5449 = vmatpush.msra.mxu0 %v4459_v8 }
 0x3b1   :  { %v4819_v46 = vld [vmem:[#allocation13 + $0x1348] sm:$0xff]  ;;  %5489 = vmatpush.msrb.mxu3 %v4587_v43  ;;  %5450 = vmatmul.f32.vlgmr.msra.gmra.mxu0 %v11065_v49 }
 0x3b2   :  { %v4695_v15 = vld [vmem:[#allocation13 + $0xf68] sm:$0xff]  ;;  %5539 = vmatpush.msra.mxu1 %v4819_v46  ;;  %5490 = vmatmul.f32.vlgmr.msrb.gmra.mxu3 %v11111_v42 }
 0x3b3   :  { %v4775_v4 = vld [vmem:[#allocation13 + $0x11e8] sm:$0xff]  ;;  %5498 = vmatpush.msra.mxu2 %v4695_v15 }
 0x3b4   :  { %v4903_v38 = vld [vmem:[#allocation13 + $0x15e8] sm:$0xff]  ;;  %5514 = vmatpush.msrb.mxu0 %v4775_v4 }
 0x3b5   :  { %v4815_v21 = vld [vmem:[#allocation13 + $0x1328] sm:$0xff]  ;;  %5554 = vmatpush.msra.mxu3 %v4903_v38 }
 0x3b6   :  { %v4691_v1 = vld [vmem:[#allocation13 + $0xf48] sm:$0xff]  ;;  %5540 = vmatpush.msra.mxu1 %v4815_v21 }
 0x3b7   :  { %v4771_v19 = vld [vmem:[#allocation13 + $0x11c8] sm:$0xff]  ;;  %5499 = vmatpush.msra.mxu2 %v4691_v1 }
 0x3b8   :  { %v4899_v39 = vld [vmem:[#allocation13 + $0x15c8] sm:$0xff]  ;;  %5515 = vmatpush.msrb.mxu0 %v4771_v19 }
 0x3b9   :  { %v4811_v24 = vld [vmem:[#allocation13 + $0x1308] sm:$0xff]  ;;  %5555 = vmatpush.msra.mxu3 %v4899_v39 }
 0x3ba   :  { %v4687_v22 = vld [vmem:[#allocation13 + $0xf28] sm:$0xff]  ;;  %5541 = vmatpush.msra.mxu1 %v4811_v24 }
 0x3bb   :  { %v4767_v57 = vld [vmem:[#allocation13 + $0x11a8] sm:$0xff]  ;;  %5500 = vmatpush.msra.mxu2 %v4687_v22 }
 0x3bc   :  { %v4895_v61 = vld [vmem:[#allocation13 + $0x15a8] sm:$0xff]  ;;  %5516 = vmatpush.msrb.mxu0 %v4767_v57 }
 0x3bd   :  { %v4807_v54 = vld [vmem:[#allocation13 + $0x12e8] sm:$0xff]  ;;  %5556 = vmatpush.msra.mxu3 %v4895_v61 }
 0x3be   :  { %v4683_v17 = vld [vmem:[#allocation13 + $0xf08] sm:$0xff]  ;;  %5542 = vmatpush.msra.mxu1 %v4807_v54 }
 0x3bf   :  { %v4763_v11 = vld [vmem:[#allocation13 + $0x1188] sm:$0xff]  ;;  %5501 = vmatpush.msra.mxu2 %v4683_v17 }
 0x3c0   :  { %v4891_v44 = vld [vmem:[#allocation13 + $0x1588] sm:$0xff]  ;;  %5517 = vmatpush.msrb.mxu0 %v4763_v11 }
 0x3c1   :  { %v4803_v20 = vld [vmem:[#allocation13 + $0x12c8] sm:$0xff]  ;;  %5557 = vmatpush.msra.mxu3 %v4891_v44 }
 0x3c2   :  { %v4679_v47 = vld [vmem:[#allocation13 + $0xee8] sm:$0xff]  ;;  %5543 = vmatpush.msra.mxu1 %v4803_v20 }
 0x3c3   :  { %v4759_v62 = vld [vmem:[#allocation13 + $0x1168] sm:$0xff]  ;;  %5502 = vmatpush.msra.mxu2 %v4679_v47  ;;  %v4264_v47 = vld [vmem:[#allocation13 + $0x1f0] sm:$0xff] }
 0x3c4   :  { %v4887_v2 = vld [vmem:[#allocation13 + $0x1568] sm:$0xff]  ;;  %5518 = vmatpush.msrb.mxu0 %v4759_v62  ;;  %v4328_v62 = vld [vmem:[#allocation13 + $0x3f0] sm:$0xff] }
 0x3c5   :  { %v4799_v60 = vld [vmem:[#allocation13 + $0x12a8] sm:$0xff]  ;;  %5558 = vmatpush.msra.mxu3 %v4887_v2 }
 0x3c6   :  { %v4675_v59 = vld [vmem:[#allocation13 + $0xec8] sm:$0xff]  ;;  %5544 = vmatpush.msra.mxu1 %v4799_v60 }
 0x3c7   :  { %v4755_v25 = vld [vmem:[#allocation13 + $0x1148] sm:$0xff]  ;;  %5503 = vmatpush.msra.mxu2 %v4675_v59  ;;  %v4260_v59 = vld [vmem:[#allocation13 + $0x1d0] sm:$0xff] }
 0x3c8   :  { %v4883_v33 = vld [vmem:[#allocation13 + $0x1548] sm:$0xff]  ;;  %5519 = vmatpush.msrb.mxu0 %v4755_v25  ;;  %v4324_v25 = vld [vmem:[#allocation13 + $0x3d0] sm:$0xff] }
 0x3c9   :  { %v4795_v48 = vld [vmem:[#allocation13 + $0x1288] sm:$0xff]  ;;  %5559 = vmatpush.msra.mxu3 %v4883_v33 }
 0x3ca   :  { %v4671_v53 = vld [vmem:[#allocation13 + $0xea8] sm:$0xff]  ;;  %5545 = vmatpush.msra.mxu1 %v4795_v48 }
 0x3cb   :  { %v4751_v9 = vld [vmem:[#allocation13 + $0x1128] sm:$0xff]  ;;  %5504 = vmatpush.msra.mxu2 %v4671_v53  ;;  %v4256_v53 = vld [vmem:[#allocation13 + $0x1b0] sm:$0xff] }
 0x3cc   :  { %v4879_v35 = vld [vmem:[#allocation13 + $0x1528] sm:$0xff]  ;;  %5520 = vmatpush.msrb.mxu0 %v4751_v9  ;;  %v4320_v9 = vld [vmem:[#allocation13 + $0x3b0] sm:$0xff] }
 0x3cd   :  { %v4791_v41 = vld [vmem:[#allocation13 + $0x1268] sm:$0xff]  ;;  %5560 = vmatpush.msra.mxu3 %v4879_v35 }
 0x3ce   :  { %v4667_v34 = vld [vmem:[#allocation13 + $0xe88] sm:$0xff]  ;;  %5546 = vmatpush.msra.mxu1 %v4791_v41 }
 0x3cf   :  { %v4747_v0 = vld [vmem:[#allocation13 + $0x1108] sm:$0xff]  ;;  %5505 = vmatpush.msra.mxu2 %v4667_v34  ;;  %v4252_v34 = vld [vmem:[#allocation13 + $0x190] sm:$0xff] }
 0x3d0   :  { %v4875_v36 = vld [vmem:[#allocation13 + $0x1508] sm:$0xff]  ;;  %5521 = vmatpush.msrb.mxu0 %v4747_v0  ;;  %v4316_v0 = vld [vmem:[#allocation13 + $0x390] sm:$0xff] }
 0x3d1   :  { %v4787_v52 = vld [vmem:[#allocation13 + $0x1248] sm:$0xff]  ;;  %5561 = vmatpush.msra.mxu3 %v4875_v36 }
 0x3d2   :  { %v4663_v51 = vld [vmem:[#allocation13 + $0xe68] sm:$0xff]  ;;  %5547 = vmatpush.msra.mxu1 %v4787_v52 }
 0x3d3   :  { %v4743_v28 = vld [vmem:[#allocation13 + $0x10e8] sm:$0xff]  ;;  %5506 = vmatpush.msra.mxu2 %v4663_v51  ;;  %v4248_v51 = vld [vmem:[#allocation13 + $0x170] sm:$0xff] }
 0x3d4   :  { %v4871_v6 = vld [vmem:[#allocation13 + $0x14e8] sm:$0xff]  ;;  %5522 = vmatpush.msrb.mxu0 %v4743_v28  ;;  %v4312_v28 = vld [vmem:[#allocation13 + $0x370] sm:$0xff] }
 0x3d5   :  { %v4783_v32 = vld [vmem:[#allocation13 + $0x1228] sm:$0xff]  ;;  %5562 = vmatpush.msra.mxu3 %v4871_v6 }
 0x3d6   :  { %v4659_v56 = vld [vmem:[#allocation13 + $0xe48] sm:$0xff]  ;;  %5548 = vmatpush.msra.mxu1 %v4783_v32 }
 0x3d7   :  { %v4739_v58 = vld [vmem:[#allocation13 + $0x10c8] sm:$0xff]  ;;  %5507 = vmatpush.msra.mxu2 %v4659_v56  ;;  %v4244_v56 = vld [vmem:[#allocation13 + $0x150] sm:$0xff] }
 0x3d8   :  { %v4867_v7 = vld [vmem:[#allocation13 + $0x14c8] sm:$0xff]  ;;  %5523 = vmatpush.msrb.mxu0 %v4739_v58  ;;  %v4308_v58 = vld [vmem:[#allocation13 + $0x350] sm:$0xff] }
 0x3d9   :  { %v4779_v23 = vld [vmem:[#allocation13 + $0x1208] sm:$0xff]  ;;  %5563 = vmatpush.msra.mxu3 %v4867_v7 }
 0x3da   :  { %v4655_v45 = vld [vmem:[#allocation13 + $0xe28] sm:$0xff]  ;;  %5549 = vmatpush.msra.mxu1 %v4779_v23 }
 0x3db   :  { %v4735_v63 = vld [vmem:[#allocation13 + $0x10a8] sm:$0xff]  ;;  %5508 = vmatpush.msra.mxu2 %v4655_v45  ;;  %5550 = vmatmul.f32.vlgmr.msra.gmra.mxu1 %v11161_v29  ;;  %v4240_v45 = vld [vmem:[#allocation13 + $0x130] sm:$0xff] }
 0x3dc   :  { %v4863_v13 = vld [vmem:[#allocation13 + $0x14a8] sm:$0xff]  ;;  %5524 = vmatpush.msrb.mxu0 %v4735_v63  ;;  %v4304_v63 = vld [vmem:[#allocation13 + $0x330] sm:$0xff] }
 0x3dd   :  { %v5055_v14 = vld [vmem:[#allocation13 + $0x1aa8] sm:$0x7]  ;;  %5564 = vmatpush.msra.mxu3 %v4863_v13 }
 0x3de   :  { %v4651_v55 = vld [vmem:[#allocation13 + $0xe08] sm:$0xff]  ;;  %8402 = vmatpush.msk.msrb.mxu1 %vm433_vm1, %v5055_v14 }
 0x3df   :  { %v4731_v30 = vld [vmem:[#allocation13 + $0x1088] sm:$0xff]  ;;  %5509 = vmatpush.msra.mxu2 %v4651_v55  ;;  %v4236_v55 = vld [vmem:[#allocation13 + $0x110] sm:$0xff] }
 0x3e0   :  { %v4859_v16 = vld [vmem:[#allocation13 + $0x1488] sm:$0xff]  ;;  %5525 = vmatpush.msrb.mxu0 %v4731_v30  ;;  %5510 = vmatmul.f32.vlgmr.msra.gmra.mxu2 %v11067_v5  ;;  %v4300_v30 = vld [vmem:[#allocation13 + $0x310] sm:$0xff] }
 0x3e1   :  { %v5051_v8 = vld [vmem:[#allocation13 + $0x1a88] sm:$0xff]  ;;  %5565 = vmatpush.msra.mxu3 %v4859_v16 }
 0x3e2   :  { %v4967_v43 = vld [vmem:[#allocation13 + $0x17e8] sm:$0xff]  ;;  %5625 = vmatpush.msrb.mxu1 %v5051_v8 }
 0x3e3   :  { %v4727_v46 = vld [vmem:[#allocation13 + $0x1068] sm:$0xff]  ;;  %5574 = vmatpush.msrb.mxu2 %v4967_v43  ;;  %v4232_v43 = vld [vmem:[#allocation13 + $0xf0] sm:$0xff] }
 0x3e4   :  { %v4855_v15 = vld [vmem:[#allocation13 + $0x1468] sm:$0xff]  ;;  %5526 = vmatpush.msrb.mxu0 %v4727_v46  ;;  %v4296_v46 = vld [vmem:[#allocation13 + $0x2f0] sm:$0xff] }
 0x3e5   :  { %v5047_v4 = vld [vmem:[#allocation13 + $0x1a68] sm:$0xff]  ;;  %5566 = vmatpush.msra.mxu3 %v4855_v15 }
 0x3e6   :  { %v4963_v38 = vld [vmem:[#allocation13 + $0x17c8] sm:$0xff]  ;;  %5626 = vmatpush.msrb.mxu1 %v5047_v4 }
 0x3e7   :  { %v4723_v21 = vld [vmem:[#allocation13 + $0x1048] sm:$0xff]  ;;  %5575 = vmatpush.msrb.mxu2 %v4963_v38  ;;  %v4228_v38 = vld [vmem:[#allocation13 + $0xd0] sm:$0xff] }
 0x3e8   :  { %v4851_v1 = vld [vmem:[#allocation13 + $0x1448] sm:$0xff]  ;;  %5527 = vmatpush.msrb.mxu0 %v4723_v21  ;;  %v4292_v21 = vld [vmem:[#allocation13 + $0x2d0] sm:$0xff] }
 0x3e9   :  { %v5043_v19 = vld [vmem:[#allocation13 + $0x1a48] sm:$0xff]  ;;  %5567 = vmatpush.msra.mxu3 %v4851_v1 }
 0x3ea   :  { %v4959_v39 = vld [vmem:[#allocation13 + $0x17a8] sm:$0xff]  ;;  %5627 = vmatpush.msrb.mxu1 %v5043_v19 }
 0x3eb   :  { %v4719_v24 = vld [vmem:[#allocation13 + $0x1028] sm:$0xff]  ;;  %5576 = vmatpush.msrb.mxu2 %v4959_v39  ;;  %v4224_v39 = vld [vmem:[#allocation13 + $0xb0] sm:$0xff] }
 0x3ec   :  { %v4847_v22 = vld [vmem:[#allocation13 + $0x1428] sm:$0xff]  ;;  %5528 = vmatpush.msrb.mxu0 %v4719_v24  ;;  %v4288_v24 = vld [vmem:[#allocation13 + $0x2b0] sm:$0xff] }
 0x3ed   :  { %v5039_v57 = vld [vmem:[#allocation13 + $0x1a28] sm:$0xff]  ;;  %5568 = vmatpush.msra.mxu3 %v4847_v22 }
 0x3ee   :  { %v4955_v61 = vld [vmem:[#allocation13 + $0x1788] sm:$0xff]  ;;  %5628 = vmatpush.msrb.mxu1 %v5039_v57 }
 0x3ef   :  { %v4715_v54 = vld [vmem:[#allocation13 + $0x1008] sm:$0xff]  ;;  %5577 = vmatpush.msrb.mxu2 %v4955_v61  ;;  %v4220_v61 = vld [vmem:[#allocation13 + $0x90] sm:$0xff] }
 0x3f0   :  { %v4843_v17 = vld [vmem:[#allocation13 + $0x1408] sm:$0xff]  ;;  %5529 = vmatpush.msrb.mxu0 %v4715_v54  ;;  %v4284_v54 = vld [vmem:[#allocation13 + $0x290] sm:$0xff] }
 0x3f1   :  { %v5035_v11 = vld [vmem:[#allocation13 + $0x1a08] sm:$0xff]  ;;  %5569 = vmatpush.msra.mxu3 %v4843_v17  ;;  %5530 = vmatmul.f32.vlgmr.msrb.gmra.mxu0 %v11157_v18  ;;  %v4392_v17 = vld [vmem:[#allocation13 + $0x5f0] sm:$0xff] }
 0x3f2   :  { %v4951_v44 = vld [vmem:[#allocation13 + $0x1768] sm:$0xff]  ;;  %5629 = vmatpush.msrb.mxu1 %v5035_v11  ;;  %5570 = vmatmul.f32.vlgmr.msra.gmra.mxu3 %v11163_v3 }
 0x3f3   :  { %v5031_v20 = vld [vmem:[#allocation13 + $0x19e8] sm:$0xff]  ;;  %5578 = vmatpush.msrb.mxu2 %v4951_v44  ;;  %8403 = vmatmul.msk.f32.vlgmr.msrb.gmra.mxu1 %vm5058_vm10, %v11176_v50  ;;  %v4216_v44 = vld [vmem:[#allocation13 + $0x70] sm:$0xff] }
 0x3f4   :  { %v4947_v2 = vld [vmem:[#allocation13 + $0x1748] sm:$0xff]  ;;  %5594 = vmatpush.msra.mxu0 %v5031_v20  ;;  %5634 = vmatpush.msrb.mxu3 %v4264_v47  ;;  %v4280_v20 = vld [vmem:[#allocation13 + $0x270] sm:$0xff] }
 0x3f5   :  { %v5027_v60 = vld [vmem:[#allocation13 + $0x19c8] sm:$0xff]  ;;  %5654 = vmatpush.msra.mxu1 %v4328_v62  ;;  %5579 = vmatpush.msrb.mxu2 %v4947_v2  ;;  %v4388_v47 = vld [vmem:[#allocation13 + $0x5d0] sm:$0xff]  ;;  %v5111_v2 = vpop.f32.mrf.mxu3 }
 0x3f6   :  { %v4943_v33 = vld [vmem:[#allocation13 + $0x1728] sm:$0xff]  ;;  %5595 = vmatpush.msra.mxu0 %v5027_v60  ;;  %5635 = vmatpush.msrb.mxu3 %v4260_v59  ;;  %v4212_v60 = vld [vmem:[#allocation13 + $0x50] sm:$0xff] }
 0x3f7   :  { %v5023_v48 = vld [vmem:[#allocation13 + $0x19a8] sm:$0xff]  ;;  %5655 = vmatpush.msra.mxu1 %v4324_v25  ;;  %5580 = vmatpush.msrb.mxu2 %v4943_v33  ;;  %v4276_v59 = vld [vmem:[#allocation13 + $0x250] sm:$0xff] }
 0x3f8   :  { %v4939_v35 = vld [vmem:[#allocation13 + $0x1708] sm:$0xff]  ;;  %5596 = vmatpush.msra.mxu0 %v5023_v48  ;;  %5636 = vmatpush.msrb.mxu3 %v4256_v53  ;;  %v4384_v25 = vld [vmem:[#allocation13 + $0x5b0] sm:$0xff]  ;;  %v5091_v48 = vpop.f32.mrf.mxu2 }
 0x3f9   :  { %v5019_v41 = vld [vmem:[#allocation13 + $0x1988] sm:$0xff]  ;;  %5656 = vmatpush.msra.mxu1 %v4320_v9  ;;  %5581 = vmatpush.msrb.mxu2 %v4939_v35  ;;  %v4208_v53 = vld [vmem:[#allocation13 + $0x30] sm:$0xff]  ;;  %v5112_v35 = vadd.f32 %v5111_v2, %v5091_v48 }
 0x3fa   :  { %v4935_v36 = vld [vmem:[#allocation13 + $0x16e8] sm:$0xff]  ;;  %5597 = vmatpush.msra.mxu0 %v5019_v41  ;;  %5637 = vmatpush.msrb.mxu3 %v4252_v34  ;;  %v4272_v9 = vld [vmem:[#allocation13 + $0x230] sm:$0xff] }
 0x3fb   :  { %v5015_v52 = vld [vmem:[#allocation13 + $0x1968] sm:$0xff]  ;;  %5657 = vmatpush.msra.mxu1 %v4316_v0  ;;  %5582 = vmatpush.msrb.mxu2 %v4935_v36  ;;  %v4380_v41 = vld [vmem:[#allocation13 + $0x590] sm:$0xff] }
 0x3fc   :  { %v4931_v6 = vld [vmem:[#allocation13 + $0x16c8] sm:$0xff]  ;;  %5598 = vmatpush.msra.mxu0 %v5015_v52  ;;  %5638 = vmatpush.msrb.mxu3 %v4248_v51  ;;  %v4204_v0 = vld [vmem:[#allocation13 + $0x10] sm:$0xff]  ;;  %v5131_v52 = vpop.f32.mrf.mxu0 }
 0x3fd   :  { %v5011_v32 = vld [vmem:[#allocation13 + $0x1948] sm:$0xff]  ;;  %5658 = vmatpush.msra.mxu1 %v4312_v28  ;;  %5583 = vmatpush.msrb.mxu2 %v4931_v6  ;;  %v4268_v36 = vld [vmem:[#allocation13 + $0x210] sm:$0xff]  ;;  %v5132_v28 = vadd.f32 %v5131_v52, %v5112_v35 }
 0x3fe   :  { %v4927_v7 = vld [vmem:[#allocation13 + $0x16a8] sm:$0xff]  ;;  %5599 = vmatpush.msra.mxu0 %v5011_v32  ;;  %5639 = vmatpush.msrb.mxu3 %v4244_v56  ;;  %v4376_v51 = vld [vmem:[#allocation13 + $0x570] sm:$0xff] }
 0x3ff   :  { %v5007_v23 = vld [vmem:[#allocation13 + $0x1928] sm:$0xff]  ;;  %5659 = vmatpush.msra.mxu1 %v4308_v58  ;;  %5584 = vmatpush.msrb.mxu2 %v4927_v7  ;;  %v4456_v6 = vld [vmem:[#allocation13 + $0x7f0] sm:$0xff] }
 0x400   :  { %v4923_v13 = vld [vmem:[#allocation13 + $0x1688] sm:$0xff]  ;;  %5600 = vmatpush.msra.mxu0 %v5007_v23  ;;  %5640 = vmatpush.msrb.mxu3 %v4240_v45  ;;  %v4520_v32 = vld [vmem:[#allocation13 + $0x9f0] sm:$0xff]  ;;  %v5151_v45 = vpop.f32.mrf.mxu1 }
 0x401   :  { %v5003_v14 = vld [vmem:[#allocation13 + $0x1908] sm:$0xff]  ;;  %5660 = vmatpush.msra.mxu1 %v4304_v63  ;;  %5585 = vmatpush.msrb.mxu2 %v4923_v13  ;;  %v4584_v56 = vld [vmem:[#allocation13 + $0xbf0] sm:$0xff] }
 0x402   :  { %v4919_v16 = vld [vmem:[#allocation13 + $0x1668] sm:$0xff]  ;;  %5601 = vmatpush.msra.mxu0 %v5003_v14  ;;  %5641 = vmatpush.msrb.mxu3 %v4236_v55  ;;  %v4372_v58 = vld [vmem:[#allocation13 + $0x550] sm:$0xff]  ;;  %v5152_v14 = vadd.f32 %v5151_v45, %v5132_v28 }
 0x403   :  { %v4999_v8 = vld [vmem:[#allocation13 + $0x18e8] sm:$0xff]  ;;  %5661 = vmatpush.msra.mxu1 %v4300_v30  ;;  %5586 = vmatpush.msrb.mxu2 %v4919_v16  ;;  %v4452_v7 = vld [vmem:[#allocation13 + $0x7d0] sm:$0xff]  ;;  %v5171_v16 = vpop.f32.mrf.mxu2 }
 0x404   :  { %v4915_v15 = vld [vmem:[#allocation13 + $0x1648] sm:$0xff]  ;;  %5602 = vmatpush.msra.mxu0 %v4999_v8  ;;  %5642 = vmatpush.msrb.mxu3 %v4232_v43  ;;  %v4516_v23 = vld [vmem:[#allocation13 + $0x9d0] sm:$0xff] }
 0x405   :  { %v4995_v4 = vld [vmem:[#allocation13 + $0x18c8] sm:$0xff]  ;;  %5662 = vmatpush.msra.mxu1 %v4296_v46  ;;  %5587 = vmatpush.msrb.mxu2 %v4915_v15  ;;  %v4580_v63 = vld [vmem:[#allocation13 + $0xbd0] sm:$0xff] }
 0x406   :  { %v4911_v1 = vld [vmem:[#allocation13 + $0x1628] sm:$0xff]  ;;  %5603 = vmatpush.msra.mxu0 %v4995_v4  ;;  %5643 = vmatpush.msrb.mxu3 %v4228_v38  ;;  %v4368_v13 = vld [vmem:[#allocation13 + $0x530] sm:$0xff]  ;;  %v5191_v4 = vpop.f32.mrf.mxu3 }
 0x407   :  { %v4991_v19 = vld [vmem:[#allocation13 + $0x18a8] sm:$0xff]  ;;  %5663 = vmatpush.msra.mxu1 %v4292_v21  ;;  %5588 = vmatpush.msrb.mxu2 %v4911_v1  ;;  %v4448_v55 = vld [vmem:[#allocation13 + $0x7b0] sm:$0xff]  ;;  %v5172_v1 = vadd.f32 %v5171_v16, %v5152_v14 }
 0x408   :  { %v4907_v22 = vld [vmem:[#allocation13 + $0x1608] sm:$0xff]  ;;  %5604 = vmatpush.msra.mxu0 %v4991_v19  ;;  %5644 = vmatpush.msrb.mxu3 %v4224_v39  ;;  %v4512_v30 = vld [vmem:[#allocation13 + $0x9b0] sm:$0xff]  ;;  %v5231_v35 = vpop.f32.mrf.mxu1 }
 0x409   :  { %v4987_v57 = vld [vmem:[#allocation13 + $0x1888] sm:$0xff]  ;;  %5664 = vmatpush.msra.mxu1 %v4288_v24  ;;  %5589 = vmatpush.msrb.mxu2 %v4907_v22  ;;  %v4576_v8 = vld [vmem:[#allocation13 + $0xbb0] sm:$0xff] }
 0x40a   :  { %v4983_v11 = vld [vmem:[#allocation13 + $0x1868] sm:$0xff]  ;;  %5605 = vmatpush.msra.mxu0 %v4987_v57  ;;  %5645 = vmatpush.msrb.mxu3 %v4220_v61  ;;  %v4364_v43 = vld [vmem:[#allocation13 + $0x510] sm:$0xff]  ;;  %v5192_v57 = vadd.f32 %v5191_v4, %v5172_v1 }
 0x40b   :  { %5665 = vmatpush.msra.mxu1 %v4284_v54  ;;  %5590 = vmatmul.f32.vlgmr.msrb.gmra.mxu2 %v11127_v10  ;;  %v4979_v62 = vld [vmem:[#allocation13 + $0x1848] sm:$0xff]  ;;  %v4444_v46 = vld [vmem:[#allocation13 + $0x790] sm:$0xff] }
 0x40c   :  { %5674 = vmatpush.msra.mxu2 %v4392_v17  ;;  %5606 = vmatpush.msra.mxu0 %v4983_v11  ;;  %v4975_v33 = vld [vmem:[#allocation13 + $0x1828] sm:$0xff]  ;;  %v4508_v15 = vld [vmem:[#allocation13 + $0x990] sm:$0xff] }
 0x40d   :  { %5646 = vmatpush.msrb.mxu3 %v4216_v44  ;;  %5666 = vmatpush.msra.mxu1 %v4280_v20  ;;  %v4971_v34 = vld [vmem:[#allocation13 + $0x1808] sm:$0xff]  ;;  %v4572_v38 = vld [vmem:[#allocation13 + $0xb90] sm:$0xff] }
 0x40e   :  { %5675 = vmatpush.msra.mxu2 %v4388_v47  ;;  %5607 = vmatpush.msra.mxu0 %v4979_v62  ;;  %v4360_v21 = vld [vmem:[#allocation13 + $0x4f0] sm:$0xff]  ;;  %v5211_v47 = vpop.f32.mrf.mxu0 }
 0x40f   :  { %5647 = vmatpush.msrb.mxu3 %v4212_v60  ;;  %5667 = vmatpush.msra.mxu1 %v4276_v59  ;;  %v4440_v19 = vld [vmem:[#allocation13 + $0x770] sm:$0xff]  ;;  %v5212_v60 = vadd.f32 %v5211_v47, %v5192_v57 }
 0x410   :  { %5676 = vmatpush.msra.mxu2 %v4384_v25  ;;  %5608 = vmatpush.msra.mxu0 %v4975_v33  ;;  %v4504_v39 = vld [vmem:[#allocation13 + $0x970] sm:$0xff] }
 0x411   :  { %5648 = vmatpush.msrb.mxu3 %v4208_v53  ;;  %5668 = vmatpush.msra.mxu1 %v4272_v9  ;;  %v4568_v24 = vld [vmem:[#allocation13 + $0xb70] sm:$0xff] }
 0x412   :  { %5677 = vmatpush.msra.mxu2 %v4380_v41  ;;  %5609 = vmatpush.msra.mxu0 %v4971_v34  ;;  %v4356_v22 = vld [vmem:[#allocation13 + $0x4d0] sm:$0xff]  ;;  %v5251_v41 = vpop.f32.mrf.mxu2 }
 0x413   :  { %5649 = vmatpush.msrb.mxu3 %v4204_v0  ;;  %5669 = vmatpush.msra.mxu1 %v4268_v36  ;;  %v4436_v61 = vld [vmem:[#allocation13 + $0x750] sm:$0xff]  ;;  %v5232_v36 = vadd.f32 %v5231_v35, %v5212_v60 }
 0x414   :  { %5610 = vmatmul.f32.vlgmr.msra.gmra.mxu0 %v11191_v27  ;;  %5650 = vmatmul.f32.vlgmr.msrb.gmra.mxu3 %v10984_v31  ;;  %v4500_v54 = vld [vmem:[#allocation13 + $0x950] sm:$0xff] }
 0x415   :  { %5670 = vmatmul.f32.vlgmr.msra.gmra.mxu1 %v11027_v40  ;;  %5678 = vmatpush.msra.mxu2 %v4376_v51  ;;  %v4564_v17 = vld [vmem:[#allocation13 + $0xb50] sm:$0xff] }
 0x416   :  { %5694 = vmatpush.msrb.mxu0 %v4456_v6  ;;  %5714 = vmatpush.msra.mxu3 %v4520_v32  ;;  %v4352_v11 = vld [vmem:[#allocation13 + $0x4b0] sm:$0xff]  ;;  %v5252_v32 = vadd.f32 %v5251_v41, %v5232_v36  ;;  %v5291_v4 = vpop.f32.mrf.mxu0 }
 0x417   :  { %5734 = vmatpush.msrb.mxu1 %v4584_v56  ;;  %5679 = vmatpush.msra.mxu2 %v4372_v58  ;;  %v4432_v44 = vld [vmem:[#allocation13 + $0x730] sm:$0xff] }
 0x418   :  { %5695 = vmatpush.msrb.mxu0 %v4452_v7  ;;  %5715 = vmatpush.msra.mxu3 %v4516_v23  ;;  %v4496_v20 = vld [vmem:[#allocation13 + $0x930] sm:$0xff]  ;;  %v5271_v7 = vpop.f32.mrf.mxu3 }
 0x419   :  { %5735 = vmatpush.msrb.mxu1 %v4580_v63  ;;  %5680 = vmatpush.msra.mxu2 %v4368_v13  ;;  %v4560_v62 = vld [vmem:[#allocation13 + $0xb30] sm:$0xff] }
 0x41a   :  { %5696 = vmatpush.msrb.mxu0 %v4448_v55  ;;  %5716 = vmatpush.msra.mxu3 %v4512_v30  ;;  %v4348_v2 = vld [vmem:[#allocation13 + $0x490] sm:$0xff]  ;;  %v5272_v55 = vadd.f32 %v5271_v7, %v5252_v32 }
 0x41b   :  { %5736 = vmatpush.msrb.mxu1 %v4576_v8  ;;  %5681 = vmatpush.msra.mxu2 %v4364_v43  ;;  %v4428_v59 = vld [vmem:[#allocation13 + $0x710] sm:$0xff] }
 0x41c   :  { %5697 = vmatpush.msrb.mxu0 %v4444_v46  ;;  %5717 = vmatpush.msra.mxu3 %v4508_v15  ;;  %v4492_v25 = vld [vmem:[#allocation13 + $0x910] sm:$0xff]  ;;  %v5292_v1 = vadd.f32 %v5291_v4, %v5272_v55 }
 0x41d   :  { %5737 = vmatpush.msrb.mxu1 %v4572_v38  ;;  %5682 = vmatpush.msra.mxu2 %v4360_v21  ;;  %v4556_v33 = vld [vmem:[#allocation13 + $0xb10] sm:$0xff] }
 0x41e   :  { %5698 = vmatpush.msrb.mxu0 %v4440_v19  ;;  %5718 = vmatpush.msra.mxu3 %v4504_v39  ;;  %v4344_v48 = vld [vmem:[#allocation13 + $0x470] sm:$0xff] }
 0x41f   :  { %5738 = vmatpush.msrb.mxu1 %v4568_v24  ;;  %5683 = vmatpush.msra.mxu2 %v4356_v22  ;;  %v4424_v53 = vld [vmem:[#allocation13 + $0x6f0] sm:$0xff]  ;;  %v5311_v24 = vpop.f32.mrf.mxu1 }
 0x420   :  { %5699 = vmatpush.msrb.mxu0 %v4436_v61  ;;  %5719 = vmatpush.msra.mxu3 %v4500_v54  ;;  %v4488_v9 = vld [vmem:[#allocation13 + $0x8f0] sm:$0xff] }
 0x421   :  { %5739 = vmatpush.msrb.mxu1 %v4564_v17  ;;  %5684 = vmatpush.msra.mxu2 %v4352_v11  ;;  %v4552_v34 = vld [vmem:[#allocation13 + $0xaf0] sm:$0xff]  ;;  %v5331_v17 = vpop.f32.mrf.mxu2 }
 0x422   :  { %5700 = vmatpush.msrb.mxu0 %v4432_v44  ;;  %5720 = vmatpush.msra.mxu3 %v4496_v20  ;;  %v4340_v0 = vld [vmem:[#allocation13 + $0x450] sm:$0xff]  ;;  %v5312_v20 = vadd.f32 %v5311_v24, %v5292_v1 }
 0x423   :  { %5740 = vmatpush.msrb.mxu1 %v4560_v62  ;;  %5685 = vmatpush.msra.mxu2 %v4348_v2  ;;  %v4420_v52 = vld [vmem:[#allocation13 + $0x6d0] sm:$0xff] }
 0x424   :  { %5701 = vmatpush.msrb.mxu0 %v4428_v59  ;;  %5721 = vmatpush.msra.mxu3 %v4492_v25  ;;  %v4484_v51 = vld [vmem:[#allocation13 + $0x8d0] sm:$0xff]  ;;  %v5332_v62 = vadd.f32 %v5331_v17, %v5312_v20 }
 0x425   :  { %5741 = vmatpush.msrb.mxu1 %v4556_v33  ;;  %5686 = vmatpush.msra.mxu2 %v4344_v48  ;;  %v4548_v28 = vld [vmem:[#allocation13 + $0xad0] sm:$0xff] }
 0x426   :  { %5702 = vmatpush.msrb.mxu0 %v4424_v53  ;;  %5722 = vmatpush.msra.mxu3 %v4488_v9  ;;  %v4336_v6 = vld [vmem:[#allocation13 + $0x430] sm:$0xff] }
 0x427   :  { %5742 = vmatpush.msrb.mxu1 %v4552_v34  ;;  %5687 = vmatpush.msra.mxu2 %v4340_v0  ;;  %v4416_v56 = vld [vmem:[#allocation13 + $0x6b0] sm:$0xff]  ;;  %v5351_v53 = vpop.f32.mrf.mxu1 }
 0x428   :  { %v4480_v58 = vld [vmem:[#allocation13 + $0x8b0] sm:$0xff]  ;;  %5703 = vmatpush.msrb.mxu0 %v4420_v52  ;;  %5723 = vmatpush.msra.mxu3 %v4484_v51  ;;  %v11215_v41 = vadd.f32 %v5351_v53, %v5332_v62 }
 0x429   :  { %v4544_v23 = vld [vmem:[#allocation13 + $0xab0] sm:$0xff]  ;;  %5743 = vmatpush.msrb.mxu1 %v4548_v28  ;;  %5688 = vmatpush.msra.mxu2 %v4336_v6 }
 0x42a   :  { %v4332_v45 = vld [vmem:[#allocation13 + $0x410] sm:$0xff]  ;;  %5704 = vmatpush.msrb.mxu0 %v4416_v56  ;;  %5724 = vmatpush.msra.mxu3 %v4480_v58 }
 0x42b   :  { %v4412_v63 = vld [vmem:[#allocation13 + $0x690] sm:$0xff]  ;;  %5744 = vmatpush.msrb.mxu1 %v4544_v23  ;;  %5689 = vmatpush.msra.mxu2 %v4332_v45 }
 0x42c   :  { %v4476_v13 = vld [vmem:[#allocation13 + $0x890] sm:$0xff]  ;;  %5705 = vmatpush.msrb.mxu0 %v4412_v63  ;;  %5690 = vmatmul.f32.vlgmr.msra.gmra.mxu2 %v11029_v37 }
 0x42d   :  { %v4540_v14 = vld [vmem:[#allocation13 + $0xa90] sm:$0xff]  ;;  %5725 = vmatpush.msra.mxu3 %v4476_v13  ;;  %6202 = vrot.lane.b32.xlu2 %v11215_v41, %s9196_s14 }
 0x42e   :  { %v4648_v30 = vld [vmem:[#allocation13 + $0xdf0] sm:$0xff]  ;;  %5745 = vmatpush.msrb.mxu1 %v4540_v14 }
 0x42f   :  { %v4408_v16 = vld [vmem:[#allocation13 + $0x670] sm:$0xff]  ;;  %5754 = vmatpush.msrb.mxu2 %v4648_v30 }
 0x430   :  { %v4472_v8 = vld [vmem:[#allocation13 + $0x870] sm:$0xff]  ;;  %5706 = vmatpush.msrb.mxu0 %v4408_v16 }
 0x431   :  { %v4536_v43 = vld [vmem:[#allocation13 + $0xa70] sm:$0xff]  ;;  %5726 = vmatpush.msra.mxu3 %v4472_v8 }
 0x432   :  { %v4644_v46 = vld [vmem:[#allocation13 + $0xdd0] sm:$0xff]  ;;  %5746 = vmatpush.msrb.mxu1 %v4536_v43 }
 0x433   :  { %v4404_v15 = vld [vmem:[#allocation13 + $0x650] sm:$0xff]  ;;  %5755 = vmatpush.msrb.mxu2 %v4644_v46 }
 0x434   :  { %v4468_v38 = vld [vmem:[#allocation13 + $0x850] sm:$0xff]  ;;  %5707 = vmatpush.msrb.mxu0 %v4404_v15 }
 0x435   :  { %v4532_v21 = vld [vmem:[#allocation13 + $0xa50] sm:$0xff]  ;;  %5727 = vmatpush.msra.mxu3 %v4468_v38  ;;  %6377 = vrot.lane.b32.xlu2 %v11215_v41, %s9197_s19 }
 0x436   :  { %v4640_v19 = vld [vmem:[#allocation13 + $0xdb0] sm:$0xff]  ;;  %5747 = vmatpush.msrb.mxu1 %v4532_v21 }
 0x437   :  { %v4400_v39 = vld [vmem:[#allocation13 + $0x630] sm:$0xff]  ;;  %5756 = vmatpush.msrb.mxu2 %v4640_v19 }
 0x438   :  { %v4464_v22 = vld [vmem:[#allocation13 + $0x830] sm:$0xff]  ;;  %5708 = vmatpush.msrb.mxu0 %v4400_v39 }
 0x439   :  { %v4528_v57 = vld [vmem:[#allocation13 + $0xa30] sm:$0xff]  ;;  %5728 = vmatpush.msra.mxu3 %v4464_v22 }
 0x43a   :  { %v4636_v61 = vld [vmem:[#allocation13 + $0xd90] sm:$0xff]  ;;  %5748 = vmatpush.msrb.mxu1 %v4528_v57 }
 0x43b   :  { %v4396_v54 = vld [vmem:[#allocation13 + $0x610] sm:$0xff]  ;;  %5757 = vmatpush.msrb.mxu2 %v4636_v61 }
 0x43c   :  { %v4460_v11 = vld [vmem:[#allocation13 + $0x810] sm:$0xff]  ;;  %5709 = vmatpush.msrb.mxu0 %v4396_v54 }
 0x43d   :  { %v4524_v44 = vld [vmem:[#allocation13 + $0xa10] sm:$0xff]  ;;  %5729 = vmatpush.msra.mxu3 %v4460_v11  ;;  %5710 = vmatmul.f32.vlgmr.msrb.gmra.mxu0 %v10967_v26 }
 0x43e   :  { %v4632_v47 = vld [vmem:[#allocation13 + $0xd70] sm:$0xff]  ;;  %5749 = vmatpush.msrb.mxu1 %v4524_v44  ;;  %5730 = vmatmul.f32.vlgmr.msra.gmra.mxu3 %v11065_v49 }
 0x43f   :  { %v4712_v2 = vld [vmem:[#allocation13 + $0xff0] sm:$0xff]  ;;  %5750 = vmatmul.f32.vlgmr.msrb.gmra.mxu1 %v11109_v12  ;;  %5758 = vmatpush.msrb.mxu2 %v4632_v47 }
 0x440   :  { %v4776_v60 = vld [vmem:[#allocation13 + $0x11f0] sm:$0xff]  ;;  %5774 = vmatpush.msra.mxu0 %v4712_v2 }
 0x441   :  { %v4840_v59 = vld [vmem:[#allocation13 + $0x13f0] sm:$0xff]  ;;  %5794 = vmatpush.msrb.mxu3 %v4776_v60 }
 0x442   :  { %v4628_v25 = vld [vmem:[#allocation13 + $0xd50] sm:$0xff]  ;;  %5814 = vmatpush.msra.mxu1 %v4840_v59 }
 0x443   :  { %v4708_v33 = vld [vmem:[#allocation13 + $0xfd0] sm:$0xff]  ;;  %5759 = vmatpush.msrb.mxu2 %v4628_v25 }
 0x444   :  { %v4772_v48 = vld [vmem:[#allocation13 + $0x11d0] sm:$0xff]  ;;  %5775 = vmatpush.msra.mxu0 %v4708_v33 }
 0x445   :  { %v4836_v9 = vld [vmem:[#allocation13 + $0x13d0] sm:$0xff]  ;;  %5795 = vmatpush.msrb.mxu3 %v4772_v48 }
 0x446   :  { %v4624_v35 = vld [vmem:[#allocation13 + $0xd30] sm:$0xff]  ;;  %5815 = vmatpush.msra.mxu1 %v4836_v9 }
 0x447   :  { %v4704_v34 = vld [vmem:[#allocation13 + $0xfb0] sm:$0xff]  ;;  %5760 = vmatpush.msrb.mxu2 %v4624_v35 }
 0x448   :  { %v4768_v0 = vld [vmem:[#allocation13 + $0x11b0] sm:$0xff]  ;;  %5776 = vmatpush.msra.mxu0 %v4704_v34 }
 0x449   :  { %v4832_v36 = vld [vmem:[#allocation13 + $0x13b0] sm:$0xff]  ;;  %5796 = vmatpush.msrb.mxu3 %v4768_v0 }
 0x44a   :  { %v4620_v52 = vld [vmem:[#allocation13 + $0xd10] sm:$0xff]  ;;  %5816 = vmatpush.msra.mxu1 %v4832_v36 }
 0x44b   :  { %v4700_v51 = vld [vmem:[#allocation13 + $0xf90] sm:$0xff]  ;;  %5761 = vmatpush.msrb.mxu2 %v4620_v52 }
 0x44c   :  { %v4764_v28 = vld [vmem:[#allocation13 + $0x1190] sm:$0xff]  ;;  %5777 = vmatpush.msra.mxu0 %v4700_v51 }
 0x44d   :  { %v4828_v6 = vld [vmem:[#allocation13 + $0x1390] sm:$0xff]  ;;  %5797 = vmatpush.msrb.mxu3 %v4764_v28 }
 0x44e   :  { %v4616_v32 = vld [vmem:[#allocation13 + $0xcf0] sm:$0xff]  ;;  %5817 = vmatpush.msra.mxu1 %v4828_v6 }
 0x44f   :  { %v4696_v56 = vld [vmem:[#allocation13 + $0xf70] sm:$0xff]  ;;  %5762 = vmatpush.msrb.mxu2 %v4616_v32 }
 0x450   :  { %v4760_v58 = vld [vmem:[#allocation13 + $0x1170] sm:$0xff]  ;;  %5778 = vmatpush.msra.mxu0 %v4696_v56 }
 0x451   :  { %v4824_v7 = vld [vmem:[#allocation13 + $0x1370] sm:$0xff]  ;;  %5798 = vmatpush.msrb.mxu3 %v4760_v58 }
 0x452   :  { %v4612_v23 = vld [vmem:[#allocation13 + $0xcd0] sm:$0xff]  ;;  %5818 = vmatpush.msra.mxu1 %v4824_v7 }
 0x453   :  { %v4692_v45 = vld [vmem:[#allocation13 + $0xf50] sm:$0xff]  ;;  %5763 = vmatpush.msrb.mxu2 %v4612_v23 }
 0x454   :  { %v4756_v63 = vld [vmem:[#allocation13 + $0x1150] sm:$0xff]  ;;  %5779 = vmatpush.msra.mxu0 %v4692_v45 }
 0x455   :  { %v4820_v13 = vld [vmem:[#allocation13 + $0x1350] sm:$0xff]  ;;  %5799 = vmatpush.msrb.mxu3 %v4756_v63 }
 0x456   :  { %v4608_v14 = vld [vmem:[#allocation13 + $0xcb0] sm:$0xff]  ;;  %5819 = vmatpush.msra.mxu1 %v4820_v13 }
 0x457   :  { %v4688_v55 = vld [vmem:[#allocation13 + $0xf30] sm:$0xff]  ;;  %5764 = vmatpush.msrb.mxu2 %v4608_v14 }
 0x458   :  { %v4752_v30 = vld [vmem:[#allocation13 + $0x1130] sm:$0xff]  ;;  %5780 = vmatpush.msra.mxu0 %v4688_v55 }
 0x459   :  { %v4816_v16 = vld [vmem:[#allocation13 + $0x1330] sm:$0xff]  ;;  %5800 = vmatpush.msrb.mxu3 %v4752_v30 }
 0x45a   :  { %v4604_v8 = vld [vmem:[#allocation13 + $0xc90] sm:$0xff]  ;;  %5820 = vmatpush.msra.mxu1 %v4816_v16 }
 0x45b   :  { %v4684_v43 = vld [vmem:[#allocation13 + $0xf10] sm:$0xff]  ;;  %5765 = vmatpush.msrb.mxu2 %v4604_v8 }
 0x45c   :  { %v4748_v46 = vld [vmem:[#allocation13 + $0x1110] sm:$0xff]  ;;  %5781 = vmatpush.msra.mxu0 %v4684_v43 }
 0x45d   :  { %v4812_v15 = vld [vmem:[#allocation13 + $0x1310] sm:$0xff]  ;;  %5801 = vmatpush.msrb.mxu3 %v4748_v46 }
 0x45e   :  { %v4600_v4 = vld [vmem:[#allocation13 + $0xc70] sm:$0xff]  ;;  %5821 = vmatpush.msra.mxu1 %v4812_v15 }
 0x45f   :  { %v4680_v38 = vld [vmem:[#allocation13 + $0xef0] sm:$0xff]  ;;  %5766 = vmatpush.msrb.mxu2 %v4600_v4 }
 0x460   :  { %v4744_v21 = vld [vmem:[#allocation13 + $0x10f0] sm:$0xff]  ;;  %5782 = vmatpush.msra.mxu0 %v4680_v38 }
 0x461   :  { %v4808_v1 = vld [vmem:[#allocation13 + $0x12f0] sm:$0xff]  ;;  %5802 = vmatpush.msrb.mxu3 %v4744_v21 }
 0x462   :  { %v4596_v19 = vld [vmem:[#allocation13 + $0xc50] sm:$0xff]  ;;  %5822 = vmatpush.msra.mxu1 %v4808_v1 }
 0x463   :  { %v4676_v39 = vld [vmem:[#allocation13 + $0xed0] sm:$0xff]  ;;  %5767 = vmatpush.msrb.mxu2 %v4596_v19 }
 0x464   :  { %v4740_v24 = vld [vmem:[#allocation13 + $0x10d0] sm:$0xff]  ;;  %5783 = vmatpush.msra.mxu0 %v4676_v39 }
 0x465   :  { %v4804_v22 = vld [vmem:[#allocation13 + $0x12d0] sm:$0xff]  ;;  %5803 = vmatpush.msrb.mxu3 %v4740_v24 }
 0x466   :  { %v4592_v57 = vld [vmem:[#allocation13 + $0xc30] sm:$0xff]  ;;  %5823 = vmatpush.msra.mxu1 %v4804_v22 }
 0x467   :  { %v4672_v61 = vld [vmem:[#allocation13 + $0xeb0] sm:$0xff]  ;;  %5768 = vmatpush.msrb.mxu2 %v4592_v57 }
 0x468   :  { %v4736_v54 = vld [vmem:[#allocation13 + $0x10b0] sm:$0xff]  ;;  %5784 = vmatpush.msra.mxu0 %v4672_v61  ;;  %v4265_v61 = vld [vmem:[#allocation13 + $0x1f8] sm:$0xff] }
 0x469   :  { %v4800_v17 = vld [vmem:[#allocation13 + $0x12b0] sm:$0xff]  ;;  %5804 = vmatpush.msrb.mxu3 %v4736_v54 }
 0x46a   :  { %v4588_v11 = vld [vmem:[#allocation13 + $0xc10] sm:$0xff]  ;;  %5824 = vmatpush.msra.mxu1 %v4800_v17 }
 0x46b   :  { %v4668_v44 = vld [vmem:[#allocation13 + $0xe90] sm:$0xff]  ;;  %5769 = vmatpush.msrb.mxu2 %v4588_v11 }
 0x46c   :  { %v4732_v20 = vld [vmem:[#allocation13 + $0x1090] sm:$0xff]  ;;  %5785 = vmatpush.msra.mxu0 %v4668_v44  ;;  %5770 = vmatmul.f32.vlgmr.msrb.gmra.mxu2 %v11111_v42  ;;  %v4261_v44 = vld [vmem:[#allocation13 + $0x1d8] sm:$0xff] }
 0x46d   :  { %v4796_v47 = vld [vmem:[#allocation13 + $0x1290] sm:$0xff]  ;;  %5805 = vmatpush.msrb.mxu3 %v4732_v20 }
 0x46e   :  { %v4904_v62 = vld [vmem:[#allocation13 + $0x15f0] sm:$0xff]  ;;  %5825 = vmatpush.msra.mxu1 %v4796_v47 }
 0x46f   :  { %v4664_v2 = vld [vmem:[#allocation13 + $0xe70] sm:$0xff]  ;;  %5834 = vmatpush.msra.mxu2 %v4904_v62 }
 0x470   :  { %v4728_v60 = vld [vmem:[#allocation13 + $0x1070] sm:$0xff]  ;;  %5786 = vmatpush.msra.mxu0 %v4664_v2  ;;  %v4257_v2 = vld [vmem:[#allocation13 + $0x1b8] sm:$0xff] }
 0x471   :  { %v4792_v59 = vld [vmem:[#allocation13 + $0x1270] sm:$0xff]  ;;  %5806 = vmatpush.msrb.mxu3 %v4728_v60 }
 0x472   :  { %v4900_v25 = vld [vmem:[#allocation13 + $0x15d0] sm:$0xff]  ;;  %5826 = vmatpush.msra.mxu1 %v4792_v59 }
 0x473   :  { %v4660_v33 = vld [vmem:[#allocation13 + $0xe50] sm:$0xff]  ;;  %5835 = vmatpush.msra.mxu2 %v4900_v25 }
 0x474   :  { %v4724_v48 = vld [vmem:[#allocation13 + $0x1050] sm:$0xff]  ;;  %5787 = vmatpush.msra.mxu0 %v4660_v33  ;;  %v4253_v33 = vld [vmem:[#allocation13 + $0x198] sm:$0xff] }
 0x475   :  { %v4788_v53 = vld [vmem:[#allocation13 + $0x1250] sm:$0xff]  ;;  %5807 = vmatpush.msrb.mxu3 %v4724_v48 }
 0x476   :  { %v4896_v9 = vld [vmem:[#allocation13 + $0x15b0] sm:$0xff]  ;;  %5827 = vmatpush.msra.mxu1 %v4788_v53 }
 0x477   :  { %v4656_v35 = vld [vmem:[#allocation13 + $0xe30] sm:$0xff]  ;;  %5836 = vmatpush.msra.mxu2 %v4896_v9 }
 0x478   :  { %v4720_v34 = vld [vmem:[#allocation13 + $0x1030] sm:$0xff]  ;;  %5788 = vmatpush.msra.mxu0 %v4656_v35  ;;  %v4249_v35 = vld [vmem:[#allocation13 + $0x178] sm:$0xff] }
 0x479   :  { %v4784_v0 = vld [vmem:[#allocation13 + $0x1230] sm:$0xff]  ;;  %5808 = vmatpush.msrb.mxu3 %v4720_v34 }
 0x47a   :  { %v4892_v36 = vld [vmem:[#allocation13 + $0x1590] sm:$0xff]  ;;  %5828 = vmatpush.msra.mxu1 %v4784_v0 }
 0x47b   :  { %v4652_v52 = vld [vmem:[#allocation13 + $0xe10] sm:$0xff]  ;;  %5837 = vmatpush.msra.mxu2 %v4892_v36 }
 0x47c   :  { %v4716_v51 = vld [vmem:[#allocation13 + $0x1010] sm:$0xff]  ;;  %5789 = vmatpush.msra.mxu0 %v4652_v52  ;;  %v4245_v52 = vld [vmem:[#allocation13 + $0x158] sm:$0xff] }
 0x47d   :  { %v4780_v28 = vld [vmem:[#allocation13 + $0x1210] sm:$0xff]  ;;  %5809 = vmatpush.msrb.mxu3 %v4716_v51  ;;  %5790 = vmatmul.f32.vlgmr.msra.gmra.mxu0 %v11067_v5 }
 0x47e   :  { %v4888_v6 = vld [vmem:[#allocation13 + $0x1570] sm:$0xff]  ;;  %5829 = vmatpush.msra.mxu1 %v4780_v28  ;;  %5810 = vmatmul.f32.vlgmr.msrb.gmra.mxu3 %v11157_v18 }
 0x47f   :  { %v4968_v32 = vld [vmem:[#allocation13 + $0x17f0] sm:$0xff]  ;;  %5830 = vmatmul.f32.vlgmr.msra.gmra.mxu1 %v11161_v29  ;;  %5838 = vmatpush.msra.mxu2 %v4888_v6  ;;  %v4241_v6 = vld [vmem:[#allocation13 + $0x138] sm:$0xff] }
 0x480   :  { %v5032_v56 = vld [vmem:[#allocation13 + $0x19f0] sm:$0xff]  ;;  %5854 = vmatpush.msrb.mxu0 %v4968_v32  ;;  %v4329_v32 = vld [vmem:[#allocation13 + $0x3f8] sm:$0xff] }
 0x481   :  { %v5056_v58 = vld [vmem:[#allocation13 + $0x1ab0] sm:$0x7]  ;;  %5874 = vmatpush.msra.mxu3 %v5032_v56 }
 0x482   :  { %v4884_v7 = vld [vmem:[#allocation13 + $0x1550] sm:$0xff]  ;;  %8404 = vmatpush.msk.msrb.mxu1 %vm433_vm1, %v5056_v58 }
 0x483   :  { %v4964_v23 = vld [vmem:[#allocation13 + $0x17d0] sm:$0xff]  ;;  %5839 = vmatpush.msra.mxu2 %v4884_v7  ;;  %v4237_v7 = vld [vmem:[#allocation13 + $0x118] sm:$0xff] }
 0x484   :  { %v5028_v45 = vld [vmem:[#allocation13 + $0x19d0] sm:$0xff]  ;;  %5855 = vmatpush.msrb.mxu0 %v4964_v23  ;;  %v4325_v23 = vld [vmem:[#allocation13 + $0x3d8] sm:$0xff] }
 0x485   :  { %v5052_v63 = vld [vmem:[#allocation13 + $0x1a90] sm:$0xff]  ;;  %5875 = vmatpush.msra.mxu3 %v5028_v45 }
 0x486   :  { %v4880_v13 = vld [vmem:[#allocation13 + $0x1530] sm:$0xff]  ;;  %5905 = vmatpush.msrb.mxu1 %v5052_v63 }
 0x487   :  { %v4960_v14 = vld [vmem:[#allocation13 + $0x17b0] sm:$0xff]  ;;  %5840 = vmatpush.msra.mxu2 %v4880_v13  ;;  %v4233_v13 = vld [vmem:[#allocation13 + $0xf8] sm:$0xff] }
 0x488   :  { %v5024_v55 = vld [vmem:[#allocation13 + $0x19b0] sm:$0xff]  ;;  %5856 = vmatpush.msrb.mxu0 %v4960_v14  ;;  %v4321_v14 = vld [vmem:[#allocation13 + $0x3b8] sm:$0xff] }
 0x489   :  { %v5048_v30 = vld [vmem:[#allocation13 + $0x1a70] sm:$0xff]  ;;  %5876 = vmatpush.msra.mxu3 %v5024_v55 }
 0x48a   :  { %v4876_v16 = vld [vmem:[#allocation13 + $0x1510] sm:$0xff]  ;;  %5906 = vmatpush.msrb.mxu1 %v5048_v30 }
 0x48b   :  { %v4956_v8 = vld [vmem:[#allocation13 + $0x1790] sm:$0xff]  ;;  %5841 = vmatpush.msra.mxu2 %v4876_v16  ;;  %v4229_v16 = vld [vmem:[#allocation13 + $0xd8] sm:$0xff] }
 0x48c   :  { %v5020_v43 = vld [vmem:[#allocation13 + $0x1990] sm:$0xff]  ;;  %5857 = vmatpush.msrb.mxu0 %v4956_v8  ;;  %v4317_v8 = vld [vmem:[#allocation13 + $0x398] sm:$0xff] }
 0x48d   :  { %v5044_v46 = vld [vmem:[#allocation13 + $0x1a50] sm:$0xff]  ;;  %5877 = vmatpush.msra.mxu3 %v5020_v43 }
 0x48e   :  { %v4872_v15 = vld [vmem:[#allocation13 + $0x14f0] sm:$0xff]  ;;  %5907 = vmatpush.msrb.mxu1 %v5044_v46  ;;  %v4225_v46 = vld [vmem:[#allocation13 + $0xb8] sm:$0xff] }
 0x48f   :  { %v4952_v4 = vld [vmem:[#allocation13 + $0x1770] sm:$0xff]  ;;  %5842 = vmatpush.msra.mxu2 %v4872_v15  ;;  %v4313_v15 = vld [vmem:[#allocation13 + $0x378] sm:$0xff] }
 0x490   :  { %v5016_v38 = vld [vmem:[#allocation13 + $0x1970] sm:$0xff]  ;;  %5858 = vmatpush.msrb.mxu0 %v4952_v4  ;;  %v4393_v4 = vld [vmem:[#allocation13 + $0x5f8] sm:$0xff] }
 0x491   :  { %v5040_v21 = vld [vmem:[#allocation13 + $0x1a30] sm:$0xff]  ;;  %5878 = vmatpush.msra.mxu3 %v5016_v38  ;;  %v5371_v38 = vpop.f32.mrf.mxu0 }
 0x492   :  { %v4868_v1 = vld [vmem:[#allocation13 + $0x14d0] sm:$0xff]  ;;  %5908 = vmatpush.msrb.mxu1 %v5040_v21  ;;  %v4457_v21 = vld [vmem:[#allocation13 + $0x7f8] sm:$0xff] }
 0x493   :  { %v4948_v19 = vld [vmem:[#allocation13 + $0x1750] sm:$0xff]  ;;  %5843 = vmatpush.msra.mxu2 %v4868_v1  ;;  %v4221_v1 = vld [vmem:[#allocation13 + $0x98] sm:$0xff] }
 0x494   :  { %v5012_v39 = vld [vmem:[#allocation13 + $0x1950] sm:$0xff]  ;;  %5859 = vmatpush.msrb.mxu0 %v4948_v19  ;;  %v4309_v19 = vld [vmem:[#allocation13 + $0x358] sm:$0xff] }
 0x495   :  { %v5036_v24 = vld [vmem:[#allocation13 + $0x1a10] sm:$0xff]  ;;  %5879 = vmatpush.msra.mxu3 %v5012_v39  ;;  %v4389_v39 = vld [vmem:[#allocation13 + $0x5d8] sm:$0xff] }
 0x496   :  { %v4864_v22 = vld [vmem:[#allocation13 + $0x14b0] sm:$0xff]  ;;  %5909 = vmatpush.msrb.mxu1 %v5036_v24  ;;  %v5391_v24 = vpop.f32.mrf.mxu1 }
 0x497   :  { %v4944_v57 = vld [vmem:[#allocation13 + $0x1730] sm:$0xff]  ;;  %5844 = vmatpush.msra.mxu2 %v4864_v22  ;;  %8405 = vmatmul.msk.f32.vlgmr.msrb.gmra.mxu1 %vm5058_vm10, %v11176_v50  ;;  %v5411_v22 = vpop.f32.mrf.mxu3 }
 0x498   :  { %v5008_v54 = vld [vmem:[#allocation13 + $0x1930] sm:$0xff]  ;;  %5860 = vmatpush.msrb.mxu0 %v4944_v57  ;;  %5914 = vmatpush.msra.mxu1 %v4265_v61  ;;  %v4453_v57 = vld [vmem:[#allocation13 + $0x7d8] sm:$0xff] }
 0x499   :  { %v4860_v17 = vld [vmem:[#allocation13 + $0x1490] sm:$0xff]  ;;  %5880 = vmatpush.msra.mxu3 %v5008_v54  ;;  %v4217_v61 = vld [vmem:[#allocation13 + $0x78] sm:$0xff]  ;;  %v5392_v54 = vadd.f32 %v5391_v24, %v5371_v38 }
 0x49a   :  { %v4940_v11 = vld [vmem:[#allocation13 + $0x1710] sm:$0xff]  ;;  %5845 = vmatpush.msra.mxu2 %v4860_v17  ;;  %5915 = vmatpush.msra.mxu1 %v4261_v44  ;;  %v4305_v17 = vld [vmem:[#allocation13 + $0x338] sm:$0xff]  ;;  %v5431_v44 = vpop.f32.mrf.mxu2 }
 0x49b   :  { %v5004_v20 = vld [vmem:[#allocation13 + $0x1910] sm:$0xff]  ;;  %5861 = vmatpush.msrb.mxu0 %v4940_v11  ;;  %v4385_v11 = vld [vmem:[#allocation13 + $0x5b8] sm:$0xff] }
 0x49c   :  { %v4856_v47 = vld [vmem:[#allocation13 + $0x1470] sm:$0xff]  ;;  %5881 = vmatpush.msra.mxu3 %v5004_v20  ;;  %5916 = vmatpush.msra.mxu1 %v4257_v2  ;;  %v4449_v20 = vld [vmem:[#allocation13 + $0x7b8] sm:$0xff] }
 0x49d   :  { %v4936_v62 = vld [vmem:[#allocation13 + $0x16f0] sm:$0xff]  ;;  %5846 = vmatpush.msra.mxu2 %v4856_v47  ;;  %v4213_v47 = vld [vmem:[#allocation13 + $0x58] sm:$0xff] }
 0x49e   :  { %v5000_v60 = vld [vmem:[#allocation13 + $0x18f0] sm:$0xff]  ;;  %5862 = vmatpush.msrb.mxu0 %v4936_v62  ;;  %5917 = vmatpush.msra.mxu1 %v4253_v33  ;;  %v5412_v62 = vadd.f32 %v5411_v22, %v5392_v54  ;;  %v4301_v2 = vld [vmem:[#allocation13 + $0x318] sm:$0xff] }
 0x49f   :  { %v4852_v59 = vld [vmem:[#allocation13 + $0x1450] sm:$0xff]  ;;  %5882 = vmatpush.msra.mxu3 %v5000_v60  ;;  %v4381_v60 = vld [vmem:[#allocation13 + $0x598] sm:$0xff] }
 0x4a0   :  { %v4932_v25 = vld [vmem:[#allocation13 + $0x16d0] sm:$0xff]  ;;  %5847 = vmatpush.msra.mxu2 %v4852_v59  ;;  %5918 = vmatpush.msra.mxu1 %v4249_v35  ;;  %v4445_v59 = vld [vmem:[#allocation13 + $0x798] sm:$0xff]  ;;  %v5432_v33 = vadd.f32 %v5431_v44, %v5412_v62 }
 0x4a1   :  { %v4996_v48 = vld [vmem:[#allocation13 + $0x18d0] sm:$0xff]  ;;  %5863 = vmatpush.msrb.mxu0 %v4932_v25  ;;  %v4209_v25 = vld [vmem:[#allocation13 + $0x38] sm:$0xff] }
 0x4a2   :  { %v4848_v53 = vld [vmem:[#allocation13 + $0x1430] sm:$0xff]  ;;  %5883 = vmatpush.msra.mxu3 %v4996_v48  ;;  %5919 = vmatpush.msra.mxu1 %v4245_v52  ;;  %v4297_v48 = vld [vmem:[#allocation13 + $0x2f8] sm:$0xff] }
 0x4a3   :  { %v4928_v9 = vld [vmem:[#allocation13 + $0x16b0] sm:$0xff]  ;;  %5848 = vmatpush.msra.mxu2 %v4848_v53  ;;  %v4377_v53 = vld [vmem:[#allocation13 + $0x578] sm:$0xff] }
 0x4a4   :  { %v4992_v34 = vld [vmem:[#allocation13 + $0x18b0] sm:$0xff]  ;;  %5864 = vmatpush.msrb.mxu0 %v4928_v9  ;;  %5920 = vmatpush.msra.mxu1 %v4241_v6  ;;  %v5451_v9 = vpop.f32.mrf.mxu0  ;;  %v4441_v35 = vld [vmem:[#allocation13 + $0x778] sm:$0xff] }
 0x4a5   :  { %v4844_v0 = vld [vmem:[#allocation13 + $0x1410] sm:$0xff]  ;;  %5884 = vmatpush.msra.mxu3 %v4992_v34  ;;  %v4205_v34 = vld [vmem:[#allocation13 + $0x18] sm:$0xff] }
 0x4a6   :  { %v4924_v36 = vld [vmem:[#allocation13 + $0x1690] sm:$0xff]  ;;  %5849 = vmatpush.msra.mxu2 %v4844_v0  ;;  %5921 = vmatpush.msra.mxu1 %v4237_v7  ;;  %v4293_v0 = vld [vmem:[#allocation13 + $0x2d8] sm:$0xff] }
 0x4a7   :  { %v4988_v51 = vld [vmem:[#allocation13 + $0x1890] sm:$0xff]  ;;  %5865 = vmatpush.msrb.mxu0 %v4924_v36  ;;  %5850 = vmatmul.f32.vlgmr.msra.gmra.mxu2 %v11163_v3  ;;  %v4373_v36 = vld [vmem:[#allocation13 + $0x558] sm:$0xff] }
 0x4a8   :  { %v4920_v28 = vld [vmem:[#allocation13 + $0x1670] sm:$0xff]  ;;  %5885 = vmatpush.msra.mxu3 %v4988_v51  ;;  %5934 = vmatpush.msrb.mxu2 %v4329_v32  ;;  %v4437_v52 = vld [vmem:[#allocation13 + $0x758] sm:$0xff]  ;;  %v5452_v51 = vadd.f32 %v5451_v9, %v5432_v33 }
 0x4a9   :  { %v4984_v56 = vld [vmem:[#allocation13 + $0x1870] sm:$0xff]  ;;  %5866 = vmatpush.msrb.mxu0 %v4920_v28  ;;  %5922 = vmatpush.msra.mxu1 %v4233_v13  ;;  %v4521_v28 = vld [vmem:[#allocation13 + $0x9f8] sm:$0xff] }
 0x4aa   :  { %v4916_v58 = vld [vmem:[#allocation13 + $0x1650] sm:$0xff]  ;;  %5886 = vmatpush.msra.mxu3 %v4984_v56  ;;  %5935 = vmatpush.msrb.mxu2 %v4325_v23  ;;  %v4289_v6 = vld [vmem:[#allocation13 + $0x2b8] sm:$0xff]  ;;  %v5471_v23 = vpop.f32.mrf.mxu1 }
 0x4ab   :  { %v4980_v45 = vld [vmem:[#allocation13 + $0x1850] sm:$0xff]  ;;  %5867 = vmatpush.msrb.mxu0 %v4916_v58  ;;  %5923 = vmatpush.msra.mxu1 %v4229_v16  ;;  %v4369_v32 = vld [vmem:[#allocation13 + $0x538] sm:$0xff]  ;;  %v5511_v16 = vpop.f32.mrf.mxu2 }
 0x4ac   :  { %v4912_v63 = vld [vmem:[#allocation13 + $0x1630] sm:$0xff]  ;;  %5887 = vmatpush.msra.mxu3 %v4980_v45  ;;  %5936 = vmatpush.msrb.mxu2 %v4321_v14  ;;  %v4433_v56 = vld [vmem:[#allocation13 + $0x738] sm:$0xff]  ;;  %v5491_v45 = vpop.f32.mrf.mxu3  ;;  %v5472_v14 = vadd.f32 %v5471_v23, %v5452_v51 }
 0x4ad   :  { %v4976_v55 = vld [vmem:[#allocation13 + $0x1830] sm:$0xff]  ;;  %5868 = vmatpush.msrb.mxu0 %v4912_v63  ;;  %5924 = vmatpush.msra.mxu1 %v4225_v46  ;;  %v4517_v58 = vld [vmem:[#allocation13 + $0x9d8] sm:$0xff] }
 0x4ae   :  { %v4908_v30 = vld [vmem:[#allocation13 + $0x1610] sm:$0xff]  ;;  %5888 = vmatpush.msra.mxu3 %v4976_v55  ;;  %5937 = vmatpush.msrb.mxu2 %v4317_v8  ;;  %v4285_v7 = vld [vmem:[#allocation13 + $0x298] sm:$0xff]  ;;  %v5492_v46 = vadd.f32 %v5491_v45, %v5472_v14 }
 0x4af   :  { %v4972_v43 = vld [vmem:[#allocation13 + $0x1810] sm:$0xff]  ;;  %5869 = vmatpush.msrb.mxu0 %v4908_v30  ;;  %5925 = vmatpush.msra.mxu1 %v4221_v1  ;;  %v4365_v63 = vld [vmem:[#allocation13 + $0x518] sm:$0xff] }
 0x4b0   :  { %5889 = vmatpush.msra.mxu3 %v4972_v43  ;;  %5870 = vmatmul.f32.vlgmr.msrb.gmra.mxu0 %v11127_v10  ;;  %v4429_v13 = vld [vmem:[#allocation13 + $0x718] sm:$0xff] }
 0x4b1   :  { %5890 = vmatmul.f32.vlgmr.msra.gmra.mxu3 %v11191_v27  ;;  %5938 = vmatpush.msrb.mxu2 %v4313_v15  ;;  %v4513_v55 = vld [vmem:[#allocation13 + $0x9b8] sm:$0xff] }
 0x4b2   :  { %5954 = vmatpush.msra.mxu0 %v4393_v4  ;;  %5974 = vmatpush.msrb.mxu3 %v4457_v21  ;;  %v4281_v30 = vld [vmem:[#allocation13 + $0x278] sm:$0xff]  ;;  %v5512_v21 = vadd.f32 %v5511_v16, %v5492_v46 }
 0x4b3   :  { %5939 = vmatpush.msrb.mxu2 %v4309_v19  ;;  %5926 = vmatpush.msra.mxu1 %v4217_v61  ;;  %v4361_v8 = vld [vmem:[#allocation13 + $0x4f8] sm:$0xff] }
 0x4b4   :  { %5955 = vmatpush.msra.mxu0 %v4389_v39  ;;  %5975 = vmatpush.msrb.mxu3 %v4453_v57  ;;  %v4425_v43 = vld [vmem:[#allocation13 + $0x6f8] sm:$0xff]  ;;  %v5531_v39 = vpop.f32.mrf.mxu0 }
 0x4b5   :  { %5940 = vmatpush.msrb.mxu2 %v4305_v17  ;;  %5927 = vmatpush.msra.mxu1 %v4213_v47  ;;  %v4277_v15 = vld [vmem:[#allocation13 + $0x258] sm:$0xff] }
 0x4b6   :  { %5956 = vmatpush.msra.mxu0 %v4385_v11  ;;  %5976 = vmatpush.msrb.mxu3 %v4449_v20  ;;  %v4357_v4 = vld [vmem:[#allocation13 + $0x4d8] sm:$0xff]  ;;  %v5532_v11 = vadd.f32 %v5531_v39, %v5512_v21 }
 0x4b7   :  { %5941 = vmatpush.msrb.mxu2 %v4301_v2  ;;  %5928 = vmatpush.msra.mxu1 %v4209_v25  ;;  %v4421_v38 = vld [vmem:[#allocation13 + $0x6d8] sm:$0xff] }
 0x4b8   :  { %5957 = vmatpush.msra.mxu0 %v4381_v60  ;;  %5977 = vmatpush.msrb.mxu3 %v4445_v59  ;;  %v4505_v1 = vld [vmem:[#allocation13 + $0x978] sm:$0xff]  ;;  %v5551_v60 = vpop.f32.mrf.mxu1  ;;  %v5571_v59 = vpop.f32.mrf.mxu3 }
 0x4b9   :  { %5942 = vmatpush.msrb.mxu2 %v4297_v48  ;;  %5929 = vmatpush.msra.mxu1 %v4205_v34  ;;  %v4273_v19 = vld [vmem:[#allocation13 + $0x238] sm:$0xff]  ;;  %v5552_v48 = vadd.f32 %v5551_v60, %v5532_v11 }
 0x4ba   :  { %5958 = vmatpush.msra.mxu0 %v4377_v53  ;;  %5978 = vmatpush.msrb.mxu3 %v4441_v35  ;;  %v4353_v24 = vld [vmem:[#allocation13 + $0x4b8] sm:$0xff] }
 0x4bb   :  { %5943 = vmatpush.msrb.mxu2 %v4293_v0  ;;  %5930 = vmatmul.f32.vlgmr.msra.gmra.mxu1 %v10984_v31  ;;  %v4509_v31 = vld [vmem:[#allocation13 + $0x998] sm:$0xff]  ;;  %v5591_v0 = vpop.f32.mrf.mxu2 }
 0x4bc   :  { %5959 = vmatpush.msra.mxu0 %v4373_v36  ;;  %5979 = vmatpush.msrb.mxu3 %v4437_v52  ;;  %v4417_v22 = vld [vmem:[#allocation13 + $0x6b8] sm:$0xff]  ;;  %v5572_v36 = vadd.f32 %v5571_v59, %v5552_v48 }
 0x4bd   :  { %5994 = vmatpush.msrb.mxu1 %v4521_v28  ;;  %5944 = vmatpush.msrb.mxu2 %v4289_v6  ;;  %v4501_v57 = vld [vmem:[#allocation13 + $0x958] sm:$0xff] }
 0x4be   :  { %5960 = vmatpush.msra.mxu0 %v4369_v32  ;;  %5980 = vmatpush.msrb.mxu3 %v4433_v56  ;;  %v4269_v61 = vld [vmem:[#allocation13 + $0x218] sm:$0xff]  ;;  %v5592_v6 = vadd.f32 %v5591_v0, %v5572_v36 }
 0x4bf   :  { %5995 = vmatpush.msrb.mxu1 %v4517_v58  ;;  %5945 = vmatpush.msrb.mxu2 %v4285_v7  ;;  %v4349_v54 = vld [vmem:[#allocation13 + $0x498] sm:$0xff]  ;;  %v5611_v58 = vpop.f32.mrf.mxu0 }
 0x4c0   :  { %5961 = vmatpush.msra.mxu0 %v4365_v63  ;;  %5981 = vmatpush.msrb.mxu3 %v4429_v13  ;;  %v4413_v17 = vld [vmem:[#allocation13 + $0x698] sm:$0xff]  ;;  %v5612_v13 = vadd.f32 %v5611_v58, %v5592_v6  ;;  %v5631_v46 = vpop.f32.mrf.mxu1 }
 0x4c1   :  { %5996 = vmatpush.msrb.mxu1 %v4513_v55  ;;  %5946 = vmatpush.msrb.mxu2 %v4281_v30  ;;  %v4497_v44 = vld [vmem:[#allocation13 + $0x938] sm:$0xff] }
 0x4c2   :  { %5962 = vmatpush.msra.mxu0 %v4361_v8  ;;  %5982 = vmatpush.msrb.mxu3 %v4425_v43  ;;  %v4585_v20 = vld [vmem:[#allocation13 + $0xbf8] sm:$0xff] }
 0x4c3   :  { %5997 = vmatpush.msrb.mxu1 %v4509_v31  ;;  %5947 = vmatpush.msrb.mxu2 %v4277_v15  ;;  %v4345_v47 = vld [vmem:[#allocation13 + $0x478] sm:$0xff]  ;;  %v11235_v15 = vadd.f32 %v5631_v46, %v5612_v13 }
 0x4c4   :  { %5963 = vmatpush.msra.mxu0 %v4357_v4  ;;  %5983 = vmatpush.msrb.mxu3 %v4421_v38  ;;  %v4409_v62 = vld [vmem:[#allocation13 + $0x678] sm:$0xff] }
 0x4c5   :  { %5998 = vmatpush.msrb.mxu1 %v4505_v1  ;;  %5948 = vmatpush.msrb.mxu2 %v4273_v19  ;;  %v4493_v2 = vld [vmem:[#allocation13 + $0x918] sm:$0xff] }
 0x4c6   :  { %5964 = vmatpush.msra.mxu0 %v4353_v24  ;;  %5984 = vmatpush.msrb.mxu3 %v4417_v22  ;;  %v4581_v25 = vld [vmem:[#allocation13 + $0xbd8] sm:$0xff] }
 0x4c7   :  { %5999 = vmatpush.msrb.mxu1 %v4501_v57  ;;  %5949 = vmatpush.msrb.mxu2 %v4269_v61  ;;  %v4341_v33 = vld [vmem:[#allocation13 + $0x458] sm:$0xff] }
 0x4c8   :  { %5965 = vmatpush.msra.mxu0 %v4349_v54  ;;  %5985 = vmatpush.msrb.mxu3 %v4413_v17  ;;  %v4405_v53 = vld [vmem:[#allocation13 + $0x658] sm:$0xff] }
 0x4c9   :  { %5950 = vmatmul.f32.vlgmr.msrb.gmra.mxu2 %v11027_v40  ;;  %6000 = vmatpush.msrb.mxu1 %v4497_v44  ;;  %v4489_v9 = vld [vmem:[#allocation13 + $0x8f8] sm:$0xff] }
 0x4ca   :  { %6014 = vmatpush.msra.mxu2 %v4585_v20  ;;  %5966 = vmatpush.msra.mxu0 %v4345_v47  ;;  %v4577_v35 = vld [vmem:[#allocation13 + $0xbb8] sm:$0xff] }
 0x4cb   :  { %5986 = vmatpush.msrb.mxu3 %v4409_v62  ;;  %6001 = vmatpush.msrb.mxu1 %v4493_v2  ;;  %v4337_v34 = vld [vmem:[#allocation13 + $0x438] sm:$0xff] }
 0x4cc   :  { %6015 = vmatpush.msra.mxu2 %v4581_v25  ;;  %5967 = vmatpush.msra.mxu0 %v4341_v33  ;;  %v4401_v52 = vld [vmem:[#allocation13 + $0x638] sm:$0xff] }
 0x4cd   :  { %v4485_v51 = vld [vmem:[#allocation13 + $0x8d8] sm:$0xff]  ;;  %5987 = vmatpush.msrb.mxu3 %v4405_v53  ;;  %6002 = vmatpush.msrb.mxu1 %v4489_v9 }
 0x4ce   :  { %v4573_v40 = vld [vmem:[#allocation13 + $0xb98] sm:$0xff]  ;;  %6016 = vmatpush.msra.mxu2 %v4577_v35  ;;  %5968 = vmatpush.msra.mxu0 %v4337_v34 }
 0x4cf   :  { %v4333_v28 = vld [vmem:[#allocation13 + $0x418] sm:$0xff]  ;;  %5988 = vmatpush.msrb.mxu3 %v4401_v52  ;;  %6003 = vmatpush.msrb.mxu1 %v4485_v51 }
 0x4d0   :  { %v4397_v32 = vld [vmem:[#allocation13 + $0x618] sm:$0xff]  ;;  %6017 = vmatpush.msra.mxu2 %v4573_v40  ;;  %5969 = vmatpush.msra.mxu0 %v4333_v28 }
 0x4d1   :  { %v4481_v56 = vld [vmem:[#allocation13 + $0x8b8] sm:$0xff]  ;;  %5989 = vmatpush.msrb.mxu3 %v4397_v32  ;;  %5970 = vmatmul.f32.vlgmr.msra.gmra.mxu0 %v11029_v37 }
 0x4d2   :  { %v4569_v7 = vld [vmem:[#allocation13 + $0xb78] sm:$0xff]  ;;  %5990 = vmatmul.f32.vlgmr.msrb.gmra.mxu3 %v10967_v26  ;;  %6004 = vmatpush.msrb.mxu1 %v4481_v56 }
 0x4d3   :  { %v4649_v23 = vld [vmem:[#allocation13 + $0xdf8] sm:$0xff]  ;;  %6018 = vmatpush.msra.mxu2 %v4569_v7  ;;  %6204 = vrot.lane.b32.xlu0 %v11235_v15, %s9196_s14 }
 0x4d4   :  { %v4713_v45 = vld [vmem:[#allocation13 + $0xff8] sm:$0xff]  ;;  %6034 = vmatpush.msrb.mxu0 %v4649_v23  ;;  %6477 = vrot.lane.b32.xlu2 %v11235_v15, %s9205_s23 }
 0x4d5   :  { %v4477_v63 = vld [vmem:[#allocation13 + $0x898] sm:$0xff]  ;;  %6054 = vmatpush.msra.mxu3 %v4713_v45 }
 0x4d6   :  { %v4565_v14 = vld [vmem:[#allocation13 + $0xb58] sm:$0xff]  ;;  %6005 = vmatpush.msrb.mxu1 %v4477_v63 }
 0x4d7   :  { %v4645_v55 = vld [vmem:[#allocation13 + $0xdd8] sm:$0xff]  ;;  %6019 = vmatpush.msra.mxu2 %v4565_v14 }
 0x4d8   :  { %v4709_v30 = vld [vmem:[#allocation13 + $0xfd8] sm:$0xff]  ;;  %6035 = vmatpush.msrb.mxu0 %v4645_v55 }
 0x4d9   :  { %v4473_v16 = vld [vmem:[#allocation13 + $0x878] sm:$0xff]  ;;  %6055 = vmatpush.msra.mxu3 %v4709_v30 }
 0x4da   :  { %v4561_v8 = vld [vmem:[#allocation13 + $0xb38] sm:$0xff]  ;;  %6006 = vmatpush.msrb.mxu1 %v4473_v16 }
 0x4db   :  { %v4641_v43 = vld [vmem:[#allocation13 + $0xdb8] sm:$0xff]  ;;  %6020 = vmatpush.msra.mxu2 %v4561_v8  ;;  %6379 = vrot.lane.b32.xlu0 %v11235_v15, %s9197_s19 }
 0x4dc   :  { %v4705_v37 = vld [vmem:[#allocation13 + $0xfb8] sm:$0xff]  ;;  %6036 = vmatpush.msrb.mxu0 %v4641_v43  ;;  %6576 = vrot.lane.b32.xlu2 %v11235_v15, %s9206_s4 }
 0x4dd   :  { %v4469_v31 = vld [vmem:[#allocation13 + $0x858] sm:$0xff]  ;;  %6056 = vmatpush.msra.mxu3 %v4705_v37 }
 0x4de   :  { %v4557_v26 = vld [vmem:[#allocation13 + $0xb18] sm:$0xff]  ;;  %6007 = vmatpush.msrb.mxu1 %v4469_v31 }
 0x4df   :  { %v4637_v4 = vld [vmem:[#allocation13 + $0xd98] sm:$0xff]  ;;  %6021 = vmatpush.msra.mxu2 %v4557_v26 }
 0x4e0   :  { %v4701_v38 = vld [vmem:[#allocation13 + $0xf98] sm:$0xff]  ;;  %6037 = vmatpush.msrb.mxu0 %v4637_v4 }
 0x4e1   :  { %v4465_v21 = vld [vmem:[#allocation13 + $0x838] sm:$0xff]  ;;  %6057 = vmatpush.msra.mxu3 %v4701_v38 }
 0x4e2   :  { %v4553_v1 = vld [vmem:[#allocation13 + $0xaf8] sm:$0xff]  ;;  %6008 = vmatpush.msrb.mxu1 %v4465_v21 }
 0x4e3   :  { %v4633_v19 = vld [vmem:[#allocation13 + $0xd78] sm:$0xff]  ;;  %6022 = vmatpush.msra.mxu2 %v4553_v1 }
 0x4e4   :  { %v4697_v39 = vld [vmem:[#allocation13 + $0xf78] sm:$0xff]  ;;  %6038 = vmatpush.msrb.mxu0 %v4633_v19 }
 0x4e5   :  { %v4461_v24 = vld [vmem:[#allocation13 + $0x818] sm:$0xff]  ;;  %6058 = vmatpush.msra.mxu3 %v4697_v39 }
 0x4e6   :  { %v4549_v22 = vld [vmem:[#allocation13 + $0xad8] sm:$0xff]  ;;  %6009 = vmatpush.msrb.mxu1 %v4461_v24 }
 0x4e7   :  { %v4629_v57 = vld [vmem:[#allocation13 + $0xd58] sm:$0xff]  ;;  %6023 = vmatpush.msra.mxu2 %v4549_v22  ;;  %6010 = vmatmul.f32.vlgmr.msrb.gmra.mxu1 %v11065_v49 }
 0x4e8   :  { %v4693_v61 = vld [vmem:[#allocation13 + $0xf58] sm:$0xff]  ;;  %6039 = vmatpush.msrb.mxu0 %v4629_v57 }
 0x4e9   :  { %v4777_v54 = vld [vmem:[#allocation13 + $0x11f8] sm:$0xff]  ;;  %6059 = vmatpush.msra.mxu3 %v4693_v61 }
 0x4ea   :  { %v4545_v17 = vld [vmem:[#allocation13 + $0xab8] sm:$0xff]  ;;  %6074 = vmatpush.msra.mxu1 %v4777_v54 }
 0x4eb   :  { %v4625_v11 = vld [vmem:[#allocation13 + $0xd38] sm:$0xff]  ;;  %6024 = vmatpush.msra.mxu2 %v4545_v17 }
 0x4ec   :  { %v4689_v44 = vld [vmem:[#allocation13 + $0xf38] sm:$0xff]  ;;  %6040 = vmatpush.msrb.mxu0 %v4625_v11 }
 0x4ed   :  { %v4773_v20 = vld [vmem:[#allocation13 + $0x11d8] sm:$0xff]  ;;  %6060 = vmatpush.msra.mxu3 %v4689_v44 }
 0x4ee   :  { %v4541_v47 = vld [vmem:[#allocation13 + $0xa98] sm:$0xff]  ;;  %6075 = vmatpush.msra.mxu1 %v4773_v20 }
 0x4ef   :  { %v4621_v62 = vld [vmem:[#allocation13 + $0xd18] sm:$0xff]  ;;  %6025 = vmatpush.msra.mxu2 %v4541_v47 }
 0x4f0   :  { %v4685_v2 = vld [vmem:[#allocation13 + $0xf18] sm:$0xff]  ;;  %6041 = vmatpush.msrb.mxu0 %v4621_v62 }
 0x4f1   :  { %v4769_v60 = vld [vmem:[#allocation13 + $0x11b8] sm:$0xff]  ;;  %6061 = vmatpush.msra.mxu3 %v4685_v2 }
 0x4f2   :  { %v4537_v59 = vld [vmem:[#allocation13 + $0xa78] sm:$0xff]  ;;  %6076 = vmatpush.msra.mxu1 %v4769_v60 }
 0x4f3   :  { %v4617_v25 = vld [vmem:[#allocation13 + $0xcf8] sm:$0xff]  ;;  %6026 = vmatpush.msra.mxu2 %v4537_v59 }
 0x4f4   :  { %v4681_v33 = vld [vmem:[#allocation13 + $0xef8] sm:$0xff]  ;;  %6042 = vmatpush.msrb.mxu0 %v4617_v25 }
 0x4f5   :  { %v4765_v49 = vld [vmem:[#allocation13 + $0x1198] sm:$0xff]  ;;  %6062 = vmatpush.msra.mxu3 %v4681_v33 }
 0x4f6   :  { %v4533_v48 = vld [vmem:[#allocation13 + $0xa58] sm:$0xff]  ;;  %6077 = vmatpush.msra.mxu1 %v4765_v49 }
 0x4f7   :  { %v4613_v53 = vld [vmem:[#allocation13 + $0xcd8] sm:$0xff]  ;;  %6027 = vmatpush.msra.mxu2 %v4533_v48 }
 0x4f8   :  { %v4677_v9 = vld [vmem:[#allocation13 + $0xed8] sm:$0xff]  ;;  %6043 = vmatpush.msrb.mxu0 %v4613_v53 }
 0x4f9   :  { %v4761_v35 = vld [vmem:[#allocation13 + $0x1178] sm:$0xff]  ;;  %6063 = vmatpush.msra.mxu3 %v4677_v9 }
 0x4fa   :  { %v4529_v34 = vld [vmem:[#allocation13 + $0xa38] sm:$0xff]  ;;  %6078 = vmatpush.msra.mxu1 %v4761_v35 }
 0x4fb   :  { %v4609_v0 = vld [vmem:[#allocation13 + $0xcb8] sm:$0xff]  ;;  %6028 = vmatpush.msra.mxu2 %v4529_v34 }
 0x4fc   :  { %v4673_v36 = vld [vmem:[#allocation13 + $0xeb8] sm:$0xff]  ;;  %6044 = vmatpush.msrb.mxu0 %v4609_v0 }
 0x4fd   :  { %v4757_v52 = vld [vmem:[#allocation13 + $0x1158] sm:$0xff]  ;;  %6064 = vmatpush.msra.mxu3 %v4673_v36 }
 0x4fe   :  { %v4525_v51 = vld [vmem:[#allocation13 + $0xa18] sm:$0xff]  ;;  %6079 = vmatpush.msra.mxu1 %v4757_v52 }
 0x4ff   :  { %v4605_v40 = vld [vmem:[#allocation13 + $0xc98] sm:$0xff]  ;;  %6029 = vmatpush.msra.mxu2 %v4525_v51 }
 0x500   :  { %v4669_v28 = vld [vmem:[#allocation13 + $0xe98] sm:$0xff]  ;;  %6045 = vmatpush.msrb.mxu0 %v4605_v40  ;;  %6030 = vmatmul.f32.vlgmr.msra.gmra.mxu2 %v11109_v12 }
 0x501   :  { %v4753_v6 = vld [vmem:[#allocation13 + $0x1138] sm:$0xff]  ;;  %6065 = vmatpush.msra.mxu3 %v4669_v28 }
 0x502   :  { %v4841_v32 = vld [vmem:[#allocation13 + $0x13f8] sm:$0xff]  ;;  %6080 = vmatpush.msra.mxu1 %v4753_v6 }
 0x503   :  { %v4601_v56 = vld [vmem:[#allocation13 + $0xc78] sm:$0xff]  ;;  %6094 = vmatpush.msrb.mxu2 %v4841_v32 }
 0x504   :  { %v4665_v58 = vld [vmem:[#allocation13 + $0xe78] sm:$0xff]  ;;  %6046 = vmatpush.msrb.mxu0 %v4601_v56 }
 0x505   :  { %v4749_v7 = vld [vmem:[#allocation13 + $0x1118] sm:$0xff]  ;;  %6066 = vmatpush.msra.mxu3 %v4665_v58 }
 0x506   :  { %v4837_v23 = vld [vmem:[#allocation13 + $0x13d8] sm:$0xff]  ;;  %6081 = vmatpush.msra.mxu1 %v4749_v7 }
 0x507   :  { %v4597_v45 = vld [vmem:[#allocation13 + $0xc58] sm:$0xff]  ;;  %6095 = vmatpush.msrb.mxu2 %v4837_v23 }
 0x508   :  { %v4661_v63 = vld [vmem:[#allocation13 + $0xe58] sm:$0xff]  ;;  %6047 = vmatpush.msrb.mxu0 %v4597_v45 }
 0x509   :  { %v4745_v13 = vld [vmem:[#allocation13 + $0x10f8] sm:$0xff]  ;;  %6067 = vmatpush.msra.mxu3 %v4661_v63 }
 0x50a   :  { %v4833_v14 = vld [vmem:[#allocation13 + $0x13b8] sm:$0xff]  ;;  %6082 = vmatpush.msra.mxu1 %v4745_v13 }
 0x50b   :  { %v4593_v55 = vld [vmem:[#allocation13 + $0xc38] sm:$0xff]  ;;  %6096 = vmatpush.msrb.mxu2 %v4833_v14 }
 0x50c   :  { %v4657_v30 = vld [vmem:[#allocation13 + $0xe38] sm:$0xff]  ;;  %6048 = vmatpush.msrb.mxu0 %v4593_v55 }
 0x50d   :  { %v4741_v16 = vld [vmem:[#allocation13 + $0x10d8] sm:$0xff]  ;;  %6068 = vmatpush.msra.mxu3 %v4657_v30 }
 0x50e   :  { %v4829_v8 = vld [vmem:[#allocation13 + $0x1398] sm:$0xff]  ;;  %6083 = vmatpush.msra.mxu1 %v4741_v16 }
 0x50f   :  { %v4589_v43 = vld [vmem:[#allocation13 + $0xc18] sm:$0xff]  ;;  %6097 = vmatpush.msrb.mxu2 %v4829_v8 }
 0x510   :  { %v4653_v12 = vld [vmem:[#allocation13 + $0xe18] sm:$0xff]  ;;  %6049 = vmatpush.msrb.mxu0 %v4589_v43 }
 0x511   :  { %v4737_v46 = vld [vmem:[#allocation13 + $0x10b8] sm:$0xff]  ;;  %6069 = vmatpush.msra.mxu3 %v4653_v12  ;;  %6050 = vmatmul.f32.vlgmr.msrb.gmra.mxu0 %v11111_v42 }
 0x512   :  { %v4825_v37 = vld [vmem:[#allocation13 + $0x1378] sm:$0xff]  ;;  %6070 = vmatmul.f32.vlgmr.msra.gmra.mxu3 %v11067_v5  ;;  %6084 = vmatpush.msra.mxu1 %v4737_v46  ;;  %v5651_v46 = vpop.f32.mrf.mxu3 }
 0x513   :  { %v4905_v31 = vld [vmem:[#allocation13 + $0x15f8] sm:$0xff]  ;;  %6098 = vmatpush.msrb.mxu2 %v4825_v37 }
 0x514   :  { %v4969_v26 = vld [vmem:[#allocation13 + $0x17f8] sm:$0xff]  ;;  %6114 = vmatpush.msra.mxu0 %v4905_v31 }
 0x515   :  { %v4733_v4 = vld [vmem:[#allocation13 + $0x1098] sm:$0xff]  ;;  %6134 = vmatpush.msrb.mxu3 %v4969_v26 }
 0x516   :  { %v4821_v38 = vld [vmem:[#allocation13 + $0x1358] sm:$0xff]  ;;  %6085 = vmatpush.msra.mxu1 %v4733_v4 }
 0x517   :  { %v4901_v21 = vld [vmem:[#allocation13 + $0x15d8] sm:$0xff]  ;;  %6099 = vmatpush.msrb.mxu2 %v4821_v38  ;;  %v5671_v38 = vpop.f32.mrf.mxu1 }
 0x518   :  { %v4965_v1 = vld [vmem:[#allocation13 + $0x17d8] sm:$0xff]  ;;  %6115 = vmatpush.msra.mxu0 %v4901_v21  ;;  %v5691_v21 = vpop.f32.mrf.mxu2 }
 0x519   :  { %v4729_v19 = vld [vmem:[#allocation13 + $0x1078] sm:$0xff]  ;;  %6135 = vmatpush.msrb.mxu3 %v4965_v1 }
 0x51a   :  { %v4817_v39 = vld [vmem:[#allocation13 + $0x1338] sm:$0xff]  ;;  %6086 = vmatpush.msra.mxu1 %v4729_v19  ;;  %v5672_v19 = vadd.f32 %v5671_v38, %v5651_v46 }
 0x51b   :  { %v4897_v24 = vld [vmem:[#allocation13 + $0x15b8] sm:$0xff]  ;;  %6100 = vmatpush.msrb.mxu2 %v4817_v39 }
 0x51c   :  { %v4961_v22 = vld [vmem:[#allocation13 + $0x17b8] sm:$0xff]  ;;  %6116 = vmatpush.msra.mxu0 %v4897_v24 }
 0x51d   :  { %v4725_v57 = vld [vmem:[#allocation13 + $0x1058] sm:$0xff]  ;;  %6136 = vmatpush.msrb.mxu3 %v4961_v22  ;;  %v5692_v22 = vadd.f32 %v5691_v21, %v5672_v19 }
 0x51e   :  { %v4813_v42 = vld [vmem:[#allocation13 + $0x1318] sm:$0xff]  ;;  %6087 = vmatpush.msra.mxu1 %v4725_v57 }
 0x51f   :  { %v4893_v61 = vld [vmem:[#allocation13 + $0x1598] sm:$0xff]  ;;  %6101 = vmatpush.msrb.mxu2 %v4813_v42  ;;  %v5711_v42 = vpop.f32.mrf.mxu0 }
 0x520   :  { %v4957_v5 = vld [vmem:[#allocation13 + $0x1798] sm:$0xff]  ;;  %6117 = vmatpush.msra.mxu0 %v4893_v61 }
 0x521   :  { %v4721_v54 = vld [vmem:[#allocation13 + $0x1038] sm:$0xff]  ;;  %6137 = vmatpush.msrb.mxu3 %v4957_v5 }
 0x522   :  { %v4809_v17 = vld [vmem:[#allocation13 + $0x12f8] sm:$0xff]  ;;  %6088 = vmatpush.msra.mxu1 %v4721_v54  ;;  %v5731_v54 = vpop.f32.mrf.mxu3 }
 0x523   :  { %v4889_v11 = vld [vmem:[#allocation13 + $0x1578] sm:$0xff]  ;;  %6102 = vmatpush.msrb.mxu2 %v4809_v17 }
 0x524   :  { %v4953_v44 = vld [vmem:[#allocation13 + $0x1778] sm:$0xff]  ;;  %6118 = vmatpush.msra.mxu0 %v4889_v11  ;;  %v5712_v11 = vadd.f32 %v5711_v42, %v5692_v22 }
 0x525   :  { %v4717_v20 = vld [vmem:[#allocation13 + $0x1018] sm:$0xff]  ;;  %6138 = vmatpush.msrb.mxu3 %v4953_v44 }
 0x526   :  { %v4805_v47 = vld [vmem:[#allocation13 + $0x12d8] sm:$0xff]  ;;  %6089 = vmatpush.msra.mxu1 %v4717_v20  ;;  %v5732_v20 = vadd.f32 %v5731_v54, %v5712_v11 }
 0x527   :  { %v4885_v62 = vld [vmem:[#allocation13 + $0x1558] sm:$0xff]  ;;  %6103 = vmatpush.msrb.mxu2 %v4805_v47  ;;  %6090 = vmatmul.f32.vlgmr.msra.gmra.mxu1 %v11157_v18  ;;  %v5771_v47 = vpop.f32.mrf.mxu2 }
 0x528   :  { %v4949_v2 = vld [vmem:[#allocation13 + $0x1758] sm:$0xff]  ;;  %6119 = vmatpush.msra.mxu0 %v4885_v62 }
 0x529   :  { %v5033_v60 = vld [vmem:[#allocation13 + $0x19f8] sm:$0xff]  ;;  %6139 = vmatpush.msrb.mxu3 %v4949_v2 }
 0x52a   :  { %v4801_v59 = vld [vmem:[#allocation13 + $0x12b8] sm:$0xff]  ;;  %6154 = vmatpush.msrb.mxu1 %v5033_v60 }
 0x52b   :  { %v4881_v25 = vld [vmem:[#allocation13 + $0x1538] sm:$0xff]  ;;  %6104 = vmatpush.msrb.mxu2 %v4801_v59  ;;  %v5791_v59 = vpop.f32.mrf.mxu0 }
 0x52c   :  { %v4945_v33 = vld [vmem:[#allocation13 + $0x1738] sm:$0xff]  ;;  %6120 = vmatpush.msra.mxu0 %v4881_v25  ;;  %v5811_v25 = vpop.f32.mrf.mxu3 }
 0x52d   :  { %v5029_v49 = vld [vmem:[#allocation13 + $0x19d8] sm:$0xff]  ;;  %6140 = vmatpush.msrb.mxu3 %v4945_v33 }
 0x52e   :  { %v4797_v48 = vld [vmem:[#allocation13 + $0x1298] sm:$0xff]  ;;  %6155 = vmatpush.msrb.mxu1 %v5029_v49 }
 0x52f   :  { %v4877_v53 = vld [vmem:[#allocation13 + $0x1518] sm:$0xff]  ;;  %6105 = vmatpush.msrb.mxu2 %v4797_v48 }
 0x530   :  { %v4941_v9 = vld [vmem:[#allocation13 + $0x1718] sm:$0xff]  ;;  %6121 = vmatpush.msra.mxu0 %v4877_v53  ;;  %v5851_v53 = vpop.f32.mrf.mxu2 }
 0x531   :  { %v5025_v35 = vld [vmem:[#allocation13 + $0x19b8] sm:$0xff]  ;;  %6141 = vmatpush.msrb.mxu3 %v4941_v9 }
 0x532   :  { %v4793_v34 = vld [vmem:[#allocation13 + $0x1278] sm:$0xff]  ;;  %6156 = vmatpush.msrb.mxu1 %v5025_v35 }
 0x533   :  { %v4873_v0 = vld [vmem:[#allocation13 + $0x14f8] sm:$0xff]  ;;  %6106 = vmatpush.msrb.mxu2 %v4793_v34  ;;  %v5871_v35 = vpop.f32.mrf.mxu0 }
 0x534   :  { %v4937_v36 = vld [vmem:[#allocation13 + $0x16f8] sm:$0xff]  ;;  %6122 = vmatpush.msra.mxu0 %v4873_v0  ;;  %v5891_v0 = vpop.f32.mrf.mxu3 }
 0x535   :  { %v5021_v52 = vld [vmem:[#allocation13 + $0x1998] sm:$0xff]  ;;  %6142 = vmatpush.msrb.mxu3 %v4937_v36 }
 0x536   :  { %v4789_v51 = vld [vmem:[#allocation13 + $0x1258] sm:$0xff]  ;;  %6157 = vmatpush.msrb.mxu1 %v5021_v52 }
 0x537   :  { %v4869_v18 = vld [vmem:[#allocation13 + $0x14d8] sm:$0xff]  ;;  %6107 = vmatpush.msrb.mxu2 %v4789_v51 }
 0x538   :  { %v4933_v40 = vld [vmem:[#allocation13 + $0x16d8] sm:$0xff]  ;;  %6123 = vmatpush.msra.mxu0 %v4869_v18 }
 0x539   :  { %v5017_v28 = vld [vmem:[#allocation13 + $0x1978] sm:$0xff]  ;;  %6143 = vmatpush.msrb.mxu3 %v4933_v40 }
 0x53a   :  { %v4785_v6 = vld [vmem:[#allocation13 + $0x1238] sm:$0xff]  ;;  %6158 = vmatpush.msrb.mxu1 %v5017_v28 }
 0x53b   :  { %v4865_v32 = vld [vmem:[#allocation13 + $0x14b8] sm:$0xff]  ;;  %6108 = vmatpush.msrb.mxu2 %v4785_v6 }
 0x53c   :  { %v4929_v56 = vld [vmem:[#allocation13 + $0x16b8] sm:$0xff]  ;;  %6124 = vmatpush.msra.mxu0 %v4865_v32 }
 0x53d   :  { %v5013_v58 = vld [vmem:[#allocation13 + $0x1958] sm:$0xff]  ;;  %6144 = vmatpush.msrb.mxu3 %v4929_v56 }
 0x53e   :  { %v4781_v7 = vld [vmem:[#allocation13 + $0x1218] sm:$0xff]  ;;  %6159 = vmatpush.msrb.mxu1 %v5013_v58 }
 0x53f   :  { %v4861_v23 = vld [vmem:[#allocation13 + $0x1498] sm:$0xff]  ;;  %6109 = vmatpush.msrb.mxu2 %v4781_v7 }
 0x540   :  { %v4925_v45 = vld [vmem:[#allocation13 + $0x1698] sm:$0xff]  ;;  %6125 = vmatpush.msra.mxu0 %v4861_v23  ;;  %6110 = vmatmul.f32.vlgmr.msrb.gmra.mxu2 %v11161_v29  ;;  %v6197_v23 = vld [vmem:[#allocation7 + $0x10] sm:$0xff] }
 0x541   :  { %v5009_v63 = vld [vmem:[#allocation13 + $0x1938] sm:$0xff]  ;;  %6145 = vmatpush.msrb.mxu3 %v4925_v45 }
 0x542   :  { %v5057_v13 = vld [vmem:[#allocation13 + $0x1ab8] sm:$0x7]  ;;  %6160 = vmatpush.msrb.mxu1 %v5009_v63 }
 0x543   :  { %v4857_v14 = vld [vmem:[#allocation13 + $0x1478] sm:$0xff]  ;;  %8406 = vmatpush.msk.msra.mxu2 %vm433_vm1, %v5057_v13 }
 0x544   :  { %v4921_v55 = vld [vmem:[#allocation13 + $0x1678] sm:$0xff]  ;;  %6126 = vmatpush.msra.mxu0 %v4857_v14 }
 0x545   :  { %v5005_v30 = vld [vmem:[#allocation13 + $0x1918] sm:$0xff]  ;;  %6146 = vmatpush.msrb.mxu3 %v4921_v55  ;;  %v6205_v18 = vpop.permute.xlu0 %6204 }
 0x546   :  { %v5053_v16 = vld [vmem:[#allocation13 + $0x1a98] sm:$0xff]  ;;  %6161 = vmatpush.msrb.mxu1 %v5005_v30 }
 0x547   :  { %v4853_v8 = vld [vmem:[#allocation13 + $0x1458] sm:$0xff]  ;;  %6185 = vmatpush.msra.mxu2 %v5053_v16 }
 0x548   :  { %v4917_v43 = vld [vmem:[#allocation13 + $0x1658] sm:$0xff]  ;;  %6127 = vmatpush.msra.mxu0 %v4853_v8  ;;  %v6198_v8 = vld [vmem:[#allocation7 + $0x18] sm:$0x3] }
 0x549   :  { %v5001_v12 = vld [vmem:[#allocation13 + $0x18f8] sm:$0xff]  ;;  %6147 = vmatpush.msrb.mxu3 %v4917_v43 }
 0x54a   :  { %v5049_v37 = vld [vmem:[#allocation13 + $0x1a78] sm:$0xff]  ;;  %6162 = vmatpush.msrb.mxu1 %v5001_v12 }
 0x54b   :  { %v4849_v31 = vld [vmem:[#allocation13 + $0x1438] sm:$0xff]  ;;  %6186 = vmatpush.msra.mxu2 %v5049_v37 }
 0x54c   :  { %v4913_v26 = vld [vmem:[#allocation13 + $0x1638] sm:$0xff]  ;;  %6128 = vmatpush.msra.mxu0 %v4849_v31  ;;  %v5951_v58 = vpop.f32.mrf.mxu2 }
 0x54d   :  { %v4997_v4 = vld [vmem:[#allocation13 + $0x18d8] sm:$0xff]  ;;  %6148 = vmatpush.msrb.mxu3 %v4913_v26  ;;  %v6380_v6 = vpop.permute.xlu0 %6379 }
 0x54e   :  { %v5045_v29 = vld [vmem:[#allocation13 + $0x1a58] sm:$0xff]  ;;  %6163 = vmatpush.msrb.mxu1 %v4997_v4  ;;  %v5971_v45 = vpop.f32.mrf.mxu0 }
 0x54f   :  { %v4845_v1 = vld [vmem:[#allocation13 + $0x1418] sm:$0xff]  ;;  %6187 = vmatpush.msra.mxu2 %v5045_v29 }
 0x550   :  { %v4909_v39 = vld [vmem:[#allocation13 + $0x1618] sm:$0xff]  ;;  %6129 = vmatpush.msra.mxu0 %v4845_v1 }
 0x551   :  { %v4993_v24 = vld [vmem:[#allocation13 + $0x18b8] sm:$0xff]  ;;  %6149 = vmatpush.msrb.mxu3 %v4909_v39  ;;  %6130 = vmatmul.f32.vlgmr.msra.gmra.mxu0 %v11163_v3  ;;  %v11303_v39 = vld [vmem:[#allocation7 + $0x8] sm:$0x3] }
 0x552   :  { %v5041_v57 = vld [vmem:[#allocation13 + $0x1a38] sm:$0xff]  ;;  %6150 = vmatmul.f32.vlgmr.msrb.gmra.mxu3 %v11127_v10  ;;  %6164 = vmatpush.msrb.mxu1 %v4993_v24  ;;  %v5751_v10 = vpop.f32.mrf.mxu1  ;;  %v11305_v24 = vld [vmem:[#allocation7 + $0x28] sm:$0x3] }
 0x553   :  { %v4989_v61 = vld [vmem:[#allocation13 + $0x1898] sm:$0xff]  ;;  %6188 = vmatpush.msra.mxu2 %v5041_v57  ;;  %8417 = vmatpush.msk.msrb.mxu0 %vm6217_vm11, %v11215_v41  ;;  %v5752_v2 = vadd.f32 %v5751_v10, %v5732_v20 }
 0x554   :  { %v5037_v5 = vld [vmem:[#allocation13 + $0x1a18] sm:$0xff]  ;;  %6165 = vmatpush.msrb.mxu1 %v4989_v61 }
 0x555   :  { %v4985_v17 = vld [vmem:[#allocation13 + $0x1878] sm:$0xff]  ;;  %6189 = vmatpush.msra.mxu2 %v5037_v5  ;;  %v5772_v60 = vadd.f32 %v5771_v47, %v5752_v2  ;;  %v5991_v63 = vpop.f32.mrf.mxu3 }
 0x556   :  { %v4981_v44 = vld [vmem:[#allocation13 + $0x1858] sm:$0xff]  ;;  %8407 = vmatmul.msk.f32.vlgmr.msra.gmra.mxu2 %vm5058_vm10, %v11176_v50  ;;  %6166 = vmatpush.msrb.mxu1 %v4985_v17  ;;  %vm7677_vm10 = vcmask 97280  }
 0x557   :  { %v4977_v3 = vld [vmem:[#allocation13 + $0x1838] sm:$0xff]  ;;  %v5792_v33 = vadd.f32 %v5791_v59, %v5772_v60 }
 0x558   :  { %6167 = vmatpush.msrb.mxu1 %v4981_v44  ;;  %v4973_v62 = vld [vmem:[#allocation13 + $0x1818] sm:$0xff] }
 0x559   :  { %v5812_v49 = vadd.f32 %v5811_v25, %v5792_v33  ;;  %v6194_v26 = vld [vmem:[#allocation7] sm:$0xff]  ;;  %v6473_v33 = vld [vmem:[#allocation7 + $0x30] sm:$0xff] }
 0x55a   :  { %6168 = vmatpush.msrb.mxu1 %v4977_v3  ;;  %v5831_v48 = vpop.f32.mrf.mxu1  ;;  %v11298_v4 = vld [vmem:[#allocation7 + $0x20] sm:$0xff]  ;;  %8418 = vmatmul.msk.f32.vlgmr.msrb.gmra.mxu0 %vm6210_vm12, %v6194_v26 }
 0x55b   :  { %v5832_v9 = vadd.f32 %v5831_v48, %v5812_v49 }
 0x55c   :  { %6169 = vmatpush.msrb.mxu1 %v4973_v62 }
 0x55d   :  { %6170 = vmatmul.f32.vlgmr.msrb.gmra.mxu1 %v11191_v27  ;;  %v5852_v50 = vadd.f32 %v5851_v53, %v5832_v9  ;;  %v6203_v27 = vpop.permute.xlu2 %6202 }
 0x55e   :  { %v6208_v40 = vsel %vm415_vm0, %v6203_v27, %v6205_v18 }
 0x55f   :  { %v5872_v34 = vadd.f32 %v5871_v35, %v5852_v50  ;;  %8408 = vmatpush.msk.msrb.mxu2 %vm6217_vm11, %v6208_v40 }
 0x560   :  { %8409 = vmatmul.msk.f32.vlgmr.msrb.gmra.mxu2 %vm6210_vm12, %v6197_v23 }
 0x561   :  { %v5892_v36 = vadd.f32 %v5891_v0, %v5872_v34  ;;  %v6474_v0 = vld [vmem:[#allocation7 + $0x38] sm:$0x3] }
 0x562   :  { %v5911_v52 = vpop.f32.mrf.mxu1  ;;  %8419 = vmatmul.msk.f32.gmra.mxu0 %vm6210_vm12, %v11303_v39 }
 0x563   :  { %v11259_v51 = vadd.f32 %v5911_v52, %v5892_v36 }
 0x565   :  { %6206 = vrot.lane.b32.xlu1 %v11259_v51, %s9196_s14  ;;  %6381 = vrot.lane.b32.xlu0 %v11259_v51, %s9197_s19  ;;  %v6378_v28 = vpop.permute.xlu2 %6377 }
 0x566   :  { %6677 = vrot.lane.b32.xlu2 %v11259_v51, %s9207_s18  ;;  %v6383_v32 = vsel %vm1145_vm3, %v6378_v28, %v6380_v6 }
 0x567   :  { %8426 = vmatpush.msk.msra.mxu1 %vm6217_vm11, %v6383_v32 }
 0x568   :  { %8410 = vmatmul.msk.f32.gmra.mxu2 %vm6210_vm12, %v6198_v8  ;;  %8427 = vmatmul.msk.f32.vlgmr.msra.gmra.mxu1 %vm6210_vm12, %v11298_v4 }
 0x56a   :  { %v5931_v56 = vpop.f32.mrf.mxu1 }
 0x56b   :  { %v5952_v7 = vadd.f32 %v5951_v58, %v5931_v56  ;;  %v6573_v56 = vld [vmem:[#allocation7 + $0x48] sm:$0x3]  ;;  %v6672_v58 = vld [vmem:[#allocation7 + $0x58] sm:$0x3] }
 0x56d   :  { %6578 = vrot.lane.b32.xlu0 %v11259_v51, %s9206_s4  ;;  %6475 = vrot.lane.b32.xlu1 %v11215_v41, %s9205_s23  ;;  %v5972_v13 = vadd.f32 %v5971_v45, %v5952_v7  ;;  %v6478_v19 = vpop.permute.xlu2 %6477 }
 0x56e   :  { %6773 = vrot.lane.b32.xlu2 %v11215_v41, %s9208_s28 }
 0x56f   :  { %v5992_v55 = vadd.f32 %v5991_v63, %v5972_v13  ;;  %v6771_v63 = vld [vmem:[#allocation7 + $0x68] sm:$0x3]  ;;  %v6873_v13 = vld [vmem:[#allocation7 + $0x70] sm:$0xff] }
 0x570   :  { %8428 = vmatmul.msk.f32.gmra.mxu1 %vm6210_vm12, %v11305_v24 }
 0x572   :  { %v6011_v14 = vpop.f32.mrf.mxu1 }
 0x573   :  { %v6012_v16 = vadd.f32 %v6011_v14, %v5992_v55  ;;  %v6874_v14 = vld [vmem:[#allocation7 + $0x78] sm:$0x3] }
 0x575   :  { %6673 = vrot.lane.b32.xlu0 %v11215_v41, %s9207_s18  ;;  %6479 = vrot.lane.b32.xlu1 %v11259_v51, %s9205_s23  ;;  %v6577_v11 = vpop.permute.xlu2 %6576 }
 0x576   :  { %6877 = vrot.lane.b32.xlu2 %v11235_v15, %s9209_s17 }
 0x57d   :  { %6775 = vrot.lane.b32.xlu0 %v11235_v15, %s9208_s28  ;;  %6574 = vrot.lane.b32.xlu1 %v11215_v41, %s9206_s4 }
 0x57e   :  { %6879 = vrot.lane.b32.xlu2 %v11259_v51, %s9209_s17 }
 0x583   :  { %v6031_v30 = vpop.f32.mrf.mxu2 }
 0x584   :  { %v6032_v43 = vadd.f32 %v6031_v30, %v6012_v16 }
 0x585   :  { %6777 = vrot.lane.b32.xlu0 %v11259_v51, %s9208_s28  ;;  %6675 = vrot.lane.b32.xlu1 %v11235_v15, %s9207_s18 }
 0x58d   :  { %6979 = vrot.lane.b32.xlu0 %v11235_v15, %s9198_s2  ;;  %6875 = vrot.lane.b32.xlu1 %v11215_v41, %s9209_s17 }
 0x58e   :  { %v6051_v12 = vpop.f32.mrf.mxu0 }
 0x58f   :  { %v6052_v46 = vadd.f32 %v6051_v12, %v6032_v43  ;;  %v7076_v43 = vld [vmem:[#allocation9 + $0x8] sm:$0x3] }
 0x595   :  { %6977 = vrot.lane.b32.xlu0 %v11215_v41, %s9198_s2  ;;  %v6071_v41 = vpop.f32.mrf.mxu3 }
 0x596   :  { %v6072_v31 = vadd.f32 %v6071_v41, %v6052_v46 }
 0x59d   :  { %7084 = vperm.xlu0 %8661, %v7076_v43  }
 0x5a4   :  { %v6091_v37 = vpop.f32.mrf.mxu1 }
 0x5a5   :  { %v6092_v21 = vadd.f32 %v6091_v37, %v6072_v31 }
 0x5c0   :  { %v6678_v47 = vpop.permute.xlu2 %6677 }
 0x5c3   :  { %v6111_v38 = vpop.f32.mrf.mxu2 }
 0x5c4   :  { %v6112_v29 = vadd.f32 %v6111_v38, %v6092_v21 }
 0x5c8   :  { %v6774_v59 = vpop.permute.xlu2 %6773 }
 0x5ce   :  { %v6131_v1 = vpop.f32.mrf.mxu0 }
 0x5cf   :  { %v6132_v57 = vadd.f32 %v6131_v1, %v6112_v29 }
 0x5d0   :  { %v6878_v53 = vpop.permute.xlu2 %6877 }
 0x5d5   :  { %v6151_v22 = vpop.f32.mrf.mxu3 }
 0x5d6   :  { %v6152_v42 = vadd.f32 %v6151_v22, %v6132_v57  ;;  %v6975_v22 = vld [vmem:[#allocation7 + $0x80] sm:$0xff] }
 0x5d7   :  { %v6207_v44 = vpop.permute.xlu1 %6206  ;;  %v6382_v20 = vpop.permute.xlu0 %6381 }
 0x5d8   :  { %v6209_v3 = vsel %vm415_vm0, %v6205_v18, %v6207_v44  ;;  %v6384_v10 = vsel %vm1145_vm3, %v6380_v6, %v6382_v20  ;;  %8414 = vmatpush.msk.msra.mxu3 %vm6217_vm11, %v6207_v44  ;;  %vm6883_vm3 = vcmask 809984   ;;  %v6880_v27 = vpop.permute.xlu2 %6879  ;;  %v6671_v6 = vld [vmem:[#allocation7 + $0x50] sm:$0xff]  ;;  %v6322_v12 = vpop.f32.mrf.mxu0 }
 0x5d9   :  { %v6191_v54 = vpop.f32.mrf.mxu2  ;;  %8411 = vmatpush.msk.msra.mxu2 %vm6217_vm11, %v6209_v3  ;;  %8415 = vmatmul.msk.f32.vlgmr.msra.gmra.mxu3 %vm6210_vm12, %v6197_v23  ;;  %v6885_v32 = vsel %vm6883_vm3, %v6878_v53, %v6880_v27 }
 0x5da   :  { %v6171_v61 = vpop.f32.mrf.mxu1  ;;  %8423 = vmatpush.msk.msrb.mxu3 %vm6217_vm11, %v11259_v51  ;;  %8429 = vmatpush.msk.msra.mxu0 %vm6217_vm11, %v6384_v10 }
 0x5db   :  { %v6172_v5 = vadd.f32 %v6171_v61, %v6152_v42  ;;  %8412 = vmatmul.msk.f32.vlgmr.msra.gmra.mxu2 %vm6210_vm12, %v6197_v23  ;;  %8430 = vmatmul.msk.f32.vlgmr.msra.gmra.mxu0 %vm6210_vm12, %v11298_v4  ;;  %v6770_v23 = vld [vmem:[#allocation7 + $0x60] sm:$0xff]  ;;  %v7075_v42 = vld [vmem:[#allocation9] sm:$0xff] }
 0x5dc   :  { %8420 = vmatpush.msk.msrb.mxu2 %vm6217_vm11, %v11235_v15 }
 0x5dd   :  { %v6192_v17 = vadd.f32 %v6191_v54, %v6172_v5  ;;  %v6976_v5 = vld [vmem:[#allocation7 + $0x88] sm:$0x3] }
 0x5de   :  { %8432 = vmatpush.msk.msra.mxu2 %vm6217_vm11, %v6382_v20 }
 0x5df   :  { %6779 = vrot.lane.b32.xlu1 %v6192_v17, %s9208_s28  ;;  %6881 = vrot.lane.b32.xlu2 %v6192_v17, %s9209_s17  ;;  %v6579_v62 = vpop.permute.xlu0 %6578  ;;  %v6476_v2 = vpop.permute.xlu1 %6475 }
 0x5e0   :  { %v6482_v60 = vsel %vm6481_vm13, %v6476_v2, %v6478_v19  ;;  %v6582_v48 = vsel %vm6580_vm14, %v6577_v11, %v6579_v62  ;;  %v6325_v29 = vpop.f32.mrf.mxu0 }
 0x5e1   :  { %8416 = vmatmul.msk.f32.gmra.mxu3 %vm6210_vm12, %v6198_v8 }
 0x5e2   :  { %8435 = vmatpush.msk.msra.mxu3 %vm6217_vm11, %v6482_v60 }
 0x5e3   :  { %8413 = vmatmul.msk.f32.gmra.mxu2 %vm6210_vm12, %v6198_v8  ;;  %8431 = vmatmul.msk.f32.gmra.mxu0 %vm6210_vm12, %v11305_v24  ;;  %v6241_v8 = vpop.f32.mrf.mxu2 }
 0x5e4   :  { %v6323_v41 = vadd.f32 %v6322_v12, %v6241_v8 }
 0x5e5   :  { %v6414_v46 = vpop.f32.mrf.mxu1 }
 0x5e6   :  { %v11398_v37 = vadd.f32 %v6414_v46, %v6323_v41 }
 0x5e7   :  { %6981 = vrot.lane.b32.xlu1 %v11259_v51, %s9198_s2  ;;  %v6674_v15 = vpop.permute.xlu0 %6673  ;;  %v6480_v25 = vpop.permute.xlu1 %6479  ;;  %v6572_v51 = vld [vmem:[#allocation7 + $0x40] sm:$0xff]  ;;  %7079 = vperm.xlu2 %8660, %v7075_v42  }
 0x5e8   :  { %v6483_v49 = vsel %vm6481_vm13, %v6478_v19, %v6480_v25  ;;  %8441 = vmatpush.msk.msrb.mxu0 %vm6217_vm11, %v6480_v25 }
 0x5e9   :  { %8424 = vmatmul.msk.f32.vlgmr.msrb.gmra.mxu3 %vm6210_vm12, %v6194_v26  ;;  %8438 = vmatpush.msk.msrb.mxu1 %vm6217_vm11, %v6483_v49 }
 0x5ea   :  { %8447 = vmatpush.msk.msrb.mxu3 %vm6217_vm11, %v6582_v48  ;;  %8439 = vmatmul.msk.f32.vlgmr.msrb.gmra.mxu1 %vm6210_vm12, %v6473_v33 }
 0x5eb   :  { %8421 = vmatmul.msk.f32.vlgmr.msrb.gmra.mxu2 %vm6210_vm12, %v6194_v26  ;;  %8450 = vmatpush.msk.msra.mxu1 %vm6217_vm11, %v6579_v62  ;;  %v6244_v21 = vpop.f32.mrf.mxu2 }
 0x5ec   :  { %8442 = vmatmul.msk.f32.vlgmr.msrb.gmra.mxu0 %vm6210_vm12, %v6473_v33  ;;  %v6326_v1 = vadd.f32 %v6325_v29, %v6244_v21 }
 0x5ed   :  { %v6417_v19 = vpop.f32.mrf.mxu1 }
 0x5ef   :  { %6983 = vrot.lane.b32.xlu1 %v6192_v17, %s9198_s2  ;;  %v6776_v9 = vpop.permute.xlu0 %6775  ;;  %v6575_v50 = vpop.permute.xlu1 %6574  ;;  %s9210_s2 = smov 116  }
 0x5f0   :  { %v6782_v35 = vsel %vm6781_vm15, %v6774_v59, %v6776_v9  ;;  %v6581_v34 = vsel %vm6580_vm14, %v6575_v50, %v6577_v11 }
 0x5f1   :  { %8425 = vmatmul.msk.f32.gmra.mxu3 %vm6210_vm12, %v11303_v39  ;;  %8444 = vmatpush.msk.msrb.mxu2 %vm6217_vm11, %v6581_v34 }
 0x5f2   :  { %8462 = vmatpush.msk.msrb.mxu1 %vm6217_vm11, %v6782_v35 }
 0x5f3   :  { %8422 = vmatmul.msk.f32.gmra.mxu2 %vm6210_vm12, %v11303_v39  ;;  %8440 = vmatmul.msk.f32.gmra.mxu1 %vm6210_vm12, %v6474_v0  ;;  %v6469_v39 = vadd.f32 %v6417_v19, %v6326_v1 }
 0x5f4   :  { %8443 = vmatmul.msk.f32.gmra.mxu0 %vm6210_vm12, %v6474_v0 }
 0x5f7   :  { %v11356_v36 = vpop.permute.xlu0 %6777  ;;  %v6676_v52 = vpop.permute.xlu1 %6675 }
 0x5f8   :  { %v6783_v18 = vsel %vm6781_vm15, %v6776_v9, %v11356_v36  ;;  %v6680_v40 = vsel %vm6679_vm2, %v6674_v15, %v6676_v52  ;;  %v6681_v28 = vsel %vm6679_vm2, %v6676_v52, %v6678_v47 }
 0x5f9   :  { %8436 = vmatmul.msk.f32.vlgmr.msra.gmra.mxu3 %vm6210_vm12, %v6473_v33  ;;  %8453 = vmatpush.msk.msra.mxu0 %vm6217_vm11, %v6680_v40 }
 0x5fa   :  { %8459 = vmatpush.msk.msra.mxu3 %vm6217_vm11, %v6678_v47 }
 0x5fb   :  { %8433 = vmatmul.msk.f32.vlgmr.msra.gmra.mxu2 %vm6210_vm12, %v11298_v4  ;;  %8451 = vmatmul.msk.f32.vlgmr.msra.gmra.mxu1 %vm6210_vm12, %v6572_v51 }
 0x5fc   :  { %8456 = vmatpush.msk.msra.mxu2 %vm6217_vm11, %v6681_v28  ;;  %8465 = vmatpush.msk.msrb.mxu0 %vm6217_vm11, %v6783_v18 }
 0x5fd   :  { %8474 = vmatpush.msk.msra.mxu1 %vm6217_vm11, %v6885_v32  ;;  %8454 = vmatmul.msk.f32.vlgmr.msra.gmra.mxu0 %vm6210_vm12, %v6671_v6 }
 0x5ff   :  { %v6876_v7 = vpop.permute.xlu1 %6875  ;;  %v6980_v16 = vpop.permute.xlu0 %6979 }
 0x600   :  { %v6884_v45 = vsel %vm6883_vm3, %v6876_v7, %v6878_v53 }
 0x601   :  { %8437 = vmatmul.msk.f32.gmra.mxu3 %vm6210_vm12, %v6474_v0 }
 0x603   :  { %8434 = vmatmul.msk.f32.gmra.mxu2 %vm6210_vm12, %v11305_v24  ;;  %8452 = vmatmul.msk.f32.gmra.mxu1 %vm6210_vm12, %v6573_v56 }
 0x605   :  { %8455 = vmatmul.msk.f32.gmra.mxu0 %vm6210_vm12, %v6672_v58 }
 0x607   :  { %v6978_v31 = vpop.permute.xlu0 %6977 }
 0x608   :  { %v6985_v38 = vsel %vm1552_vm4, %v6978_v31, %v6980_v16 }
 0x609   :  { %8448 = vmatmul.msk.f32.vlgmr.msrb.gmra.mxu3 %vm6210_vm12, %v6572_v51 }
 0x60a   :  { %8471 = vmatpush.msk.msrb.mxu3 %vm6217_vm11, %v6884_v45 }
 0x60b   :  { %8445 = vmatmul.msk.f32.vlgmr.msrb.gmra.mxu2 %vm6210_vm12, %v6572_v51  ;;  %8463 = vmatmul.msk.f32.vlgmr.msrb.gmra.mxu1 %vm6210_vm12, %v6770_v23 }
 0x60d   :  { %8466 = vmatmul.msk.f32.vlgmr.msrb.gmra.mxu0 %vm6210_vm12, %v6770_v23 }
 0x611   :  { %8449 = vmatmul.msk.f32.gmra.mxu3 %vm6210_vm12, %v6573_v56 }
 0x613   :  { %8446 = vmatmul.msk.f32.gmra.mxu2 %vm6210_vm12, %v6573_v56  ;;  %8464 = vmatmul.msk.f32.gmra.mxu1 %vm6210_vm12, %v6771_v63 }
 0x615   :  { %8467 = vmatmul.msk.f32.gmra.mxu0 %vm6210_vm12, %v6771_v63 }
 0x619   :  { %8460 = vmatmul.msk.f32.vlgmr.msra.gmra.mxu3 %vm6210_vm12, %v6671_v6 }
 0x61b   :  { %8457 = vmatmul.msk.f32.vlgmr.msra.gmra.mxu2 %vm6210_vm12, %v6671_v6  ;;  %8475 = vmatmul.msk.f32.vlgmr.msra.gmra.mxu1 %vm6210_vm12, %v6873_v13 }
 0x621   :  { %8461 = vmatmul.msk.f32.gmra.mxu3 %vm6210_vm12, %v6672_v58 }
 0x623   :  { %8458 = vmatmul.msk.f32.gmra.mxu2 %vm6210_vm12, %v6672_v58  ;;  %8476 = vmatmul.msk.f32.gmra.mxu1 %vm6210_vm12, %v6874_v14 }
 0x629   :  { %8472 = vmatmul.msk.f32.vlgmr.msrb.gmra.mxu3 %vm6210_vm12, %v6873_v13 }
 0x631   :  { %8473 = vmatmul.msk.f32.gmra.mxu3 %vm6210_vm12, %v6874_v14 }
 0x639   :  { %v6882_v55 = vpop.permute.xlu2 %6881 }
 0x63a   :  { %v6886_v30 = vsel %vm6883_vm3, %v6880_v27, %v6882_v55 }
 0x63b   :  { %8477 = vmatpush.msk.msra.mxu0 %vm6217_vm11, %v6886_v30 }
 0x63c   :  { %8478 = vmatmul.msk.f32.vlgmr.msra.gmra.mxu0 %vm6210_vm12, %v6873_v13 }
 0x644   :  { %8479 = vmatmul.msk.f32.gmra.mxu0 %vm6210_vm12, %v6874_v14 }
 0x651   :  { %v6780_v26 = vpop.permute.xlu1 %6779 }
 0x652   :  { %v6784_v4 = vsel %vm6781_vm15, %v11356_v36, %v6780_v26 }
 0x653   :  { %8468 = vmatpush.msk.msrb.mxu2 %vm6217_vm11, %v6784_v4 }
 0x654   :  { %8469 = vmatmul.msk.f32.vlgmr.msrb.gmra.mxu2 %vm6210_vm12, %v6770_v23 }
 0x655   :  { %8480 = vmatpush.msk.msra.mxu2 %vm6217_vm11, %v6985_v38 }
 0x658   :  { %v6437_v47 = vpop.f32.mrf.mxu0 }
 0x659   :  { %v6982_v24 = vpop.permute.xlu1 %6981 }
 0x65a   :  { %v6986_v57 = vsel %vm1552_vm4, %v6980_v16, %v6982_v24 }
 0x65b   :  { %8483 = vmatpush.msk.msra.mxu3 %vm6217_vm11, %v6986_v57 }
 0x65c   :  { %8470 = vmatmul.msk.f32.gmra.mxu2 %vm6210_vm12, %v6771_v63  ;;  %8484 = vmatmul.msk.f32.vlgmr.msra.gmra.mxu3 %vm6210_vm12, %v6975_v22  ;;  %v6287_v17 = vpop.f32.mrf.mxu3 }
 0x65e   :  { %v6264_v11 = vpop.f32.mrf.mxu2 }
 0x660   :  { %v6440_v49 = vpop.f32.mrf.mxu0 }
 0x661   :  { %v6984_v61 = vpop.permute.xlu1 %6983 }
 0x662   :  { %v6987_v54 = vsel %vm1552_vm4, %v6982_v24, %v6984_v61  ;;  %vm7233_vm4 = vcmask 744448  }
 0x663   :  { %8486 = vmatpush.msk.msrb.mxu1 %vm6217_vm11, %v6987_v54  ;;  %vm7695_vm11 = vcmask 1040384  }
 0x664   :  { %8481 = vmatmul.msk.f32.vlgmr.msra.gmra.mxu2 %vm6210_vm12, %v6975_v22  ;;  %8485 = vmatmul.msk.f32.gmra.mxu3 %vm6210_vm12, %v6976_v5  ;;  %v6290_v44 = vpop.f32.mrf.mxu3 }
 0x665   :  { %8487 = vmatmul.msk.f32.vlgmr.msrb.gmra.mxu1 %vm6210_vm12, %v6975_v22 }
 0x666   :  { %v6267_v20 = vpop.f32.mrf.mxu2 }
 0x667   :  { %v6536_v2 = vpop.f32.mrf.mxu1 }
 0x669   :  { %v6559_v36 = vpop.f32.mrf.mxu0 }
 0x66c   :  { %8482 = vmatmul.msk.f32.gmra.mxu2 %vm6210_vm12, %v6976_v5  ;;  %v6368_v3 = vpop.f32.mrf.mxu3 }
 0x66d   :  { %8488 = vmatmul.msk.f32.gmra.mxu1 %vm6210_vm12, %v6976_v5  ;;  %v6369_v55 = vadd.f32 %v6368_v3, %v6287_v17  ;;  %v7080_v3 = vpop.permute.xlu2 %7079  ;;  %vm7703_vm12 = vcmask 130048  }
 0x66e   :  { %v6345_v10 = vpop.f32.mrf.mxu2 }
 0x66f   :  { %v6346_v62 = vadd.f32 %v6345_v10, %v6264_v11 }
 0x670   :  { %v6539_v53 = vpop.f32.mrf.mxu1 }
 0x671   :  { %v6467_v60 = vadd.f32 %v6437_v47, %v6346_v62  ;;  %v6562_v27 = vpop.f32.mrf.mxu0 }
 0x673   :  { %v6566_v59 = vadd.f32 %v6536_v2, %v6467_v60 }
 0x674   :  { %v6371_v15 = vpop.f32.mrf.mxu3 }
 0x675   :  { %v6372_v41 = vadd.f32 %v6371_v15, %v6290_v44 }
 0x676   :  { %v6348_v25 = vpop.f32.mrf.mxu2 }
 0x677   :  { %v6349_v33 = vadd.f32 %v6348_v25, %v6267_v20 }
 0x678   :  { %v6658_v51 = vpop.f32.mrf.mxu1 }
 0x679   :  { %v6470_v48 = vadd.f32 %v6440_v49, %v6349_v33 }
 0x67a   :  { %v6711_v6 = vpop.f32.mrf.mxu0 }
 0x67b   :  { %v11417_v9 = vadd.f32 %v6539_v53, %v6470_v48 }
 0x67c   :  { %v6513_v50 = vpop.f32.mrf.mxu3 }
 0x67d   :  { %v6565_v1 = vadd.f32 %v6513_v50, %v11398_v37 }
 0x67e   :  { %v6460_v0 = vpop.f32.mrf.mxu2 }
 0x67f   :  { %v6468_v8 = vadd.f32 %v6460_v0, %v6369_v55  ;;  %v7085_v0 = vpop.permute.xlu0 %7084 }
 0x680   :  { %v6661_v28 = vpop.f32.mrf.mxu1 }
 0x681   :  { %v6567_v12 = vadd.f32 %v6559_v36, %v6468_v8 }
 0x682   :  { %v11423_v7 = vpop.f32.mrf.mxu0 }
 0x683   :  { %v6666_v26 = vadd.f32 %v6658_v51, %v6567_v12  ;;  %v7231_v12 = vld [vmem:[#allocation15 + $0x150] sm:$0xff] }
 0x684   :  { %v6516_v35 = vpop.f32.mrf.mxu3 }
 0x685   :  { %v11419_v34 = vadd.f32 %v6516_v35, %v6469_v39 }
 0x686   :  { %v6463_v52 = vpop.f32.mrf.mxu2 }
 0x687   :  { %v6471_v4 = vadd.f32 %v6463_v52, %v6372_v41  ;;  %v7230_v41 = vld [vmem:[#allocation15 + $0x148] sm:$0xff] }
 0x688   :  { %v6814_v58 = vpop.f32.mrf.mxu1 }
 0x689   :  { %v6570_v19 = vadd.f32 %v6562_v27, %v6471_v4  ;;  %v7226_v4 = vld [vmem:[#allocation15 + $0x128] sm:$0xff] }
 0x68a   :  { %v6837_v13 = vpop.f32.mrf.mxu0 }
 0x68b   :  { %v6669_v57 = vadd.f32 %v6661_v28, %v6570_v19  ;;  %v7204_v19 = vld [vmem:[#allocation15 + $0x78] sm:$0xff] }
 0x68c   :  { %v6635_v18 = vpop.f32.mrf.mxu3  ;;  %7243 = vmatpush.msrb.mxu0 %v7204_v19 }
 0x68d   :  { %v6665_v42 = vadd.f32 %v6635_v18, %v6566_v59 }
 0x68e   :  { %v6612_v40 = vpop.f32.mrf.mxu2 }
 0x68f   :  { %v6664_v24 = vadd.f32 %v6612_v40, %v6565_v1  ;;  %v7222_v1 = vld [vmem:[#allocation15 + $0x108] sm:$0xff] }
 0x690   :  { %v11425_v63 = vpop.f32.mrf.mxu1 }
 0x691   :  { %v6763_v17 = vadd.f32 %v6711_v6, %v6664_v24  ;;  %v7221_v24 = vld [vmem:[#allocation15 + $0x100] sm:$0xff] }
 0x692   :  { %v6840_v43 = vpop.f32.mrf.mxu0 }
 0x693   :  { %v6866_v2 = vadd.f32 %v6814_v58, %v6763_v17  ;;  %v7200_v17 = vld [vmem:[#allocation15 + $0x58] sm:$0xff] }
 0x694   :  { %v6638_v32 = vpop.f32.mrf.mxu3 }
 0x695   :  { %v6668_v48 = vadd.f32 %v6638_v32, %v11417_v9 }
 0x696   :  { %v11421_v56 = vpop.f32.mrf.mxu2 }
 0x697   :  { %v6667_v9 = vadd.f32 %v11421_v56, %v11419_v34 }
 0x698   :  { %v6939_v16 = vpop.f32.mrf.mxu1 }
 0x69c   :  { %v6757_v23 = vpop.f32.mrf.mxu3 }
 0x69d   :  { %v6765_v21 = vadd.f32 %v6757_v23, %v6666_v26  ;;  %v7227_v26 = vld [vmem:[#allocation15 + $0x130] sm:$0xff] }
 0x69e   :  { %v6734_v45 = vpop.f32.mrf.mxu2 }
 0x69f   :  { %v6764_v11 = vadd.f32 %v6734_v45, %v6665_v42  ;;  %v6766_v45 = vadd.f32 %v11423_v7, %v6667_v9  ;;  %v7202_v42 = vld [vmem:[#allocation15 + $0x68] sm:$0xff] }
 0x6a0   :  { %v6942_v38 = vpop.f32.mrf.mxu1  ;;  %v7206_v9 = vld [vmem:[#allocation15 + $0x88] sm:$0xff] }
 0x6a1   :  { %v6867_v60 = vadd.f32 %v6837_v13, %v6764_v11  ;;  %v6869_v34 = vadd.f32 %v11425_v63, %v6766_v45  ;;  %v7232_v63 = vld [vmem:[#allocation15 + $0x158] sm:$0x7] }
 0x6a2   :  { %8489 = vmatpush.msk.msrb.mxu3 %vm433_vm1, %v7232_v63  ;;  %v7216_v11 = vld [vmem:[#allocation15 + $0xd8] sm:$0xff] }
 0x6a3   :  { %v6969_v53 = vadd.f32 %v6939_v16, %v6867_v60  ;;  %v7212_v60 = vld [vmem:[#allocation15 + $0xb8] sm:$0xff] }
 0x6a4   :  { %v6760_v14 = vpop.f32.mrf.mxu3  ;;  %7294 = vmatpush.msrb.mxu3 %v7231_v12 }
 0x6a5   :  { %v6768_v44 = vadd.f32 %v6760_v14, %v6669_v57  ;;  %v7219_v57 = vld [vmem:[#allocation15 + $0xf0] sm:$0xff] }
 0x6a6   :  { %v6737_v30 = vpop.f32.mrf.mxu2  ;;  %7295 = vmatpush.msrb.mxu3 %v7230_v41 }
 0x6a7   :  { %v6767_v36 = vadd.f32 %v6737_v30, %v6668_v48  ;;  %v7193_v48 = vld [vmem:[#allocation15 + $0x20] sm:$0xff] }
 0x6a9   :  { %v6870_v40 = vadd.f32 %v6840_v43, %v6767_v36  ;;  %v7207_v36 = vld [vmem:[#allocation15 + $0x90] sm:$0xff] }
 0x6ab   :  { %v6972_v58 = vadd.f32 %v6942_v38, %v6870_v40  ;;  %v7225_v38 = vld [vmem:[#allocation15 + $0x120] sm:$0xff]  ;;  %v7190_v40 = vld [vmem:[#allocation15 + $0x8] sm:$0xff] }
 0x6ac   :  { %v6916_v31 = vpop.f32.mrf.mxu3 }
 0x6ad   :  { %v6968_v25 = vadd.f32 %v6916_v31, %v6866_v2  ;;  %v7228_v31 = vld [vmem:[#allocation15 + $0x138] sm:$0xff] }
 0x6ae   :  { %v7196_v2 = vld [vmem:[#allocation15 + $0x38] sm:$0xff] }
 0x6b4   :  { %v6919_v5 = vpop.f32.mrf.mxu3 }
 0x6b5   :  { %v6971_v30 = vadd.f32 %v6919_v5, %v6869_v34  ;;  %v7201_v5 = vld [vmem:[#allocation15 + $0x60] sm:$0xff] }
 0x6b9   :  { %v6962_v29 = vpop.f32.mrf.mxu0 }
 0x6c1   :  { %v6965_v62 = vpop.f32.mrf.mxu0 }
 0x6d7   :  { %v6860_v46 = vpop.f32.mrf.mxu2 }
 0x6d8   :  { %v6868_v39 = vadd.f32 %v6860_v46, %v6765_v21  ;;  %v7229_v46 = vld [vmem:[#allocation15 + $0x140] sm:$0xff]  ;;  %v7224_v21 = vld [vmem:[#allocation15 + $0x118] sm:$0xff] }
 0x6d9   :  { %7296 = vmatpush.msrb.mxu3 %v7229_v46 }
 0x6da   :  { %v6970_v61 = vadd.f32 %v6962_v29, %v6868_v39  ;;  %v7223_v29 = vld [vmem:[#allocation15 + $0x110] sm:$0xff]  ;;  %v7220_v39 = vld [vmem:[#allocation15 + $0xf8] sm:$0xff] }
 0x6db   :  { %7297 = vmatpush.msrb.mxu3 %v7228_v31  ;;  %7266 = vmatpush.msrb.mxu2 %v7220_v39 }
 0x6dd   :  { %7298 = vmatpush.msrb.mxu3 %v7227_v26  ;;  %7267 = vmatpush.msrb.mxu2 %v7219_v57 }
 0x6df   :  { %v6863_v22 = vpop.f32.mrf.mxu2  ;;  %v7040_v59 = vpop.f32.mrf.mxu3  ;;  %7299 = vmatpush.msrb.mxu3 %v7226_v4 }
 0x6e0   :  { %v6871_v10 = vadd.f32 %v6863_v22, %v6768_v44  ;;  %v7070_v52 = vadd.f32 %v7040_v59, %v6969_v53  ;;  %v7203_v22 = vld [vmem:[#allocation15 + $0x70] sm:$0xff]  ;;  %v7194_v59 = vld [vmem:[#allocation15 + $0x28] sm:$0xff]  ;;  %v7209_v53 = vld [vmem:[#allocation15 + $0xa0] sm:$0xff] }
 0x6e1   :  { %7300 = vmatpush.msrb.mxu3 %v7225_v38  ;;  %7244 = vmatpush.msrb.mxu0 %v7203_v22  ;;  %v7199_v44 = vld [vmem:[#allocation15 + $0x50] sm:$0xff] }
 0x6e2   :  { %v7063_v54 = vpop.f32.mrf.mxu1  ;;  %v6973_v33 = vadd.f32 %v6965_v62, %v6871_v10  ;;  %v11439_v28 = vadd.f32 %v7080_v3, %v7070_v52  ;;  %v7214_v10 = vld [vmem:[#allocation15 + $0xc8] sm:$0xff]  ;;  %v7213_v62 = vld [vmem:[#allocation15 + $0xc0] sm:$0xff] }
 0x6e3   :  { %v7071_v20 = vadd.f32 %v7063_v54, %v6970_v61  ;;  %7301 = vmatpush.msrb.mxu3 %v7224_v21  ;;  %v7218_v61 = vld [vmem:[#allocation15 + $0xe8] sm:$0xff]  ;;  %v7217_v54 = vld [vmem:[#allocation15 + $0xe0] sm:$0xff]  ;;  %7245 = vmatpush.msrb.mxu0 %v7202_v42 }
 0x6e4   :  { %v7094_v23 = vmax.f32 %v11439_v28, 0.0  ;;  %7268 = vmatpush.msrb.mxu2 %v7218_v61 }
 0x6e5   :  { %v7089_v47 = vadd.f32 %v7080_v3, %v7071_v20  ;;  %7302 = vmatpush.msrb.mxu3 %v7223_v29  ;;  %7246 = vmatpush.msrb.mxu0 %v7201_v5  ;;  %v7215_v20 = vld [vmem:[#allocation15 + $0xd0] sm:$0xff] }
 0x6e6   :  { %7269 = vmatpush.msrb.mxu2 %v7217_v54 }
 0x6e7   :  { %v11428_v37 = vmax.f32 %v7089_v47, 0.0  ;;  %v7017_v15 = vpop.f32.mrf.mxu2  ;;  %v7043_v32 = vpop.f32.mrf.mxu3  ;;  %7303 = vmatpush.msrb.mxu3 %v7222_v1  ;;  %7247 = vmatpush.msrb.mxu0 %v7200_v17  ;;  %v7197_v47 = vld [vmem:[#allocation15 + $0x40] sm:$0xff] }
 0x6e8   :  { %v7069_v50 = vadd.f32 %v7017_v15, %v6968_v25  ;;  %v7073_v13 = vadd.f32 %v7043_v32, %v6972_v58  ;;  %7270 = vmatpush.msrb.mxu2 %v7216_v11  ;;  %v7195_v25 = vld [vmem:[#allocation15 + $0x30] sm:$0xff]  ;;  %v7189_v32 = vld [vmem:[#allocation15] sm:$0xff] }
 0x6e9   :  { %7165 = vrot.lane.b32.xlu1 %v11428_v37, %s9206_s4  ;;  %7109 = vrot.lane.b32.xlu2 %v11428_v37, %s9196_s14  ;;  %v7205_v58 = vld [vmem:[#allocation15 + $0x80] sm:$0xff] }
 0x6ea   :  { %v7066_v49 = vpop.f32.mrf.mxu1  ;;  %v11435_v27 = vadd.f32 %v7080_v3, %v7069_v50  ;;  %v7091_v56 = vadd.f32 %v7085_v0, %v7073_v13  ;;  %7304 = vmatpush.msrb.mxu3 %v7221_v24  ;;  %7248 = vmatpush.msrb.mxu0 %v7199_v44  ;;  %v7198_v3 = vld [vmem:[#allocation15 + $0x48] sm:$0xff]  ;;  %v7192_v50 = vld [vmem:[#allocation15 + $0x18] sm:$0xff] }
 0x6eb   :  { %v7074_v35 = vadd.f32 %v7066_v49, %v6973_v33  ;;  %7271 = vmatpush.msrb.mxu2 %v7215_v20  ;;  %v7211_v33 = vld [vmem:[#allocation15 + $0xb0] sm:$0xff]  ;;  %v7210_v49 = vld [vmem:[#allocation15 + $0xa8] sm:$0xff] }
 0x6ec   :  { %v7093_v6 = vmax.f32 %v11435_v27, 0.0  ;;  %v11461_v16 = vmax.f32 %v7091_v56, 0.0  ;;  %7249 = vmatpush.msrb.mxu0 %v7198_v3 }
 0x6ed   :  { %v7092_v51 = vadd.f32 %v7085_v0, %v7074_v35  ;;  %7272 = vmatpush.msrb.mxu2 %v7214_v10  ;;  %v7208_v35 = vld [vmem:[#allocation15 + $0x98] sm:$0xff] }
 0x6ee   :  { %v8662_v14 = vpack.i.bf16 %v7093_v6, %v7094_v23  ;;  %7250 = vmatpush.msrb.mxu0 %v7197_v47 }
 0x6ef   :  { %v11437_v18 = vmax.f32 %v7092_v51, 0.0  ;;  %v7020_v55 = vpop.f32.mrf.mxu2  ;;  %7273 = vmatpush.msrb.mxu2 %v7213_v62 }
 0x6f0   :  { %v7072_v7 = vadd.f32 %v7020_v55, %v6971_v30  ;;  %7251 = vmatpush.msrb.mxu0 %v7196_v2 }
 0x6f1   :  { %7137 = vrot.lane.b32.xlu2 %v11428_v37, %s9205_s23  ;;  %7171 = vrot.lane.b32.xlu1 %v11437_v18, %s9206_s4 }
 0x6f2   :  { %7115 = vrot.lane.b32.xlu0 %v11437_v18, %s9196_s14  ;;  %v7090_v8 = vadd.f32 %v7085_v0, %v7072_v7  ;;  %7274 = vmatpush.msrb.mxu2 %v7212_v60  ;;  %v7191_v0 = vld [vmem:[#allocation15 + $0x10] sm:$0xff] }
 0x6f3   :  { %7252 = vmatpush.msrb.mxu0 %v7195_v25 }
 0x6f4   :  { %v11468_v43 = vmax.f32 %v7090_v8, 0.0  ;;  %7275 = vmatpush.msrb.mxu2 %v7211_v33 }
 0x6f5   :  { %7253 = vmatpush.msrb.mxu0 %v7194_v59 }
 0x6f6   :  { %7276 = vmatpush.msrb.mxu2 %v7210_v49 }
 0x6f7   :  { %7254 = vmatpush.msrb.mxu0 %v7193_v48 }
 0x6f8   :  { %7277 = vmatpush.msrb.mxu2 %v7209_v53 }
 0x6f9   :  { %7143 = vrot.lane.b32.xlu2 %v11437_v18, %s9205_s23  ;;  %8663 = vrot.lane.b32.xlu1 %v8662_v14, %s9196_s14 }
 0x6fa   :  { %8673 = vrot.lane.b32.xlu0 %v8662_v14, %s9206_s4  ;;  %7255 = vmatpush.msrb.mxu0 %v7192_v50 }
 0x6fb   :  { %7278 = vmatpush.msrb.mxu2 %v7208_v35 }
 0x6fc   :  { %7256 = vmatpush.msrb.mxu0 %v7191_v0 }
 0x6fd   :  { %7279 = vmatpush.msrb.mxu2 %v7207_v36 }
 0x6fe   :  { %7257 = vmatpush.msrb.mxu0 %v7190_v40 }
 0x6ff   :  { %7280 = vmatpush.msrb.mxu2 %v7206_v9 }
 0x700   :  { %7258 = vmatpush.msrb.mxu0 %v7189_v32 }
 0x701   :  { %7113 = vrot.lane.b32.xlu2 %v11461_v16, %s9196_s14  ;;  %8668 = vrot.lane.b32.xlu1 %v8662_v14, %s9205_s23 }
 0x702   :  { %7169 = vrot.lane.b32.xlu0 %v11461_v16, %s9206_s4  ;;  %7281 = vmatpush.msrb.mxu2 %v7205_v58  ;;  %v7314_v58 = vld [vmem:[#allocation10 + $0x4] sm:$0xf] }
 0x709   :  { %7111 = vrot.lane.b32.xlu2 %v11468_v43, %s9196_s14  ;;  %7141 = vrot.lane.b32.xlu1 %v11461_v16, %s9205_s23 }
 0x70a   :  { %7139 = vrot.lane.b32.xlu0 %v11468_v43, %s9205_s23 }
 0x711   :  { %7167 = vrot.lane.b32.xlu1 %v11468_v43, %s9206_s4 }
 0x743   :  { %v7110_v15 = vpop.permute.xlu2 %7109 }
 0x744   :  { %v7129_v51 = vmax.f32 %v11428_v37, %v7110_v15 }
 0x74b   :  { %v7138_v52 = vpop.permute.xlu2 %7137 }
 0x74c   :  { %v7157_v45 = vmax.f32 %v7129_v51, %v7138_v52 }
 0x753   :  { %v7144_v30 = vpop.permute.xlu2 %7143 }
 0x75b   :  { %v7166_v13 = vpop.permute.xlu1 %7165  ;;  %v7114_v46 = vpop.permute.xlu2 %7113 }
 0x75c   :  { %v7185_v14 = vmax.f32 %v7157_v45, %v7166_v13 }
 0x75e   :  { %8490 = vmatmul.msk.f32.vlgmr.msrb.gmra.mxu3 %vm7233_vm4, %v7185_v14 }
 0x763   :  { %v7172_v34 = vpop.permute.xlu1 %7171 }
 0x764   :  { %v7116_v56 = vpop.permute.xlu0 %7115 }
 0x765   :  { %v7132_v55 = vmax.f32 %v11437_v18, %v7116_v56  ;;  %v7120_v61 = vsel %vm415_vm0, %v7114_v46, %v7116_v56  ;;  %v7312_v56 = vld [vmem:[#allocation10] sm:$0xf] }
 0x766   :  { %v7131_v27 = vmax.f32 %v11461_v16, %v7120_v61 }
 0x767   :  { %v7160_v7 = vmax.f32 %v7132_v55, %v7144_v30 }
 0x769   :  { %v7188_v37 = vmax.f32 %v7160_v7, %v7172_v34 }
 0x76b   :  { %8491 = vmatmul.msk.f32.gmra.mxu3 %vm7233_vm4, %v7188_v37  ;;  %v8664_v8 = vpop.permute.xlu1 %8663  ;;  %v7375_v37 = vld [vmem:[#allocation10 + $0x8] sm:$0xf] }
 0x76c   :  { %v8674_v63 = vpop.permute.xlu0 %8673  ;;  %v8666_v12 = vunpack.i.h.bf16 %v8664_v8  ;;  %v8665_v41 = vunpack.i.l.bf16 %v8664_v8  ;;  %v7408_v8 = vld [vmem:[#allocation10 + $0xc] sm:$0xf] }
 0x76d   :  { %v8676_v38 = vunpack.i.h.bf16 %v8674_v63  ;;  %v8675_v21 = vunpack.i.l.bf16 %v8674_v63 }
 0x76e   :  { %v7117_v31 = vsel %vm415_vm0, %v8666_v12, %v8665_v41  ;;  %v7118_v26 = vsel %vm415_vm0, %v8665_v41, %v7110_v15 }
 0x76f   :  { %v7127_v18 = vmax.f32 %v7093_v6, %v7117_v31  ;;  %v7128_v39 = vmax.f32 %v7094_v23, %v7118_v26  ;;  %v7173_v5 = vsel %vm6580_vm14, %v8676_v38, %v8675_v21  ;;  %v7174_v54 = vsel %vm6580_vm14, %v8675_v21, %v7166_v13  ;;  %v7112_v6 = vpop.permute.xlu2 %7111  ;;  %v7507_v13 = vld [vmem:[#allocation10 + $0x18] sm:$0xf]  ;;  %v7540_v31 = vld [vmem:[#allocation10 + $0x1c] sm:$0xf]  ;;  %v7474_v26 = vld [vmem:[#allocation10 + $0x14] sm:$0xf] }
 0x770   :  { %v7119_v3 = vsel %vm415_vm0, %v7112_v6, %v7114_v46  ;;  %vm7326_vm0 = vcmask 1041408   ;;  %v7441_v46 = vld [vmem:[#allocation10 + $0x10] sm:$0xf]  ;;  %v7573_v21 = vld [vmem:[#allocation10 + $0x20] sm:$0xf] }
 0x771   :  { %v7130_v62 = vmax.f32 %v11468_v43, %v7119_v3 }
 0x773   :  { %v8669_v4 = vpop.permute.xlu1 %8668 }
 0x774   :  { %v7170_v29 = vpop.permute.xlu0 %7169  ;;  %v8671_v1 = vunpack.i.h.bf16 %v8669_v4  ;;  %v8670_v19 = vunpack.i.l.bf16 %v8669_v4 }
 0x775   :  { %v7176_v10 = vsel %vm6580_vm14, %v7170_v29, %v7172_v34 }
 0x776   :  { %v7145_v24 = vsel %vm6481_vm13, %v8671_v1, %v8670_v19  ;;  %v7146_v22 = vsel %vm6481_vm13, %v8670_v19, %v7138_v52  ;;  %v7605_v52 = vld [vmem:[#allocation12] sm:$0xf] }
 0x777   :  { %v7155_v57 = vmax.f32 %v7127_v18, %v7145_v24  ;;  %v7156_v42 = vmax.f32 %v7128_v39, %v7146_v22 }
 0x779   :  { %v7183_v17 = vmax.f32 %v7155_v57, %v7173_v5  ;;  %v7184_v11 = vmax.f32 %v7156_v42, %v7174_v54 }
 0x77b   :  { %v7142_v44 = vpop.permute.xlu1 %7141  ;;  %7259 = vmatmul.f32.vlgmr.msrb.gmra.mxu0 %v7183_v17  ;;  %7282 = vmatmul.f32.vlgmr.msrb.gmra.mxu2 %v7184_v11 }
 0x77c   :  { %v7148_v28 = vsel %vm6481_vm13, %v7142_v44, %v7144_v30  ;;  %v7140_v23 = vpop.permute.xlu0 %7139 }
 0x77d   :  { %v7159_v20 = vmax.f32 %v7131_v27, %v7148_v28  ;;  %v7147_v47 = vsel %vm6481_vm13, %v7140_v23, %v7142_v44  ;;  %vm7827_vm13 = vcmask 711680  }
 0x77e   :  { %v7158_v60 = vmax.f32 %v7130_v62, %v7147_v47  ;;  %v7631_v47 = vld [vmem:[#allocation16 + $0x28] sm:$0xff]  ;;  %v7630_v62 = vld [vmem:[#allocation16 + $0x20] sm:$0xff] }
 0x77f   :  { %v7187_v2 = vmax.f32 %v7159_v20, %v7176_v10  ;;  %v7632_v10 = vld [vmem:[#allocation16 + $0x30] sm:$0x7] }
 0x783   :  { %v7168_v15 = vpop.permute.xlu1 %7167  ;;  %7285 = vmatmul.f32.gmra.mxu2 %v7187_v2  ;;  %v7629_v2 = vld [vmem:[#allocation16 + $0x18] sm:$0xff] }
 0x784   :  { %v7175_v16 = vsel %vm6580_vm14, %v7168_v15, %v7170_v29  ;;  %v7627_v15 = vld [vmem:[#allocation16 + $0x8] sm:$0xff] }
 0x785   :  { %v7186_v25 = vmax.f32 %v7158_v60, %v7175_v16  ;;  %v7628_v60 = vld [vmem:[#allocation16 + $0x10] sm:$0xff]  ;;  %v7626_v16 = vld [vmem:[#allocation16] sm:$0xff] }
 0x787   :  { %7262 = vmatmul.f32.gmra.mxu0 %v7186_v25 }
 0x7e1   :  { %v7306_v48 = vpop.f32.mrf.mxu3 }
 0x7ee   :  { %v7309_v0 = vpop.f32.mrf.mxu3 }
 0x7f8   :  { %v7260_v33 = vpop.f32.mrf.mxu0 }
 0x7fe   :  { %v7283_v59 = vpop.f32.mrf.mxu2 }
 0x7ff   :  { %v7284_v49 = vadd.f32 %v7283_v59, %v7260_v33 }
 0x801   :  { %v7307_v53 = vadd.f32 %v7306_v48, %v7284_v49 }
 0x803   :  { %7376 = vrot.lane.b32.xlu1 %v7307_v53, %s9197_s19  ;;  %7317 = vrot.lane.b32.xlu0 %v7307_v53, %s9196_s14 }
 0x804   :  { %v7263_v50 = vpop.f32.mrf.mxu0 }
 0x806   :  { %v7286_v35 = vpop.f32.mrf.mxu2 }
 0x807   :  { %v7287_v43 = vadd.f32 %v7286_v35, %v7263_v50 }
 0x809   :  { %v7310_v36 = vadd.f32 %v7309_v0, %v7287_v43 }
 0x80b   :  { %7508 = vrot.lane.b32.xlu1 %v7307_v53, %s9210_s2  ;;  %7409 = vrot.lane.b32.xlu0 %v7307_v53, %s9211_s6 }
 0x80c   :  { %7319 = vrot.lane.b32.xlu2 %v7310_v36, %s9196_s14 }
 0x813   :  { %7442 = vrot.lane.b32.xlu0 %v7307_v53, %s9212_s21  ;;  %7411 = vrot.lane.b32.xlu1 %v7310_v36, %s9211_s6 }
 0x814   :  { %7378 = vrot.lane.b32.xlu2 %v7310_v36, %s9197_s19  ;;  %s9216_s19 = smov 12  }
 0x81b   :  { %7444 = vrot.lane.b32.xlu0 %v7310_v36, %s9212_s21  ;;  %7477 = vrot.lane.b32.xlu1 %v7310_v36, %s9213_s1 }
 0x81c   :  { %7510 = vrot.lane.b32.xlu2 %v7310_v36, %s9210_s2 }
 0x823   :  { %7475 = vrot.lane.b32.xlu0 %v7307_v53, %s9213_s1  ;;  %7576 = vrot.lane.b32.xlu1 %v7310_v36, %s9205_s23 }
 0x824   :  { %7543 = vrot.lane.b32.xlu2 %v7310_v36, %s9214_s7 }
 0x82b   :  { %7608 = vperm.xlu0 %8661, %v7605_v52   ;;  %v7697_v52 = vld [vmem:[#allocation18] sm:$0xff] }
 0x82c   :  { %7541 = vrot.lane.b32.xlu2 %v7307_v53, %s9214_s7 }
 0x834   :  { %7574 = vrot.lane.b32.xlu2 %v7307_v53, %s9205_s23 }
 0x866   :  { %v7320_v51 = vpop.permute.xlu2 %7319 }
 0x867   :  { %8492 = vmatpush.msk.msra.mxu1 %vm7326_vm0, %v7320_v51  ;;  %v7775_v51 = vld [vmem:[#allocation22 + $0xc0] sm:$0xf] }
 0x86e   :  { %v7379_v40 = vpop.permute.xlu2 %7378 }
 0x875   :  { %v7377_v9 = vpop.permute.xlu1 %7376  ;;  %v7318_v32 = vpop.permute.xlu0 %7317 }
 0x876   :  { %v7511_v45 = vpop.permute.xlu2 %7510  ;;  %7344 = vmatpush.msra.mxu1 %v7318_v32  ;;  %v7774_v32 = vld [vmem:[#allocation22 + $0xb8] sm:$0xff] }
 0x877   :  { %8504 = vmatpush.msk.msra.mxu2 %vm7326_vm0, %v7511_v45  ;;  %8493 = vmatmul.msk.f32.vlgmr.msra.gmra.mxu1 %vm7322_vm5, %v7314_v58  ;;  %v7771_v58 = vld [vmem:[#allocation22 + $0xa0] sm:$0xff]  ;;  %v7772_v45 = vld [vmem:[#allocation22 + $0xa8] sm:$0xff] }
 0x878   :  { %8494 = vmatpush.msk.msrb.mxu1 %vm7326_vm0, %v7310_v36  ;;  %v7698_v36 = vld [vmem:[#allocation18 + $0x8] sm:$0xff] }
 0x87a   :  { %7369 = vmatpush.msrb.mxu1 %v7307_v53 }
 0x87c   :  { %8496 = vmatpush.msk.msra.mxu1 %vm7326_vm0, %v7379_v40  ;;  %v7776_v40 = vld [vmem:[#allocation22 + $0xc8] sm:$0xf] }
 0x87d   :  { %v7509_v14 = vpop.permute.xlu1 %7508  ;;  %v7410_v34 = vpop.permute.xlu0 %7409 }
 0x87e   :  { %7401 = vmatpush.msra.mxu1 %v7377_v9  ;;  %7533 = vmatpush.msra.mxu2 %v7509_v14  ;;  %v7544_v55 = vpop.permute.xlu2 %7543  ;;  %v7773_v9 = vld [vmem:[#allocation22 + $0xb0] sm:$0xff]  ;;  %v7750_v14 = vld [vmem:[#allocation21 + $0xa8] sm:$0x7f] }
 0x87f   :  { %8505 = vmatmul.msk.f32.vlgmr.msra.gmra.mxu2 %vm7322_vm5, %v7507_v13  ;;  %8495 = vmatmul.msk.f32.vlgmr.msrb.gmra.mxu1 %vm7322_vm5, %v7312_v56  ;;  %v7749_v13 = vld [vmem:[#allocation21 + $0xa0] sm:$0x7f]  ;;  %v7748_v56 = vld [vmem:[#allocation21 + $0x98] sm:$0xff] }
 0x880   :  { %7721 = vmatpush.msrb.mxu2 %v7698_v36  ;;  %v7728_v36 = vld [vmem:[#allocation2] sm:$0x3] }
 0x882   :  { %7722 = vmatpush.msrb.mxu2 %v7697_v52  ;;  %v7950_v52 = vld [vmem:[#allocation25 + $0x1f0] sm:$0xff] }
 0x884   :  { %8517 = vmatpush.msk.msra.mxu2 %vm7831_vm7, %v7749_v13  ;;  %v7947_v13 = vld [vmem:[#allocation25 + $0x1d8] sm:$0xff] }
 0x885   :  { %v7443_v30 = vpop.permute.xlu0 %7442  ;;  %v7412_v7 = vpop.permute.xlu1 %7411 }
 0x886   :  { %8498 = vmatpush.msk.msra.mxu3 %vm7326_vm0, %v7412_v7  ;;  %v7542_v63 = vpop.permute.xlu2 %7541  ;;  %v7745_v7 = vld [vmem:[#allocation21 + $0x80] sm:$0xff] }
 0x887   :  { %8497 = vmatmul.msk.f32.vlgmr.msra.gmra.mxu1 %vm7322_vm5, %v7375_v37  ;;  %v7746_v37 = vld [vmem:[#allocation21 + $0x88] sm:$0xff] }
 0x888   :  { %7434 = vmatpush.msra.mxu3 %v7410_v34  ;;  %v7747_v34 = vld [vmem:[#allocation21 + $0x90] sm:$0xff] }
 0x889   :  { %8499 = vmatmul.msk.f32.vlgmr.msra.gmra.mxu3 %vm7322_vm5, %v7408_v8  ;;  %7844 = vmatpush.msra.mxu2 %v7747_v34  ;;  %v7767_v8 = vld [vmem:[#allocation22 + $0x80] sm:$0xff] }
 0x88a   :  { %8506 = vmatpush.msk.msrb.mxu3 %vm7326_vm0, %v7544_v55  ;;  %v7769_v55 = vld [vmem:[#allocation22 + $0x90] sm:$0xff]  ;;  %v7917_v34 = vld [vmem:[#allocation25 + $0xe8] sm:$0xff] }
 0x88b   :  { %7845 = vmatpush.msra.mxu2 %v7745_v7  ;;  %v7915_v7 = vld [vmem:[#allocation25 + $0xd8] sm:$0xff] }
 0x88c   :  { %7566 = vmatpush.msrb.mxu3 %v7542_v63  ;;  %v7768_v63 = vld [vmem:[#allocation22 + $0x88] sm:$0xff] }
 0x88d   :  { %v7445_v12 = vpop.permute.xlu0 %7444  ;;  %v7478_v41 = vpop.permute.xlu1 %7477 }
 0x88e   :  { %8500 = vmatpush.msk.msra.mxu0 %vm7326_vm0, %v7445_v12  ;;  %8502 = vmatpush.msk.msrb.mxu1 %vm7326_vm0, %v7478_v41  ;;  %v7575_v29 = vpop.permute.xlu2 %7574  ;;  %v7743_v12 = vld [vmem:[#allocation21 + $0x70] sm:$0xff]  ;;  %v7744_v41 = vld [vmem:[#allocation21 + $0x78] sm:$0xff] }
 0x88f   :  { %7846 = vmatpush.msra.mxu2 %v7743_v12  ;;  %v7943_v12 = vld [vmem:[#allocation25 + $0x1b8] sm:$0xff] }
 0x890   :  { %7467 = vmatpush.msra.mxu0 %v7443_v30  ;;  %v7770_v30 = vld [vmem:[#allocation22 + $0x98] sm:$0xff] }
 0x891   :  { %8501 = vmatmul.msk.f32.vlgmr.msra.gmra.mxu0 %vm7322_vm5, %v7441_v46  ;;  %8507 = vmatmul.msk.f32.vlgmr.msrb.gmra.mxu3 %vm7322_vm5, %v7540_v31  ;;  %v7765_v46 = vld [vmem:[#allocation22 + $0x70] sm:$0xff]  ;;  %v7766_v31 = vld [vmem:[#allocation22 + $0x78] sm:$0xff] }
 0x895   :  { %v7476_v4 = vpop.permute.xlu0 %7475  ;;  %v7577_v38 = vpop.permute.xlu1 %7576 }
 0x896   :  { %7500 = vmatpush.msrb.mxu1 %v7476_v4  ;;  %8508 = vmatpush.msk.msrb.mxu0 %vm7326_vm0, %v7577_v38  ;;  %v7742_v4 = vld [vmem:[#allocation21 + $0x68] sm:$0xff]  ;;  %v7763_v38 = vld [vmem:[#allocation22 + $0x60] sm:$0xff] }
 0x897   :  { %8503 = vmatmul.msk.f32.vlgmr.msrb.gmra.mxu1 %vm7322_vm5, %v7474_v26  ;;  %v7741_v26 = vld [vmem:[#allocation21 + $0x60] sm:$0xff] }
 0x898   :  { %7599 = vmatpush.msrb.mxu0 %v7575_v29  ;;  %8510 = vmatpush.msk.msra.mxu1 %vm433_vm1, %v7632_v10  ;;  %vm7780_vm1 = vcmask 1043456   ;;  %v7739_v29 = vld [vmem:[#allocation21 + $0x50] sm:$0xff] }
 0x899   :  { %8509 = vmatmul.msk.f32.vlgmr.msrb.gmra.mxu0 %vm7322_vm5, %v7573_v21  ;;  %8513 = vmatpush.msk.msra.mxu3 %vm7780_vm1, %v7775_v51  ;;  %v7764_v21 = vld [vmem:[#allocation22 + $0x68] sm:$0xff] }
 0x89a   :  { %7650 = vmatpush.msra.mxu1 %v7631_v47  ;;  %8515 = vmatpush.msk.msra.mxu0 %vm7780_vm1, %v7776_v40  ;;  %v7951_v51 = vld [vmem:[#allocation25 + $0x1f8] sm:$0xff]  ;;  %v7948_v40 = vld [vmem:[#allocation25 + $0x1e0] sm:$0xff] }
 0x89b   :  { %7791 = vmatpush.msra.mxu3 %v7773_v9  ;;  %7847 = vmatpush.msra.mxu2 %v7741_v26  ;;  %v7949_v9 = vld [vmem:[#allocation25 + $0x1e8] sm:$0xff] }
 0x89c   :  { %7651 = vmatpush.msra.mxu1 %v7630_v62  ;;  %7811 = vmatpush.msra.mxu0 %v7774_v32  ;;  %v7918_v32 = vld [vmem:[#allocation25 + $0xf0] sm:$0xff]  ;;  %v7941_v26 = vld [vmem:[#allocation25 + $0x1a8] sm:$0xff] }
 0x89d   :  { %v7609_v23 = vpop.permute.xlu0 %7608  ;;  %7792 = vmatpush.msra.mxu3 %v7771_v58  ;;  %7848 = vmatpush.msra.mxu2 %v7739_v29  ;;  %v7919_v58 = vld [vmem:[#allocation25 + $0xf8] sm:$0xff] }
 0x89e   :  { %7652 = vmatpush.msra.mxu1 %v7629_v2  ;;  %7812 = vmatpush.msra.mxu0 %v7772_v45  ;;  %v7946_v45 = vld [vmem:[#allocation25 + $0x1d0] sm:$0xff]  ;;  %v7939_v29 = vld [vmem:[#allocation25 + $0x198] sm:$0xff] }
 0x89f   :  { %7793 = vmatpush.msra.mxu3 %v7769_v55  ;;  %v7944_v55 = vld [vmem:[#allocation25 + $0x1c0] sm:$0xff] }
 0x8a0   :  { %7653 = vmatpush.msra.mxu1 %v7628_v60  ;;  %7813 = vmatpush.msra.mxu0 %v7770_v30  ;;  %v7945_v30 = vld [vmem:[#allocation25 + $0x1c8] sm:$0xff] }
 0x8a1   :  { %7794 = vmatpush.msra.mxu3 %v7767_v8  ;;  %v7913_v8 = vld [vmem:[#allocation25 + $0xc8] sm:$0xff] }
 0x8a2   :  { %7654 = vmatpush.msra.mxu1 %v7627_v15  ;;  %7814 = vmatpush.msra.mxu0 %v7768_v63  ;;  %v7755_v15 = vld [vmem:[#allocation22 + $0x20] sm:$0xff] }
 0x8a3   :  { %7795 = vmatpush.msra.mxu3 %v7765_v46  ;;  %v7942_v63 = vld [vmem:[#allocation25 + $0x1b0] sm:$0xff]  ;;  %v7911_v46 = vld [vmem:[#allocation25 + $0xb8] sm:$0xff] }
 0x8a4   :  { %7655 = vmatpush.msra.mxu1 %v7626_v16  ;;  %7815 = vmatpush.msra.mxu0 %v7766_v31  ;;  %v7756_v16 = vld [vmem:[#allocation22 + $0x28] sm:$0xff]  ;;  %v7940_v31 = vld [vmem:[#allocation25 + $0x1a0] sm:$0xff] }
 0x8a5   :  { %7796 = vmatpush.msra.mxu3 %v7763_v38  ;;  %v7909_v38 = vld [vmem:[#allocation25 + $0xa8] sm:$0xff] }
 0x8a6   :  { %8519 = vmatpush.msk.msrb.mxu1 %vm7831_vm7, %v7750_v14  ;;  %7816 = vmatpush.msra.mxu0 %v7764_v21  ;;  %v7916_v14 = vld [vmem:[#allocation25 + $0xe0] sm:$0xff]  ;;  %v7938_v21 = vld [vmem:[#allocation25 + $0x190] sm:$0xff] }
 0x8a8   :  { %7864 = vmatpush.msrb.mxu1 %v7748_v56  ;;  %v7914_v56 = vld [vmem:[#allocation25 + $0xd0] sm:$0xff] }
 0x8aa   :  { %7865 = vmatpush.msrb.mxu1 %v7746_v37  ;;  %v7912_v37 = vld [vmem:[#allocation25 + $0xc0] sm:$0xff] }
 0x8ac   :  { %7866 = vmatpush.msrb.mxu1 %v7744_v41  ;;  %v7910_v41 = vld [vmem:[#allocation25 + $0xb0] sm:$0xff] }
 0x8ae   :  { %7867 = vmatpush.msrb.mxu1 %v7742_v4  ;;  %v7908_v4 = vld [vmem:[#allocation25 + $0xa0] sm:$0xff] }
 0x8f4   :  { %v7346_v1 = vpop.f32.mrf.mxu1 }
 0x8fc   :  { %v7371_v19 = vpop.f32.mrf.mxu1 }
 0x8fd   :  { %v7372_v39 = vadd.f32 %v7371_v19, %v7346_v1  ;;  %v7740_v1 = vld [vmem:[#allocation21 + $0x58] sm:$0xff]  ;;  %v7761_v19 = vld [vmem:[#allocation22 + $0x50] sm:$0xff] }
 0x8fe   :  { %7868 = vmatpush.msrb.mxu1 %v7740_v1  ;;  %7797 = vmatpush.msra.mxu3 %v7761_v19  ;;  %v7906_v1 = vld [vmem:[#allocation25 + $0x90] sm:$0xff]  ;;  %v7907_v19 = vld [vmem:[#allocation25 + $0x98] sm:$0xff] }
 0x902   :  { %v7535_v54 = vpop.f32.mrf.mxu2 }
 0x904   :  { %v7403_v18 = vpop.f32.mrf.mxu1 }
 0x905   :  { %v7406_v24 = vadd.f32 %v7403_v18, %v7372_v39  ;;  %v7762_v18 = vld [vmem:[#allocation22 + $0x58] sm:$0xff]  ;;  %v7737_v39 = vld [vmem:[#allocation21 + $0x40] sm:$0xff] }
 0x906   :  { %7817 = vmatpush.msra.mxu0 %v7762_v18  ;;  %7849 = vmatpush.msra.mxu2 %v7737_v39  ;;  %v7936_v18 = vld [vmem:[#allocation25 + $0x180] sm:$0xff]  ;;  %v7937_v39 = vld [vmem:[#allocation25 + $0x188] sm:$0xff] }
 0x90c   :  { %v7436_v22 = vpop.f32.mrf.mxu3 }
 0x90d   :  { %v7439_v57 = vadd.f32 %v7436_v22, %v7406_v24  ;;  %v7738_v24 = vld [vmem:[#allocation21 + $0x48] sm:$0xff]  ;;  %v7759_v22 = vld [vmem:[#allocation22 + $0x40] sm:$0xff] }
 0x90e   :  { %v7469_v42 = vpop.f32.mrf.mxu0  ;;  %7869 = vmatpush.msrb.mxu1 %v7738_v24  ;;  %7798 = vmatpush.msra.mxu3 %v7759_v22  ;;  %v7934_v24 = vld [vmem:[#allocation25 + $0x170] sm:$0xff]  ;;  %v7935_v22 = vld [vmem:[#allocation25 + $0x178] sm:$0xff] }
 0x90f   :  { %v7472_v61 = vadd.f32 %v7469_v42, %v7439_v57  ;;  %v7760_v57 = vld [vmem:[#allocation22 + $0x48] sm:$0xff]  ;;  %v7735_v42 = vld [vmem:[#allocation21 + $0x30] sm:$0xff] }
 0x910   :  { %7818 = vmatpush.msra.mxu0 %v7760_v57  ;;  %7850 = vmatpush.msra.mxu2 %v7735_v42  ;;  %v7932_v57 = vld [vmem:[#allocation25 + $0x160] sm:$0xff]  ;;  %v7933_v42 = vld [vmem:[#allocation25 + $0x168] sm:$0xff] }
 0x914   :  { %v7502_v5 = vpop.f32.mrf.mxu1  ;;  %v7568_v11 = vpop.f32.mrf.mxu3 }
 0x915   :  { %v7505_v17 = vadd.f32 %v7502_v5, %v7472_v61  ;;  %v7736_v61 = vld [vmem:[#allocation21 + $0x38] sm:$0xff]  ;;  %v7757_v5 = vld [vmem:[#allocation22 + $0x30] sm:$0xff] }
 0x916   :  { %v7601_v6 = vpop.f32.mrf.mxu0  ;;  %7870 = vmatpush.msrb.mxu1 %v7736_v61  ;;  %7799 = vmatpush.msra.mxu3 %v7757_v5  ;;  %v8677_v61 = vld [vmem:[#allocation19] ss:$0 sm:$0xff] }
 0x917   :  { %v7538_v27 = vadd.f32 %v7535_v54, %v7505_v17  ;;  %v7758_v54 = vld [vmem:[#allocation22 + $0x38] sm:$0xff] }
 0x918   :  { %7819 = vmatpush.msra.mxu0 %v7758_v54  ;;  %7800 = vmatpush.msra.mxu3 %v7755_v15  ;;  %v7924_v15 = vld [vmem:[#allocation25 + $0x120] sm:$0xff] }
 0x919   :  { %v7571_v44 = vadd.f32 %v7568_v11, %v7538_v27 }
 0x91a   :  { %7820 = vmatpush.msra.mxu0 %v7756_v16  ;;  %v7899_v16 = vld [vmem:[#allocation25 + $0x58] sm:$0xff] }
 0x91b   :  { %v7604_v28 = vadd.f32 %v7601_v6, %v7571_v44 }
 0x91d   :  { %v7611_v20 = vadd.f32 %v7609_v23, %v7604_v28 }
 0x91f   :  { %v7612_v3 = vmax.f32 %v7611_v20, 0.0 }
 0x921   :  { %7622 = vrot.lane.b32.xlu0 %v7612_v3, %s9212_s21  ;;  %7618 = vrot.lane.b32.xlu2 %v7612_v3, %s9211_s6 }
 0x922   :  { %7614 = vrot.lane.b32.xlu1 %v7612_v3, %s9196_s14  ;;  %s9215_s14 = smov 124  }
 0x97b   :  { %v7619_v59 = vpop.permute.xlu2 %7618 }
 0x993   :  { %v7623_v48 = vpop.permute.xlu0 %7622 }
 0x994   :  { %v7615_v25 = vpop.permute.xlu1 %7614 }
 0x995   :  { %v7617_v33 = vmax.f32 %v7612_v3, %v7615_v25  ;;  %v7733_v25 = vld [vmem:[#allocation21 + $0x20] sm:$0xff] }
 0x996   :  { %7851 = vmatpush.msra.mxu2 %v7733_v25  ;;  %v7925_v25 = vld [vmem:[#allocation25 + $0x128] sm:$0xff] }
 0x997   :  { %v7621_v49 = vmax.f32 %v7617_v33, %v7619_v59  ;;  %v7734_v33 = vld [vmem:[#allocation21 + $0x28] sm:$0xff]  ;;  %v7753_v59 = vld [vmem:[#allocation22 + $0x10] sm:$0xff] }
 0x998   :  { %7871 = vmatpush.msrb.mxu1 %v7734_v33  ;;  %7801 = vmatpush.msra.mxu3 %v7753_v59  ;;  %v7896_v33 = vld [vmem:[#allocation25 + $0x40] sm:$0xff]  ;;  %v7922_v59 = vld [vmem:[#allocation25 + $0x110] sm:$0xff] }
 0x999   :  { %v7625_v53 = vmax.f32 %v7621_v49, %v7623_v48  ;;  %v7754_v49 = vld [vmem:[#allocation22 + $0x18] sm:$0xff]  ;;  %v7731_v48 = vld [vmem:[#allocation21 + $0x10] sm:$0xff] }
 0x99a   :  { %7821 = vmatpush.msra.mxu0 %v7754_v49  ;;  %7852 = vmatpush.msra.mxu2 %v7731_v48  ;;  %v7897_v49 = vld [vmem:[#allocation25 + $0x48] sm:$0xff]  ;;  %v7923_v48 = vld [vmem:[#allocation25 + $0x118] sm:$0xff] }
 0x99b   :  { %8511 = vmatmul.msk.f32.vlgmr.msra.gmra.mxu1 %vm7633_vm6, %v7625_v53  ;;  %v7732_v53 = vld [vmem:[#allocation21 + $0x18] sm:$0xff] }
 0x99c   :  { %7872 = vmatpush.msrb.mxu1 %v7732_v53  ;;  %v7894_v53 = vld [vmem:[#allocation25 + $0x30] sm:$0xff] }
 0xa18   :  { %v11531_v50 = vpop.f32.mrf.mxu1 }
 0xa19   :  { %7679 = vrot.lane.b32.xlu1 %v11531_v50, %s9215_s14  ;;  %v7665_v35 = vrot.slane %v11531_v50, 2  ;;  %v7661_v43 = vrot.slane %v11531_v50, 1  ;;  %v7669_v0 = vrot.slane %v11531_v50, 3 }
 0xa1b   :  { %7683 = vrot.lane.b32.xlu2 %v7665_v35, %s9175_s27  ;;  %7662 = vrot.lane.b32.xlu0 %v7661_v43, %s9175_s27 }
 0xa21   :  { %7686 = vrot.lane.b32.xlu1 %v7669_v0, %s9171_s29 }
 0xa23   :  { %7666 = vrot.lane.b32.xlu2 %v7665_v35, %s9171_s29  ;;  %7670 = vrot.lane.b32.xlu0 %v7669_v0, %s9216_s19  ;;  %v7752_v35 = vld [vmem:[#allocation22 + $0x8] sm:$0xff]  ;;  %v7730_v0 = vld [vmem:[#allocation21 + $0x8] sm:$0xff] }
 0xa24   :  { %7822 = vmatpush.msra.mxu0 %v7752_v35  ;;  %7873 = vmatpush.msrb.mxu1 %v7730_v0  ;;  %v7895_v35 = vld [vmem:[#allocation25 + $0x38] sm:$0xff]  ;;  %v7892_v0 = vld [vmem:[#allocation25 + $0x20] sm:$0xff] }
 0xa25   :  { %8520 = vmatmul.msk.f32.vlgmr.msrb.gmra.mxu1 %vm7827_vm13, %v7728_v36 }
 0xa26   :  { %7978 = vmatpush.msrb.mxu0 %v7950_v52  ;;  %8018 = vmatpush.msra.mxu1 %v7951_v51  ;;  %v7890_v52 = vld [vmem:[#allocation25 + $0x10] sm:$0xff]  ;;  %v7891_v51 = vld [vmem:[#allocation25 + $0x18] sm:$0xff] }
 0xa28   :  { %7979 = vmatpush.msrb.mxu0 %v7948_v40  ;;  %8019 = vmatpush.msra.mxu1 %v7949_v9  ;;  %v7888_v40 = vld [vmem:[#allocation25] sm:$0xff]  ;;  %v7889_v9 = vld [vmem:[#allocation25 + $0x8] sm:$0xff] }
 0xa2a   :  { %7980 = vmatpush.msrb.mxu0 %v7946_v45  ;;  %8020 = vmatpush.msra.mxu1 %v7947_v13  ;;  %v8054_v45 = vld [vmem:[#allocation28 + $0x70] sm:$0xff] }
 0xa2b   :  { %v8070_v13 = vld [vmem:[#allocation28 + $0xf0] sm:$0xff] }
 0xa2c   :  { %7981 = vmatpush.msrb.mxu0 %v7944_v55  ;;  %8021 = vmatpush.msra.mxu1 %v7945_v30  ;;  %v8068_v55 = vld [vmem:[#allocation28 + $0xe0] sm:$0xff]  ;;  %v7878_v30 = vld [vmem:[#allocation24] sm:$0x3] }
 0xa2e   :  { %7982 = vmatpush.msrb.mxu0 %v7942_v63  ;;  %8022 = vmatpush.msra.mxu1 %v7943_v12 }
 0xa30   :  { %7983 = vmatpush.msrb.mxu0 %v7940_v31  ;;  %8023 = vmatpush.msra.mxu1 %v7941_v26 }
 0xa32   :  { %7984 = vmatpush.msrb.mxu0 %v7938_v21  ;;  %8024 = vmatpush.msra.mxu1 %v7939_v29  ;;  %v8051_v29 = vld [vmem:[#allocation28 + $0x58] sm:$0xff] }
 0xa34   :  { %7985 = vmatpush.msrb.mxu0 %v7936_v18  ;;  %8025 = vmatpush.msra.mxu1 %v7937_v39  ;;  %v8066_v18 = vld [vmem:[#allocation28 + $0xd0] sm:$0xff]  ;;  %v8049_v39 = vld [vmem:[#allocation28 + $0x48] sm:$0xff] }
 0xa36   :  { %7986 = vmatpush.msrb.mxu0 %v7934_v24  ;;  %8026 = vmatpush.msra.mxu1 %v7935_v22  ;;  %v8065_v24 = vld [vmem:[#allocation28 + $0xc8] sm:$0xff]  ;;  %v8048_v22 = vld [vmem:[#allocation28 + $0x40] sm:$0xff] }
 0xa38   :  { %7987 = vmatpush.msrb.mxu0 %v7932_v57  ;;  %8027 = vmatpush.msra.mxu1 %v7933_v42  ;;  %v8064_v57 = vld [vmem:[#allocation28 + $0xc0] sm:$0xff]  ;;  %v8047_v42 = vld [vmem:[#allocation28 + $0x38] sm:$0xff] }
 0xa75   :  { %v7684_v17 = vpop.permute.xlu2 %7683 }
 0xa7d   :  { %v7667_v20 = vpop.permute.xlu2 %7666 }
 0xa8b   :  { %v7680_v11 = vpop.permute.xlu1 %7679 }
 0xa8c   :  { %v7689_v6 = vsel %vm7673_vm8, %v7680_v11, %v7661_v43  ;;  %v7729_v43 = vld [vmem:[#allocation21] sm:$0xff] }
 0xa8d   :  { %v7663_v27 = vpop.permute.xlu0 %7662  ;;  %v7690_v23 = vsel %vm7675_vm9, %v7689_v6, %v7684_v17  ;;  %7853 = vmatpush.msra.mxu2 %v7729_v43  ;;  %v7904_v11 = vld [vmem:[#allocation25 + $0x80] sm:$0xff]  ;;  %v7905_v6 = vld [vmem:[#allocation25 + $0x88] sm:$0xff] }
 0xa8e   :  { %v7674_v44 = vsel %vm7673_vm8, %v11531_v50, %v7663_v27  ;;  %v7751_v50 = vld [vmem:[#allocation22] sm:$0xff] }
 0xa8f   :  { %v7676_v47 = vsel %vm7675_vm9, %v7674_v44, %v7667_v20  ;;  %7802 = vmatpush.msra.mxu3 %v7751_v50  ;;  %v7930_v27 = vld [vmem:[#allocation25 + $0x150] sm:$0xff]  ;;  %v7931_v44 = vld [vmem:[#allocation25 + $0x158] sm:$0xff]  ;;  %v7920_v50 = vld [vmem:[#allocation25 + $0x100] sm:$0xff] }
 0xa90   :  { %7988 = vmatpush.msrb.mxu0 %v7930_v27  ;;  %8028 = vmatpush.msra.mxu1 %v7931_v44  ;;  %v7903_v20 = vld [vmem:[#allocation25 + $0x78] sm:$0xff]  ;;  %v7921_v43 = vld [vmem:[#allocation25 + $0x108] sm:$0xff] }
 0xa91   :  { %7958 = vmatpush.msrb.mxu3 %v7918_v32  ;;  %v8055_v32 = vld [vmem:[#allocation28 + $0x78] sm:$0xff]  ;;  %v8044_v27 = vld [vmem:[#allocation28 + $0x20] sm:$0xff] }
 0xa92   :  { %v8043_v44 = vld [vmem:[#allocation28 + $0x18] sm:$0xff] }
 0xa93   :  { %v7687_v28 = vpop.permute.xlu1 %7686  ;;  %7959 = vmatpush.msrb.mxu3 %v7916_v14  ;;  %v8053_v14 = vld [vmem:[#allocation28 + $0x68] sm:$0xff] }
 0xa94   :  { %v7691_v3 = vsel %vm7677_vm10, %v7690_v23, %v7687_v28  ;;  %v7902_v28 = vld [vmem:[#allocation25 + $0x70] sm:$0xff]  ;;  %v7928_v23 = vld [vmem:[#allocation25 + $0x140] sm:$0xff] }
 0xa95   :  { %v7693_v10 = vrot.slane %v7691_v3, 7  ;;  %v7671_v62 = vpop.permute.xlu0 %7670  ;;  %7960 = vmatpush.msrb.mxu3 %v7914_v56  ;;  %7989 = vmatpush.msrb.mxu0 %v7928_v23  ;;  %v7929_v3 = vld [vmem:[#allocation25 + $0x148] sm:$0xff]  ;;  %v8042_v23 = vld [vmem:[#allocation28 + $0x10] sm:$0xff] }
 0xa96   :  { %v7678_v2 = vsel %vm7677_vm10, %v7676_v47, %v7671_v62  ;;  %8029 = vmatpush.msra.mxu1 %v7929_v3  ;;  %v7926_v47 = vld [vmem:[#allocation25 + $0x130] sm:$0xff]  ;;  %v7901_v62 = vld [vmem:[#allocation25 + $0x68] sm:$0xff] }
 0xa97   :  { %v7696_v60 = vsel %vm7695_vm11, %v7678_v2, %v7693_v10  ;;  %7961 = vmatpush.msrb.mxu3 %v7912_v37  ;;  %v7900_v10 = vld [vmem:[#allocation25 + $0x60] sm:$0xff]  ;;  %7990 = vmatpush.msrb.mxu0 %v7926_v47  ;;  %v7927_v2 = vld [vmem:[#allocation25 + $0x138] sm:$0xff]  ;;  %v7881_v37 = vperm.slane %v7878_v30, 1  ;;  %v8041_v3 = vld [vmem:[#allocation28 + $0x8] sm:$0xff] }
 0xa98   :  { %8512 = vmatmul.msk.f32.vlgmr.msrb.gmra.mxu2 %vm7703_vm12, %v7696_v60  ;;  %8030 = vmatpush.msra.mxu1 %v7927_v2  ;;  %v7898_v60 = vld [vmem:[#allocation25 + $0x50] sm:$0xff]  ;;  %v8052_v56 = vld [vmem:[#allocation28 + $0x60] sm:$0xff]  ;;  %v7952_v2 = vld [vmem:[#allocation27] sm:$0x3] }
 0xa99   :  { %7998 = vmatpush.msrb.mxu2 %v7919_v58  ;;  %7962 = vmatpush.msrb.mxu3 %v7910_v41  ;;  %v8071_v58 = vld [vmem:[#allocation28 + $0xf8] sm:$0xff]  ;;  %v8040_v47 = vld [vmem:[#allocation28] sm:$0xff] }
 0xa9a   :  { %7991 = vmatpush.msrb.mxu0 %v7924_v15  ;;  %8031 = vmatpush.msra.mxu1 %v7925_v25  ;;  %v7955_v15 = vperm.slane %v7952_v2, 1 }
 0xa9b   :  { %7999 = vmatpush.msrb.mxu2 %v7917_v34  ;;  %7963 = vmatpush.msrb.mxu3 %v7908_v4  ;;  %v8069_v34 = vld [vmem:[#allocation28 + $0xe8] sm:$0xff] }
 0xa9c   :  { %7992 = vmatpush.msrb.mxu0 %v7922_v59  ;;  %8032 = vmatpush.msra.mxu1 %v7923_v48 }
 0xa9d   :  { %8000 = vmatpush.msrb.mxu2 %v7915_v7  ;;  %7964 = vmatpush.msrb.mxu3 %v7906_v1  ;;  %v8067_v1 = vld [vmem:[#allocation28 + $0xd8] sm:$0xff] }
 0xa9e   :  { %7993 = vmatpush.msrb.mxu0 %v7920_v50  ;;  %8033 = vmatpush.msra.mxu1 %v7921_v43 }
 0xa9f   :  { %8001 = vmatpush.msrb.mxu2 %v7913_v8  ;;  %7965 = vmatpush.msrb.mxu3 %v7904_v11  ;;  %v8061_v11 = vld [vmem:[#allocation28 + $0xa8] sm:$0xff] }
 0xaa0   :  { %8518 = vmatmul.msk.f32.vlgmr.msra.gmra.mxu2 %vm7827_vm13, %v7728_v36  ;;  %v7893_v36 = vld [vmem:[#allocation25 + $0x28] sm:$0xff] }
 0xaa1   :  { %8002 = vmatpush.msrb.mxu2 %v7911_v46  ;;  %7966 = vmatpush.msrb.mxu3 %v7902_v28  ;;  %v7880_v46 = vperm.slane %v7878_v30, 0  ;;  %v8059_v28 = vld [vmem:[#allocation28 + $0x98] sm:$0xff] }
 0xaa2   :  { %v7875_v7 = vpop.f32.mrf.mxu1 }
 0xaa3   :  { %8003 = vmatpush.msrb.mxu2 %v7909_v38  ;;  %7967 = vmatpush.msrb.mxu3 %v7900_v10  ;;  %v8057_v10 = vld [vmem:[#allocation28 + $0x88] sm:$0xff] }
 0xaa5   :  { %8004 = vmatpush.msrb.mxu2 %v7907_v19  ;;  %7968 = vmatpush.msrb.mxu3 %v7898_v60  ;;  %v8050_v19 = vld [vmem:[#allocation28 + $0x50] sm:$0xff]  ;;  %v7954_v60 = vperm.slane %v7952_v2, 0 }
 0xaa7   :  { %8005 = vmatpush.msrb.mxu2 %v7905_v6  ;;  %7969 = vmatpush.msrb.mxu3 %v7896_v33  ;;  %v8060_v6 = vld [vmem:[#allocation28 + $0xa0] sm:$0xff] }
 0xaa9   :  { %8006 = vmatpush.msrb.mxu2 %v7903_v20  ;;  %7970 = vmatpush.msrb.mxu3 %v7894_v53  ;;  %v8058_v20 = vld [vmem:[#allocation28 + $0x90] sm:$0xff] }
 0xaab   :  { %8007 = vmatpush.msrb.mxu2 %v7901_v62  ;;  %7971 = vmatpush.msrb.mxu3 %v7892_v0  ;;  %v8056_v62 = vld [vmem:[#allocation28 + $0x80] sm:$0xff] }
 0xaac   :  { %v8678_v0 = vld [vmem:[#allocation30] ss:$0 sm:$0xff] }
 0xaad   :  { %8008 = vmatpush.msrb.mxu2 %v7899_v16  ;;  %7972 = vmatpush.msrb.mxu3 %v7890_v52 }
 0xaaf   :  { %8009 = vmatpush.msrb.mxu2 %v7897_v49  ;;  %7973 = vmatpush.msrb.mxu3 %v7888_v40 }
 0xab1   :  { %8010 = vmatpush.msrb.mxu2 %v7895_v35 }
 0xab3   :  { %8011 = vmatpush.msrb.mxu2 %v7893_v36 }
 0xab5   :  { %8012 = vmatpush.msrb.mxu2 %v7891_v51 }
 0xab7   :  { %8013 = vmatpush.msrb.mxu2 %v7889_v9 }
 0xb1b   :  { %v7724_v5 = vpop.f32.mrf.mxu2 }
 0xb1c   :  { %v7725_v54 = vadd.f32 %v8677_v61, %v7724_v5  ;;  %v8063_v61 = vld [vmem:[#allocation28 + $0xb8] sm:$0xff]  ;;  %v8046_v5 = vld [vmem:[#allocation28 + $0x30] sm:$0xff] }
 0xb1e   :  { %v7727_v17 = vmax.f32 %v7725_v54, 0.0  ;;  %v8062_v54 = vld [vmem:[#allocation28 + $0xb0] sm:$0xff] }
 0xb20   :  { %8514 = vmatmul.msk.f32.vlgmr.msra.gmra.mxu3 %vm6781_vm15, %v7727_v17  ;;  %8516 = vmatmul.msk.f32.vlgmr.msra.gmra.mxu0 %vm6781_vm15, %v7727_v17  ;;  %v8045_v17 = vld [vmem:[#allocation28 + $0x28] sm:$0xff]  ;;  %vm8132_vm15 = vcmask 58368  }
 0xb21   :  { %8076 = vmatpush.msra.mxu3 %v8055_v32  ;;  %8096 = vmatpush.msra.mxu0 %v8071_v58 }
 0xb23   :  { %8077 = vmatpush.msra.mxu3 %v8054_v45  ;;  %8097 = vmatpush.msra.mxu0 %v8070_v13  ;;  %v7855_v41 = vpop.f32.mrf.mxu2 }
 0xb25   :  { %8078 = vmatpush.msra.mxu3 %v8053_v14  ;;  %8098 = vmatpush.msra.mxu0 %v8069_v34 }
 0xb27   :  { %8079 = vmatpush.msra.mxu3 %v8052_v56  ;;  %8099 = vmatpush.msra.mxu0 %v8068_v55  ;;  %v8128_v56 = vlaneseq }
 0xb29   :  { %8080 = vmatpush.msra.mxu3 %v8051_v29  ;;  %8100 = vmatpush.msra.mxu0 %v8067_v1  ;;  %v8129_v30 = vand.u32 127, %v8128_v56 }
 0xb2b   :  { %8081 = vmatpush.msra.mxu3 %v8050_v19  ;;  %8101 = vmatpush.msra.mxu0 %v8066_v18  ;;  %vm8130_vm14 = vcmp.lt.s32.totalorder %v8129_v30, 4 }
 0xb2d   :  { %8082 = vmatpush.msra.mxu3 %v8049_v39  ;;  %8102 = vmatpush.msra.mxu0 %v8065_v24 }
 0xb2f   :  { %8083 = vmatpush.msra.mxu3 %v8048_v22  ;;  %8103 = vmatpush.msra.mxu0 %v8064_v57 }
 0xb31   :  { %8084 = vmatpush.msra.mxu3 %v8047_v42  ;;  %8104 = vmatpush.msra.mxu0 %v8063_v61 }
 0xb33   :  { %8085 = vmatpush.msra.mxu3 %v8046_v5  ;;  %8105 = vmatpush.msra.mxu0 %v8062_v54 }
 0xb35   :  { %8086 = vmatpush.msra.mxu3 %v8045_v17  ;;  %8106 = vmatpush.msra.mxu0 %v8061_v11 }
 0xb37   :  { %8087 = vmatpush.msra.mxu3 %v8044_v27  ;;  %8107 = vmatpush.msra.mxu0 %v8060_v6 }
 0xb39   :  { %8088 = vmatpush.msra.mxu3 %v8043_v44  ;;  %8108 = vmatpush.msra.mxu0 %v8059_v28 }
 0xb3b   :  { %8089 = vmatpush.msra.mxu3 %v8042_v23  ;;  %8109 = vmatpush.msra.mxu0 %v8058_v20 }
 0xb3d   :  { %8090 = vmatpush.msra.mxu3 %v8041_v3  ;;  %8110 = vmatpush.msra.mxu0 %v8057_v10 }
 0xb3f   :  { %8091 = vmatpush.msra.mxu3 %v8040_v47  ;;  %8111 = vmatpush.msra.mxu0 %v8056_v62 }
 0xb9d   :  { %v7824_v8 = vpop.f32.mrf.mxu0 }
 0xb9e   :  { %v7876_v63 = vadd.f32 %v7875_v7, %v7824_v8 }
 0xba0   :  { %v7885_v12 = vadd.f32 %v7881_v37, %v7876_v63 }
 0xba2   :  { %8679 = vtanh.f32 %v7885_v12 }
 0xba3   :  { %v7804_v31 = vpop.f32.mrf.mxu3 }
 0xba4   :  { %v7856_v26 = vadd.f32 %v7855_v41, %v7804_v31 }
 0xba6   :  { %v7884_v4 = vadd.f32 %v7880_v46, %v7856_v26 }
 0xba8   :  { %v8680_v38 = vpop.eup %8679  ;;  %8681 = vtanh.f32 %v7884_v4 }
 0xba9   :  { %7994 = vmatmul.f32.vlgmr.msrb.gmra.mxu0 %v8680_v38  ;;  %8034 = vmatmul.f32.vlgmr.msra.gmra.mxu1 %v8680_v38 }
 0xbae   :  { %v8682_v21 = vpop.eup %8681 }
 0xbaf   :  { %7974 = vmatmul.f32.vlgmr.msrb.gmra.mxu3 %v8682_v21  ;;  %8014 = vmatmul.f32.vlgmr.msrb.gmra.mxu2 %v8682_v21 }
 0xc26   :  { %v7995_v49 = vpop.f32.mrf.mxu0  ;;  %v8035_v48 = vpop.f32.mrf.mxu1 }
 0xc32   :  { %v7975_v16 = vpop.f32.mrf.mxu3  ;;  %v8015_v25 = vpop.f32.mrf.mxu2 }
 0xc33   :  { %v7976_v33 = vadd.f32 %v7975_v16, %v7954_v60  ;;  %v8016_v59 = vadd.f32 %v8015_v25, %v7955_v15 }
 0xc35   :  { %v7996_v53 = vadd.f32 %v7995_v49, %v7976_v33  ;;  %v8036_v50 = vadd.f32 %v8035_v48, %v8016_v59 }
 0xc37   :  { %8683 = vtanh.f32 %v7996_v53 }
 0xc38   :  { %8685 = vtanh.f32 %v8036_v50 }
 0xc3d   :  { %v8684_v35 = vpop.eup %8683 }
 0xc3e   :  { %v8686_v43 = vpop.eup %8685  ;;  %8092 = vmatmul.f32.vlgmr.msra.gmra.mxu3 %v8684_v35 }
 0xc3f   :  { %8112 = vmatmul.f32.vlgmr.msra.gmra.mxu0 %v8686_v43 }
 0xcbc   :  { %v8113_v51 = vpop.f32.mrf.mxu0 }
 0xcc1   :  { %v8093_v36 = vpop.f32.mrf.mxu3 }
 0xcc2   :  { %v8094_v52 = vadd.f32 %v8678_v0, %v8093_v36 }
 0xcc4   :  { %v8114_v40 = vadd.f32 %v8113_v51, %v8094_v52 }
 0xcc6   :  { %8687 = vtanh.f32 %v8114_v40 }
 0xccc   :  { %v8688_v9 = vpop.eup %8687 }
 0xccd   :  { %v8117_v32 = vadd.f32 0.54132485, %v8688_v9 }
 0xccf   :  { %v8119_v58 = vand.u32 2147483647, %v8117_v32  ;;  %v8118_v7 = vmax.f32 %v8117_v32, 0.0 }
 0xcd1   :  { %v8120_v45 = vsub.f32 0.0, %v8119_v58 }
 0xcd3   :  { %v8121_v13 = vmul.f32 1.442695, %v8120_v45 }
 0xcd5   :  { %8689 = vpow2.f32 %v8121_v13 }
 0xcdb   :  { %v8690_v14 = vpop.eup %8689 }
 0xcdc   :  { %v8123_v34 = vadd.f32 1.0, %v8690_v14 }
 0xcde   :  { %8691 = vlog2.f32 %v8123_v34 }
 0xce4   :  { %v8692_v55 = vpop.eup %8691 }
 0xce5   :  { %v8125_v37 = vmul.f32 0.6931472, %v8692_v55 }
 0xce7   :  { %v8126_v8 = vadd.f32 %v8125_v37, %v8118_v7 }
 0xce9   :  { %v8127_v63 = vmax.f32 %v8126_v8, 0.0001 }
 0xceb   :  { %v8131_v12 = vsel %vm8130_vm14, %v8688_v9, %v8127_v63 }
 0xcec   :  { %8133 = vst.msk [vmem:[%s11691_s12] sm:$0x3] %vm8132_vm15, %v8131_v12 }
 0xced   :  { %8138 = vsyncpa [#allocation3], 1 }
 0xcee   :  { %8139 = vsyncpa [#allocation5], 1 }
 0xcef   :  { %8140 = vsyncpa [#allocation8], 1 }
 0xcf0   :  { %8141 = vsyncpa [#allocation11], 1 }
 0xcf1   :  { %8142 = vsyncpa [#allocation14], 1 }
 0xcf2   :  { %8143 = vsyncpa [#allocation17], 1 }
 0xcf3   :  { %8144 = vsyncpa [#allocation20], 1 }
 0xcf4   :  { %8145 = vsyncpa [#allocation23], 1 }
 0xcf5   :  { %8146 = vsyncpa [#allocation26], 1 }
 0xcf6   :  { %8147 = vsyncpa [#allocation29], 1 }

</bundles_post_ra>
